<compile_context>
chip_gen: v5e
topology: v5e:2x2
jax: 0.10.0
libtpu: 0.0.40
codegen_flags: <defaults>
</compile_context>

<pallas_src>
import numpy as np

import jax
import jax.numpy as jnp
from jax.experimental import pallas as pl
from jax.experimental.pallas import tpu as pltpu


# ---------------------------------------------------------------------------
# Fully fused forward kernel (one grid step = one batch tile of `bn` images)
# ---------------------------------------------------------------------------
def _net_kernel(xp_ref, bc1_ref, b1_ref, gc2_ref, b2_ref,
                wfc1_ref, bfc1_ref, wfc2_ref, bfc2_ref, out_ref):
    bn = out_ref.shape[0]                       # images in this tile (static)

    xp = xp_ref[...]                            # (2, 14, bn, 28)  rows split by parity
    bc1 = bc1_ref[...]                          # (5, 28, 256)     conv1 banded weights
    gc2 = gc2_ref[...]                          # (5, 128, 256)    conv2 banded weights
    wfc1 = wfc1_ref[...]                        # (512, 64)        fc1 (flatten folded in)

    # ---- conv1 (1->10, k=5) + 2x2 max-pool + relu -------------------------
    # Z_q[(ph, n), r*128 + pw*10 + co] = conv1(x)[n, co, 2*ph + q, 2*pw + r]
    def conv1_half(q):
        acc = None
        for i in range(5):                      # 5 row taps
            t = q + i
            xs = xp[t % 2, t // 2:t // 2 + 12]  # (12, bn, 28): rows 2*ph + q + i
            xs = xs.reshape(12 * bn, 28)
            c = jnp.dot(xs, bc1[i], preferred_element_type=jnp.float32)
            acc = c if acc is None else acc + c
        return acc                              # (12*bn, 256)

    z0 = conv1_half(0)
    z1 = conv1_half(1)
    pooled1 = jnp.maximum(jnp.maximum(z0[:, :128], z0[:, 128:]),
                          jnp.maximum(z1[:, :128], z1[:, 128:]))
    f1 = jnp.maximum(pooled1 + b1_ref[...], 0.0)    # (12*bn, 128); lanes = pw*10+co

    # TODO(synk): nn.Dropout2d on the conv2 path is identity (eval mode).

    # ---- conv2 (10->20, k=5) + 2x2 max-pool + relu ------------------------
    # Compute all 8 conv2 output rows at once: 5 slab matmuls instead of 40.
    # Z2[(r, n), r2*128 + pw2*20 + c2] = conv2(f1)[n, c2, r, 2*pw2 + r2]
    z2 = None
    for i in range(5):                          # 5 row taps
        slab = f1[i * bn:(i + 8) * bn, :]       # (8*bn, 128), contiguous row blocks
        c = jnp.dot(slab, gc2[i], preferred_element_type=jnp.float32)
        z2 = c if z2 is None else z2 + c        # (8*bn, 256)
    zc = jnp.maximum(z2[:, :128], z2[:, 128:])  # column pooling folded into lanes

    f2 = []
    for ph2 in range(4):                        # row pooling: adjacent row blocks
        m = jnp.maximum(zc[(2 * ph2) * bn:(2 * ph2 + 1) * bn, :],
                        zc[(2 * ph2 + 1) * bn:(2 * ph2 + 2) * bn, :])
        f2.append(jnp.maximum(m + b2_ref[...], 0.0))      # (bn, 128)
    f2cat = jnp.concatenate(f2, axis=-1)                  # (bn, 512)

    # ---- fc1 + relu (NCHW flatten folded into wfc1; single matmul) --------
    h = jnp.maximum(jnp.dot(f2cat, wfc1, preferred_element_type=jnp.float32)
                    + bfc1_ref[...], 0.0)                 # (bn, 64); lanes >= 50 are 0

    # TODO(synk): F.dropout after fc1 is identity (eval mode).

    # ---- fc2 + log_softmax (lane-dense 128-wide output) -------------------
    logits = jnp.dot(h, wfc2_ref[...],
                     preferred_element_type=jnp.float32) + bfc2_ref[...]   # (bn, 128)
    mx = jnp.max(logits, axis=-1, keepdims=True)
    s = logits - mx
    lse = jnp.log(jnp.sum(jnp.exp(s), axis=-1, keepdims=True))
    out_ref[...] = s - lse


# ---------------------------------------------------------------------------
# Host-side parameter prep: fold taps / pooling offsets / flatten permutation
# into static "banded" weight matrices (tiny, built once per call).
# ---------------------------------------------------------------------------
def _prepare(params):
    w1 = params["conv1_w"][:, 0]                 # (10, 5, 5)
    b1 = params["conv1_b"]                       # (10,)
    w2 = params["conv2_w"]                       # (20, 10, 5, 5)
    b2 = params["conv2_b"]                       # (20,)
    fw1, fb1 = params["fc1_w"], params["fc1_b"]  # (50, 320), (50,)
    fw2, fb2 = params["fc2_w"], params["fc2_b"]  # (10, 50),  (10,)

    lane = np.arange(128)

    # conv1: Bc1[i][w, r*128 + pw*10 + co] = w1[co, i, w - (2*pw + r)]
    i_ = np.arange(5)[:, None, None]
    w_ = np.arange(28)[None, :, None]
    l_ = np.arange(256)[None, None, :]
    r_, rem = l_ // 128, l_ % 128
    pw, co = rem // 10, rem % 10
    j1 = w_ - (2 * pw + r_)
    ok1 = (rem < 120) & (j1 >= 0) & (j1 < 5)
    bc1 = jnp.where(ok1, w1[co, i_, np.clip(j1, 0, 4)], 0.0)          # (5, 28, 256)
    b1row = jnp.where(lane < 120, b1[lane % 10], 0.0)[None, :]        # (1, 128)

    # conv2: Gc2[i][pw*10 + c1, r2*128 + pw2*20 + c2] = w2[c2, c1, i, pw - (2*pw2 + r2)]
    row = np.arange(128)[None, :, None]
    pw_, c1 = row // 10, row % 10
    r2, rem2 = l_ // 128, l_ % 128
    pw2, c2 = rem2 // 20, rem2 % 20
    j2 = pw_ - (2 * pw2 + r2)
    ok2 = (row < 120) & (rem2 < 80) & (j2 >= 0) & (j2 < 5)
    gc2 = jnp.where(ok2, w2[c2, c1, i_, np.clip(j2, 0, 4)], 0.0)      # (5, 128, 256)
    b2row = jnp.where(lane < 80, b2[lane % 20], 0.0)[None, :]         # (1, 128)

    # fc1 with PyTorch flatten (feat = c2*16 + ph2*4 + pw2) folded in; out 50 -> 64.
    # Built as (4, 128, 64) then flattened to (512, 64) to match the in-kernel
    # lane concat of the 4 pooled conv2 row blocks.
    ph2_ = np.arange(4)[:, None, None]
    rowf = np.arange(128)[None, :, None]
    u_ = np.arange(64)[None, None, :]
    pw2f, c2f = rowf // 20, rowf % 20
    feat = np.clip(c2f * 16 + ph2_ * 4 + pw2f, 0, 319)
    okf = (rowf < 80) & (u_ < 50)
    wfc1 = jnp.where(okf, fw1[np.clip(u_, 0, 49), feat], 0.0)         # (4, 128, 64)
    wfc1 = wfc1.reshape(512, 64)
    u = np.arange(64)
    bfc1 = jnp.where(u < 50, fb1[np.clip(u, 0, 49)], 0.0)[None, :]    # (1, 64)

    # fc2 padded to a lane-dense 128-wide output; padded logits get -1e30 so
    # log_softmax ignores them and the output store is a full-lane store.
    wfc2 = jnp.zeros((64, 128), jnp.float32).at[:50, :10].set(fw2.T)  # (64, 128)
    bfc2 = jnp.full((128,), -1e30, jnp.float32).at[:10].set(fb2)[None, :]   # (1, 128)

    return bc1, b1row, gc2, b2row, wfc1, bfc1, wfc2, bfc2


# ---------------------------------------------------------------------------
# Wrapper: batch-tiled, single fused pallas_call
# ---------------------------------------------------------------------------
def net_forward(x, params, *, block_n=32):
    assert block_n % 8 == 0, "batch tile must be a multiple of 8 (sublane tile)"
    n = x.shape[0]
    bc1, b1row, gc2, b2row, wfc1, bfc1, wfc2, bfc2 = _prepare(params)

    # Pad batch to a multiple of the tile and split input rows by parity so
    # every in-kernel access is a static, stride-free slice:
    #   xp[p, k, n, w] = x[n, 0, 2*k + p, w]
    pad = -n % block_n
    x2 = x.reshape(n, 28, 28)
    if pad:
        x2 = jnp.concatenate([x2, jnp.zeros((pad, 28, 28), x2.dtype)], axis=0)
    n_pad = n + pad
    xp = x2.transpose(1, 0, 2).reshape(14, 2, n_pad, 28).transpose(1, 0, 2, 3)

    out = pl.pallas_call(
        _net_kernel,
        out_shape=jax.ShapeDtypeStruct((n_pad, 128), jnp.float32),
        grid=(n_pad // block_n,),
        in_specs=[
            pl.BlockSpec((2, 14, block_n, 28), lambda b: (0, 0, b, 0)),  # xp
            pl.BlockSpec((5, 28, 256), lambda b: (0, 0, 0)),             # bc1
            pl.BlockSpec((1, 128), lambda b: (0, 0)),                    # b1row
            pl.BlockSpec((5, 128, 256), lambda b: (0, 0, 0)),            # gc2
            pl.BlockSpec((1, 128), lambda b: (0, 0)),                    # b2row
            pl.BlockSpec((512, 64), lambda b: (0, 0)),                   # wfc1
            pl.BlockSpec((1, 64), lambda b: (0, 0)),                     # bfc1
            pl.BlockSpec((64, 128), lambda b: (0, 0)),                   # wfc2
            pl.BlockSpec((1, 128), lambda b: (0, 0)),                    # bfc2
        ],
        out_specs=pl.BlockSpec((block_n, 128), lambda b: (b, 0)),
        compiler_params=pltpu.CompilerParams(
            dimension_semantics=("parallel",),
            vmem_limit_bytes=32 * 1024 * 1024),
    )(xp, bc1, b1row, gc2, b2row, wfc1, bfc1, wfc2, bfc2)
    return out[:n, :10]


# ---------------------------------------------------------------------------
# Deterministic parameter init (PyTorch-style uniform(-1/sqrt(fan_in), +))
# ---------------------------------------------------------------------------
def init_params(key):
    ks = jax.random.split(key, 8)

    def u(k, shape, fan_in):
        bound = 1.0 / float(fan_in) ** 0.5
        return jax.random.uniform(k, shape, jnp.float32, -bound, bound)

    return dict(
        conv1_w=u(ks[0], (10, 1, 5, 5), 25),
        conv1_b=u(ks[1], (10,), 25),
        conv2_w=u(ks[2], (20, 10, 5, 5), 250),
        conv2_b=u(ks[3], (20,), 250),
        fc1_w=u(ks[4], (50, 320), 320),
        fc1_b=u(ks[5], (50,), 320),
        fc2_w=u(ks[6], (10, 50), 50),
        fc2_b=u(ks[7], (10,), 50),
    )


# ---------------------------------------------------------------------------
# Pure-JAX reference (sanity check against the fused Pallas path)
# ---------------------------------------------------------------------------
def net_forward_ref(x, params):
    hp = jax.lax.Precision.HIGHEST
    dn = ("NCHW", "OIHW", "NCHW")
    y = jax.lax.conv_general_dilated(x, params["conv1_w"], (1, 1), "VALID",
                                     dimension_numbers=dn, precision=hp)
    y = y + params["conv1_b"][None, :, None, None]
    y = jax.lax.reduce_window(y, -jnp.inf, jax.lax.max, (1, 1, 2, 2), (1, 1, 2, 2), "VALID")
    y = jnp.maximum(y, 0.0)
    y = jax.lax.conv_general_dilated(y, params["conv2_w"], (1, 1), "VALID",
                                     dimension_numbers=dn, precision=hp)
    y = y + params["conv2_b"][None, :, None, None]
    y = jax.lax.reduce_window(y, -jnp.inf, jax.lax.max, (1, 1, 2, 2), (1, 1, 2, 2), "VALID")
    y = jnp.maximum(y, 0.0)
    y = y.reshape(y.shape[0], -1)
    y = jnp.maximum(jnp.dot(y, params["fc1_w"].T, precision=hp) + params["fc1_b"], 0.0)
    logits = jnp.dot(y, params["fc2_w"].T, precision=hp) + params["fc2_b"]
    return jax.nn.log_softmax(logits, axis=-1)


if __name__ == "__main__":
    key = jax.random.PRNGKey(0)
    k_x, k_p = jax.random.split(key)

    # 28x28 single-channel input is forced by fc1's 320 = 20*4*4 flatten.
    # N=48 with block_n=32 exercises both batch padding and a multi-step grid.
    x = jax.random.normal(k_x, (48, 1, 28, 28), jnp.float32)
    params = init_params(k_p)

    fwd = jax.jit(net_forward)
    out = jax.block_until_ready(fwd(x, params))
    assert out.shape == (48, 10) and out.dtype == jnp.float32

    ref = net_forward_ref(x, params)
    max_err = float(jnp.max(jnp.abs(out - ref)))
    assert max_err < 1e-2, f"mismatch vs reference: {max_err}"
    # log-probabilities must exponentiate to a distribution
    assert bool(jnp.allclose(jnp.sum(jnp.exp(out), axis=-1), 1.0, atol=1e-3))

    print("KERNEL_OK")
</pallas_src>

<mosaic_0001>
module attributes {stable_mosaic.version = 11 : i64} {
  func.func @_net_kernel(%arg0: i32, %arg1: memref<2x14x32x28xf32, #tpu.memory_space<vmem>>, %arg2: memref<5x28x256xf32, #tpu.memory_space<vmem>>, %arg3: memref<1x128xf32, #tpu.memory_space<vmem>>, %arg4: memref<5x128x256xf32, #tpu.memory_space<vmem>>, %arg5: memref<1x128xf32, #tpu.memory_space<vmem>>, %arg6: memref<512x64xf32, #tpu.memory_space<vmem>>, %arg7: memref<1x64xf32, #tpu.memory_space<vmem>>, %arg8: memref<64x128xf32, #tpu.memory_space<vmem>>, %arg9: memref<1x128xf32, #tpu.memory_space<vmem>>, %arg10: memref<32x128xf32, #tpu.memory_space<vmem>>) attributes {dimension_semantics = [#tpu.dimension_semantics<parallel>], iteration_bounds = array<i64: 2>, scalar_prefetch = 0 : i64, scratch_operands = 0 : i64, tpu.core_type = #tpu.core_type<tc>, window_params = [{transform_indices = @transform_0, window_bounds = array<i64: 2, 14, 32, 28>}, {pipeline_mode = #tpu.pipeline_mode<synchronous>, transform_indices = @transform_1, window_bounds = array<i64: 5, 28, 256>}, {pipeline_mode = #tpu.pipeline_mode<synchronous>, transform_indices = @transform_2, window_bounds = array<i64: 1, 128>}, {pipeline_mode = #tpu.pipeline_mode<synchronous>, transform_indices = @transform_3, window_bounds = array<i64: 5, 128, 256>}, {pipeline_mode = #tpu.pipeline_mode<synchronous>, transform_indices = @transform_4, window_bounds = array<i64: 1, 128>}, {pipeline_mode = #tpu.pipeline_mode<synchronous>, transform_indices = @transform_5, window_bounds = array<i64: 512, 64>}, {pipeline_mode = #tpu.pipeline_mode<synchronous>, transform_indices = @transform_6, window_bounds = array<i64: 1, 64>}, {pipeline_mode = #tpu.pipeline_mode<synchronous>, transform_indices = @transform_7, window_bounds = array<i64: 64, 128>}, {pipeline_mode = #tpu.pipeline_mode<synchronous>, transform_indices = @transform_8, window_bounds = array<i64: 1, 128>}, {transform_indices = @transform_9, window_bounds = array<i64: 32, 128>}]} {
    %c0 = arith.constant 0 : index
    %c0_0 = arith.constant 0 : index
    %c0_1 = arith.constant 0 : index
    %c0_2 = arith.constant 0 : index
    %0 = vector.load %arg1[%c0, %c0_0, %c0_1, %c0_2] : memref<2x14x32x28xf32, #tpu.memory_space<vmem>>, vector<2x14x32x28xf32>
    %c0_3 = arith.constant 0 : index
    %c0_4 = arith.constant 0 : index
    %c0_5 = arith.constant 0 : index
    %1 = vector.load %arg2[%c0_3, %c0_4, %c0_5] : memref<5x28x256xf32, #tpu.memory_space<vmem>>, vector<5x28x256xf32>
    %c0_6 = arith.constant 0 : index
    %c0_7 = arith.constant 0 : index
    %c0_8 = arith.constant 0 : index
    %2 = vector.load %arg4[%c0_6, %c0_7, %c0_8] : memref<5x128x256xf32, #tpu.memory_space<vmem>>, vector<5x128x256xf32>
    %c0_9 = arith.constant 0 : index
    %c0_10 = arith.constant 0 : index
    %3 = vector.load %arg6[%c0_9, %c0_10] : memref<512x64xf32, #tpu.memory_space<vmem>>, vector<512x64xf32>
    %4 = vector.extract_strided_slice %0 {offsets = [0, 0, 0, 0], sizes = [1, 12, 32, 28], strides = [1, 1, 1, 1]} : vector<2x14x32x28xf32> to vector<1x12x32x28xf32>
    %5 = vector.shape_cast %4 : vector<1x12x32x28xf32> to vector<12x32x28xf32>
    %6 = vector.shape_cast %5 : vector<12x32x28xf32> to vector<384x28xf32>
    %7 = vector.extract_strided_slice %1 {offsets = [0, 0, 0], sizes = [1, 28, 256], strides = [1, 1, 1]} : vector<5x28x256xf32> to vector<1x28x256xf32>
    %8 = vector.shape_cast %7 : vector<1x28x256xf32> to vector<28x256xf32>
    %cst = arith.constant dense<0.000000e+00> : vector<384x256xf32>
    %9 = tpu.matmul %6, %8, %cst {dimension_numbers = #tpu.dot_dimension_numbers<[1], [0], [0], [1], [0, 0, 1, 1], [], []>} : vector<384x28xf32>, vector<28x256xf32>, vector<384x256xf32> -> vector<384x256xf32>
    %10 = vector.extract_strided_slice %0 {offsets = [1, 0, 0, 0], sizes = [1, 12, 32, 28], strides = [1, 1, 1, 1]} : vector<2x14x32x28xf32> to vector<1x12x32x28xf32>
    %11 = vector.shape_cast %10 : vector<1x12x32x28xf32> to vector<12x32x28xf32>
    %12 = vector.shape_cast %11 : vector<12x32x28xf32> to vector<384x28xf32>
    %13 = vector.extract_strided_slice %1 {offsets = [1, 0, 0], sizes = [1, 28, 256], strides = [1, 1, 1]} : vector<5x28x256xf32> to vector<1x28x256xf32>
    %14 = vector.shape_cast %13 : vector<1x28x256xf32> to vector<28x256xf32>
    %cst_11 = arith.constant dense<0.000000e+00> : vector<384x256xf32>
    %15 = tpu.matmul %12, %14, %cst_11 {dimension_numbers = #tpu.dot_dimension_numbers<[1], [0], [0], [1], [0, 0, 1, 1], [], []>} : vector<384x28xf32>, vector<28x256xf32>, vector<384x256xf32> -> vector<384x256xf32>
    %16 = arith.addf %9, %15 : vector<384x256xf32>
    %17 = vector.extract_strided_slice %0 {offsets = [0, 1, 0, 0], sizes = [1, 12, 32, 28], strides = [1, 1, 1, 1]} : vector<2x14x32x28xf32> to vector<1x12x32x28xf32>
    %18 = vector.shape_cast %17 : vector<1x12x32x28xf32> to vector<12x32x28xf32>
    %19 = vector.shape_cast %18 : vector<12x32x28xf32> to vector<384x28xf32>
    %20 = vector.extract_strided_slice %1 {offsets = [2, 0, 0], sizes = [1, 28, 256], strides = [1, 1, 1]} : vector<5x28x256xf32> to vector<1x28x256xf32>
    %21 = vector.shape_cast %20 : vector<1x28x256xf32> to vector<28x256xf32>
    %cst_12 = arith.constant dense<0.000000e+00> : vector<384x256xf32>
    %22 = tpu.matmul %19, %21, %cst_12 {dimension_numbers = #tpu.dot_dimension_numbers<[1], [0], [0], [1], [0, 0, 1, 1], [], []>} : vector<384x28xf32>, vector<28x256xf32>, vector<384x256xf32> -> vector<384x256xf32>
    %23 = arith.addf %16, %22 : vector<384x256xf32>
    %24 = vector.extract_strided_slice %0 {offsets = [1, 1, 0, 0], sizes = [1, 12, 32, 28], strides = [1, 1, 1, 1]} : vector<2x14x32x28xf32> to vector<1x12x32x28xf32>
    %25 = vector.shape_cast %24 : vector<1x12x32x28xf32> to vector<12x32x28xf32>
    %26 = vector.shape_cast %25 : vector<12x32x28xf32> to vector<384x28xf32>
    %27 = vector.extract_strided_slice %1 {offsets = [3, 0, 0], sizes = [1, 28, 256], strides = [1, 1, 1]} : vector<5x28x256xf32> to vector<1x28x256xf32>
    %28 = vector.shape_cast %27 : vector<1x28x256xf32> to vector<28x256xf32>
    %cst_13 = arith.constant dense<0.000000e+00> : vector<384x256xf32>
    %29 = tpu.matmul %26, %28, %cst_13 {dimension_numbers = #tpu.dot_dimension_numbers<[1], [0], [0], [1], [0, 0, 1, 1], [], []>} : vector<384x28xf32>, vector<28x256xf32>, vector<384x256xf32> -> vector<384x256xf32>
    %30 = arith.addf %23, %29 : vector<384x256xf32>
    %31 = vector.extract_strided_slice %0 {offsets = [0, 2, 0, 0], sizes = [1, 12, 32, 28], strides = [1, 1, 1, 1]} : vector<2x14x32x28xf32> to vector<1x12x32x28xf32>
    %32 = vector.shape_cast %31 : vector<1x12x32x28xf32> to vector<12x32x28xf32>
    %33 = vector.shape_cast %32 : vector<12x32x28xf32> to vector<384x28xf32>
    %34 = vector.extract_strided_slice %1 {offsets = [4, 0, 0], sizes = [1, 28, 256], strides = [1, 1, 1]} : vector<5x28x256xf32> to vector<1x28x256xf32>
    %35 = vector.shape_cast %34 : vector<1x28x256xf32> to vector<28x256xf32>
    %cst_14 = arith.constant dense<0.000000e+00> : vector<384x256xf32>
    %36 = tpu.matmul %33, %35, %cst_14 {dimension_numbers = #tpu.dot_dimension_numbers<[1], [0], [0], [1], [0, 0, 1, 1], [], []>} : vector<384x28xf32>, vector<28x256xf32>, vector<384x256xf32> -> vector<384x256xf32>
    %37 = arith.addf %30, %36 : vector<384x256xf32>
    %38 = vector.extract_strided_slice %0 {offsets = [1, 0, 0, 0], sizes = [1, 12, 32, 28], strides = [1, 1, 1, 1]} : vector<2x14x32x28xf32> to vector<1x12x32x28xf32>
    %39 = vector.shape_cast %38 : vector<1x12x32x28xf32> to vector<12x32x28xf32>
    %40 = vector.shape_cast %39 : vector<12x32x28xf32> to vector<384x28xf32>
    %41 = vector.extract_strided_slice %1 {offsets = [0, 0, 0], sizes = [1, 28, 256], strides = [1, 1, 1]} : vector<5x28x256xf32> to vector<1x28x256xf32>
    %42 = vector.shape_cast %41 : vector<1x28x256xf32> to vector<28x256xf32>
    %cst_15 = arith.constant dense<0.000000e+00> : vector<384x256xf32>
    %43 = tpu.matmul %40, %42, %cst_15 {dimension_numbers = #tpu.dot_dimension_numbers<[1], [0], [0], [1], [0, 0, 1, 1], [], []>} : vector<384x28xf32>, vector<28x256xf32>, vector<384x256xf32> -> vector<384x256xf32>
    %44 = vector.extract_strided_slice %0 {offsets = [0, 1, 0, 0], sizes = [1, 12, 32, 28], strides = [1, 1, 1, 1]} : vector<2x14x32x28xf32> to vector<1x12x32x28xf32>
    %45 = vector.shape_cast %44 : vector<1x12x32x28xf32> to vector<12x32x28xf32>
    %46 = vector.shape_cast %45 : vector<12x32x28xf32> to vector<384x28xf32>
    %47 = vector.extract_strided_slice %1 {offsets = [1, 0, 0], sizes = [1, 28, 256], strides = [1, 1, 1]} : vector<5x28x256xf32> to vector<1x28x256xf32>
    %48 = vector.shape_cast %47 : vector<1x28x256xf32> to vector<28x256xf32>
    %cst_16 = arith.constant dense<0.000000e+00> : vector<384x256xf32>
    %49 = tpu.matmul %46, %48, %cst_16 {dimension_numbers = #tpu.dot_dimension_numbers<[1], [0], [0], [1], [0, 0, 1, 1], [], []>} : vector<384x28xf32>, vector<28x256xf32>, vector<384x256xf32> -> vector<384x256xf32>
    %50 = arith.addf %43, %49 : vector<384x256xf32>
    %51 = vector.extract_strided_slice %0 {offsets = [1, 1, 0, 0], sizes = [1, 12, 32, 28], strides = [1, 1, 1, 1]} : vector<2x14x32x28xf32> to vector<1x12x32x28xf32>
    %52 = vector.shape_cast %51 : vector<1x12x32x28xf32> to vector<12x32x28xf32>
    %53 = vector.shape_cast %52 : vector<12x32x28xf32> to vector<384x28xf32>
    %54 = vector.extract_strided_slice %1 {offsets = [2, 0, 0], sizes = [1, 28, 256], strides = [1, 1, 1]} : vector<5x28x256xf32> to vector<1x28x256xf32>
    %55 = vector.shape_cast %54 : vector<1x28x256xf32> to vector<28x256xf32>
    %cst_17 = arith.constant dense<0.000000e+00> : vector<384x256xf32>
    %56 = tpu.matmul %53, %55, %cst_17 {dimension_numbers = #tpu.dot_dimension_numbers<[1], [0], [0], [1], [0, 0, 1, 1], [], []>} : vector<384x28xf32>, vector<28x256xf32>, vector<384x256xf32> -> vector<384x256xf32>
    %57 = arith.addf %50, %56 : vector<384x256xf32>
    %58 = vector.extract_strided_slice %0 {offsets = [0, 2, 0, 0], sizes = [1, 12, 32, 28], strides = [1, 1, 1, 1]} : vector<2x14x32x28xf32> to vector<1x12x32x28xf32>
    %59 = vector.shape_cast %58 : vector<1x12x32x28xf32> to vector<12x32x28xf32>
    %60 = vector.shape_cast %59 : vector<12x32x28xf32> to vector<384x28xf32>
    %61 = vector.extract_strided_slice %1 {offsets = [3, 0, 0], sizes = [1, 28, 256], strides = [1, 1, 1]} : vector<5x28x256xf32> to vector<1x28x256xf32>
    %62 = vector.shape_cast %61 : vector<1x28x256xf32> to vector<28x256xf32>
    %cst_18 = arith.constant dense<0.000000e+00> : vector<384x256xf32>
    %63 = tpu.matmul %60, %62, %cst_18 {dimension_numbers = #tpu.dot_dimension_numbers<[1], [0], [0], [1], [0, 0, 1, 1], [], []>} : vector<384x28xf32>, vector<28x256xf32>, vector<384x256xf32> -> vector<384x256xf32>
    %64 = arith.addf %57, %63 : vector<384x256xf32>
    %65 = vector.extract_strided_slice %0 {offsets = [1, 2, 0, 0], sizes = [1, 12, 32, 28], strides = [1, 1, 1, 1]} : vector<2x14x32x28xf32> to vector<1x12x32x28xf32>
    %66 = vector.shape_cast %65 : vector<1x12x32x28xf32> to vector<12x32x28xf32>
    %67 = vector.shape_cast %66 : vector<12x32x28xf32> to vector<384x28xf32>
    %68 = vector.extract_strided_slice %1 {offsets = [4, 0, 0], sizes = [1, 28, 256], strides = [1, 1, 1]} : vector<5x28x256xf32> to vector<1x28x256xf32>
    %69 = vector.shape_cast %68 : vector<1x28x256xf32> to vector<28x256xf32>
    %cst_19 = arith.constant dense<0.000000e+00> : vector<384x256xf32>
    %70 = tpu.matmul %67, %69, %cst_19 {dimension_numbers = #tpu.dot_dimension_numbers<[1], [0], [0], [1], [0, 0, 1, 1], [], []>} : vector<384x28xf32>, vector<28x256xf32>, vector<384x256xf32> -> vector<384x256xf32>
    %71 = arith.addf %64, %70 : vector<384x256xf32>
    %72 = vector.extract_strided_slice %37 {offsets = [0, 0], sizes = [384, 128], strides = [1, 1]} : vector<384x256xf32> to vector<384x128xf32>
    %73 = vector.extract_strided_slice %37 {offsets = [0, 128], sizes = [384, 128], strides = [1, 1]} : vector<384x256xf32> to vector<384x128xf32>
    %74 = arith.maximumf %72, %73 : vector<384x128xf32>
    %75 = vector.extract_strided_slice %71 {offsets = [0, 0], sizes = [384, 128], strides = [1, 1]} : vector<384x256xf32> to vector<384x128xf32>
    %76 = vector.extract_strided_slice %71 {offsets = [0, 128], sizes = [384, 128], strides = [1, 1]} : vector<384x256xf32> to vector<384x128xf32>
    %77 = arith.maximumf %75, %76 : vector<384x128xf32>
    %78 = arith.maximumf %74, %77 : vector<384x128xf32>
    %c0_20 = arith.constant 0 : index
    %c0_21 = arith.constant 0 : index
    %79 = vector.load %arg3[%c0_20, %c0_21] : memref<1x128xf32, #tpu.memory_space<vmem>>, vector<1x128xf32>
    %80 = vector.broadcast %79 : vector<1x128xf32> to vector<384x128xf32>
    %81 = arith.addf %78, %80 : vector<384x128xf32>
    %cst_22 = arith.constant 0.000000e+00 : f32
    %82 = vector.broadcast %cst_22 : f32 to vector<384x128xf32>
    %83 = arith.maximumf %81, %82 : vector<384x128xf32>
    %84 = vector.extract_strided_slice %83 {offsets = [0, 0], sizes = [256, 128], strides = [1, 1]} : vector<384x128xf32> to vector<256x128xf32>
    %85 = vector.extract_strided_slice %2 {offsets = [0, 0, 0], sizes = [1, 128, 256], strides = [1, 1, 1]} : vector<5x128x256xf32> to vector<1x128x256xf32>
    %86 = vector.shape_cast %85 : vector<1x128x256xf32> to vector<128x256xf32>
    %cst_23 = arith.constant dense<0.000000e+00> : vector<256x256xf32>
    %87 = tpu.matmul %84, %86, %cst_23 {dimension_numbers = #tpu.dot_dimension_numbers<[1], [0], [0], [1], [0, 0, 1, 1], [], []>} : vector<256x128xf32>, vector<128x256xf32>, vector<256x256xf32> -> vector<256x256xf32>
    %88 = vector.extract_strided_slice %83 {offsets = [32, 0], sizes = [256, 128], strides = [1, 1]} : vector<384x128xf32> to vector<256x128xf32>
    %89 = vector.extract_strided_slice %2 {offsets = [1, 0, 0], sizes = [1, 128, 256], strides = [1, 1, 1]} : vector<5x128x256xf32> to vector<1x128x256xf32>
    %90 = vector.shape_cast %89 : vector<1x128x256xf32> to vector<128x256xf32>
    %cst_24 = arith.constant dense<0.000000e+00> : vector<256x256xf32>
    %91 = tpu.matmul %88, %90, %cst_24 {dimension_numbers = #tpu.dot_dimension_numbers<[1], [0], [0], [1], [0, 0, 1, 1], [], []>} : vector<256x128xf32>, vector<128x256xf32>, vector<256x256xf32> -> vector<256x256xf32>
    %92 = arith.addf %87, %91 : vector<256x256xf32>
    %93 = vector.extract_strided_slice %83 {offsets = [64, 0], sizes = [256, 128], strides = [1, 1]} : vector<384x128xf32> to vector<256x128xf32>
    %94 = vector.extract_strided_slice %2 {offsets = [2, 0, 0], sizes = [1, 128, 256], strides = [1, 1, 1]} : vector<5x128x256xf32> to vector<1x128x256xf32>
    %95 = vector.shape_cast %94 : vector<1x128x256xf32> to vector<128x256xf32>
    %cst_25 = arith.constant dense<0.000000e+00> : vector<256x256xf32>
    %96 = tpu.matmul %93, %95, %cst_25 {dimension_numbers = #tpu.dot_dimension_numbers<[1], [0], [0], [1], [0, 0, 1, 1], [], []>} : vector<256x128xf32>, vector<128x256xf32>, vector<256x256xf32> -> vector<256x256xf32>
    %97 = arith.addf %92, %96 : vector<256x256xf32>
    %98 = vector.extract_strided_slice %83 {offsets = [96, 0], sizes = [256, 128], strides = [1, 1]} : vector<384x128xf32> to vector<256x128xf32>
    %99 = vector.extract_strided_slice %2 {offsets = [3, 0, 0], sizes = [1, 128, 256], strides = [1, 1, 1]} : vector<5x128x256xf32> to vector<1x128x256xf32>
    %100 = vector.shape_cast %99 : vector<1x128x256xf32> to vector<128x256xf32>
    %cst_26 = arith.constant dense<0.000000e+00> : vector<256x256xf32>
    %101 = tpu.matmul %98, %100, %cst_26 {dimension_numbers = #tpu.dot_dimension_numbers<[1], [0], [0], [1], [0, 0, 1, 1], [], []>} : vector<256x128xf32>, vector<128x256xf32>, vector<256x256xf32> -> vector<256x256xf32>
    %102 = arith.addf %97, %101 : vector<256x256xf32>
    %103 = vector.extract_strided_slice %83 {offsets = [128, 0], sizes = [256, 128], strides = [1, 1]} : vector<384x128xf32> to vector<256x128xf32>
    %104 = vector.extract_strided_slice %2 {offsets = [4, 0, 0], sizes = [1, 128, 256], strides = [1, 1, 1]} : vector<5x128x256xf32> to vector<1x128x256xf32>
    %105 = vector.shape_cast %104 : vector<1x128x256xf32> to vector<128x256xf32>
    %cst_27 = arith.constant dense<0.000000e+00> : vector<256x256xf32>
    %106 = tpu.matmul %103, %105, %cst_27 {dimension_numbers = #tpu.dot_dimension_numbers<[1], [0], [0], [1], [0, 0, 1, 1], [], []>} : vector<256x128xf32>, vector<128x256xf32>, vector<256x256xf32> -> vector<256x256xf32>
    %107 = arith.addf %102, %106 : vector<256x256xf32>
    %108 = vector.extract_strided_slice %107 {offsets = [0, 0], sizes = [256, 128], strides = [1, 1]} : vector<256x256xf32> to vector<256x128xf32>
    %109 = vector.extract_strided_slice %107 {offsets = [0, 128], sizes = [256, 128], strides = [1, 1]} : vector<256x256xf32> to vector<256x128xf32>
    %110 = arith.maximumf %108, %109 : vector<256x128xf32>
    %111 = vector.extract_strided_slice %110 {offsets = [0, 0], sizes = [32, 128], strides = [1, 1]} : vector<256x128xf32> to vector<32x128xf32>
    %112 = vector.extract_strided_slice %110 {offsets = [32, 0], sizes = [32, 128], strides = [1, 1]} : vector<256x128xf32> to vector<32x128xf32>
    %113 = arith.maximumf %111, %112 : vector<32x128xf32>
    %c0_28 = arith.constant 0 : index
    %c0_29 = arith.constant 0 : index
    %114 = vector.load %arg5[%c0_28, %c0_29] : memref<1x128xf32, #tpu.memory_space<vmem>>, vector<1x128xf32>
    %115 = vector.broadcast %114 : vector<1x128xf32> to vector<32x128xf32>
    %116 = arith.addf %113, %115 : vector<32x128xf32>
    %cst_30 = arith.constant 0.000000e+00 : f32
    %117 = vector.broadcast %cst_30 : f32 to vector<32x128xf32>
    %118 = arith.maximumf %116, %117 : vector<32x128xf32>
    %119 = vector.extract_strided_slice %110 {offsets = [64, 0], sizes = [32, 128], strides = [1, 1]} : vector<256x128xf32> to vector<32x128xf32>
    %120 = vector.extract_strided_slice %110 {offsets = [96, 0], sizes = [32, 128], strides = [1, 1]} : vector<256x128xf32> to vector<32x128xf32>
    %121 = arith.maximumf %119, %120 : vector<32x128xf32>
    %c0_31 = arith.constant 0 : index
    %c0_32 = arith.constant 0 : index
    %122 = vector.load %arg5[%c0_31, %c0_32] : memref<1x128xf32, #tpu.memory_space<vmem>>, vector<1x128xf32>
    %123 = vector.broadcast %122 : vector<1x128xf32> to vector<32x128xf32>
    %124 = arith.addf %121, %123 : vector<32x128xf32>
    %cst_33 = arith.constant 0.000000e+00 : f32
    %125 = vector.broadcast %cst_33 : f32 to vector<32x128xf32>
    %126 = arith.maximumf %124, %125 : vector<32x128xf32>
    %127 = vector.extract_strided_slice %110 {offsets = [128, 0], sizes = [32, 128], strides = [1, 1]} : vector<256x128xf32> to vector<32x128xf32>
    %128 = vector.extract_strided_slice %110 {offsets = [160, 0], sizes = [32, 128], strides = [1, 1]} : vector<256x128xf32> to vector<32x128xf32>
    %129 = arith.maximumf %127, %128 : vector<32x128xf32>
    %c0_34 = arith.constant 0 : index
    %c0_35 = arith.constant 0 : index
    %130 = vector.load %arg5[%c0_34, %c0_35] : memref<1x128xf32, #tpu.memory_space<vmem>>, vector<1x128xf32>
    %131 = vector.broadcast %130 : vector<1x128xf32> to vector<32x128xf32>
    %132 = arith.addf %129, %131 : vector<32x128xf32>
    %cst_36 = arith.constant 0.000000e+00 : f32
    %133 = vector.broadcast %cst_36 : f32 to vector<32x128xf32>
    %134 = arith.maximumf %132, %133 : vector<32x128xf32>
    %135 = vector.extract_strided_slice %110 {offsets = [192, 0], sizes = [32, 128], strides = [1, 1]} : vector<256x128xf32> to vector<32x128xf32>
    %136 = vector.extract_strided_slice %110 {offsets = [224, 0], sizes = [32, 128], strides = [1, 1]} : vector<256x128xf32> to vector<32x128xf32>
    %137 = arith.maximumf %135, %136 : vector<32x128xf32>
    %c0_37 = arith.constant 0 : index
    %c0_38 = arith.constant 0 : index
    %138 = vector.load %arg5[%c0_37, %c0_38] : memref<1x128xf32, #tpu.memory_space<vmem>>, vector<1x128xf32>
    %139 = vector.broadcast %138 : vector<1x128xf32> to vector<32x128xf32>
    %140 = arith.addf %137, %139 : vector<32x128xf32>
    %cst_39 = arith.constant 0.000000e+00 : f32
    %141 = vector.broadcast %cst_39 : f32 to vector<32x128xf32>
    %142 = arith.maximumf %140, %141 : vector<32x128xf32>
    %143 = tpu.concatenate %118, %126, %134, %142 in 1 : vector<32x128xf32>, vector<32x128xf32>, vector<32x128xf32>, vector<32x128xf32> -> vector<32x512xf32>
    %cst_40 = arith.constant dense<0.000000e+00> : vector<32x64xf32>
    %144 = tpu.matmul %143, %3, %cst_40 {dimension_numbers = #tpu.dot_dimension_numbers<[1], [0], [0], [1], [0, 0, 1, 1], [], []>} : vector<32x512xf32>, vector<512x64xf32>, vector<32x64xf32> -> vector<32x64xf32>
    %c0_41 = arith.constant 0 : index
    %c0_42 = arith.constant 0 : index
    %145 = vector.load %arg7[%c0_41, %c0_42] : memref<1x64xf32, #tpu.memory_space<vmem>>, vector<1x64xf32>
    %146 = vector.broadcast %145 : vector<1x64xf32> to vector<32x64xf32>
    %147 = arith.addf %144, %146 : vector<32x64xf32>
    %cst_43 = arith.constant 0.000000e+00 : f32
    %148 = vector.broadcast %cst_43 : f32 to vector<32x64xf32>
    %149 = arith.maximumf %147, %148 : vector<32x64xf32>
    %c0_44 = arith.constant 0 : index
    %c0_45 = arith.constant 0 : index
    %150 = vector.load %arg8[%c0_44, %c0_45] : memref<64x128xf32, #tpu.memory_space<vmem>>, vector<64x128xf32>
    %cst_46 = arith.constant dense<0.000000e+00> : vector<32x128xf32>
    %151 = tpu.matmul %149, %150, %cst_46 {dimension_numbers = #tpu.dot_dimension_numbers<[1], [0], [0], [1], [0, 0, 1, 1], [], []>} : vector<32x64xf32>, vector<64x128xf32>, vector<32x128xf32> -> vector<32x128xf32>
    %c0_47 = arith.constant 0 : index
    %c0_48 = arith.constant 0 : index
    %152 = vector.load %arg9[%c0_47, %c0_48] : memref<1x128xf32, #tpu.memory_space<vmem>>, vector<1x128xf32>
    %153 = vector.broadcast %152 : vector<1x128xf32> to vector<32x128xf32>
    %154 = arith.addf %151, %153 : vector<32x128xf32>
    %cst_49 = arith.constant dense<0xFF800000> : vector<32xf32>
    %155 = vector.multi_reduction <maximumf>, %154, %cst_49 [1] : vector<32x128xf32> to vector<32xf32>
    %156 = vector.shape_cast %155 : vector<32xf32> to vector<32x1xf32>
    %157 = vector.broadcast %156 : vector<32x1xf32> to vector<32x128xf32>
    %158 = arith.subf %154, %157 : vector<32x128xf32>
    %159 = math.exp %158 : vector<32x128xf32>
    %cst_50 = arith.constant dense<0.000000e+00> : vector<32xf32>
    %160 = vector.multi_reduction <add>, %159, %cst_50 [1] : vector<32x128xf32> to vector<32xf32>
    %161 = vector.shape_cast %160 : vector<32xf32> to vector<32x1xf32>
    %162 = math.log %161 : vector<32x1xf32>
    %163 = vector.broadcast %162 : vector<32x1xf32> to vector<32x128xf32>
    %164 = arith.subf %158, %163 : vector<32x128xf32>
    %c0_51 = arith.constant 0 : index
    %c0_52 = arith.constant 0 : index
    %165 = vector.load %arg10[%c0_51, %c0_52] : memref<32x128xf32, #tpu.memory_space<vmem>>, vector<32x128xf32>
    tpu.vector_store %arg10[%c0_51, %c0_52], %164 {strides = array<i32>} : memref<32x128xf32, #tpu.memory_space<vmem>>, vector<32x128xf32>,
    return
  }
  func.func @transform_0(%arg0: i32) -> (i32, i32, i32, i32) {
    %c0_i32 = arith.constant 0 : i32
    %c0_i32_0 = arith.constant 0 : i32
    %c0_i32_1 = arith.constant 0 : i32
    %c0_i32_2 = arith.constant 0 : i32
    return %c0_i32, %c0_i32_0, %arg0, %c0_i32_1 : i32, i32, i32, i32
  }
  func.func @transform_1(%arg0: i32) -> (i32, i32, i32) {
    %c0_i32 = arith.constant 0 : i32
    %c0_i32_0 = arith.constant 0 : i32
    %c0_i32_1 = arith.constant 0 : i32
    %c0_i32_2 = arith.constant 0 : i32
    return %c0_i32, %c0_i32_0, %c0_i32_1 : i32, i32, i32
  }
  func.func @transform_2(%arg0: i32) -> (i32, i32) {
    %c0_i32 = arith.constant 0 : i32
    %c0_i32_0 = arith.constant 0 : i32
    %c0_i32_1 = arith.constant 0 : i32
    return %c0_i32, %c0_i32_0 : i32, i32
  }
  func.func @transform_3(%arg0: i32) -> (i32, i32, i32) {
    %c0_i32 = arith.constant 0 : i32
    %c0_i32_0 = arith.constant 0 : i32
    %c0_i32_1 = arith.constant 0 : i32
    %c0_i32_2 = arith.constant 0 : i32
    return %c0_i32, %c0_i32_0, %c0_i32_1 : i32, i32, i32
  }
  func.func @transform_4(%arg0: i32) -> (i32, i32) {
    %c0_i32 = arith.constant 0 : i32
    %c0_i32_0 = arith.constant 0 : i32
    %c0_i32_1 = arith.constant 0 : i32
    return %c0_i32, %c0_i32_0 : i32, i32
  }
  func.func @transform_5(%arg0: i32) -> (i32, i32) {
    %c0_i32 = arith.constant 0 : i32
    %c0_i32_0 = arith.constant 0 : i32
    %c0_i32_1 = arith.constant 0 : i32
    return %c0_i32, %c0_i32_0 : i32, i32
  }
  func.func @transform_6(%arg0: i32) -> (i32, i32) {
    %c0_i32 = arith.constant 0 : i32
    %c0_i32_0 = arith.constant 0 : i32
    %c0_i32_1 = arith.constant 0 : i32
    return %c0_i32, %c0_i32_0 : i32, i32
  }
  func.func @transform_7(%arg0: i32) -> (i32, i32) {
    %c0_i32 = arith.constant 0 : i32
    %c0_i32_0 = arith.constant 0 : i32
    %c0_i32_1 = arith.constant 0 : i32
    return %c0_i32, %c0_i32_0 : i32, i32
  }
  func.func @transform_8(%arg0: i32) -> (i32, i32) {
    %c0_i32 = arith.constant 0 : i32
    %c0_i32_0 = arith.constant 0 : i32
    %c0_i32_1 = arith.constant 0 : i32
    return %c0_i32, %c0_i32_0 : i32, i32
  }
  func.func @transform_9(%arg0: i32) -> (i32, i32) {
    %c0_i32 = arith.constant 0 : i32
    %c0_i32_0 = arith.constant 0 : i32
    return %arg0, %c0_i32 : i32, i32
  }
}

</mosaic_0001>

<bundles_post_ra>
// kernel: net_forward.1
= control target key start
LH: loop header
LB: loop body
LE: loop exit
PB: predicated region body
PF: predicated region fallthrough
CT: control target
= control target key end

     0   :  { %s8682_s30 = smov 0   ;;  %s8684_s10 = smov 0   ;;  %s16512_s0 = inlined_call_operand.vmem [shape: f32[2,14,64,28], index: 0, kind: input, shape index: {}]   ;;  %s16513_s1 = inlined_call_operand.vmem [shape: f32[5,28,256], index: 1, kind: input, shape index: {}]   ;;  %s16514_s2 = inlined_call_operand.vmem [shape: f32[1,128], index: 2, kind: input, shape index: {}]   ;;  %s16515_s3 = inlined_call_operand.vmem [shape: f32[5,128,256], index: 3, kind: input, shape index: {}]   ;;  %s16516_s4 = inlined_call_operand.vmem [shape: f32[1,128], index: 4, kind: input, shape index: {}]   ;;  %s16517_s5 = inlined_call_operand.vmem [shape: f32[512,64], index: 5, kind: input, shape index: {}]   ;;  %s16518_s6 = inlined_call_operand.vmem [shape: f32[1,64], index: 6, kind: input, shape index: {}]   ;;  %s16519_s7 = inlined_call_operand.vmem [shape: f32[64,128], index: 7, kind: input, shape index: {}]   ;;  %s16520_s8 = inlined_call_operand.vmem [shape: f32[1,128], index: 8, kind: input, shape index: {}]   ;;  %s16521_s9 = inlined_call_operand.vmem [shape: f32[64,128], index: 9, kind: output, shape index: {}]  }
   0x1   :  { %s8686_s11 = smov 0  }
   0x2 LB: > { %s7289_s12 = sadd.s32 4294967295, %s8630_s11   ;;  %s8699_s13 = sadd.s32 1, %s8630_s11   ;;  %s8630_s11 = sphi %s8686_s11, %s18470_s11   ;;  %s8626_s10 = sphi %s8684_s10, %s18469_s10   ;;  %s8622_s30 = sphi %s8682_s30, %s18468_s30  }
   0x3   : > { %s23_s14 = ssub.s32 %s8630_s11, %s8699_s13  ;;  %s26_s15 = sadd.s32 1, %s8626_s10 }
   0x4   : > { %p24_p0 = scmp.eq.s32.totalorder %s23_s14, 0  ;;  %p33_p1 = scmp.ne.s32.totalorder %s8626_s10, %s8622_s30 }
   0x5   : > { %p34_p2 = scmp.eq.s32.totalorder %s8630_s11, 0  ;;  %p7292_p4 = scmp.ge.s32.totalorder %s8630_s11, 2 }
   0x6   : > { %s8708_s16 = scalar_select %p24_p0, %s8626_s10, %s26_s15  }
   0x7   : > { %p35_p3 = por %p34_p2, %p33_p1  ;;  %277 = sbr.rel (%p7292_p4) target bundleno = 128 (0x80), region = 48 }
   0xc   : > { %280 = sbr.rel (!%p35_p3) target bundleno = 128 (0x80), region = 52  ;;  %s282_s17 = sand.u32 (%p35_p3), 1, %s8626_s10  }
   0xd   : > { %s8284_s18 = sshll.u32 (%p35_p3), %s8630_s11, 5  ;;  %s8297_s19 = smul.u32 (%p35_p3), 896, %s282_s17 }
   0xe   : > { %s8716_s22 = scalar_lea.vmem (%p35_p3), %s16512_s0, %s8284_s18 }
   0xf   : > { %v538_v0 = vld [vmem:[%s8716_s22] sm:$0xff] (%p35_p3)  ;;  %v540_v1 = vld [vmem:[%s8716_s22 + $0x8] sm:$0xff] (%p35_p3)  ;;  %v542_v2 = vld [vmem:[%s8716_s22 + $0x10] sm:$0xff] (%p35_p3)  ;;  %s8721_s23 = scalar_lea.vmem (%p35_p3), [#allocation2], %s8297_s19 }
  0x10   : > { %539 = vst [vmem:[%s8721_s23] sm:$0xff] (%p35_p3), %v538_v0  ;;  %v544_v3 = vld [vmem:[%s8716_s22 + $0x18] sm:$0xff] (%p35_p3)  ;;  %v546_v4 = vld [vmem:[%s8716_s22 + $0x40] sm:$0xff] (%p35_p3)  ;;  %v548_v5 = vld [vmem:[%s8716_s22 + $0x48] sm:$0xff] (%p35_p3) }
  0x11   : > { %541 = vst [vmem:[%s8721_s23 + $0x8] sm:$0xff] %v540_v1  ;;  %v550_v6 = vld [vmem:[%s8716_s22 + $0x50] sm:$0xff]  ;;  %v552_v7 = vld [vmem:[%s8716_s22 + $0x58] sm:$0xff]  ;;  %v554_v8 = vld [vmem:[%s8716_s22 + $0x80] sm:$0xff] }
  0x12   : > { %543 = vst [vmem:[%s8721_s23 + $0x10] sm:$0xff] %v542_v2  ;;  %v556_v9 = vld [vmem:[%s8716_s22 + $0x88] sm:$0xff]  ;;  %v558_v10 = vld [vmem:[%s8716_s22 + $0x90] sm:$0xff]  ;;  %v560_v11 = vld [vmem:[%s8716_s22 + $0x98] sm:$0xff] }
  0x13   : > { %545 = vst [vmem:[%s8721_s23 + $0x18] sm:$0xff] %v544_v3  ;;  %v562_v12 = vld [vmem:[%s8716_s22 + $0xc0] sm:$0xff]  ;;  %v564_v13 = vld [vmem:[%s8716_s22 + $0xc8] sm:$0xff]  ;;  %v566_v14 = vld [vmem:[%s8716_s22 + $0xd0] sm:$0xff] }
  0x14   : > { %547 = vst [vmem:[%s8721_s23 + $0x20] sm:$0xff] %v546_v4  ;;  %v568_v15 = vld [vmem:[%s8716_s22 + $0xd8] sm:$0xff]  ;;  %v570_v16 = vld [vmem:[%s8716_s22 + $0x100] sm:$0xff]  ;;  %v572_v17 = vld [vmem:[%s8716_s22 + $0x108] sm:$0xff] }
  0x15   : > { %549 = vst [vmem:[%s8721_s23 + $0x28] sm:$0xff] %v548_v5  ;;  %v574_v18 = vld [vmem:[%s8716_s22 + $0x110] sm:$0xff]  ;;  %v576_v19 = vld [vmem:[%s8716_s22 + $0x118] sm:$0xff]  ;;  %v578_v20 = vld [vmem:[%s8716_s22 + $0x140] sm:$0xff] }
  0x16   : > { %551 = vst [vmem:[%s8721_s23 + $0x30] sm:$0xff] %v550_v6  ;;  %v580_v21 = vld [vmem:[%s8716_s22 + $0x148] sm:$0xff]  ;;  %v582_v22 = vld [vmem:[%s8716_s22 + $0x150] sm:$0xff]  ;;  %v584_v23 = vld [vmem:[%s8716_s22 + $0x158] sm:$0xff] }
  0x17   : > { %553 = vst [vmem:[%s8721_s23 + $0x38] sm:$0xff] %v552_v7  ;;  %v586_v24 = vld [vmem:[%s8716_s22 + $0x180] sm:$0xff]  ;;  %v588_v25 = vld [vmem:[%s8716_s22 + $0x188] sm:$0xff]  ;;  %v590_v26 = vld [vmem:[%s8716_s22 + $0x190] sm:$0xff] }
  0x18   : > { %555 = vst [vmem:[%s8721_s23 + $0x40] sm:$0xff] %v554_v8  ;;  %v592_v27 = vld [vmem:[%s8716_s22 + $0x198] sm:$0xff]  ;;  %v594_v28 = vld [vmem:[%s8716_s22 + $0x1c0] sm:$0xff]  ;;  %v596_v29 = vld [vmem:[%s8716_s22 + $0x1c8] sm:$0xff] }
  0x19   : > { %557 = vst [vmem:[%s8721_s23 + $0x48] sm:$0xff] %v556_v9  ;;  %v598_v30 = vld [vmem:[%s8716_s22 + $0x1d0] sm:$0xff]  ;;  %v600_v31 = vld [vmem:[%s8716_s22 + $0x1d8] sm:$0xff]  ;;  %v602_v32 = vld [vmem:[%s8716_s22 + $0x200] sm:$0xff] }
  0x1a   : > { %559 = vst [vmem:[%s8721_s23 + $0x50] sm:$0xff] %v558_v10  ;;  %v604_v33 = vld [vmem:[%s8716_s22 + $0x208] sm:$0xff]  ;;  %v606_v34 = vld [vmem:[%s8716_s22 + $0x210] sm:$0xff]  ;;  %v608_v35 = vld [vmem:[%s8716_s22 + $0x218] sm:$0xff] }
  0x1b   : > { %561 = vst [vmem:[%s8721_s23 + $0x58] sm:$0xff] %v560_v11  ;;  %v610_v36 = vld [vmem:[%s8716_s22 + $0x240] sm:$0xff]  ;;  %v612_v37 = vld [vmem:[%s8716_s22 + $0x248] sm:$0xff]  ;;  %v614_v38 = vld [vmem:[%s8716_s22 + $0x250] sm:$0xff] }
  0x1c   : > { %563 = vst [vmem:[%s8721_s23 + $0x60] sm:$0xff] %v562_v12  ;;  %v616_v39 = vld [vmem:[%s8716_s22 + $0x258] sm:$0xff]  ;;  %v618_v40 = vld [vmem:[%s8716_s22 + $0x280] sm:$0xff]  ;;  %v620_v41 = vld [vmem:[%s8716_s22 + $0x288] sm:$0xff] }
  0x1d   : > { %565 = vst [vmem:[%s8721_s23 + $0x68] sm:$0xff] %v564_v13  ;;  %v622_v42 = vld [vmem:[%s8716_s22 + $0x290] sm:$0xff]  ;;  %v624_v43 = vld [vmem:[%s8716_s22 + $0x298] sm:$0xff]  ;;  %v626_v44 = vld [vmem:[%s8716_s22 + $0x2c0] sm:$0xff] }
  0x1e   : > { %567 = vst [vmem:[%s8721_s23 + $0x70] sm:$0xff] %v566_v14  ;;  %v628_v45 = vld [vmem:[%s8716_s22 + $0x2c8] sm:$0xff]  ;;  %v630_v46 = vld [vmem:[%s8716_s22 + $0x2d0] sm:$0xff]  ;;  %v632_v47 = vld [vmem:[%s8716_s22 + $0x2d8] sm:$0xff] }
  0x1f   : > { %569 = vst [vmem:[%s8721_s23 + $0x78] sm:$0xff] %v568_v15  ;;  %v634_v48 = vld [vmem:[%s8716_s22 + $0x300] sm:$0xff]  ;;  %v636_v49 = vld [vmem:[%s8716_s22 + $0x308] sm:$0xff]  ;;  %v638_v50 = vld [vmem:[%s8716_s22 + $0x310] sm:$0xff] }
  0x20   : > { %571 = vst [vmem:[%s8721_s23 + $0x80] sm:$0xff] %v570_v16  ;;  %v640_v51 = vld [vmem:[%s8716_s22 + $0x318] sm:$0xff]  ;;  %v642_v52 = vld [vmem:[%s8716_s22 + $0x340] sm:$0xff]  ;;  %v644_v53 = vld [vmem:[%s8716_s22 + $0x348] sm:$0xff] }
  0x21   : > { %573 = vst [vmem:[%s8721_s23 + $0x88] sm:$0xff] %v572_v17  ;;  %v646_v54 = vld [vmem:[%s8716_s22 + $0x350] sm:$0xff]  ;;  %v648_v55 = vld [vmem:[%s8716_s22 + $0x358] sm:$0xff]  ;;  %v650_v56 = vld [vmem:[%s8716_s22 + $0x380] sm:$0xff] }
  0x22   : > { %575 = vst [vmem:[%s8721_s23 + $0x90] sm:$0xff] %v574_v18  ;;  %v652_v57 = vld [vmem:[%s8716_s22 + $0x388] sm:$0xff]  ;;  %v654_v58 = vld [vmem:[%s8716_s22 + $0x390] sm:$0xff]  ;;  %v656_v59 = vld [vmem:[%s8716_s22 + $0x398] sm:$0xff] }
  0x23   : > { %577 = vst [vmem:[%s8721_s23 + $0x98] sm:$0xff] %v576_v19  ;;  %v658_v60 = vld [vmem:[%s8716_s22 + $0x3c0] sm:$0xff]  ;;  %v660_v61 = vld [vmem:[%s8716_s22 + $0x3c8] sm:$0xff]  ;;  %v662_v62 = vld [vmem:[%s8716_s22 + $0x3d0] sm:$0xff] }
  0x24   : > { %579 = vst [vmem:[%s8721_s23 + $0xa0] sm:$0xff] %v578_v20  ;;  %v664_v63 = vld [vmem:[%s8716_s22 + $0x3d8] sm:$0xff]  ;;  %v666_v0 = vld [vmem:[%s8716_s22 + $0x400] sm:$0xff]  ;;  %v668_v1 = vld [vmem:[%s8716_s22 + $0x408] sm:$0xff] }
  0x25   : > { %581 = vst [vmem:[%s8721_s23 + $0xa8] sm:$0xff] %v580_v21  ;;  %v670_v2 = vld [vmem:[%s8716_s22 + $0x410] sm:$0xff]  ;;  %v672_v3 = vld [vmem:[%s8716_s22 + $0x418] sm:$0xff]  ;;  %v674_v4 = vld [vmem:[%s8716_s22 + $0x440] sm:$0xff] }
  0x26   : > { %583 = vst [vmem:[%s8721_s23 + $0xb0] sm:$0xff] %v582_v22  ;;  %v676_v5 = vld [vmem:[%s8716_s22 + $0x448] sm:$0xff]  ;;  %v678_v6 = vld [vmem:[%s8716_s22 + $0x450] sm:$0xff]  ;;  %v680_v7 = vld [vmem:[%s8716_s22 + $0x458] sm:$0xff] }
  0x27   : > { %585 = vst [vmem:[%s8721_s23 + $0xb8] sm:$0xff] %v584_v23  ;;  %v682_v8 = vld [vmem:[%s8716_s22 + $0x480] sm:$0xff]  ;;  %v684_v9 = vld [vmem:[%s8716_s22 + $0x488] sm:$0xff]  ;;  %v686_v10 = vld [vmem:[%s8716_s22 + $0x490] sm:$0xff] }
  0x28   : > { %587 = vst [vmem:[%s8721_s23 + $0xc0] sm:$0xff] %v586_v24  ;;  %v688_v11 = vld [vmem:[%s8716_s22 + $0x498] sm:$0xff]  ;;  %v690_v12 = vld [vmem:[%s8716_s22 + $0x4c0] sm:$0xff]  ;;  %v692_v13 = vld [vmem:[%s8716_s22 + $0x4c8] sm:$0xff] }
  0x29   : > { %589 = vst [vmem:[%s8721_s23 + $0xc8] sm:$0xff] %v588_v25  ;;  %v694_v14 = vld [vmem:[%s8716_s22 + $0x4d0] sm:$0xff]  ;;  %v696_v15 = vld [vmem:[%s8716_s22 + $0x4d8] sm:$0xff]  ;;  %v698_v16 = vld [vmem:[%s8716_s22 + $0x500] sm:$0xff] }
  0x2a   : > { %591 = vst [vmem:[%s8721_s23 + $0xd0] sm:$0xff] %v590_v26  ;;  %v700_v17 = vld [vmem:[%s8716_s22 + $0x508] sm:$0xff]  ;;  %v702_v18 = vld [vmem:[%s8716_s22 + $0x510] sm:$0xff]  ;;  %v704_v19 = vld [vmem:[%s8716_s22 + $0x518] sm:$0xff] }
  0x2b   : > { %593 = vst [vmem:[%s8721_s23 + $0xd8] sm:$0xff] %v592_v27  ;;  %v706_v20 = vld [vmem:[%s8716_s22 + $0x540] sm:$0xff]  ;;  %v708_v21 = vld [vmem:[%s8716_s22 + $0x548] sm:$0xff]  ;;  %v710_v22 = vld [vmem:[%s8716_s22 + $0x550] sm:$0xff] }
  0x2c   : > { %595 = vst [vmem:[%s8721_s23 + $0xe0] sm:$0xff] %v594_v28  ;;  %v712_v23 = vld [vmem:[%s8716_s22 + $0x558] sm:$0xff]  ;;  %v714_v24 = vld [vmem:[%s8716_s22 + $0x580] sm:$0xff]  ;;  %v716_v25 = vld [vmem:[%s8716_s22 + $0x588] sm:$0xff] }
  0x2d   : > { %597 = vst [vmem:[%s8721_s23 + $0xe8] sm:$0xff] %v596_v29  ;;  %v718_v26 = vld [vmem:[%s8716_s22 + $0x590] sm:$0xff]  ;;  %v720_v27 = vld [vmem:[%s8716_s22 + $0x598] sm:$0xff]  ;;  %v722_v28 = vld [vmem:[%s8716_s22 + $0x5c0] sm:$0xff] }
  0x2e   : > { %599 = vst [vmem:[%s8721_s23 + $0xf0] sm:$0xff] %v598_v30  ;;  %v724_v29 = vld [vmem:[%s8716_s22 + $0x5c8] sm:$0xff]  ;;  %v726_v30 = vld [vmem:[%s8716_s22 + $0x5d0] sm:$0xff] }
  0x2f   : > { %601 = vst [vmem:[%s8721_s23 + $0xf8] sm:$0xff] %v600_v31  ;;  %v728_v31 = vld [vmem:[%s8716_s22 + $0x5d8] sm:$0xff] }
  0x30   : > { %603 = vst [vmem:[%s8721_s23 + $0x100] sm:$0xff] %v602_v32  ;;  %v730_v32 = vld [vmem:[%s8716_s22 + $0x600] sm:$0xff] }
  0x31   : > { %605 = vst [vmem:[%s8721_s23 + $0x108] sm:$0xff] %v604_v33  ;;  %v732_v33 = vld [vmem:[%s8716_s22 + $0x608] sm:$0xff] }
  0x32   : > { %607 = vst [vmem:[%s8721_s23 + $0x110] sm:$0xff] %v606_v34  ;;  %v734_v34 = vld [vmem:[%s8716_s22 + $0x610] sm:$0xff] }
  0x33   : > { %609 = vst [vmem:[%s8721_s23 + $0x118] sm:$0xff] %v608_v35  ;;  %v736_v35 = vld [vmem:[%s8716_s22 + $0x618] sm:$0xff] }
  0x34   : > { %611 = vst [vmem:[%s8721_s23 + $0x120] sm:$0xff] %v610_v36  ;;  %v738_v36 = vld [vmem:[%s8716_s22 + $0x640] sm:$0xff] }
  0x35   : > { %613 = vst [vmem:[%s8721_s23 + $0x128] sm:$0xff] %v612_v37  ;;  %v740_v37 = vld [vmem:[%s8716_s22 + $0x648] sm:$0xff] }
  0x36   : > { %615 = vst [vmem:[%s8721_s23 + $0x130] sm:$0xff] %v614_v38  ;;  %v742_v38 = vld [vmem:[%s8716_s22 + $0x650] sm:$0xff] }
  0x37   : > { %617 = vst [vmem:[%s8721_s23 + $0x138] sm:$0xff] %v616_v39  ;;  %v744_v39 = vld [vmem:[%s8716_s22 + $0x658] sm:$0xff] }
  0x38   : > { %619 = vst [vmem:[%s8721_s23 + $0x140] sm:$0xff] %v618_v40  ;;  %v746_v40 = vld [vmem:[%s8716_s22 + $0x680] sm:$0xff] }
  0x39   : > { %621 = vst [vmem:[%s8721_s23 + $0x148] sm:$0xff] %v620_v41  ;;  %v748_v41 = vld [vmem:[%s8716_s22 + $0x688] sm:$0xff] }
  0x3a   : > { %623 = vst [vmem:[%s8721_s23 + $0x150] sm:$0xff] %v622_v42  ;;  %v750_v42 = vld [vmem:[%s8716_s22 + $0x690] sm:$0xff] }
  0x3b   : > { %625 = vst [vmem:[%s8721_s23 + $0x158] sm:$0xff] %v624_v43  ;;  %v752_v43 = vld [vmem:[%s8716_s22 + $0x698] sm:$0xff] }
  0x3c   : > { %627 = vst [vmem:[%s8721_s23 + $0x160] sm:$0xff] %v626_v44  ;;  %v754_v44 = vld [vmem:[%s8716_s22 + $0x6c0] sm:$0xff] }
  0x3d   : > { %629 = vst [vmem:[%s8721_s23 + $0x168] sm:$0xff] %v628_v45  ;;  %v756_v45 = vld [vmem:[%s8716_s22 + $0x6c8] sm:$0xff] }
  0x3e   : > { %631 = vst [vmem:[%s8721_s23 + $0x170] sm:$0xff] %v630_v46  ;;  %v758_v46 = vld [vmem:[%s8716_s22 + $0x6d0] sm:$0xff] }
  0x3f   : > { %633 = vst [vmem:[%s8721_s23 + $0x178] sm:$0xff] %v632_v47  ;;  %v760_v47 = vld [vmem:[%s8716_s22 + $0x6d8] sm:$0xff] }
  0x40   : > { %635 = vst [vmem:[%s8721_s23 + $0x180] sm:$0xff] %v634_v48 }
  0x41   : > { %637 = vst [vmem:[%s8721_s23 + $0x188] sm:$0xff] %v636_v49 }
  0x42   : > { %639 = vst [vmem:[%s8721_s23 + $0x190] sm:$0xff] %v638_v50 }
  0x43   : > { %641 = vst [vmem:[%s8721_s23 + $0x198] sm:$0xff] %v640_v51 }
  0x44   : > { %643 = vst [vmem:[%s8721_s23 + $0x1a0] sm:$0xff] %v642_v52 }
  0x45   : > { %645 = vst [vmem:[%s8721_s23 + $0x1a8] sm:$0xff] %v644_v53 }
  0x46   : > { %647 = vst [vmem:[%s8721_s23 + $0x1b0] sm:$0xff] %v646_v54 }
  0x47   : > { %649 = vst [vmem:[%s8721_s23 + $0x1b8] sm:$0xff] %v648_v55 }
  0x48   : > { %651 = vst [vmem:[%s8721_s23 + $0x1c0] sm:$0xff] %v650_v56 }
  0x49   : > { %653 = vst [vmem:[%s8721_s23 + $0x1c8] sm:$0xff] %v652_v57 }
  0x4a   : > { %655 = vst [vmem:[%s8721_s23 + $0x1d0] sm:$0xff] %v654_v58 }
  0x4b   : > { %657 = vst [vmem:[%s8721_s23 + $0x1d8] sm:$0xff] %v656_v59 }
  0x4c   : > { %659 = vst [vmem:[%s8721_s23 + $0x1e0] sm:$0xff] %v658_v60 }
  0x4d   : > { %661 = vst [vmem:[%s8721_s23 + $0x1e8] sm:$0xff] %v660_v61 }
  0x4e   : > { %663 = vst [vmem:[%s8721_s23 + $0x1f0] sm:$0xff] %v662_v62 }
  0x4f   : > { %665 = vst [vmem:[%s8721_s23 + $0x1f8] sm:$0xff] %v664_v63 }
  0x50   : > { %667 = vst [vmem:[%s8721_s23 + $0x200] sm:$0xff] %v666_v0 }
  0x51   : > { %669 = vst [vmem:[%s8721_s23 + $0x208] sm:$0xff] %v668_v1 }
  0x52   : > { %671 = vst [vmem:[%s8721_s23 + $0x210] sm:$0xff] %v670_v2 }
  0x53   : > { %673 = vst [vmem:[%s8721_s23 + $0x218] sm:$0xff] %v672_v3 }
  0x54   : > { %675 = vst [vmem:[%s8721_s23 + $0x220] sm:$0xff] %v674_v4 }
  0x55   : > { %677 = vst [vmem:[%s8721_s23 + $0x228] sm:$0xff] %v676_v5 }
  0x56   : > { %679 = vst [vmem:[%s8721_s23 + $0x230] sm:$0xff] %v678_v6 }
  0x57   : > { %681 = vst [vmem:[%s8721_s23 + $0x238] sm:$0xff] %v680_v7 }
  0x58   : > { %683 = vst [vmem:[%s8721_s23 + $0x240] sm:$0xff] %v682_v8 }
  0x59   : > { %685 = vst [vmem:[%s8721_s23 + $0x248] sm:$0xff] %v684_v9 }
  0x5a   : > { %687 = vst [vmem:[%s8721_s23 + $0x250] sm:$0xff] %v686_v10 }
  0x5b   : > { %689 = vst [vmem:[%s8721_s23 + $0x258] sm:$0xff] %v688_v11 }
  0x5c   : > { %691 = vst [vmem:[%s8721_s23 + $0x260] sm:$0xff] %v690_v12 }
  0x5d   : > { %693 = vst [vmem:[%s8721_s23 + $0x268] sm:$0xff] %v692_v13 }
  0x5e   : > { %695 = vst [vmem:[%s8721_s23 + $0x270] sm:$0xff] %v694_v14 }
  0x5f   : > { %697 = vst [vmem:[%s8721_s23 + $0x278] sm:$0xff] %v696_v15 }
  0x60   : > { %699 = vst [vmem:[%s8721_s23 + $0x280] sm:$0xff] %v698_v16 }
  0x61   : > { %701 = vst [vmem:[%s8721_s23 + $0x288] sm:$0xff] %v700_v17 }
  0x62   : > { %703 = vst [vmem:[%s8721_s23 + $0x290] sm:$0xff] %v702_v18 }
  0x63   : > { %705 = vst [vmem:[%s8721_s23 + $0x298] sm:$0xff] %v704_v19 }
  0x64   : > { %707 = vst [vmem:[%s8721_s23 + $0x2a0] sm:$0xff] %v706_v20 }
  0x65   : > { %709 = vst [vmem:[%s8721_s23 + $0x2a8] sm:$0xff] %v708_v21 }
  0x66   : > { %711 = vst [vmem:[%s8721_s23 + $0x2b0] sm:$0xff] %v710_v22 }
  0x67   : > { %713 = vst [vmem:[%s8721_s23 + $0x2b8] sm:$0xff] %v712_v23 }
  0x68   : > { %715 = vst [vmem:[%s8721_s23 + $0x2c0] sm:$0xff] %v714_v24 }
  0x69   : > { %717 = vst [vmem:[%s8721_s23 + $0x2c8] sm:$0xff] %v716_v25 }
  0x6a   : > { %719 = vst [vmem:[%s8721_s23 + $0x2d0] sm:$0xff] %v718_v26 }
  0x6b   : > { %721 = vst [vmem:[%s8721_s23 + $0x2d8] sm:$0xff] %v720_v27 }
  0x6c   : > { %723 = vst [vmem:[%s8721_s23 + $0x2e0] sm:$0xff] %v722_v28 }
  0x6d   : > { %725 = vst [vmem:[%s8721_s23 + $0x2e8] sm:$0xff] %v724_v29 }
  0x6e   : > { %727 = vst [vmem:[%s8721_s23 + $0x2f0] sm:$0xff] %v726_v30 }
  0x6f   : > { %729 = vst [vmem:[%s8721_s23 + $0x2f8] sm:$0xff] %v728_v31 }
  0x70   : > { %731 = vst [vmem:[%s8721_s23 + $0x300] sm:$0xff] %v730_v32 }
  0x71   : > { %733 = vst [vmem:[%s8721_s23 + $0x308] sm:$0xff] %v732_v33 }
  0x72   : > { %735 = vst [vmem:[%s8721_s23 + $0x310] sm:$0xff] %v734_v34 }
  0x73   : > { %737 = vst [vmem:[%s8721_s23 + $0x318] sm:$0xff] %v736_v35 }
  0x74   : > { %739 = vst [vmem:[%s8721_s23 + $0x320] sm:$0xff] %v738_v36 }
  0x75   : > { %741 = vst [vmem:[%s8721_s23 + $0x328] sm:$0xff] %v740_v37 }
  0x76   : > { %743 = vst [vmem:[%s8721_s23 + $0x330] sm:$0xff] %v742_v38 }
  0x77   : > { %745 = vst [vmem:[%s8721_s23 + $0x338] sm:$0xff] %v744_v39 }
  0x78   : > { %747 = vst [vmem:[%s8721_s23 + $0x340] sm:$0xff] %v746_v40 }
  0x79   : > { %749 = vst [vmem:[%s8721_s23 + $0x348] sm:$0xff] %v748_v41 }
  0x7a   : > { %751 = vst [vmem:[%s8721_s23 + $0x350] sm:$0xff] %v750_v42 }
  0x7b   : > { %753 = vst [vmem:[%s8721_s23 + $0x358] sm:$0xff] %v752_v43 }
  0x7c   : > { %755 = vst [vmem:[%s8721_s23 + $0x360] sm:$0xff] %v754_v44 }
  0x7d   : > { %757 = vst [vmem:[%s8721_s23 + $0x368] sm:$0xff] %v756_v45 }
  0x7e   : > { %759 = vst [vmem:[%s8721_s23 + $0x370] sm:$0xff] %v758_v46 }
  0x7f   : > { %761 = vst [vmem:[%s8721_s23 + $0x378] sm:$0xff] %v760_v47 }
  0x80 PF: > { %p7295_p5 = scmp.ge.s32.totalorder %s8630_s11, 1  ;;  %p766_p6 = scmp.lt.s32.totalorder %s8630_s11, 3 }
  0x82   : > { %p767_p7 = pnand %p7295_p5, %p766_p6 }
  0x84   : > { %770 = sbr.rel (%p767_p7) target bundleno = 3401 (0xd49), region = 90 }
  0x89   : > { %v8949_v48 = vld [vmem:[%s16513_s1 + $0x70] sm:$0xf]  ;;  %vm1336_vm0 = vcmask 1043456   ;;  %v8954_v49 = vld [vmem:[%s16513_s1 + $0x78] sm:$0xf]  ;;  %v8959_v50 = vld [vmem:[%s16513_s1 + $0x60] sm:$0xff] }
  0x8a   : > { %7298 = vmatpush.msk.msra.mxu0 %vm1336_vm0, %v8949_v48  ;;  %8285 = vmatpush.msk.msra.mxu3 %vm1336_vm0, %v8949_v48  ;;  %v8968_v51 = vld [vmem:[%s16513_s1 + $0x68] sm:$0xff]  ;;  %s773_s17 = sand.u32 1, %s8622_s30   ;;  %v8978_v52 = vld [vmem:[%s16513_s1 + $0x50] sm:$0xff]  ;;  %v8985_v53 = vld [vmem:[%s16513_s1 + $0x58] sm:$0xff]  ;;  %vm1191_vm1 = vcmask 228352   ;;  %vm7141_vm2 = vcmask 523264  }
  0x8b   : > { %7347 = vmatpush.msk.msra.mxu1 %vm1336_vm0, %v8954_v49  ;;  %8289 = vmatpush.msk.msra.mxu2 %vm1336_vm0, %v8954_v49  ;;  %s8298_s20 = smul.u32 896, %s773_s17  ;;  %v8992_v54 = vld [vmem:[%s16513_s1 + $0x40] sm:$0xff]  ;;  %v8999_v55 = vld [vmem:[%s16513_s1 + $0x48] sm:$0xff]  ;;  %v949_v58 = vld [vmem:[%s16513_s1 + $0xb0] sm:$0xf] }
  0x8c   : > { %1356 = vmatpush.msra.mxu0 %v8959_v50  ;;  %8286 = vmatpush.msra.mxu3 %v8959_v50  ;;  %v950_v59 = vld [vmem:[%s16513_s1 + $0xb8] sm:$0xf]  ;;  %v933_v0 = vld [vmem:[%s16513_s1 + $0x30] sm:$0xf]  ;;  %v931_v5 = vld [vmem:[%s16513_s1 + $0x20] sm:$0xff] }
  0x8d   : > { %1517 = vmatpush.msra.mxu1 %v8968_v51  ;;  %8291 = vmatpush.msra.mxu2 %v8968_v51  ;;  %s9003_s26 = scalar_lea.vmem [#allocation2], %s8298_s20  ;;  %v929_v6 = vld [vmem:[%s16513_s1 + $0x10] sm:$0xff]  ;;  %v927_v7 = vld [vmem:[%s16513_s1] sm:$0xff]  ;;  %v948_v11 = vld [vmem:[%s16513_s1 + $0xa8] sm:$0xff] }
  0x8e   : > { %1357 = vmatpush.msra.mxu0 %v8978_v52  ;;  %8287 = vmatpush.msra.mxu3 %v8978_v52  ;;  %v871_v56 = vld [vmem:[%s9003_s26 + $0x1c0] sm:$0xff]  ;;  %v908_v57 = vld [vmem:[%s9003_s26 + $0x2e8] sm:$0xff]  ;;  %v909_v61 = vld [vmem:[%s9003_s26 + $0x2f0] sm:$0xff] }
  0x8f   : > { %1518 = vmatpush.msra.mxu1 %v8985_v53  ;;  %8293 = vmatpush.msra.mxu2 %v8985_v53  ;;  %v872_v60 = vld [vmem:[%s9003_s26 + $0x1c8] sm:$0xff]  ;;  %v873_v62 = vld [vmem:[%s9003_s26 + $0x1d0] sm:$0xff]  ;;  %v910_v63 = vld [vmem:[%s9003_s26 + $0x2f8] sm:$0xff] }
  0x90   : > { %1358 = vmatpush.msra.mxu0 %v8992_v54  ;;  %8288 = vmatpush.msra.mxu3 %v8992_v54  ;;  %v874_v1 = vld [vmem:[%s9003_s26 + $0x1d8] sm:$0xff]  ;;  %v911_v2 = vld [vmem:[%s9003_s26 + $0x300] sm:$0xff]  ;;  %v912_v4 = vld [vmem:[%s9003_s26 + $0x308] sm:$0xff] }
  0x91   : > { %1519 = vmatpush.msra.mxu1 %v8999_v55  ;;  %8295 = vmatpush.msra.mxu2 %v8999_v55  ;;  %v875_v3 = vld [vmem:[%s9003_s26 + $0x1e0] sm:$0xff]  ;;  %v876_v8 = vld [vmem:[%s9003_s26 + $0x1e8] sm:$0xff]  ;;  %v913_v9 = vld [vmem:[%s9003_s26 + $0x310] sm:$0xff] }
  0x92   : > { %7299 = vmatmul.msk.f32.vlgmr.msra.gmra.mxu0 %vm1191_vm1, %v871_v56  ;;  %7336 = vmatmul.msk.f32.vlgmr.msra.gmra.mxu3 %vm1191_vm1, %v908_v57  ;;  %v947_v10 = vld [vmem:[%s16513_s1 + $0xa0] sm:$0xff]  ;;  %v877_v12 = vld [vmem:[%s9003_s26 + $0x1f0] sm:$0xff]  ;;  %v914_v13 = vld [vmem:[%s9003_s26 + $0x318] sm:$0xff] }
  0x93   : > { %7348 = vmatmul.msk.f32.vlgmr.msra.gmra.mxu1 %vm1191_vm1, %v871_v56  ;;  %7385 = vmatmul.msk.f32.vlgmr.msra.gmra.mxu2 %vm1191_vm1, %v908_v57  ;;  %v878_v14 = vld [vmem:[%s9003_s26 + $0x1f8] sm:$0xff]  ;;  %v915_v15 = vld [vmem:[%s9003_s26 + $0x320] sm:$0xff]  ;;  %v916_v17 = vld [vmem:[%s9003_s26 + $0x328] sm:$0xff] }
  0x94   : > { %7494 = vmatpush.msk.msrb.mxu0 %vm1336_vm0, %v949_v58  ;;  %7543 = vmatpush.msk.msrb.mxu1 %vm1336_vm0, %v950_v59  ;;  %v879_v16 = vld [vmem:[%s9003_s26 + $0x200] sm:$0xff]  ;;  %v934_v18 = vld [vmem:[%s16513_s1 + $0x38] sm:$0xf]  ;;  %v932_v19 = vld [vmem:[%s16513_s1 + $0x28] sm:$0xff] }
  0x95   : > { %8290 = vmatpush.msk.msrb.mxu3 %vm1336_vm0, %v8954_v49  ;;  %7396 = vmatpush.msk.msrb.mxu2 %vm1336_vm0, %v933_v0  ;;  %v930_v20 = vld [vmem:[%s16513_s1 + $0x18] sm:$0xff]  ;;  %v880_v21 = vld [vmem:[%s9003_s26 + $0x208] sm:$0xff]  ;;  %v917_v22 = vld [vmem:[%s9003_s26 + $0x330] sm:$0xff] }
  0x96   : > { %2168 = vmatpush.msrb.mxu0 %v947_v10  ;;  %2329 = vmatpush.msrb.mxu1 %v948_v11  ;;  %v815_v23 = vld [vmem:[%s9003_s26] sm:$0xff]  ;;  %v928_v24 = vld [vmem:[%s16513_s1 + $0x8] sm:$0xff]  ;;  %v881_v25 = vld [vmem:[%s9003_s26 + $0x210] sm:$0xff] }
  0x97   : > { %8292 = vmatpush.msrb.mxu3 %v8968_v51  ;;  %1828 = vmatpush.msrb.mxu2 %v931_v5  ;;  %v918_v26 = vld [vmem:[%s9003_s26 + $0x338] sm:$0xff]  ;;  %v816_v27 = vld [vmem:[%s9003_s26 + $0x8] sm:$0xff]  ;;  %v817_v29 = vld [vmem:[%s9003_s26 + $0x10] sm:$0xff] }
  0x98   : > { %v882_v28 = vld [vmem:[%s9003_s26 + $0x218] sm:$0xff]  ;;  %v957_v30 = vld [vmem:[%s16513_s1 + $0xf0] sm:$0xf]  ;;  %v883_v32 = vld [vmem:[%s9003_s26 + $0x220] sm:$0xff] }
  0x99   : > { %8294 = vmatpush.msrb.mxu3 %v8985_v53  ;;  %1829 = vmatpush.msrb.mxu2 %v929_v6  ;;  %v958_v31 = vld [vmem:[%s16513_s1 + $0xf8] sm:$0xf]  ;;  %v884_v34 = vld [vmem:[%s9003_s26 + $0x228] sm:$0xff]  ;;  %v9144_v35 = vld [vmem:[%s9003_s26 + $0x20] sm:$0xff] }
  0x9a   : > { %7300 = vmatmul.msk.f32.gmra.mxu0 %vm1191_vm1, %v872_v60  ;;  %7337 = vmatmul.msk.f32.gmra.mxu3 %vm1191_vm1, %v909_v61  ;;  %v818_v33 = vld [vmem:[%s9003_s26 + $0x18] sm:$0xff]  ;;  %v885_v36 = vld [vmem:[%s9003_s26 + $0x230] sm:$0xff]  ;;  %v9153_v37 = vld [vmem:[%s9003_s26 + $0x28] sm:$0xff] }
  0x9b   : > { %7349 = vmatmul.msk.f32.gmra.mxu1 %vm1191_vm1, %v872_v60  ;;  %7386 = vmatmul.msk.f32.gmra.mxu2 %vm1191_vm1, %v909_v61  ;;  %v9163_v38 = vld [vmem:[%s16513_s1 + $0x90] sm:$0xff]  ;;  %v9168_v39 = vld [vmem:[%s16513_s1 + $0x98] sm:$0xff]  ;;  %v887_v43 = vld [vmem:[%s9003_s26 + $0x240] sm:$0xff] }
  0x9c   : > { %8296 = vmatpush.msrb.mxu3 %v8999_v55  ;;  %1830 = vmatpush.msrb.mxu2 %v927_v7  ;;  %v886_v40 = vld [vmem:[%s9003_s26 + $0x238] sm:$0xff]  ;;  %v9174_v41 = vld [vmem:[%s9003_s26 + $0x30] sm:$0xff]  ;;  %v888_v57 = vld [vmem:[%s9003_s26 + $0x248] sm:$0xff] }
  0x9d   : > { %2169 = vmatpush.msrb.mxu0 %v9163_v38  ;;  %2330 = vmatpush.msrb.mxu1 %v9168_v39  ;;  %v9187_v45 = vld [vmem:[%s9003_s26 + $0x38] sm:$0xff]  ;;  %v9204_v59 = vld [vmem:[%s9003_s26 + $0x40] sm:$0xff]  ;;  %v9240_v7 = vld [vmem:[%s9003_s26 + $0x50] sm:$0xff] }
  0x9e   : > { %7445 = vmatpush.msk.msra.mxu3 %vm1336_vm0, %v934_v18  ;;  %7592 = vmatpush.msk.msra.mxu2 %vm1336_vm0, %v957_v30  ;;  %v890_v5 = vld [vmem:[%s9003_s26 + $0x258] sm:$0xff]  ;;  %v891_v11 = vld [vmem:[%s9003_s26 + $0x260] sm:$0xff] }
  0xa0   : > { %1989 = vmatpush.msra.mxu3 %v932_v19  ;;  %v9276_v19 = vld [vmem:[%s9003_s26 + $0x60] sm:$0xff] }
  0xa2   : > { %7301 = vmatmul.msk.f32.gmra.mxu0 %vm1191_vm1, %v873_v62  ;;  %7338 = vmatmul.msk.f32.gmra.mxu3 %vm1191_vm1, %v910_v63 }
  0xa3   : > { %7350 = vmatmul.msk.f32.gmra.mxu1 %vm1191_vm1, %v873_v62  ;;  %7387 = vmatmul.msk.f32.gmra.mxu2 %vm1191_vm1, %v910_v63  ;;  %v889_v63 = vld [vmem:[%s9003_s26 + $0x250] sm:$0xff] }
  0xa4   : > { %1990 = vmatpush.msra.mxu3 %v930_v20 }
  0xa6   : > { %1991 = vmatpush.msra.mxu3 %v928_v24 }
  0xaa   : > { %7302 = vmatmul.msk.f32.gmra.mxu0 %vm1191_vm1, %v874_v1  ;;  %7339 = vmatmul.msk.f32.gmra.mxu3 %vm1191_vm1, %v911_v2 }
  0xab   : > { %7351 = vmatmul.msk.f32.gmra.mxu1 %vm1191_vm1, %v874_v1  ;;  %7388 = vmatmul.msk.f32.gmra.mxu2 %vm1191_vm1, %v911_v2  ;;  %v9222_v1 = vld [vmem:[%s9003_s26 + $0x48] sm:$0xff] }
  0xb2   : > { %7303 = vmatmul.msk.f32.gmra.mxu0 %vm1191_vm1, %v875_v3  ;;  %7340 = vmatmul.msk.f32.gmra.mxu3 %vm1191_vm1, %v912_v4 }
  0xb3   : > { %7352 = vmatmul.msk.f32.gmra.mxu1 %vm1191_vm1, %v875_v3  ;;  %7389 = vmatmul.msk.f32.gmra.mxu2 %vm1191_vm1, %v912_v4 }
  0xba   : > { %7304 = vmatmul.msk.f32.gmra.mxu0 %vm1191_vm1, %v876_v8  ;;  %7341 = vmatmul.msk.f32.gmra.mxu3 %vm1191_vm1, %v913_v9 }
  0xbb   : > { %7353 = vmatmul.msk.f32.gmra.mxu1 %vm1191_vm1, %v876_v8  ;;  %7390 = vmatmul.msk.f32.gmra.mxu2 %vm1191_vm1, %v913_v9 }
  0xc2   : > { %7305 = vmatmul.msk.f32.gmra.mxu0 %vm1191_vm1, %v877_v12  ;;  %7342 = vmatmul.msk.f32.gmra.mxu3 %vm1191_vm1, %v914_v13 }
  0xc3   : > { %7354 = vmatmul.msk.f32.gmra.mxu1 %vm1191_vm1, %v877_v12  ;;  %7391 = vmatmul.msk.f32.gmra.mxu2 %vm1191_vm1, %v914_v13  ;;  %v9258_v13 = vld [vmem:[%s9003_s26 + $0x58] sm:$0xff] }
  0xca   : > { %7306 = vmatmul.msk.f32.gmra.mxu0 %vm1191_vm1, %v878_v14  ;;  %7343 = vmatmul.msk.f32.gmra.mxu3 %vm1191_vm1, %v915_v15 }
  0xcb   : > { %7355 = vmatmul.msk.f32.gmra.mxu1 %vm1191_vm1, %v878_v14  ;;  %7392 = vmatmul.msk.f32.gmra.mxu2 %vm1191_vm1, %v915_v15 }
  0xd2   : > { %7307 = vmatmul.msk.f32.gmra.mxu0 %vm1191_vm1, %v879_v16  ;;  %7344 = vmatmul.msk.f32.gmra.mxu3 %vm1191_vm1, %v916_v17 }
  0xd3   : > { %7356 = vmatmul.msk.f32.gmra.mxu1 %vm1191_vm1, %v879_v16  ;;  %7393 = vmatmul.msk.f32.gmra.mxu2 %vm1191_vm1, %v916_v17  ;;  %v892_v17 = vld [vmem:[%s9003_s26 + $0x268] sm:$0xff] }
  0xda   : > { %7308 = vmatmul.msk.f32.gmra.mxu0 %vm1191_vm1, %v880_v21  ;;  %7345 = vmatmul.msk.f32.gmra.mxu3 %vm1191_vm1, %v917_v22 }
  0xdb   : > { %7357 = vmatmul.msk.f32.gmra.mxu1 %vm1191_vm1, %v880_v21  ;;  %7397 = vmatmul.msk.f32.vlgmr.msrb.gmra.mxu2 %vm1191_vm1, %v815_v23 }
  0xe2   : > { %7309 = vmatmul.msk.f32.gmra.mxu0 %vm1191_vm1, %v881_v25  ;;  %7346 = vmatmul.msk.f32.gmra.mxu3 %vm1191_vm1, %v918_v26 }
  0xe3   : > { %7358 = vmatmul.msk.f32.gmra.mxu1 %vm1191_vm1, %v881_v25  ;;  %7398 = vmatmul.msk.f32.gmra.mxu2 %vm1191_vm1, %v816_v27  ;;  %v9294_v25 = vld [vmem:[%s9003_s26 + $0x68] sm:$0xff] }
  0xea   : > { %7310 = vmatmul.msk.f32.gmra.mxu0 %vm1191_vm1, %v882_v28  ;;  %7394 = vmatmul.msk.f32.vlgmr.msrb.gmra.mxu3 %vm1191_vm1, %v917_v22 }
  0xeb   : > { %7359 = vmatmul.msk.f32.gmra.mxu1 %vm1191_vm1, %v882_v28  ;;  %7399 = vmatmul.msk.f32.gmra.mxu2 %vm1191_vm1, %v817_v29 }
  0xec   : > { %7641 = vmatpush.msk.msrb.mxu3 %vm1336_vm0, %v958_v31  ;;  %v9312_v31 = vld [vmem:[%s9003_s26 + $0x70] sm:$0xff] }
  0xf2   : > { %7311 = vmatmul.msk.f32.gmra.mxu0 %vm1191_vm1, %v883_v32  ;;  %7395 = vmatmul.msk.f32.gmra.mxu3 %vm1191_vm1, %v918_v26 }
  0xf3   : > { %7360 = vmatmul.msk.f32.gmra.mxu1 %vm1191_vm1, %v883_v32  ;;  %7400 = vmatmul.msk.f32.gmra.mxu2 %vm1191_vm1, %v818_v33  ;;  %v955_v32 = vld [vmem:[%s16513_s1 + $0xe0] sm:$0xff] }
  0xf4   : > { %2604 = vmatpush.msra.mxu2 %v955_v32  ;;  %v896_v32 = vld [vmem:[%s9003_s26 + $0x288] sm:$0xff] }
  0xfa   : > { %7312 = vmatmul.msk.f32.gmra.mxu0 %vm1191_vm1, %v884_v34  ;;  %7446 = vmatmul.msk.f32.vlgmr.msra.gmra.mxu3 %vm1191_vm1, %v815_v23  ;;  %v893_v23 = vld [vmem:[%s9003_s26 + $0x270] sm:$0xff] }
  0xfb   : > { %7361 = vmatmul.msk.f32.gmra.mxu1 %vm1191_vm1, %v884_v34  ;;  %7401 = vmatmul.msk.f32.gmra.mxu2 %vm1191_vm1, %v9144_v35 }
 0x102   : > { %7313 = vmatmul.msk.f32.gmra.mxu0 %vm1191_vm1, %v885_v36  ;;  %7447 = vmatmul.msk.f32.gmra.mxu3 %vm1191_vm1, %v816_v27 }
 0x103   : > { %7362 = vmatmul.msk.f32.gmra.mxu1 %vm1191_vm1, %v885_v36  ;;  %7402 = vmatmul.msk.f32.gmra.mxu2 %vm1191_vm1, %v9153_v37 }
 0x10a   : > { %7314 = vmatmul.msk.f32.gmra.mxu0 %vm1191_vm1, %v886_v40  ;;  %7448 = vmatmul.msk.f32.gmra.mxu3 %vm1191_vm1, %v817_v29  ;;  %v894_v29 = vld [vmem:[%s9003_s26 + $0x278] sm:$0xff] }
 0x10b   : > { %7363 = vmatmul.msk.f32.gmra.mxu1 %vm1191_vm1, %v886_v40  ;;  %7403 = vmatmul.msk.f32.gmra.mxu2 %vm1191_vm1, %v9174_v41 }
 0x10f   : > { %v9181_v42 = vpop.f32.mrf.mxu0 }
 0x110   : > { %v9184_v44 = vpop.f32.mrf.mxu1 }
 0x112   : > { %7315 = vmatmul.msk.f32.gmra.mxu0 %vm1191_vm1, %v887_v43  ;;  %7449 = vmatmul.msk.f32.gmra.mxu3 %vm1191_vm1, %v818_v33  ;;  %v956_v33 = vld [vmem:[%s16513_s1 + $0xe8] sm:$0xff] }
 0x113   : > { %7364 = vmatmul.msk.f32.gmra.mxu1 %vm1191_vm1, %v887_v43  ;;  %7404 = vmatmul.msk.f32.gmra.mxu2 %vm1191_vm1, %v9187_v45  ;;  %v895_v43 = vld [vmem:[%s9003_s26 + $0x280] sm:$0xff] }
 0x114   : > { %2765 = vmatpush.msrb.mxu3 %v956_v33 }
 0x115   : > { %v9194_v46 = vpop.f32.mrf.mxu3 }
 0x116   : > { %16694 = vst [vmem:[#allocation3_spill] sm:$0xff] %v9194_v46  ;;  %v9196_v47 = vpop.f32.mrf.mxu2  ;;  %v9438_v46 = vld [vmem:[%s9003_s26 + $0xa0] sm:$0xff] }
 0x117   : > { %16695 = vst [vmem:[#allocation4_spill] sm:$0xff] %v9196_v47  ;;  %v9198_v56 = vpop.f32.mrf.mxu0  ;;  %v9420_v47 = vld [vmem:[%s9003_s26 + $0x98] sm:$0xff] }
 0x118   : > { %v9201_v58 = vpop.f32.mrf.mxu1 }
 0x11a   : > { %7316 = vmatmul.msk.f32.gmra.mxu0 %vm1191_vm1, %v888_v57  ;;  %7450 = vmatmul.msk.f32.gmra.mxu3 %vm1191_vm1, %v9144_v35 }
 0x11b   : > { %7365 = vmatmul.msk.f32.gmra.mxu1 %vm1191_vm1, %v888_v57  ;;  %7405 = vmatmul.msk.f32.gmra.mxu2 %vm1191_vm1, %v9204_v59 }
 0x11d   : > { %v9212_v60 = vpop.f32.mrf.mxu3 }
 0x11e   : > { %16696 = vst [vmem:[#allocation5_spill] sm:$0xff] %v9212_v60  ;;  %v9214_v61 = vpop.f32.mrf.mxu2 }
 0x11f   : > { %16697 = vst [vmem:[#allocation6_spill] sm:$0xff] %v9214_v61  ;;  %v9216_v62 = vpop.f32.mrf.mxu0  ;;  %v899_v61 = vld [vmem:[%s9003_s26 + $0x2a0] sm:$0xff] }
 0x120   : > { %v9219_v0 = vpop.f32.mrf.mxu1 }
 0x122   : > { %7317 = vmatmul.msk.f32.gmra.mxu0 %vm1191_vm1, %v889_v63  ;;  %7451 = vmatmul.msk.f32.gmra.mxu3 %vm1191_vm1, %v9153_v37 }
 0x123   : > { %7366 = vmatmul.msk.f32.gmra.mxu1 %vm1191_vm1, %v889_v63  ;;  %7406 = vmatmul.msk.f32.gmra.mxu2 %vm1191_vm1, %v9222_v1  ;;  %v9336_v63 = vld [vmem:[%s9003_s26 + $0x78] sm:$0xff] }
 0x125   : > { %v9230_v2 = vpop.f32.mrf.mxu3 }
 0x126   : > { %16698 = vst [vmem:[#allocation7_spill] sm:$0xff] %v9230_v2  ;;  %v9232_v3 = vpop.f32.mrf.mxu2  ;;  %v900_v2 = vld [vmem:[%s9003_s26 + $0x2a8] sm:$0xff] }
 0x127   : > { %16699 = vst [vmem:[#allocation8_spill] sm:$0xff] %v9232_v3  ;;  %v9234_v4 = vpop.f32.mrf.mxu0  ;;  %v9402_v3 = vld [vmem:[%s9003_s26 + $0x90] sm:$0xff] }
 0x128   : > { %v9237_v6 = vpop.f32.mrf.mxu1 }
 0x12a   : > { %7318 = vmatmul.msk.f32.gmra.mxu0 %vm1191_vm1, %v890_v5  ;;  %7452 = vmatmul.msk.f32.gmra.mxu3 %vm1191_vm1, %v9174_v41 }
 0x12b   : > { %7367 = vmatmul.msk.f32.gmra.mxu1 %vm1191_vm1, %v890_v5  ;;  %7407 = vmatmul.msk.f32.gmra.mxu2 %vm1191_vm1, %v9240_v7  ;;  %v9341_v5 = vld [vmem:[%s16513_s1 + $0x80] sm:$0xff] }
 0x12c   : > { %2170 = vmatpush.msrb.mxu0 %v9341_v5 }
 0x12d   : > { %v9248_v8 = vpop.f32.mrf.mxu3 }
 0x12e   : > { %16700 = vst [vmem:[#allocation9_spill] sm:$0xff] %v9248_v8  ;;  %v9250_v9 = vpop.f32.mrf.mxu2 }
 0x12f   : > { %16701 = vst [vmem:[#allocation10_spill] sm:$0xff] %v9250_v9  ;;  %v9252_v10 = vpop.f32.mrf.mxu0  ;;  %v898_v9 = vld [vmem:[%s9003_s26 + $0x298] sm:$0xff] }
 0x130   : > { %v9255_v12 = vpop.f32.mrf.mxu1 }
 0x131   : > { %16702 = vst [vmem:[#allocation11_spill] sm:$0xff] %v9255_v12 }
 0x132   : > { %7319 = vmatmul.msk.f32.gmra.mxu0 %vm1191_vm1, %v891_v11  ;;  %7453 = vmatmul.msk.f32.gmra.mxu3 %vm1191_vm1, %v9187_v45 }
 0x133   : > { %7368 = vmatmul.msk.f32.gmra.mxu1 %vm1191_vm1, %v891_v11  ;;  %7408 = vmatmul.msk.f32.gmra.mxu2 %vm1191_vm1, %v9258_v13  ;;  %v9346_v11 = vld [vmem:[%s16513_s1 + $0x88] sm:$0xff] }
 0x134   : > { %2331 = vmatpush.msrb.mxu1 %v9346_v11 }
 0x135   : > { %v9266_v14 = vpop.f32.mrf.mxu3 }
 0x136   : > { %16703 = vst [vmem:[#allocation12_spill] sm:$0xff] %v9266_v14  ;;  %v9268_v15 = vpop.f32.mrf.mxu2 }
 0x137   : > { %16704 = vst [vmem:[#allocation13_spill] sm:$0xff] %v9268_v15  ;;  %v9270_v16 = vpop.f32.mrf.mxu0  ;;  %v9384_v15 = vld [vmem:[%s9003_s26 + $0x88] sm:$0xff] }
 0x138   : > { %v9273_v18 = vpop.f32.mrf.mxu1 }
 0x139   : > { %16705 = vst [vmem:[#allocation14_spill] sm:$0xff] %v9273_v18 }
 0x13a   : > { %7320 = vmatmul.msk.f32.gmra.mxu0 %vm1191_vm1, %v892_v17  ;;  %7454 = vmatmul.msk.f32.gmra.mxu3 %vm1191_vm1, %v9204_v59 }
 0x13b   : > { %7369 = vmatmul.msk.f32.gmra.mxu1 %vm1191_vm1, %v892_v17  ;;  %7409 = vmatmul.msk.f32.gmra.mxu2 %vm1191_vm1, %v9276_v19 }
 0x13d   : > { %v9284_v20 = vpop.f32.mrf.mxu3 }
 0x13e   : > { %16706 = vst [vmem:[#allocation15_spill] sm:$0xff] %v9284_v20  ;;  %v9286_v21 = vpop.f32.mrf.mxu2 }
 0x13f   : > { %16707 = vst [vmem:[#allocation16_spill] sm:$0xff] %v9286_v21  ;;  %v9288_v22 = vpop.f32.mrf.mxu0  ;;  %v897_v21 = vld [vmem:[%s9003_s26 + $0x290] sm:$0xff] }
 0x140   : > { %v9291_v24 = vpop.f32.mrf.mxu1 }
 0x141   : > { %16708 = vst [vmem:[#allocation17_spill] sm:$0xff] %v9291_v24 }
 0x142   : > { %7321 = vmatmul.msk.f32.gmra.mxu0 %vm1191_vm1, %v893_v23  ;;  %7455 = vmatmul.msk.f32.gmra.mxu3 %vm1191_vm1, %v9222_v1 }
 0x143   : > { %7370 = vmatmul.msk.f32.gmra.mxu1 %vm1191_vm1, %v893_v23  ;;  %7410 = vmatmul.msk.f32.gmra.mxu2 %vm1191_vm1, %v9294_v25 }
 0x145   : > { %v9302_v26 = vpop.f32.mrf.mxu3 }
 0x146   : > { %16709 = vst [vmem:[#allocation18_spill] sm:$0xff] %v9302_v26  ;;  %v9304_v27 = vpop.f32.mrf.mxu2 }
 0x147   : > { %16710 = vst [vmem:[#allocation19_spill] sm:$0xff] %v9304_v27  ;;  %v9306_v28 = vpop.f32.mrf.mxu0 }
 0x148   : > { %16711 = vst [vmem:[#allocation20_spill] sm:$0xff] %v9306_v28  ;;  %v9309_v30 = vpop.f32.mrf.mxu1 }
 0x149   : > { %16712 = vst [vmem:[#allocation21_spill] sm:$0xff] %v9309_v30  ;;  %v9492_v30 = vld [vmem:[%s9003_s26 + $0xb8] sm:$0xff] }
 0x14a   : > { %7322 = vmatmul.msk.f32.gmra.mxu0 %vm1191_vm1, %v894_v29  ;;  %7456 = vmatmul.msk.f32.gmra.mxu3 %vm1191_vm1, %v9240_v7 }
 0x14b   : > { %7371 = vmatmul.msk.f32.gmra.mxu1 %vm1191_vm1, %v894_v29  ;;  %7411 = vmatmul.msk.f32.gmra.mxu2 %vm1191_vm1, %v9312_v31 }
 0x14d   : > { %v9326_v34 = vpop.f32.mrf.mxu3 }
 0x14e   : > { %16713 = vst [vmem:[#allocation22_spill] sm:$0xff] %v9326_v34  ;;  %v9328_v36 = vpop.f32.mrf.mxu2 }
 0x14f   : > { %16714 = vst [vmem:[#allocation23_spill] sm:$0xff] %v9328_v36  ;;  %v9330_v40 = vpop.f32.mrf.mxu0  ;;  %v9366_v36 = vld [vmem:[%s9003_s26 + $0x80] sm:$0xff] }
 0x150   : > { %16715 = vst [vmem:[#allocation24_spill] sm:$0xff] %v9330_v40  ;;  %v9333_v57 = vpop.f32.mrf.mxu1  ;;  %v905_v40 = vld [vmem:[%s9003_s26 + $0x2d0] sm:$0xff] }
 0x151   : > { %16716 = vst [vmem:[#allocation25_spill] sm:$0xff] %v9333_v57 }
 0x152   : > { %7323 = vmatmul.msk.f32.gmra.mxu0 %vm1191_vm1, %v895_v43  ;;  %7457 = vmatmul.msk.f32.gmra.mxu3 %vm1191_vm1, %v9258_v13 }
 0x153   : > { %7372 = vmatmul.msk.f32.gmra.mxu1 %vm1191_vm1, %v895_v43  ;;  %7412 = vmatmul.msk.f32.gmra.mxu2 %vm1191_vm1, %v9336_v63 }
 0x155   : > { %v9356_v17 = vpop.f32.mrf.mxu3 }
 0x156   : > { %16717 = vst [vmem:[#allocation26_spill] sm:$0xff] %v9356_v17  ;;  %v9358_v23 = vpop.f32.mrf.mxu2 }
 0x157   : > { %16718 = vst [vmem:[#allocation27_spill] sm:$0xff] %v9358_v23  ;;  %v9360_v29 = vpop.f32.mrf.mxu0 }
 0x158   : > { %16719 = vst [vmem:[#allocation28_spill] sm:$0xff] %v9360_v29  ;;  %v9363_v33 = vpop.f32.mrf.mxu1  ;;  %v9510_v29 = vld [vmem:[%s9003_s26 + $0xc0] sm:$0xff] }
 0x159   : > { %16720 = vst [vmem:[#allocation29_spill] sm:$0xff] %v9363_v33 }
 0x15a   : > { %7324 = vmatmul.msk.f32.gmra.mxu0 %vm1191_vm1, %v896_v32  ;;  %7458 = vmatmul.msk.f32.gmra.mxu3 %vm1191_vm1, %v9276_v19 }
 0x15b   : > { %7373 = vmatmul.msk.f32.gmra.mxu1 %vm1191_vm1, %v896_v32  ;;  %7413 = vmatmul.msk.f32.gmra.mxu2 %vm1191_vm1, %v9366_v36 }
 0x15d   : > { %v9374_v43 = vpop.f32.mrf.mxu3 }
 0x15e   : > { %16721 = vst [vmem:[#allocation30_spill] sm:$0xff] %v9374_v43  ;;  %v9376_v23 = vpop.f32.mrf.mxu2 }
 0x15f   : > { %v9378_v27 = vpop.f32.mrf.mxu0 }
 0x160   : > { %16722 = vst [vmem:[#allocation31_spill] sm:$0xff] %v9378_v27  ;;  %v9381_v17 = vpop.f32.mrf.mxu1 }
 0x161   : > { %16723 = vst [vmem:[#allocation32_spill] sm:$0xff] %v9381_v17  ;;  %v9456_v17 = vld [vmem:[%s9003_s26 + $0xa8] sm:$0xff] }
 0x162   : > { %7325 = vmatmul.msk.f32.gmra.mxu0 %vm1191_vm1, %v897_v21  ;;  %7459 = vmatmul.msk.f32.gmra.mxu3 %vm1191_vm1, %v9294_v25 }
 0x163   : > { %7374 = vmatmul.msk.f32.gmra.mxu1 %vm1191_vm1, %v897_v21  ;;  %7414 = vmatmul.msk.f32.gmra.mxu2 %vm1191_vm1, %v9384_v15 }
 0x165   : > { %v9392_v32 = vpop.f32.mrf.mxu3 }
 0x166   : > { %16724 = vst [vmem:[#allocation33_spill] sm:$0xff] %v9392_v32  ;;  %v9394_v43 = vpop.f32.mrf.mxu2 }
 0x167   : > { %v9396_v34 = vpop.f32.mrf.mxu0 }
 0x168   : > { %16725 = vst [vmem:[#allocation34_spill] sm:$0xff] %v9396_v34  ;;  %v9399_v26 = vpop.f32.mrf.mxu1 }
 0x169   : > { %16726 = vst [vmem:[#allocation35_spill] sm:$0xff] %v9399_v26 }
 0x16a   : > { %7326 = vmatmul.msk.f32.gmra.mxu0 %vm1191_vm1, %v898_v9  ;;  %7460 = vmatmul.msk.f32.gmra.mxu3 %vm1191_vm1, %v9312_v31 }
 0x16b   : > { %7375 = vmatmul.msk.f32.gmra.mxu1 %vm1191_vm1, %v898_v9  ;;  %7415 = vmatmul.msk.f32.gmra.mxu2 %vm1191_vm1, %v9402_v3 }
 0x16d   : > { %v9410_v21 = vpop.f32.mrf.mxu3 }
 0x16e   : > { %16727 = vst [vmem:[#allocation36_spill] sm:$0xff] %v9410_v21  ;;  %v9412_v32 = vpop.f32.mrf.mxu2 }
 0x16f   : > { %v9414_v20 = vpop.f32.mrf.mxu0 }
 0x170   : > { %16728 = vst [vmem:[#allocation37_spill] sm:$0xff] %v9414_v20  ;;  %v9417_v14 = vpop.f32.mrf.mxu1  ;;  %v9474_v20 = vld [vmem:[%s9003_s26 + $0xb0] sm:$0xff] }
 0x171   : > { %16729 = vst [vmem:[#allocation38_spill] sm:$0xff] %v9417_v14 }
 0x172   : > { %7327 = vmatmul.msk.f32.gmra.mxu0 %vm1191_vm1, %v899_v61  ;;  %7461 = vmatmul.msk.f32.gmra.mxu3 %vm1191_vm1, %v9336_v63 }
 0x173   : > { %7376 = vmatmul.msk.f32.gmra.mxu1 %vm1191_vm1, %v899_v61  ;;  %7416 = vmatmul.msk.f32.gmra.mxu2 %vm1191_vm1, %v9420_v47 }
 0x175   : > { %v9428_v9 = vpop.f32.mrf.mxu3 }
 0x176   : > { %16730 = vst [vmem:[#allocation39_spill] sm:$0xff] %v9428_v9  ;;  %v9430_v21 = vpop.f32.mrf.mxu2 }
 0x177   : > { %v9432_v8 = vpop.f32.mrf.mxu0 }
 0x178   : > { %16731 = vst [vmem:[#allocation40_spill] sm:$0xff] %v9432_v8  ;;  %v9435_v60 = vpop.f32.mrf.mxu1 }
 0x179   : > { %16732 = vst [vmem:[#allocation41_spill] sm:$0xff] %v9435_v60  ;;  %v901_v60 = vld [vmem:[%s9003_s26 + $0x2b0] sm:$0xff] }
 0x17a   : > { %7328 = vmatmul.msk.f32.gmra.mxu0 %vm1191_vm1, %v900_v2  ;;  %7462 = vmatmul.msk.f32.gmra.mxu3 %vm1191_vm1, %v9366_v36 }
 0x17b   : > { %7377 = vmatmul.msk.f32.gmra.mxu1 %vm1191_vm1, %v900_v2  ;;  %7417 = vmatmul.msk.f32.gmra.mxu2 %vm1191_vm1, %v9438_v46 }
 0x17d   : > { %v9446_v61 = vpop.f32.mrf.mxu3 }
 0x17e   : > { %v9448_v9 = vpop.f32.mrf.mxu2 }
 0x17f   : > { %v9450_v14 = vpop.f32.mrf.mxu0 }
 0x180   : > { %16733 = vst [vmem:[#allocation42_spill] sm:$0xff] %v9450_v14  ;;  %v9453_v26 = vpop.f32.mrf.mxu1 }
 0x181   : > { %16734 = vst [vmem:[#allocation43_spill] sm:$0xff] %v9453_v26  ;;  %v902_v26 = vld [vmem:[%s9003_s26 + $0x2b8] sm:$0xff] }
 0x182   : > { %7329 = vmatmul.msk.f32.gmra.mxu0 %vm1191_vm1, %v901_v60  ;;  %7463 = vmatmul.msk.f32.gmra.mxu3 %vm1191_vm1, %v9384_v15 }
 0x183   : > { %7378 = vmatmul.msk.f32.gmra.mxu1 %vm1191_vm1, %v901_v60  ;;  %7418 = vmatmul.msk.f32.gmra.mxu2 %vm1191_vm1, %v9456_v17 }
 0x185   : > { %v9464_v2 = vpop.f32.mrf.mxu3 }
 0x186   : > { %v9466_v14 = vpop.f32.mrf.mxu2 }
 0x187   : > { %v9468_v8 = vpop.f32.mrf.mxu0 }
 0x188   : > { %16735 = vst [vmem:[#allocation44_spill] sm:$0xff] %v9468_v8  ;;  %v9471_v33 = vpop.f32.mrf.mxu1 }
 0x189   : > { %16736 = vst [vmem:[#allocation45_spill] sm:$0xff] %v9471_v33  ;;  %v903_v33 = vld [vmem:[%s9003_s26 + $0x2c0] sm:$0xff] }
 0x18a   : > { %7330 = vmatmul.msk.f32.gmra.mxu0 %vm1191_vm1, %v902_v26  ;;  %7464 = vmatmul.msk.f32.gmra.mxu3 %vm1191_vm1, %v9402_v3 }
 0x18b   : > { %7379 = vmatmul.msk.f32.gmra.mxu1 %vm1191_vm1, %v902_v26  ;;  %7419 = vmatmul.msk.f32.gmra.mxu2 %vm1191_vm1, %v9474_v20 }
 0x18d   : > { %v9482_v60 = vpop.f32.mrf.mxu3 }
 0x18e   : > { %v9484_v8 = vpop.f32.mrf.mxu2 }
 0x18f   : > { %v9486_v57 = vpop.f32.mrf.mxu0 }
 0x190   : > { %16737 = vst [vmem:[#allocation46_spill] sm:$0xff] %v9486_v57  ;;  %v9489_v34 = vpop.f32.mrf.mxu1 }
 0x191   : > { %16738 = vst [vmem:[#allocation47_spill] sm:$0xff] %v9489_v34  ;;  %v904_v34 = vld [vmem:[%s9003_s26 + $0x2c8] sm:$0xff] }
 0x192   : > { %7331 = vmatmul.msk.f32.gmra.mxu0 %vm1191_vm1, %v903_v33  ;;  %7465 = vmatmul.msk.f32.gmra.mxu3 %vm1191_vm1, %v9420_v47 }
 0x193   : > { %7380 = vmatmul.msk.f32.gmra.mxu1 %vm1191_vm1, %v903_v33  ;;  %7420 = vmatmul.msk.f32.gmra.mxu2 %vm1191_vm1, %v9492_v30  ;;  %v965_v33 = vld [vmem:[%s16513_s1 + $0x130] sm:$0xf] }
 0x194   : > { %7690 = vmatpush.msk.msra.mxu0 %vm1336_vm0, %v965_v33 }
 0x195   : > { %v9500_v26 = vpop.f32.mrf.mxu3 }
 0x196   : > { %16739 = vst [vmem:[#allocation48_spill] sm:$0xff] %v9500_v26  ;;  %v9502_v27 = vpop.f32.mrf.mxu2  ;;  %v9578_v26 = vld [vmem:[%s9003_s26 + $0xd8] sm:$0xff] }
 0x197   : > { %16740 = vst [vmem:[#allocation49_spill] sm:$0xff] %v9502_v27  ;;  %v9504_v57 = vpop.f32.mrf.mxu0  ;;  %v9536_v27 = vld [vmem:[%s9003_s26 + $0xc8] sm:$0xff] }
 0x198   : > { %16741 = vst [vmem:[#allocation50_spill] sm:$0xff] %v9504_v57  ;;  %v9507_v24 = vpop.f32.mrf.mxu1 }
 0x199   : > { %16742 = vst [vmem:[#allocation51_spill] sm:$0xff] %v9507_v24  ;;  %v966_v24 = vld [vmem:[%s16513_s1 + $0x138] sm:$0xf] }
 0x19a   : > { %7332 = vmatmul.msk.f32.gmra.mxu0 %vm1191_vm1, %v904_v34  ;;  %7466 = vmatmul.msk.f32.gmra.mxu3 %vm1191_vm1, %v9438_v46 }
 0x19b   : > { %7381 = vmatmul.msk.f32.gmra.mxu1 %vm1191_vm1, %v904_v34  ;;  %7421 = vmatmul.msk.f32.gmra.mxu2 %vm1191_vm1, %v9510_v29 }
 0x19c   : > { %7739 = vmatpush.msk.msra.mxu1 %vm1336_vm0, %v966_v24 }
 0x19d   : > { %v9526_v57 = vpop.f32.mrf.mxu3 }
 0x19e   : > { %16743 = vst [vmem:[#allocation52_spill] sm:$0xff] %v9526_v57  ;;  %v9528_v34 = vpop.f32.mrf.mxu2  ;;  %v9554_v57 = vld [vmem:[%s9003_s26 + $0xd0] sm:$0xff] }
 0x19f   : > { %16744 = vst [vmem:[#allocation53_spill] sm:$0xff] %v9528_v34  ;;  %v9530_v18 = vpop.f32.mrf.mxu0 }
 0x1a0   : > { %16745 = vst [vmem:[#allocation54_spill] sm:$0xff] %v9530_v18  ;;  %v9533_v12 = vpop.f32.mrf.mxu1 }
 0x1a1   : > { %16746 = vst [vmem:[#allocation55_spill] sm:$0xff] %v9533_v12  ;;  %v906_v12 = vld [vmem:[%s9003_s26 + $0x2d8] sm:$0xff] }
 0x1a2   : > { %7333 = vmatmul.msk.f32.gmra.mxu0 %vm1191_vm1, %v905_v40  ;;  %7467 = vmatmul.msk.f32.gmra.mxu3 %vm1191_vm1, %v9456_v17 }
 0x1a3   : > { %7382 = vmatmul.msk.f32.gmra.mxu1 %vm1191_vm1, %v905_v40  ;;  %7422 = vmatmul.msk.f32.gmra.mxu2 %vm1191_vm1, %v9536_v27  ;;  %v953_v40 = vld [vmem:[%s16513_s1 + $0xd0] sm:$0xff] }
 0x1a4   : > { %2605 = vmatpush.msra.mxu2 %v953_v40 }
 0x1a5   : > { %v9544_v24 = vpop.f32.mrf.mxu3 }
 0x1a6   : > { %16747 = vst [vmem:[#allocation56_spill] sm:$0xff] %v9544_v24  ;;  %v9546_v33 = vpop.f32.mrf.mxu2 }
 0x1a7   : > { %16748 = vst [vmem:[#allocation57_spill] sm:$0xff] %v9546_v33  ;;  %v9548_v18 = vpop.f32.mrf.mxu0 }
 0x1a8   : > { %16749 = vst [vmem:[#allocation58_spill] sm:$0xff] %v9548_v18  ;;  %v9551_v34 = vpop.f32.mrf.mxu1 }
 0x1a9   : > { %16750 = vst [vmem:[#allocation59_spill] sm:$0xff] %v9551_v34  ;;  %v954_v34 = vld [vmem:[%s16513_s1 + $0xd8] sm:$0xff] }
 0x1aa   : > { %7334 = vmatmul.msk.f32.gmra.mxu0 %vm1191_vm1, %v906_v12  ;;  %7468 = vmatmul.msk.f32.gmra.mxu3 %vm1191_vm1, %v9474_v20 }
 0x1ab   : > { %7383 = vmatmul.msk.f32.gmra.mxu1 %vm1191_vm1, %v906_v12  ;;  %7423 = vmatmul.msk.f32.gmra.mxu2 %vm1191_vm1, %v9554_v57  ;;  %v907_v12 = vld [vmem:[%s9003_s26 + $0x2e0] sm:$0xff] }
 0x1ac   : > { %2766 = vmatpush.msrb.mxu3 %v954_v34 }
 0x1ad   : > { %v9568_v18 = vpop.f32.mrf.mxu3 }
 0x1ae   : > { %16751 = vst [vmem:[#allocation60_spill] sm:$0xff] %v9568_v18  ;;  %v9570_v33 = vpop.f32.mrf.mxu2 }
 0x1af   : > { %16752 = vst [vmem:[#allocation61_spill] sm:$0xff] %v9570_v33  ;;  %v9572_v24 = vpop.f32.mrf.mxu0  ;;  %v9595_v33 = vld [vmem:[%s9003_s26 + $0xe0] sm:$0xff] }
 0x1b0   : > { %16753 = vst [vmem:[#allocation62_spill] sm:$0xff] %v9572_v24  ;;  %v9575_v28 = vpop.f32.mrf.mxu1 }
 0x1b1   : > { %16754 = vst [vmem:[#allocation63_spill] sm:$0xff] %v9575_v28 }
 0x1b2   : > { %7335 = vmatmul.msk.f32.gmra.mxu0 %vm1191_vm1, %v907_v12  ;;  %7469 = vmatmul.msk.f32.gmra.mxu3 %vm1191_vm1, %v9492_v30 }
 0x1b3   : > { %7384 = vmatmul.msk.f32.gmra.mxu1 %vm1191_vm1, %v907_v12  ;;  %7424 = vmatmul.msk.f32.gmra.mxu2 %vm1191_vm1, %v9578_v26 }
 0x1b5   : > { %v9586_v34 = vpop.f32.mrf.mxu3 }
 0x1b6   : > { %16755 = vst [vmem:[#allocation64_spill] sm:$0xff] %v9586_v34  ;;  %v9588_v40 = vpop.f32.mrf.mxu2  ;;  %v9614_v34 = vld [vmem:[%s9003_s26 + $0xe8] sm:$0xff] }
 0x1b7   : > { %16756 = vst [vmem:[#allocation65_spill] sm:$0xff] %v9588_v40  ;;  %v9590_v24 = vpop.f32.mrf.mxu0 }
 0x1b8   : > { %16757 = vst [vmem:[#allocation66_spill] sm:$0xff] %v9590_v24  ;;  %v9592_v28 = vpop.f32.mrf.mxu1 }
 0x1b9   : > { %16758 = vst [vmem:[#allocation67_spill] sm:$0xff] %v9592_v28 }
 0x1ba   : > { %7470 = vmatmul.msk.f32.gmra.mxu3 %vm1191_vm1, %v9510_v29  ;;  %7495 = vmatmul.msk.f32.vlgmr.msrb.gmra.mxu0 %vm1191_vm1, %v9144_v35 }
 0x1bb   : > { %7425 = vmatmul.msk.f32.gmra.mxu2 %vm1191_vm1, %v9595_v33  ;;  %7544 = vmatmul.msk.f32.vlgmr.msrb.gmra.mxu1 %vm1191_vm1, %v9144_v35 }
 0x1bd   : > { %v9605_v12 = vpop.f32.mrf.mxu3 }
 0x1be   : > { %16759 = vst [vmem:[#allocation68_spill] sm:$0xff] %v9605_v12  ;;  %v9607_v24 = vpop.f32.mrf.mxu2  ;;  %v9633_v12 = vld [vmem:[%s9003_s26 + $0xf0] sm:$0xff] }
 0x1bf   : > { %16760 = vst [vmem:[#allocation69_spill] sm:$0xff] %v9607_v24  ;;  %v9609_v28 = vpop.f32.mrf.mxu0 }
 0x1c0   : > { %16761 = vst [vmem:[#allocation70_spill] sm:$0xff] %v9609_v28  ;;  %v9611_v40 = vpop.f32.mrf.mxu1 }
 0x1c1   : > { %16762 = vst [vmem:[#allocation71_spill] sm:$0xff] %v9611_v40 }
 0x1c2   : > { %7471 = vmatmul.msk.f32.gmra.mxu3 %vm1191_vm1, %v9536_v27  ;;  %7496 = vmatmul.msk.f32.gmra.mxu0 %vm1191_vm1, %v9153_v37 }
 0x1c3   : > { %7426 = vmatmul.msk.f32.gmra.mxu2 %vm1191_vm1, %v9614_v34  ;;  %7545 = vmatmul.msk.f32.gmra.mxu1 %vm1191_vm1, %v9153_v37 }
 0x1c5   : > { %v9624_v35 = vpop.f32.mrf.mxu3 }
 0x1c6   : > { %16763 = vst [vmem:[#allocation72_spill] sm:$0xff] %v9624_v35  ;;  %v9626_v28 = vpop.f32.mrf.mxu2  ;;  %v9652_v35 = vld [vmem:[%s9003_s26 + $0xf8] sm:$0xff] }
 0x1c7   : > { %16764 = vst [vmem:[#allocation73_spill] sm:$0xff] %v9626_v28  ;;  %v9628_v40 = vpop.f32.mrf.mxu0 }
 0x1c8   : > { %16765 = vst [vmem:[#allocation74_spill] sm:$0xff] %v9628_v40  ;;  %v9630_v24 = vpop.f32.mrf.mxu1 }
 0x1c9   : > { %16766 = vst [vmem:[#allocation75_spill] sm:$0xff] %v9630_v24 }
 0x1ca   : > { %7472 = vmatmul.msk.f32.gmra.mxu3 %vm1191_vm1, %v9554_v57  ;;  %7497 = vmatmul.msk.f32.gmra.mxu0 %vm1191_vm1, %v9174_v41 }
 0x1cb   : > { %7427 = vmatmul.msk.f32.gmra.mxu2 %vm1191_vm1, %v9633_v12  ;;  %7546 = vmatmul.msk.f32.gmra.mxu1 %vm1191_vm1, %v9174_v41 }
 0x1cd   : > { %v9643_v37 = vpop.f32.mrf.mxu3 }
 0x1ce   : > { %16767 = vst [vmem:[#allocation76_spill] sm:$0xff] %v9643_v37  ;;  %v9645_v40 = vpop.f32.mrf.mxu2  ;;  %v9671_v37 = vld [vmem:[%s9003_s26 + $0x100] sm:$0xff] }
 0x1cf   : > { %16768 = vst [vmem:[#allocation77_spill] sm:$0xff] %v9645_v40  ;;  %v9647_v24 = vpop.f32.mrf.mxu0 }
 0x1d0   : > { %16769 = vst [vmem:[#allocation78_spill] sm:$0xff] %v9647_v24  ;;  %v9649_v28 = vpop.f32.mrf.mxu1 }
 0x1d1   : > { %16770 = vst [vmem:[#allocation79_spill] sm:$0xff] %v9649_v28 }
 0x1d2   : > { %7473 = vmatmul.msk.f32.gmra.mxu3 %vm1191_vm1, %v9578_v26  ;;  %7498 = vmatmul.msk.f32.gmra.mxu0 %vm1191_vm1, %v9187_v45 }
 0x1d3   : > { %7428 = vmatmul.msk.f32.gmra.mxu2 %vm1191_vm1, %v9652_v35  ;;  %7547 = vmatmul.msk.f32.gmra.mxu1 %vm1191_vm1, %v9187_v45 }
 0x1d5   : > { %v9662_v41 = vpop.f32.mrf.mxu3 }
 0x1d6   : > { %16771 = vst [vmem:[#allocation80_spill] sm:$0xff] %v9662_v41  ;;  %v9664_v24 = vpop.f32.mrf.mxu2  ;;  %v9690_v41 = vld [vmem:[%s9003_s26 + $0x108] sm:$0xff] }
 0x1d7   : > { %16772 = vst [vmem:[#allocation81_spill] sm:$0xff] %v9664_v24  ;;  %v9666_v28 = vpop.f32.mrf.mxu0 }
 0x1d8   : > { %16773 = vst [vmem:[#allocation82_spill] sm:$0xff] %v9666_v28  ;;  %v9668_v40 = vpop.f32.mrf.mxu1 }
 0x1d9   : > { %16774 = vst [vmem:[#allocation83_spill] sm:$0xff] %v9668_v40 }
 0x1da   : > { %7474 = vmatmul.msk.f32.gmra.mxu3 %vm1191_vm1, %v9595_v33  ;;  %7499 = vmatmul.msk.f32.gmra.mxu0 %vm1191_vm1, %v9204_v59 }
 0x1db   : > { %7429 = vmatmul.msk.f32.gmra.mxu2 %vm1191_vm1, %v9671_v37  ;;  %7548 = vmatmul.msk.f32.gmra.mxu1 %vm1191_vm1, %v9204_v59 }
 0x1dd   : > { %v9681_v45 = vpop.f32.mrf.mxu3 }
 0x1de   : > { %16775 = vst [vmem:[#allocation84_spill] sm:$0xff] %v9681_v45  ;;  %v9683_v28 = vpop.f32.mrf.mxu2  ;;  %v9709_v45 = vld [vmem:[%s9003_s26 + $0x110] sm:$0xff] }
 0x1df   : > { %16776 = vst [vmem:[#allocation85_spill] sm:$0xff] %v9683_v28  ;;  %v9685_v40 = vpop.f32.mrf.mxu0 }
 0x1e0   : > { %16777 = vst [vmem:[#allocation86_spill] sm:$0xff] %v9685_v40  ;;  %v9687_v24 = vpop.f32.mrf.mxu1 }
 0x1e1   : > { %16778 = vst [vmem:[#allocation87_spill] sm:$0xff] %v9687_v24 }
 0x1e2   : > { %7475 = vmatmul.msk.f32.gmra.mxu3 %vm1191_vm1, %v9614_v34  ;;  %7500 = vmatmul.msk.f32.gmra.mxu0 %vm1191_vm1, %v9222_v1 }
 0x1e3   : > { %7430 = vmatmul.msk.f32.gmra.mxu2 %vm1191_vm1, %v9690_v41  ;;  %7549 = vmatmul.msk.f32.gmra.mxu1 %vm1191_vm1, %v9222_v1 }
 0x1e5   : > { %v9700_v59 = vpop.f32.mrf.mxu3 }
 0x1e6   : > { %16779 = vst [vmem:[#allocation88_spill] sm:$0xff] %v9700_v59  ;;  %v9702_v40 = vpop.f32.mrf.mxu2  ;;  %v9728_v59 = vld [vmem:[%s9003_s26 + $0x118] sm:$0xff] }
 0x1e7   : > { %16780 = vst [vmem:[#allocation89_spill] sm:$0xff] %v9702_v40  ;;  %v9704_v24 = vpop.f32.mrf.mxu0 }
 0x1e8   : > { %16781 = vst [vmem:[#allocation90_spill] sm:$0xff] %v9704_v24  ;;  %v9706_v28 = vpop.f32.mrf.mxu1 }
 0x1e9   : > { %16782 = vst [vmem:[#allocation91_spill] sm:$0xff] %v9706_v28 }
 0x1ea   : > { %7476 = vmatmul.msk.f32.gmra.mxu3 %vm1191_vm1, %v9633_v12  ;;  %7501 = vmatmul.msk.f32.gmra.mxu0 %vm1191_vm1, %v9240_v7 }
 0x1eb   : > { %7431 = vmatmul.msk.f32.gmra.mxu2 %vm1191_vm1, %v9709_v45  ;;  %7550 = vmatmul.msk.f32.gmra.mxu1 %vm1191_vm1, %v9240_v7 }
 0x1ed   : > { %v9719_v1 = vpop.f32.mrf.mxu3 }
 0x1ee   : > { %16783 = vst [vmem:[#allocation92_spill] sm:$0xff] %v9719_v1  ;;  %v9721_v24 = vpop.f32.mrf.mxu2  ;;  %v9747_v1 = vld [vmem:[%s9003_s26 + $0x120] sm:$0xff] }
 0x1ef   : > { %16784 = vst [vmem:[#allocation93_spill] sm:$0xff] %v9721_v24  ;;  %v9723_v28 = vpop.f32.mrf.mxu0 }
 0x1f0   : > { %16785 = vst [vmem:[#allocation94_spill] sm:$0xff] %v9723_v28  ;;  %v9725_v40 = vpop.f32.mrf.mxu1 }
 0x1f1   : > { %16786 = vst [vmem:[#allocation95_spill] sm:$0xff] %v9725_v40 }
 0x1f2   : > { %7477 = vmatmul.msk.f32.gmra.mxu3 %vm1191_vm1, %v9652_v35  ;;  %7502 = vmatmul.msk.f32.gmra.mxu0 %vm1191_vm1, %v9258_v13 }
 0x1f3   : > { %7432 = vmatmul.msk.f32.gmra.mxu2 %vm1191_vm1, %v9728_v59  ;;  %7551 = vmatmul.msk.f32.gmra.mxu1 %vm1191_vm1, %v9258_v13  ;;  %v963_v13 = vld [vmem:[%s16513_s1 + $0x120] sm:$0xff] }
 0x1f4   : > { %3040 = vmatpush.msra.mxu0 %v963_v13 }
 0x1f5   : > { %v9738_v7 = vpop.f32.mrf.mxu3 }
 0x1f6   : > { %16787 = vst [vmem:[#allocation96_spill] sm:$0xff] %v9738_v7  ;;  %v9740_v24 = vpop.f32.mrf.mxu2 }
 0x1f7   : > { %16788 = vst [vmem:[#allocation97_spill] sm:$0xff] %v9740_v24  ;;  %v9742_v40 = vpop.f32.mrf.mxu0 }
 0x1f8   : > { %16789 = vst [vmem:[#allocation98_spill] sm:$0xff] %v9742_v40  ;;  %v9744_v28 = vpop.f32.mrf.mxu1 }
 0x1f9   : > { %16790 = vst [vmem:[#allocation99_spill] sm:$0xff] %v9744_v28  ;;  %v964_v28 = vld [vmem:[%s16513_s1 + $0x128] sm:$0xff] }
 0x1fa   : > { %7478 = vmatmul.msk.f32.gmra.mxu3 %vm1191_vm1, %v9671_v37  ;;  %7503 = vmatmul.msk.f32.gmra.mxu0 %vm1191_vm1, %v9276_v19 }
 0x1fb   : > { %7433 = vmatmul.msk.f32.gmra.mxu2 %vm1191_vm1, %v9747_v1  ;;  %7552 = vmatmul.msk.f32.gmra.mxu1 %vm1191_vm1, %v9276_v19  ;;  %v9772_v19 = vld [vmem:[%s9003_s26 + $0x128] sm:$0xff] }
 0x1fc   : > { %3201 = vmatpush.msra.mxu1 %v964_v28 }
 0x1fd   : > { %v9763_v40 = vpop.f32.mrf.mxu3 }
 0x1fe   : > { %16791 = vst [vmem:[#allocation100_spill] sm:$0xff] %v9763_v40  ;;  %v9765_v24 = vpop.f32.mrf.mxu2  ;;  %v9828_v40 = vld [vmem:[%s9003_s26 + $0x138] sm:$0xff] }
 0x1ff   : > { %16792 = vst [vmem:[#allocation101_spill] sm:$0xff] %v9765_v24  ;;  %v9767_v7 = vpop.f32.mrf.mxu0  ;;  %v9791_v24 = vld [vmem:[%s9003_s26 + $0x130] sm:$0xff] }
 0x200   : > { %16793 = vst [vmem:[#allocation102_spill] sm:$0xff] %v9767_v7  ;;  %v9769_v18 = vpop.f32.mrf.mxu1 }
 0x201   : > { %16794 = vst [vmem:[#allocation103_spill] sm:$0xff] %v9769_v18 }
 0x202   : > { %7479 = vmatmul.msk.f32.gmra.mxu3 %vm1191_vm1, %v9690_v41  ;;  %7504 = vmatmul.msk.f32.gmra.mxu0 %vm1191_vm1, %v9294_v25 }
 0x203   : > { %7434 = vmatmul.msk.f32.gmra.mxu2 %vm1191_vm1, %v9772_v19  ;;  %7553 = vmatmul.msk.f32.gmra.mxu1 %vm1191_vm1, %v9294_v25  ;;  %v9804_v25 = vld [vmem:[%s16513_s1 + $0xc0] sm:$0xff] }
 0x204   : > { %16799 = vst [vmem:[#allocation108_spill] sm:$0xff] %v9804_v25  ;;  %2606 = vmatpush.msra.mxu2 %v9804_v25 }
 0x205   : > { %v9782_v28 = vpop.f32.mrf.mxu3 }
 0x206   : > { %16795 = vst [vmem:[#allocation104_spill] sm:$0xff] %v9782_v28  ;;  %v9784_v13 = vpop.f32.mrf.mxu2  ;;  %7788 = vmatpush.msk.msrb.mxu2 %vm1336_vm0, %v8949_v48 }
 0x207   : > { %16796 = vst [vmem:[#allocation105_spill] sm:$0xff] %v9784_v13  ;;  %v9786_v7 = vpop.f32.mrf.mxu0 }
 0x208   : > { %16797 = vst [vmem:[#allocation106_spill] sm:$0xff] %v9786_v7  ;;  %v9788_v18 = vpop.f32.mrf.mxu1  ;;  %3458 = vmatpush.msrb.mxu2 %v8959_v50 }
 0x209   : > { %16798 = vst [vmem:[#allocation107_spill] sm:$0xff] %v9788_v18  ;;  %v9809_v18 = vld [vmem:[%s16513_s1 + $0xc8] sm:$0xff] }
 0x20a   : > { %7480 = vmatmul.msk.f32.gmra.mxu3 %vm1191_vm1, %v9709_v45  ;;  %7505 = vmatmul.msk.f32.gmra.mxu0 %vm1191_vm1, %v9312_v31  ;;  %16800 = vst [vmem:[#allocation109_spill] sm:$0xff] %v9809_v18 }
 0x20b   : > { %7435 = vmatmul.msk.f32.gmra.mxu2 %vm1191_vm1, %v9791_v24  ;;  %7554 = vmatmul.msk.f32.gmra.mxu1 %vm1191_vm1, %v9312_v31 }
 0x20c   : > { %2767 = vmatpush.msrb.mxu3 %v9809_v18  ;;  %3459 = vmatpush.msrb.mxu2 %v8978_v52  ;;  %v9851_v52 = vld [vmem:[%s9003_s26 + $0x140] sm:$0xff] }
 0x20d   : > { %v9813_v7 = vpop.f32.mrf.mxu3  ;;  %v8343_v18 = vld [vmem:[%s9003_s26 + $0x1e0] sm:$0xff] }
 0x20e   : > { %16801 = vst [vmem:[#allocation110_spill] sm:$0xff] %v9813_v7  ;;  %7837 = vmatpush.msk.msra.mxu3 %vm1336_vm0, %v8954_v49  ;;  %v9819_v31 = vpop.f32.mrf.mxu2  ;;  %3460 = vmatpush.msrb.mxu2 %v8992_v54 }
 0x20f   : > { %16802 = vst [vmem:[#allocation111_spill] sm:$0xff] %v9819_v31  ;;  %v9821_v13 = vpop.f32.mrf.mxu0  ;;  %v9984_v31 = vld [vmem:[%s9003_s26 + $0x178] sm:$0xff] }
 0x210   : > { %16803 = vst [vmem:[#allocation112_spill] sm:$0xff] %v9821_v13  ;;  %3619 = vmatpush.msra.mxu3 %v8968_v51  ;;  %v9825_v28 = vpop.f32.mrf.mxu1 }
 0x211   : > { %16804 = vst [vmem:[#allocation113_spill] sm:$0xff] %v9825_v28 }
 0x212   : > { %3620 = vmatpush.msra.mxu3 %v8985_v53  ;;  %7506 = vmatmul.msk.f32.gmra.mxu0 %vm1191_vm1, %v9336_v63 }
 0x213   : > { %7481 = vmatmul.msk.f32.gmra.mxu3 %vm1191_vm1, %v9728_v59  ;;  %7436 = vmatmul.msk.f32.gmra.mxu2 %vm1191_vm1, %v9828_v40 }
 0x214   : > { %7555 = vmatmul.msk.f32.gmra.mxu1 %vm1191_vm1, %v9336_v63  ;;  %3621 = vmatpush.msra.mxu3 %v8999_v55 }
 0x215   : > { %v9842_v48 = vpop.f32.mrf.mxu3 }
 0x216   : > { %16805 = vst [vmem:[#allocation114_spill] sm:$0xff] %v9842_v48  ;;  %v9844_v49 = vpop.f32.mrf.mxu2 }
 0x217   : > { %16806 = vst [vmem:[#allocation115_spill] sm:$0xff] %v9844_v49  ;;  %v9846_v50 = vpop.f32.mrf.mxu0  ;;  %v9965_v49 = vld [vmem:[%s9003_s26 + $0x170] sm:$0xff] }
 0x218   : > { %16807 = vst [vmem:[#allocation116_spill] sm:$0xff] %v9846_v50  ;;  %v9848_v51 = vpop.f32.mrf.mxu1  ;;  %v9889_v50 = vld [vmem:[%s9003_s26 + $0x150] sm:$0xff] }
 0x219   : > { %16808 = vst [vmem:[#allocation117_spill] sm:$0xff] %v9848_v51  ;;  %v9870_v51 = vld [vmem:[%s9003_s26 + $0x148] sm:$0xff] }
 0x21a   : > { %7507 = vmatmul.msk.f32.gmra.mxu0 %vm1191_vm1, %v9366_v36 }
 0x21b   : > { %7482 = vmatmul.msk.f32.gmra.mxu3 %vm1191_vm1, %v9747_v1  ;;  %7437 = vmatmul.msk.f32.gmra.mxu2 %vm1191_vm1, %v9851_v52 }
 0x21c   : > { %7556 = vmatmul.msk.f32.gmra.mxu1 %vm1191_vm1, %v9366_v36 }
 0x21d   : > { %v9861_v53 = vpop.f32.mrf.mxu3 }
 0x21e   : > { %16809 = vst [vmem:[#allocation118_spill] sm:$0xff] %v9861_v53  ;;  %v9863_v54 = vpop.f32.mrf.mxu2 }
 0x21f   : > { %16810 = vst [vmem:[#allocation119_spill] sm:$0xff] %v9863_v54  ;;  %v9865_v55 = vpop.f32.mrf.mxu0  ;;  %v9946_v54 = vld [vmem:[%s9003_s26 + $0x168] sm:$0xff] }
 0x220   : > { %16811 = vst [vmem:[#allocation120_spill] sm:$0xff] %v9865_v55  ;;  %v9867_v63 = vpop.f32.mrf.mxu1 }
 0x221   : > { %16812 = vst [vmem:[#allocation121_spill] sm:$0xff] %v9867_v63 }
 0x222   : > { %7508 = vmatmul.msk.f32.gmra.mxu0 %vm1191_vm1, %v9384_v15 }
 0x223   : > { %7483 = vmatmul.msk.f32.gmra.mxu3 %vm1191_vm1, %v9772_v19  ;;  %7438 = vmatmul.msk.f32.gmra.mxu2 %vm1191_vm1, %v9870_v51 }
 0x224   : > { %7557 = vmatmul.msk.f32.gmra.mxu1 %vm1191_vm1, %v9384_v15 }
 0x225   : > { %v9880_v36 = vpop.f32.mrf.mxu3 }
 0x226   : > { %16813 = vst [vmem:[#allocation122_spill] sm:$0xff] %v9880_v36  ;;  %v9882_v28 = vpop.f32.mrf.mxu2 }
 0x227   : > { %16814 = vst [vmem:[#allocation123_spill] sm:$0xff] %v9882_v28  ;;  %v9884_v63 = vpop.f32.mrf.mxu0  ;;  %v9908_v28 = vld [vmem:[%s9003_s26 + $0x158] sm:$0xff] }
 0x228   : > { %16815 = vst [vmem:[#allocation124_spill] sm:$0xff] %v9884_v63  ;;  %v9886_v55 = vpop.f32.mrf.mxu1 }
 0x229   : > { %16816 = vst [vmem:[#allocation125_spill] sm:$0xff] %v9886_v55 }
 0x22a   : > { %7509 = vmatmul.msk.f32.gmra.mxu0 %vm1191_vm1, %v9402_v3 }
 0x22b   : > { %7484 = vmatmul.msk.f32.gmra.mxu3 %vm1191_vm1, %v9791_v24  ;;  %7439 = vmatmul.msk.f32.gmra.mxu2 %vm1191_vm1, %v9889_v50 }
 0x22c   : > { %7558 = vmatmul.msk.f32.gmra.mxu1 %vm1191_vm1, %v9402_v3 }
 0x22d   : > { %v9899_v15 = vpop.f32.mrf.mxu3 }
 0x22e   : > { %16817 = vst [vmem:[#allocation126_spill] sm:$0xff] %v9899_v15  ;;  %v9901_v63 = vpop.f32.mrf.mxu2  ;;  %v9927_v15 = vld [vmem:[%s9003_s26 + $0x160] sm:$0xff] }
 0x22f   : > { %16818 = vst [vmem:[#allocation127_spill] sm:$0xff] %v9901_v63  ;;  %v9903_v55 = vpop.f32.mrf.mxu0 }
 0x230   : > { %16819 = vst [vmem:[#allocation128_spill] sm:$0xff] %v9903_v55  ;;  %v9905_v13 = vpop.f32.mrf.mxu1 }
 0x231   : > { %16820 = vst [vmem:[#allocation129_spill] sm:$0xff] %v9905_v13 }
 0x232   : > { %7510 = vmatmul.msk.f32.gmra.mxu0 %vm1191_vm1, %v9420_v47 }
 0x233   : > { %7485 = vmatmul.msk.f32.gmra.mxu3 %vm1191_vm1, %v9828_v40  ;;  %7440 = vmatmul.msk.f32.gmra.mxu2 %vm1191_vm1, %v9908_v28 }
 0x234   : > { %7559 = vmatmul.msk.f32.gmra.mxu1 %vm1191_vm1, %v9420_v47 }
 0x235   : > { %v9918_v3 = vpop.f32.mrf.mxu3 }
 0x236   : > { %16821 = vst [vmem:[#allocation130_spill] sm:$0xff] %v9918_v3  ;;  %v9920_v55 = vpop.f32.mrf.mxu2 }
 0x237   : > { %16822 = vst [vmem:[#allocation131_spill] sm:$0xff] %v9920_v55  ;;  %v9922_v13 = vpop.f32.mrf.mxu0 }
 0x238   : > { %v9924_v63 = vpop.f32.mrf.mxu1 }
 0x23a   : > { %7511 = vmatmul.msk.f32.gmra.mxu0 %vm1191_vm1, %v9438_v46 }
 0x23b   : > { %7486 = vmatmul.msk.f32.gmra.mxu3 %vm1191_vm1, %v9851_v52  ;;  %7441 = vmatmul.msk.f32.gmra.mxu2 %vm1191_vm1, %v9927_v15 }
 0x23c   : > { %7560 = vmatmul.msk.f32.gmra.mxu1 %vm1191_vm1, %v9438_v46 }
 0x23d   : > { %v9937_v47 = vpop.f32.mrf.mxu3 }
 0x23e   : > { %16823 = vst [vmem:[#allocation132_spill] sm:$0xff] %v9937_v47  ;;  %v9939_v55 = vpop.f32.mrf.mxu2 }
 0x23f   : > { %16824 = vst [vmem:[#allocation133_spill] sm:$0xff] %v9939_v55  ;;  %v9941_v3 = vpop.f32.mrf.mxu0 }
 0x240   : > { %v9943_v36 = vpop.f32.mrf.mxu1 }
 0x242   : > { %7512 = vmatmul.msk.f32.gmra.mxu0 %vm1191_vm1, %v9456_v17 }
 0x243   : > { %7487 = vmatmul.msk.f32.gmra.mxu3 %vm1191_vm1, %v9870_v51  ;;  %7442 = vmatmul.msk.f32.gmra.mxu2 %vm1191_vm1, %v9946_v54 }
 0x244   : > { %7561 = vmatmul.msk.f32.gmra.mxu1 %vm1191_vm1, %v9456_v17 }
 0x245   : > { %v9956_v46 = vpop.f32.mrf.mxu3 }
 0x246   : > { %16825 = vst [vmem:[#allocation134_spill] sm:$0xff] %v9956_v46  ;;  %v9958_v55 = vpop.f32.mrf.mxu2 }
 0x247   : > { %16826 = vst [vmem:[#allocation135_spill] sm:$0xff] %v9958_v55  ;;  %v9960_v47 = vpop.f32.mrf.mxu0 }
 0x248   : > { %v9962_v53 = vpop.f32.mrf.mxu1 }
 0x24a   : > { %7513 = vmatmul.msk.f32.gmra.mxu0 %vm1191_vm1, %v9474_v20 }
 0x24b   : > { %7488 = vmatmul.msk.f32.gmra.mxu3 %vm1191_vm1, %v9889_v50  ;;  %7443 = vmatmul.msk.f32.gmra.mxu2 %vm1191_vm1, %v9965_v49 }
 0x24c   : > { %7562 = vmatmul.msk.f32.gmra.mxu1 %vm1191_vm1, %v9474_v20 }
 0x24d   : > { %v9975_v17 = vpop.f32.mrf.mxu3 }
 0x24e   : > { %16827 = vst [vmem:[#allocation136_spill] sm:$0xff] %v9975_v17  ;;  %v9977_v55 = vpop.f32.mrf.mxu2 }
 0x24f   : > { %16828 = vst [vmem:[#allocation137_spill] sm:$0xff] %v9977_v55  ;;  %v9979_v46 = vpop.f32.mrf.mxu0 }
 0x250   : > { %v9981_v48 = vpop.f32.mrf.mxu1 }
 0x251   : > { %16829 = vst [vmem:[#allocation138_spill] sm:$0xff] %v9981_v48  ;;  %v8345_v48 = vld [vmem:[%s16513_s1 + $0xa0] sm:$0xff] }
 0x252   : > { %7514 = vmatmul.msk.f32.gmra.mxu0 %vm1191_vm1, %v9492_v30 }
 0x253   : > { %7489 = vmatmul.msk.f32.gmra.mxu3 %vm1191_vm1, %v9908_v28  ;;  %7444 = vmatmul.msk.f32.gmra.mxu2 %vm1191_vm1, %v9984_v31 }
 0x254   : > { %7563 = vmatmul.msk.f32.gmra.mxu1 %vm1191_vm1, %v9492_v30  ;;  %v961_v30 = vld [vmem:[%s16513_s1 + $0x110] sm:$0xff] }
 0x255   : > { %v9994_v20 = vpop.f32.mrf.mxu3  ;;  %3041 = vmatpush.msra.mxu0 %v961_v30 }
 0x256   : > { %16830 = vst [vmem:[#allocation139_spill] sm:$0xff] %v9994_v20  ;;  %v9996_v55 = vpop.f32.mrf.mxu2 }
 0x257   : > { %16831 = vst [vmem:[#allocation140_spill] sm:$0xff] %v9996_v55  ;;  %v9998_v17 = vpop.f32.mrf.mxu0  ;;  %v962_v55 = vld [vmem:[%s16513_s1 + $0x118] sm:$0xff] }
 0x258   : > { %v10000_v7 = vpop.f32.mrf.mxu1  ;;  %3202 = vmatpush.msra.mxu1 %v962_v55  ;;  %v8346_v55 = vld [vmem:[%s9003_s26 + $0x1e8] sm:$0xff] }
 0x259   : > { %16832 = vst [vmem:[#allocation141_spill] sm:$0xff] %v10000_v7 }
 0x25a   : > { %7515 = vmatmul.msk.f32.gmra.mxu0 %vm1191_vm1, %v9510_v29 }
 0x25b   : > { %7490 = vmatmul.msk.f32.gmra.mxu3 %vm1191_vm1, %v9927_v15  ;;  %7593 = vmatmul.msk.f32.vlgmr.msra.gmra.mxu2 %vm1191_vm1, %v8343_v18 }
 0x25c   : > { %7564 = vmatmul.msk.f32.gmra.mxu1 %vm1191_vm1, %v9510_v29  ;;  %v8344_v29 = vld [vmem:[%s16513_s1 + $0xb0] sm:$0xf] }
 0x25d   : > { %v10016_v20 = vpop.f32.mrf.mxu3  ;;  %7984 = vmatpush.msk.msra.mxu2 %vm1336_vm0, %v8344_v29 }
 0x25e   : > { %16833 = vst [vmem:[#allocation142_spill] sm:$0xff] %v10016_v20  ;;  %v10022_v25 = vpop.f32.mrf.mxu2 }
 0x25f   : > { %16834 = vst [vmem:[#allocation143_spill] sm:$0xff] %v10022_v25  ;;  %v10024_v7 = vpop.f32.mrf.mxu0  ;;  %4102 = vmatpush.msra.mxu2 %v8345_v48 }
 0x260   : > { %v10029_v30 = vpop.f32.mrf.mxu1 }
 0x261   : > { %16835 = vst [vmem:[#allocation144_spill] sm:$0xff] %v10029_v30  ;;  %4103 = vmatpush.msra.mxu2 %v9163_v38 }
 0x262   : > { %7516 = vmatmul.msk.f32.gmra.mxu0 %vm1191_vm1, %v9536_v27 }
 0x263   : > { %7491 = vmatmul.msk.f32.gmra.mxu3 %vm1191_vm1, %v9946_v54  ;;  %7594 = vmatmul.msk.f32.gmra.mxu2 %vm1191_vm1, %v8346_v55 }
 0x264   : > { %7565 = vmatmul.msk.f32.gmra.mxu1 %vm1191_vm1, %v9536_v27  ;;  %4104 = vmatpush.msra.mxu2 %v9341_v5  ;;  %v8347_v27 = vld [vmem:[%s9003_s26 + $0x1f0] sm:$0xff] }
 0x265   : > { %v10041_v48 = vpop.f32.mrf.mxu3 }
 0x266   : > { %16836 = vst [vmem:[#allocation145_spill] sm:$0xff] %v10041_v48  ;;  %v10043_v29 = vpop.f32.mrf.mxu2 }
 0x267   : > { %16837 = vst [vmem:[#allocation146_spill] sm:$0xff] %v10043_v29  ;;  %v10045_v38 = vpop.f32.mrf.mxu0 }
 0x268   : > { %v10047_v25 = vpop.f32.mrf.mxu1 }
 0x269   : > { %16838 = vst [vmem:[#allocation147_spill] sm:$0xff] %v10047_v25 }
 0x26a   : > { %7517 = vmatmul.msk.f32.gmra.mxu0 %vm1191_vm1, %v9554_v57 }
 0x26b   : > { %7492 = vmatmul.msk.f32.gmra.mxu3 %vm1191_vm1, %v9965_v49  ;;  %7595 = vmatmul.msk.f32.gmra.mxu2 %vm1191_vm1, %v8347_v27 }
 0x26c   : > { %7566 = vmatmul.msk.f32.gmra.mxu1 %vm1191_vm1, %v9554_v57  ;;  %v8348_v57 = vld [vmem:[%s9003_s26 + $0x1f8] sm:$0xff] }
 0x26d   : > { %v10057_v5 = vpop.f32.mrf.mxu3 }
 0x26e   : > { %16839 = vst [vmem:[#allocation148_spill] sm:$0xff] %v10057_v5  ;;  %v10059_v29 = vpop.f32.mrf.mxu2 }
 0x26f   : > { %16840 = vst [vmem:[#allocation149_spill] sm:$0xff] %v10059_v29  ;;  %v10061_v48 = vpop.f32.mrf.mxu0 }
 0x270   : > { %v10063_v20 = vpop.f32.mrf.mxu1 }
 0x271   : > { %16841 = vst [vmem:[#allocation150_spill] sm:$0xff] %v10063_v20 }
 0x272   : > { %7518 = vmatmul.msk.f32.gmra.mxu0 %vm1191_vm1, %v9578_v26 }
 0x273   : > { %7493 = vmatmul.msk.f32.gmra.mxu3 %vm1191_vm1, %v9984_v31  ;;  %7596 = vmatmul.msk.f32.gmra.mxu2 %vm1191_vm1, %v8348_v57 }
 0x274   : > { %7567 = vmatmul.msk.f32.gmra.mxu1 %vm1191_vm1, %v9578_v26  ;;  %v8349_v26 = vld [vmem:[%s9003_s26 + $0x200] sm:$0xff] }
 0x275   : > { %v10073_v5 = vpop.f32.mrf.mxu3 }
 0x276   : > { %16842 = vst [vmem:[#allocation151_spill] sm:$0xff] %v10073_v5  ;;  %v10075_v25 = vpop.f32.mrf.mxu2 }
 0x277   : > { %16843 = vst [vmem:[#allocation152_spill] sm:$0xff] %v10075_v25  ;;  %v10077_v29 = vpop.f32.mrf.mxu0  ;;  %v8350_v25 = vld [vmem:[%s16513_s1 + $0xb8] sm:$0xf] }
 0x278   : > { %v10079_v30 = vpop.f32.mrf.mxu1 }
 0x279   : > { %16844 = vst [vmem:[#allocation153_spill] sm:$0xff] %v10079_v30 }
 0x27a   : > { %7519 = vmatmul.msk.f32.gmra.mxu0 %vm1191_vm1, %v9595_v33 }
 0x27b   : > { %7642 = vmatmul.msk.f32.vlgmr.msrb.gmra.mxu3 %vm1191_vm1, %v8343_v18  ;;  %7597 = vmatmul.msk.f32.gmra.mxu2 %vm1191_vm1, %v8349_v26  ;;  %v8351_v18 = vld [vmem:[%s16513_s1 + $0xa8] sm:$0xff] }
 0x27c   : > { %7568 = vmatmul.msk.f32.gmra.mxu1 %vm1191_vm1, %v9595_v33  ;;  %8033 = vmatpush.msk.msrb.mxu3 %vm1336_vm0, %v8350_v25  ;;  %v8352_v25 = vld [vmem:[%s9003_s26 + $0x208] sm:$0xff] }
 0x27d   : > { %v10092_v5 = vpop.f32.mrf.mxu3 }
 0x27e   : > { %16845 = vst [vmem:[#allocation154_spill] sm:$0xff] %v10092_v5  ;;  %v10094_v30 = vpop.f32.mrf.mxu2  ;;  %4263 = vmatpush.msrb.mxu3 %v8351_v18 }
 0x27f   : > { %16846 = vst [vmem:[#allocation155_spill] sm:$0xff] %v10094_v30  ;;  %v10099_v20 = vpop.f32.mrf.mxu0 }
 0x280   : > { %v10101_v33 = vpop.f32.mrf.mxu1  ;;  %4264 = vmatpush.msrb.mxu3 %v9168_v39 }
 0x282   : > { %7520 = vmatmul.msk.f32.gmra.mxu0 %vm1191_vm1, %v9614_v34  ;;  %4265 = vmatpush.msrb.mxu3 %v9346_v11 }
 0x283   : > { %7643 = vmatmul.msk.f32.gmra.mxu3 %vm1191_vm1, %v8346_v55  ;;  %7598 = vmatmul.msk.f32.gmra.mxu2 %vm1191_vm1, %v8352_v25 }
 0x284   : > { %7569 = vmatmul.msk.f32.gmra.mxu1 %vm1191_vm1, %v9614_v34  ;;  %v8353_v34 = vld [vmem:[%s9003_s26 + $0x210] sm:$0xff] }
 0x285   : > { %v10112_v18 = vpop.f32.mrf.mxu3 }
 0x286   : > { %16847 = vst [vmem:[#allocation156_spill] sm:$0xff] %v10112_v18  ;;  %v10114_v30 = vpop.f32.mrf.mxu2 }
 0x287   : > { %16848 = vst [vmem:[#allocation157_spill] sm:$0xff] %v10114_v30  ;;  %v10116_v5 = vpop.f32.mrf.mxu0 }
 0x288   : > { %v10118_v39 = vpop.f32.mrf.mxu1 }
 0x289   : > { %16849 = vst [vmem:[#allocation158_spill] sm:$0xff] %v10118_v39 }
 0x28a   : > { %7521 = vmatmul.msk.f32.gmra.mxu0 %vm1191_vm1, %v9633_v12 }
 0x28b   : > { %7644 = vmatmul.msk.f32.gmra.mxu3 %vm1191_vm1, %v8347_v27  ;;  %7599 = vmatmul.msk.f32.gmra.mxu2 %vm1191_vm1, %v8353_v34 }
 0x28c   : > { %7570 = vmatmul.msk.f32.gmra.mxu1 %vm1191_vm1, %v9633_v12  ;;  %v8354_v12 = vld [vmem:[%s9003_s26 + $0x218] sm:$0xff] }
 0x28d   : > { %v10127_v11 = vpop.f32.mrf.mxu3 }
 0x28e   : > { %16850 = vst [vmem:[#allocation159_spill] sm:$0xff] %v10127_v11  ;;  %v10129_v55 = vpop.f32.mrf.mxu2 }
 0x28f   : > { %16851 = vst [vmem:[#allocation160_spill] sm:$0xff] %v10129_v55  ;;  %v10131_v30 = vpop.f32.mrf.mxu0 }
 0x291   : > { %v10133_v18 = vpop.f32.mrf.mxu1 }
 0x292   : > { %16852 = vst [vmem:[#allocation161_spill] sm:$0xff] %v10133_v18  ;;  %7522 = vmatmul.msk.f32.gmra.mxu0 %vm1191_vm1, %v9652_v35 }
 0x293   : > { %7645 = vmatmul.msk.f32.gmra.mxu3 %vm1191_vm1, %v8348_v57  ;;  %7600 = vmatmul.msk.f32.gmra.mxu2 %vm1191_vm1, %v8354_v12 }
 0x294   : > { %7571 = vmatmul.msk.f32.gmra.mxu1 %vm1191_vm1, %v9652_v35  ;;  %v8355_v35 = vld [vmem:[%s9003_s26 + $0x220] sm:$0xff] }
 0x296   : > { %v10142_v27 = vpop.f32.mrf.mxu3  ;;  %v10144_v11 = vpop.f32.mrf.mxu2 }
 0x297   : > { %16853 = vst [vmem:[#allocation162_spill] sm:$0xff] %v10142_v27  ;;  %v10146_v55 = vpop.f32.mrf.mxu0 }
 0x298   : > { %16854 = vst [vmem:[#allocation163_spill] sm:$0xff] %v10144_v11 }
 0x299   : > { %v10148_v39 = vpop.f32.mrf.mxu1 }
 0x29a   : > { %16855 = vst [vmem:[#allocation164_spill] sm:$0xff] %v10148_v39  ;;  %7523 = vmatmul.msk.f32.gmra.mxu0 %vm1191_vm1, %v9671_v37 }
 0x29b   : > { %7646 = vmatmul.msk.f32.gmra.mxu3 %vm1191_vm1, %v8349_v26  ;;  %7601 = vmatmul.msk.f32.gmra.mxu2 %vm1191_vm1, %v8355_v35 }
 0x29c   : > { %7572 = vmatmul.msk.f32.gmra.mxu1 %vm1191_vm1, %v9671_v37  ;;  %v8356_v37 = vld [vmem:[%s9003_s26 + $0x228] sm:$0xff] }
 0x29e   : > { %v10157_v57 = vpop.f32.mrf.mxu3  ;;  %v10159_v27 = vpop.f32.mrf.mxu2 }
 0x29f   : > { %16856 = vst [vmem:[#allocation165_spill] sm:$0xff] %v10157_v57  ;;  %v10161_v11 = vpop.f32.mrf.mxu0 }
 0x2a0   : > { %16857 = vst [vmem:[#allocation166_spill] sm:$0xff] %v10159_v27 }
 0x2a1   : > { %v10163_v18 = vpop.f32.mrf.mxu1 }
 0x2a2   : > { %16858 = vst [vmem:[#allocation167_spill] sm:$0xff] %v10163_v18  ;;  %7524 = vmatmul.msk.f32.gmra.mxu0 %vm1191_vm1, %v9690_v41 }
 0x2a3   : > { %7647 = vmatmul.msk.f32.gmra.mxu3 %vm1191_vm1, %v8352_v25  ;;  %7602 = vmatmul.msk.f32.gmra.mxu2 %vm1191_vm1, %v8356_v37 }
 0x2a4   : > { %7573 = vmatmul.msk.f32.gmra.mxu1 %vm1191_vm1, %v9690_v41  ;;  %v8357_v41 = vld [vmem:[%s9003_s26 + $0x230] sm:$0xff] }
 0x2a6   : > { %v10172_v26 = vpop.f32.mrf.mxu3  ;;  %v10174_v57 = vpop.f32.mrf.mxu2 }
 0x2a7   : > { %16859 = vst [vmem:[#allocation168_spill] sm:$0xff] %v10172_v26  ;;  %v10176_v27 = vpop.f32.mrf.mxu0 }
 0x2a8   : > { %16860 = vst [vmem:[#allocation169_spill] sm:$0xff] %v10174_v57 }
 0x2a9   : > { %v10178_v39 = vpop.f32.mrf.mxu1 }
 0x2aa   : > { %16861 = vst [vmem:[#allocation170_spill] sm:$0xff] %v10178_v39  ;;  %7525 = vmatmul.msk.f32.gmra.mxu0 %vm1191_vm1, %v9709_v45 }
 0x2ab   : > { %7648 = vmatmul.msk.f32.gmra.mxu3 %vm1191_vm1, %v8353_v34  ;;  %7603 = vmatmul.msk.f32.gmra.mxu2 %vm1191_vm1, %v8357_v41 }
 0x2ac   : > { %7574 = vmatmul.msk.f32.gmra.mxu1 %vm1191_vm1, %v9709_v45  ;;  %v8358_v45 = vld [vmem:[%s9003_s26 + $0x238] sm:$0xff] }
 0x2ae   : > { %v10187_v25 = vpop.f32.mrf.mxu3  ;;  %v10189_v26 = vpop.f32.mrf.mxu2 }
 0x2af   : > { %16862 = vst [vmem:[#allocation171_spill] sm:$0xff] %v10187_v25  ;;  %v10191_v57 = vpop.f32.mrf.mxu0 }
 0x2b0   : > { %16863 = vst [vmem:[#allocation172_spill] sm:$0xff] %v10189_v26 }
 0x2b1   : > { %v10193_v18 = vpop.f32.mrf.mxu1 }
 0x2b2   : > { %16864 = vst [vmem:[#allocation173_spill] sm:$0xff] %v10193_v18  ;;  %7526 = vmatmul.msk.f32.gmra.mxu0 %vm1191_vm1, %v9728_v59 }
 0x2b3   : > { %7649 = vmatmul.msk.f32.gmra.mxu3 %vm1191_vm1, %v8354_v12  ;;  %7604 = vmatmul.msk.f32.gmra.mxu2 %vm1191_vm1, %v8358_v45  ;;  %v959_v12 = vld [vmem:[%s16513_s1 + $0x100] sm:$0xff] }
 0x2b4   : > { %7575 = vmatmul.msk.f32.gmra.mxu1 %vm1191_vm1, %v9728_v59  ;;  %v8359_v59 = vld [vmem:[%s9003_s26 + $0x240] sm:$0xff]  ;;  %3042 = vmatpush.msra.mxu0 %v959_v12  ;;  %v8363_v12 = vld [vmem:[%s16513_s1 + $0x28] sm:$0xff] }
 0x2b6   : > { %v10202_v34 = vpop.f32.mrf.mxu3  ;;  %v10204_v25 = vpop.f32.mrf.mxu2 }
 0x2b7   : > { %16865 = vst [vmem:[#allocation174_spill] sm:$0xff] %v10202_v34  ;;  %v10206_v26 = vpop.f32.mrf.mxu0 }
 0x2b8   : > { %16866 = vst [vmem:[#allocation175_spill] sm:$0xff] %v10204_v25  ;;  %v960_v25 = vld [vmem:[%s16513_s1 + $0x108] sm:$0xff] }
 0x2b9   : > { %v10208_v39 = vpop.f32.mrf.mxu1  ;;  %3203 = vmatpush.msra.mxu1 %v960_v25  ;;  %v8362_v25 = vld [vmem:[%s16513_s1 + $0x20] sm:$0xff] }
 0x2ba   : > { %16867 = vst [vmem:[#allocation176_spill] sm:$0xff] %v10208_v39  ;;  %7527 = vmatmul.msk.f32.gmra.mxu0 %vm1191_vm1, %v9747_v1 }
 0x2bb   : > { %7650 = vmatmul.msk.f32.gmra.mxu3 %vm1191_vm1, %v8355_v35  ;;  %7605 = vmatmul.msk.f32.gmra.mxu2 %vm1191_vm1, %v8359_v59  ;;  %v8360_v35 = vld [vmem:[%s16513_s1 + $0x30] sm:$0xf] }
 0x2bc   : > { %7576 = vmatmul.msk.f32.gmra.mxu1 %vm1191_vm1, %v9747_v1  ;;  %7886 = vmatpush.msk.msrb.mxu0 %vm1336_vm0, %v8360_v35  ;;  %v8361_v1 = vld [vmem:[%s16513_s1 + $0x38] sm:$0xf] }
 0x2bd   : > { %7935 = vmatpush.msk.msrb.mxu1 %vm1336_vm0, %v8361_v1  ;;  %v8364_v1 = vld [vmem:[%s16513_s1 + $0x10] sm:$0xff] }
 0x2be   : > { %v10223_v34 = vpop.f32.mrf.mxu3  ;;  %v10233_v39 = vpop.f32.mrf.mxu2  ;;  %3780 = vmatpush.msrb.mxu0 %v8362_v25  ;;  %v8366_v25 = vld [vmem:[%s9003_s26 + $0x248] sm:$0xff] }
 0x2bf   : > { %16868 = vst [vmem:[#allocation177_spill] sm:$0xff] %v10223_v34  ;;  %v10235_v18 = vpop.f32.mrf.mxu0  ;;  %3941 = vmatpush.msrb.mxu1 %v8363_v12  ;;  %v8367_v12 = vld [vmem:[%s16513_s1] sm:$0xff] }
 0x2c0   : > { %16869 = vst [vmem:[#allocation178_spill] sm:$0xff] %v10233_v39  ;;  %3781 = vmatpush.msrb.mxu0 %v8364_v1  ;;  %v8365_v39 = vld [vmem:[%s16513_s1 + $0x18] sm:$0xff] }
 0x2c1   : > { %v10243_v35 = vpop.f32.mrf.mxu1  ;;  %3942 = vmatpush.msrb.mxu1 %v8365_v39  ;;  %v8368_v39 = vld [vmem:[%s16513_s1 + $0x8] sm:$0xff] }
 0x2c2   : > { %16870 = vst [vmem:[#allocation179_spill] sm:$0xff] %v10243_v35  ;;  %7528 = vmatmul.msk.f32.gmra.mxu0 %vm1191_vm1, %v9772_v19 }
 0x2c3   : > { %7651 = vmatmul.msk.f32.gmra.mxu3 %vm1191_vm1, %v8356_v37  ;;  %7606 = vmatmul.msk.f32.gmra.mxu2 %vm1191_vm1, %v8366_v25 }
 0x2c4   : > { %7577 = vmatmul.msk.f32.gmra.mxu1 %vm1191_vm1, %v9772_v19  ;;  %3782 = vmatpush.msrb.mxu0 %v8367_v12  ;;  %v8369_v12 = vld [vmem:[%s9003_s26 + $0x250] sm:$0xff] }
 0x2c5   : > { %3943 = vmatpush.msrb.mxu1 %v8368_v39 }
 0x2c6   : > { %v10264_v1 = vpop.f32.mrf.mxu3  ;;  %v10266_v37 = vpop.f32.mrf.mxu2 }
 0x2c7   : > { %16871 = vst [vmem:[#allocation180_spill] sm:$0xff] %v10264_v1  ;;  %v10268_v34 = vpop.f32.mrf.mxu0 }
 0x2c8   : > { %16872 = vst [vmem:[#allocation181_spill] sm:$0xff] %v10266_v37 }
 0x2c9   : > { %v10270_v19 = vpop.f32.mrf.mxu1 }
 0x2ca   : > { %16873 = vst [vmem:[#allocation182_spill] sm:$0xff] %v10270_v19  ;;  %7529 = vmatmul.msk.f32.gmra.mxu0 %vm1191_vm1, %v9791_v24 }
 0x2cb   : > { %7652 = vmatmul.msk.f32.gmra.mxu3 %vm1191_vm1, %v8357_v41  ;;  %7607 = vmatmul.msk.f32.gmra.mxu2 %vm1191_vm1, %v8369_v12 }
 0x2cc   : > { %7578 = vmatmul.msk.f32.gmra.mxu1 %vm1191_vm1, %v9791_v24  ;;  %v8370_v24 = vld [vmem:[%s9003_s26 + $0x258] sm:$0xff] }
 0x2ce   : > { %v10279_v39 = vpop.f32.mrf.mxu3  ;;  %v10281_v1 = vpop.f32.mrf.mxu2 }
 0x2cf   : > { %16874 = vst [vmem:[#allocation183_spill] sm:$0xff] %v10279_v39  ;;  %v10283_v37 = vpop.f32.mrf.mxu0 }
 0x2d0   : > { %16875 = vst [vmem:[#allocation184_spill] sm:$0xff] %v10281_v1 }
 0x2d1   : > { %16876 = vst [vmem:[#allocation185_spill] sm:$0xff] %v10283_v37  ;;  %v10285_v35 = vpop.f32.mrf.mxu1 }
 0x2d2   : > { %16877 = vst [vmem:[#allocation186_spill] sm:$0xff] %v10285_v35  ;;  %7530 = vmatmul.msk.f32.gmra.mxu0 %vm1191_vm1, %v9828_v40 }
 0x2d3   : > { %7653 = vmatmul.msk.f32.gmra.mxu3 %vm1191_vm1, %v8358_v45  ;;  %7608 = vmatmul.msk.f32.gmra.mxu2 %vm1191_vm1, %v8370_v24  ;;  %v8371_v45 = vld [vmem:[%s9003_s26 + $0x260] sm:$0xff] }
 0x2d4   : > { %7579 = vmatmul.msk.f32.gmra.mxu1 %vm1191_vm1, %v9828_v40  ;;  %v1833_v40 = vadd.f32 %v9376_v23, %v9181_v42  ;;  %v1836_v42 = vadd.f32 %v9394_v43, %v9198_v56  ;;  %v8372_v23 = vld [vmem:[%s9003_s26 + $0x268] sm:$0xff]  ;;  %v1839_v56 = vadd.f32 %v9412_v32, %v9216_v62  ;;  %v8373_v43 = vld [vmem:[%s9003_s26 + $0x270] sm:$0xff]  ;;  %v1842_v62 = vadd.f32 %v9430_v21, %v9234_v4  ;;  %v8374_v32 = vld [vmem:[%s9003_s26 + $0x278] sm:$0xff] }
 0x2d5   : > { %v1994_v4 = vadd.f32 %v9446_v61, %v9184_v44  ;;  %v1845_v21 = vadd.f32 %v9448_v9, %v9252_v10  ;;  %v1997_v9 = vadd.f32 %v9464_v2, %v9201_v58 }
 0x2d6   : > { %v10294_v41 = vpop.f32.mrf.mxu3  ;;  %v10296_v39 = vpop.f32.mrf.mxu2 }
 0x2d7   : > { %16878 = vst [vmem:[#allocation187_spill] sm:$0xff] %v10294_v41  ;;  %v10298_v1 = vpop.f32.mrf.mxu0 }
 0x2d8   : > { %16879 = vst [vmem:[#allocation188_spill] sm:$0xff] %v10296_v39  ;;  %v2477_v39 = vadd.f32 %v9922_v13, %v1833_v40  ;;  %v2479_v13 = vadd.f32 %v9941_v3, %v1836_v42 }
 0x2d9   : > { %16880 = vst [vmem:[#allocation189_spill] sm:$0xff] %v10298_v1  ;;  %v10300_v19 = vpop.f32.mrf.mxu1 }
 0x2da   : > { %16881 = vst [vmem:[#allocation190_spill] sm:$0xff] %v10300_v19  ;;  %7531 = vmatmul.msk.f32.gmra.mxu0 %vm1191_vm1, %v9851_v52 }
 0x2db   : > { %7654 = vmatmul.msk.f32.gmra.mxu3 %vm1191_vm1, %v8359_v59  ;;  %7609 = vmatmul.msk.f32.gmra.mxu2 %vm1191_vm1, %v8371_v45 }
 0x2dc   : > { %7580 = vmatmul.msk.f32.gmra.mxu1 %vm1191_vm1, %v9851_v52 }
 0x2de   : > { %v10312_v41 = vpop.f32.mrf.mxu3  ;;  %v2608_v19 = vpop.f32.mrf.mxu2 }
 0x2df   : > { %16882 = vst [vmem:[#allocation191_spill] sm:$0xff] %v10312_v41  ;;  %v10314_v35 = vadd.f32 %v2608_v19, %v2477_v39  ;;  %v10316_v1 = vpop.f32.mrf.mxu0  ;;  %v16910_v41 = vld [vmem:[#allocation64_spill] sm:$0xff] }
 0x2e1   : > { %v10318_v37 = vpop.f32.mrf.mxu1 }
 0x2e2   : > { %7532 = vmatmul.msk.f32.gmra.mxu0 %vm1191_vm1, %v9870_v51 }
 0x2e3   : > { %7655 = vmatmul.msk.f32.gmra.mxu3 %vm1191_vm1, %v8366_v25  ;;  %7610 = vmatmul.msk.f32.gmra.mxu2 %vm1191_vm1, %v8372_v23 }
 0x2e4   : > { %7581 = vmatmul.msk.f32.gmra.mxu1 %vm1191_vm1, %v9870_v51  ;;  %v2481_v51 = vadd.f32 %v9960_v47, %v1839_v56 }
 0x2e6   : > { %v10330_v52 = vpop.f32.mrf.mxu3  ;;  %v2611_v59 = vpop.f32.mrf.mxu2 }
 0x2e7   : > { %16883 = vst [vmem:[#allocation192_spill] sm:$0xff] %v10330_v52  ;;  %v10332_v19 = vadd.f32 %v2611_v59, %v2479_v13  ;;  %v10334_v39 = vpop.f32.mrf.mxu0 }
 0x2e9   : > { %v10336_v40 = vpop.f32.mrf.mxu1 }
 0x2ea   : > { %7533 = vmatmul.msk.f32.gmra.mxu0 %vm1191_vm1, %v9889_v50 }
 0x2eb   : > { %7656 = vmatmul.msk.f32.gmra.mxu3 %vm1191_vm1, %v8369_v12  ;;  %7611 = vmatmul.msk.f32.gmra.mxu2 %vm1191_vm1, %v8373_v43 }
 0x2ec   : > { %7582 = vmatmul.msk.f32.gmra.mxu1 %vm1191_vm1, %v9889_v50  ;;  %v2483_v50 = vadd.f32 %v9979_v46, %v1842_v62  ;;  %v2478_v46 = vadd.f32 %v9924_v63, %v1994_v4  ;;  %v1848_v63 = vadd.f32 %v9466_v14, %v9270_v16  ;;  %v2000_v16 = vadd.f32 %v9482_v60, %v9219_v0 }
 0x2ee   : > { %v10348_v3 = vpop.f32.mrf.mxu3  ;;  %v2614_v25 = vpop.f32.mrf.mxu2 }
 0x2ef   : > { %16884 = vst [vmem:[#allocation193_spill] sm:$0xff] %v10348_v3  ;;  %v10350_v42 = vadd.f32 %v2614_v25, %v2481_v51  ;;  %v10352_v13 = vpop.f32.mrf.mxu0  ;;  %v2485_v25 = vadd.f32 %v9998_v17, %v1845_v21  ;;  %v2480_v17 = vadd.f32 %v9943_v36, %v1997_v9  ;;  %v2482_v36 = vadd.f32 %v9962_v53, %v2000_v16  ;;  %v16887_v53 = vld [vmem:[#allocation20_spill] sm:$0xff]  ;;  %v8378_v9 = vld [vmem:[%s9003_s26 + $0x298] sm:$0xff] }
 0x2f1   : > { %v10354_v59 = vpop.f32.mrf.mxu1 }
 0x2f2   : > { %7534 = vmatmul.msk.f32.gmra.mxu0 %vm1191_vm1, %v9908_v28 }
 0x2f3   : > { %7657 = vmatmul.msk.f32.gmra.mxu3 %vm1191_vm1, %v8370_v24  ;;  %7612 = vmatmul.msk.f32.gmra.mxu2 %vm1191_vm1, %v8374_v32 }
 0x2f4   : > { %7583 = vmatmul.msk.f32.gmra.mxu1 %vm1191_vm1, %v9908_v28  ;;  %v8375_v28 = vld [vmem:[%s9003_s26 + $0x280] sm:$0xff] }
 0x2f6   : > { %v10366_v47 = vpop.f32.mrf.mxu3  ;;  %v2617_v12 = vpop.f32.mrf.mxu2 }
 0x2f7   : > { %16885 = vst [vmem:[#allocation194_spill] sm:$0xff] %v10366_v47  ;;  %v10368_v56 = vadd.f32 %v2617_v12, %v2483_v50  ;;  %v10370_v51 = vpop.f32.mrf.mxu0  ;;  %v2487_v12 = vadd.f32 %v10024_v7, %v1848_v63  ;;  %v1851_v7 = vadd.f32 %v9484_v8, %v9288_v22  ;;  %v16886_v22 = vld [vmem:[#allocation48_spill] sm:$0xff]  ;;  %v16889_v63 = vld [vmem:[#allocation138_spill] sm:$0xff] }
 0x2f8   : > { %v16903_v47 = vld [vmem:[#allocation60_spill] sm:$0xff] }
 0x2f9   : > { %v10372_v24 = vpop.f32.mrf.mxu1 }
 0x2fa   : > { %7535 = vmatmul.msk.f32.gmra.mxu0 %vm1191_vm1, %v9927_v15 }
 0x2fb   : > { %7658 = vmatmul.msk.f32.gmra.mxu3 %vm1191_vm1, %v8371_v45  ;;  %7613 = vmatmul.msk.f32.gmra.mxu2 %vm1191_vm1, %v8375_v28 }
 0x2fc   : > { %7584 = vmatmul.msk.f32.gmra.mxu1 %vm1191_vm1, %v9927_v15  ;;  %v8376_v15 = vld [vmem:[%s9003_s26 + $0x288] sm:$0xff] }
 0x2fe   : > { %v2769_v44 = vpop.f32.mrf.mxu3  ;;  %v2620_v61 = vpop.f32.mrf.mxu2 }
 0x2ff   : > { %v10387_v62 = vadd.f32 %v2769_v44, %v2478_v46  ;;  %v10389_v50 = vadd.f32 %v2620_v61, %v2485_v25  ;;  %v10391_v45 = vpop.f32.mrf.mxu0  ;;  %v2489_v46 = vadd.f32 %v10045_v38, %v1851_v7  ;;  %v16888_v38 = vld [vmem:[#allocation49_spill] sm:$0xff]  ;;  %v863_v7 = vld [vmem:[%s9003_s26 + $0x180] sm:$0xff] }
 0x300   : > { %v1854_v61 = vadd.f32 %v16888_v38, %v16887_v53  ;;  %v16894_v53 = vld [vmem:[#allocation141_spill] sm:$0xff] }
 0x301   : > { %v10393_v10 = vpop.f32.mrf.mxu1 }
 0x302   : > { %7536 = vmatmul.msk.f32.gmra.mxu0 %vm1191_vm1, %v9946_v54 }
 0x303   : > { %7659 = vmatmul.msk.f32.gmra.mxu3 %vm1191_vm1, %v8372_v23  ;;  %7614 = vmatmul.msk.f32.gmra.mxu2 %vm1191_vm1, %v8376_v15 }
 0x304   : > { %7585 = vmatmul.msk.f32.gmra.mxu1 %vm1191_vm1, %v9946_v54  ;;  %v8377_v54 = vld [vmem:[%s9003_s26 + $0x290] sm:$0xff] }
 0x306   : > { %v2772_v58 = vpop.f32.mrf.mxu3  ;;  %v2623_v2 = vpop.f32.mrf.mxu2 }
 0x307   : > { %v10408_v4 = vadd.f32 %v2772_v58, %v2480_v17  ;;  %v10410_v21 = vadd.f32 %v2623_v2, %v2487_v12  ;;  %v10412_v23 = vpop.f32.mrf.mxu0  ;;  %v2491_v12 = vadd.f32 %v10061_v48, %v1854_v61  ;;  %v16892_v48 = vld [vmem:[#allocation24_spill] sm:$0xff] }
 0x309   : > { %v10414_v14 = vpop.f32.mrf.mxu1 }
 0x30a   : > { %7537 = vmatmul.msk.f32.gmra.mxu0 %vm1191_vm1, %v9965_v49 }
 0x30b   : > { %7660 = vmatmul.msk.f32.gmra.mxu3 %vm1191_vm1, %v8373_v43  ;;  %7615 = vmatmul.msk.f32.gmra.mxu2 %vm1191_vm1, %v8377_v54 }
 0x30c   : > { %7586 = vmatmul.msk.f32.gmra.mxu1 %vm1191_vm1, %v9965_v49  ;;  %v2003_v49 = vadd.f32 %v16886_v22, %v9237_v6 }
 0x30e   : > { %v2775_v0 = vpop.f32.mrf.mxu3  ;;  %v2626_v60 = vpop.f32.mrf.mxu2  ;;  %v2484_v17 = vadd.f32 %v16889_v63, %v2003_v49  ;;  %v8379_v49 = vld [vmem:[%s9003_s26 + $0x2a0] sm:$0xff] }
 0x30f   : > { %v10429_v25 = vadd.f32 %v2775_v0, %v2482_v36  ;;  %v10431_v44 = vadd.f32 %v2626_v60, %v2489_v46  ;;  %v10433_v43 = vpop.f32.mrf.mxu0  ;;  %v16891_v46 = vld [vmem:[#allocation52_spill] sm:$0xff]  ;;  %v16893_v60 = vld [vmem:[#allocation53_spill] sm:$0xff] }
 0x310   : > { %v1857_v22 = vadd.f32 %v16893_v60, %v16892_v48 }
 0x311   : > { %v10435_v8 = vpop.f32.mrf.mxu1 }
 0x312   : > { %7538 = vmatmul.msk.f32.gmra.mxu0 %vm1191_vm1, %v9984_v31  ;;  %v2493_v61 = vadd.f32 %v10077_v29, %v1857_v22  ;;  %v16898_v29 = vld [vmem:[#allocation28_spill] sm:$0xff] }
 0x313   : > { %7661 = vmatmul.msk.f32.gmra.mxu3 %vm1191_vm1, %v8374_v32  ;;  %7616 = vmatmul.msk.f32.gmra.mxu2 %vm1191_vm1, %v8378_v9  ;;  %v10487_v22 = vld [vmem:[%s9003_s26 + $0x2a8] sm:$0xff] }
 0x314   : > { %7587 = vmatmul.msk.f32.gmra.mxu1 %vm1191_vm1, %v9984_v31  ;;  %v16890_v31 = vld [vmem:[#allocation11_spill] sm:$0xff] }
 0x315   : > { %v2006_v0 = vadd.f32 %v16891_v46, %v16890_v31  ;;  %v16897_v46 = vld [vmem:[#allocation56_spill] sm:$0xff] }
 0x316   : > { %v2778_v6 = vpop.f32.mrf.mxu3  ;;  %v2629_v58 = vpop.f32.mrf.mxu2 }
 0x317   : > { %v10450_v2 = vadd.f32 %v2778_v6, %v2484_v17  ;;  %v10452_v16 = vadd.f32 %v2629_v58, %v2491_v12  ;;  %v10454_v32 = vpop.f32.mrf.mxu0  ;;  %v2486_v38 = vadd.f32 %v16894_v53, %v2006_v0  ;;  %v864_v58 = vld [vmem:[%s9003_s26 + $0x188] sm:$0xff]  ;;  %v16899_v0 = vld [vmem:[#allocation57_spill] sm:$0xff] }
 0x318   : > { %v1860_v60 = vadd.f32 %v16899_v0, %v16898_v29  ;;  %v16900_v53 = vld [vmem:[#allocation144_spill] sm:$0xff]  ;;  %v865_v29 = vld [vmem:[%s9003_s26 + $0x190] sm:$0xff] }
 0x319   : > { %v10457_v36 = vpop.f32.mrf.mxu1  ;;  %v16902_v0 = vld [vmem:[#allocation17_spill] sm:$0xff] }
 0x31a   : > { %7539 = vmatmul.msk.f32.gmra.mxu0 %vm1191_vm1, %v863_v7  ;;  %v2012_v3 = vadd.f32 %v16903_v47, %v16902_v0 }
 0x31b   : > { %7662 = vmatmul.msk.f32.gmra.mxu3 %vm1191_vm1, %v8375_v28  ;;  %7617 = vmatmul.msk.f32.gmra.mxu2 %vm1191_vm1, %v8379_v49 }
 0x31c   : > { %7588 = vmatmul.msk.f32.gmra.mxu1 %vm1191_vm1, %v863_v7  ;;  %v16896_v7 = vld [vmem:[#allocation14_spill] sm:$0xff] }
 0x31d   : > { %v2009_v48 = vadd.f32 %v16897_v46, %v16896_v7 }
 0x31e   : > { %v2781_v63 = vpop.f32.mrf.mxu3  ;;  %v2632_v17 = vpop.f32.mrf.mxu2 }
 0x31f   : > { %v10470_v12 = vadd.f32 %v2781_v63, %v2486_v38  ;;  %v10472_v6 = vadd.f32 %v2632_v17, %v2493_v61  ;;  %v10474_v28 = vpop.f32.mrf.mxu0  ;;  %v2488_v38 = vadd.f32 %v16900_v53, %v2009_v48  ;;  %v2495_v61 = vadd.f32 %v10099_v20, %v1860_v60  ;;  %v16904_v20 = vld [vmem:[#allocation31_spill] sm:$0xff]  ;;  %v16905_v48 = vld [vmem:[#allocation61_spill] sm:$0xff] }
 0x320   : > { %v1863_v60 = vadd.f32 %v16905_v48, %v16904_v20  ;;  %v10510_v53 = vld [vmem:[%s9003_s26 + $0x2b0] sm:$0xff]  ;;  %v866_v20 = vld [vmem:[%s9003_s26 + $0x198] sm:$0xff] }
 0x321   : > { %16895 = vst [vmem:[#allocation48_spill] sm:$0xff] %v10472_v6  ;;  %v10477_v31 = vpop.f32.mrf.mxu1  ;;  %v16909_v48 = vld [vmem:[#allocation21_spill] sm:$0xff] }
 0x322   : > { %7540 = vmatmul.msk.f32.gmra.mxu0 %vm1191_vm1, %v864_v58 }
 0x323   : > { %7663 = vmatmul.msk.f32.gmra.mxu3 %vm1191_vm1, %v8376_v15  ;;  %7618 = vmatmul.msk.f32.gmra.mxu2 %vm1191_vm1, %v10487_v22 }
 0x324   : > { %7589 = vmatmul.msk.f32.gmra.mxu1 %vm1191_vm1, %v864_v58 }
 0x326   : > { %v2784_v63 = vpop.f32.mrf.mxu3  ;;  %v2635_v17 = vpop.f32.mrf.mxu2 }
 0x327   : > { %v10493_v7 = vadd.f32 %v2784_v63, %v2488_v38  ;;  %v10495_v15 = vadd.f32 %v2635_v17, %v2495_v61  ;;  %v10497_v46 = vpop.f32.mrf.mxu0  ;;  %v16906_v38 = vld [vmem:[#allocation147_spill] sm:$0xff]  ;;  %v2497_v63 = vadd.f32 %v10116_v5, %v1863_v60  ;;  %v16911_v5 = vld [vmem:[#allocation34_spill] sm:$0xff] }
 0x328   : > { %v2490_v61 = vadd.f32 %v16906_v38, %v2012_v3  ;;  %v16912_v3 = vld [vmem:[#allocation65_spill] sm:$0xff]  ;;  %v10533_v38 = vld [vmem:[%s9003_s26 + $0x2b8] sm:$0xff] }
 0x329   : > { %16901 = vst [vmem:[#allocation20_spill] sm:$0xff] %v10495_v15  ;;  %v10500_v58 = vpop.f32.mrf.mxu1  ;;  %v2015_v15 = vadd.f32 %v16910_v41, %v16909_v48  ;;  %v1866_v60 = vadd.f32 %v16912_v3, %v16911_v5  ;;  %v16918_v3 = vld [vmem:[#allocation68_spill] sm:$0xff] }
 0x32a   : > { %7541 = vmatmul.msk.f32.gmra.mxu0 %vm1191_vm1, %v865_v29 }
 0x32b   : > { %7664 = vmatmul.msk.f32.gmra.mxu3 %vm1191_vm1, %v8377_v54  ;;  %7619 = vmatmul.msk.f32.gmra.mxu2 %vm1191_vm1, %v10510_v53  ;;  %v2499_v41 = vadd.f32 %v10131_v30, %v1866_v60  ;;  %v16920_v30 = vld [vmem:[#allocation37_spill] sm:$0xff] }
 0x32c   : > { %7590 = vmatmul.msk.f32.gmra.mxu1 %vm1191_vm1, %v865_v29 }
 0x32e   : > { %v2787_v47 = vpop.f32.mrf.mxu3  ;;  %v2638_v17 = vpop.f32.mrf.mxu2 }
 0x32f   : > { %v10516_v0 = vadd.f32 %v2787_v47, %v2490_v61  ;;  %v10518_v54 = vadd.f32 %v2638_v17, %v2497_v63  ;;  %v10520_v52 = vpop.f32.mrf.mxu0  ;;  %v16913_v61 = vld [vmem:[#allocation150_spill] sm:$0xff] }
 0x330   : > { %v2492_v63 = vadd.f32 %v16913_v61, %v2015_v15  ;;  %v16921_v15 = vld [vmem:[#allocation69_spill] sm:$0xff]  ;;  %v10558_v61 = vld [vmem:[%s9003_s26 + $0x2c0] sm:$0xff] }
 0x331   : > { %16907 = vst [vmem:[#allocation49_spill] sm:$0xff] %v10518_v54  ;;  %v10523_v29 = vpop.f32.mrf.mxu1  ;;  %v1869_v60 = vadd.f32 %v16921_v15, %v16920_v30  ;;  %v8388_v15 = vld [vmem:[%s16513_s1 + $0xe8] sm:$0xff] }
 0x332   : > { %16908 = vst [vmem:[#allocation138_spill] sm:$0xff] %v10523_v29  ;;  %7542 = vmatmul.msk.f32.gmra.mxu0 %vm1191_vm1, %v866_v20  ;;  %v10551_v29 = vld [vmem:[%s9003_s26 + $0x40] sm:$0xff] }
 0x333   : > { %7665 = vmatmul.msk.f32.gmra.mxu3 %vm1191_vm1, %v8378_v9  ;;  %7620 = vmatmul.msk.f32.gmra.mxu2 %vm1191_vm1, %v10533_v38  ;;  %16919 = vst [vmem:[#allocation53_spill] sm:$0xff] %v10551_v29 }
 0x334   : > { %7591 = vmatmul.msk.f32.gmra.mxu1 %vm1191_vm1, %v866_v20  ;;  %v16917_v20 = vld [vmem:[#allocation25_spill] sm:$0xff] }
 0x335   : > { %v2018_v6 = vadd.f32 %v16918_v3, %v16917_v20 }
 0x336   : > { %v2790_v47 = vpop.f32.mrf.mxu3  ;;  %v2641_v17 = vpop.f32.mrf.mxu2 }
 0x337   : > { %v10539_v48 = vadd.f32 %v2790_v47, %v2492_v63  ;;  %v10541_v9 = vadd.f32 %v2641_v17, %v2499_v41  ;;  %v10543_v54 = vpop.f32.mrf.mxu0  ;;  %v16922_v63 = vld [vmem:[#allocation153_spill] sm:$0xff]  ;;  %v8386_v47 = vld [vmem:[%s16513_s1 + $0xf8] sm:$0xf]  ;;  %v2501_v17 = vadd.f32 %v10146_v55, %v1869_v60 }
 0x338   : > { %v2494_v41 = vadd.f32 %v16922_v63, %v2018_v6  ;;  %v8387_v6 = vld [vmem:[%s16513_s1 + $0xe0] sm:$0xff]  ;;  %v8389_v60 = vld [vmem:[%s16513_s1 + $0xd0] sm:$0xff] }
 0x339   : > { %16914 = vst [vmem:[#allocation11_spill] sm:$0xff] %v10539_v48  ;;  %v10545_v5 = vpop.f32.mrf.mxu1 }
 0x33a   : > { %16915 = vst [vmem:[#allocation52_spill] sm:$0xff] %v10541_v9  ;;  %7691 = vmatmul.msk.f32.vlgmr.msra.gmra.mxu0 %vm1191_vm1, %v10551_v29 }
 0x33b   : > { %16916 = vst [vmem:[#allocation24_spill] sm:$0xff] %v10545_v5  ;;  %7666 = vmatmul.msk.f32.gmra.mxu3 %vm1191_vm1, %v8379_v49  ;;  %7621 = vmatmul.msk.f32.gmra.mxu2 %vm1191_vm1, %v10558_v61  ;;  %v8385_v49 = vld [vmem:[%s16513_s1 + $0xf0] sm:$0xf] }
 0x33c   : > { %7740 = vmatmul.msk.f32.vlgmr.msra.gmra.mxu1 %vm1191_vm1, %v10551_v29  ;;  %8082 = vmatpush.msk.msra.mxu0 %vm1336_vm0, %v8385_v49 }
 0x33d   : > { %8131 = vmatpush.msk.msra.mxu1 %vm1336_vm0, %v8386_v47  ;;  %v16926_v47 = vld [vmem:[#allocation29_spill] sm:$0xff] }
 0x33e   : > { %v2793_v20 = vpop.f32.mrf.mxu3  ;;  %v2644_v3 = vpop.f32.mrf.mxu2  ;;  %4520 = vmatpush.msra.mxu0 %v8387_v6 }
 0x33f   : > { %v10574_v30 = vadd.f32 %v2793_v20, %v2494_v41  ;;  %4681 = vmatpush.msra.mxu1 %v8388_v15  ;;  %v10582_v63 = vadd.f32 %v2644_v3, %v2501_v17  ;;  %v10584_v49 = vpop.f32.mrf.mxu0  ;;  %v8390_v41 = vld [vmem:[%s16513_s1 + $0xd8] sm:$0xff]  ;;  %v16927_v20 = vld [vmem:[#allocation72_spill] sm:$0xff]  ;;  %v16930_v15 = vld [vmem:[#allocation73_spill] sm:$0xff] }
 0x340   : > { %4521 = vmatpush.msra.mxu0 %v8389_v60  ;;  %v2021_v6 = vadd.f32 %v16927_v20, %v16926_v47  ;;  %v10599_v17 = vld [vmem:[%s9003_s26 + $0x48] sm:$0xff] }
 0x341   : > { %16923 = vst [vmem:[#allocation141_spill] sm:$0xff] %v10574_v30  ;;  %v10586_v55 = vpop.f32.mrf.mxu1  ;;  %4682 = vmatpush.msra.mxu1 %v8390_v41  ;;  %v16929_v3 = vld [vmem:[#allocation40_spill] sm:$0xff] }
 0x342   : > { %16924 = vst [vmem:[#allocation14_spill] sm:$0xff] %v10582_v63  ;;  %7692 = vmatmul.msk.f32.gmra.mxu0 %vm1191_vm1, %v10599_v17  ;;  %v1872_v63 = vadd.f32 %v16930_v15, %v16929_v3  ;;  %v8392_v60 = vld [vmem:[%s9003_s26 + $0x2c8] sm:$0xff]  ;;  %v2496_v41 = vadd.f32 %v10101_v33, %v2021_v6  ;;  %v10626_v33 = vld [vmem:[%s9003_s26 + $0x50] sm:$0xff] }
 0x343   : > { %16925 = vst [vmem:[#allocation56_spill] sm:$0xff] %v10586_v55  ;;  %7667 = vmatmul.msk.f32.gmra.mxu3 %vm1191_vm1, %v10487_v22  ;;  %7622 = vmatmul.msk.f32.gmra.mxu2 %vm1191_vm1, %v8392_v60  ;;  %v16931_v47 = vld [vmem:[#allocation108_spill] sm:$0xff]  ;;  %v16932_v22 = vld [vmem:[#allocation109_spill] sm:$0xff] }
 0x344   : > { %16928 = vst [vmem:[#allocation28_spill] sm:$0xff] %v10599_v17  ;;  %7741 = vmatmul.msk.f32.gmra.mxu1 %vm1191_vm1, %v10599_v17  ;;  %4522 = vmatpush.msra.mxu0 %v16931_v47  ;;  %v2503_v20 = vadd.f32 %v10161_v11, %v1872_v63  ;;  %v16935_v17 = vld [vmem:[#allocation32_spill] sm:$0xff]  ;;  %v16938_v11 = vld [vmem:[#allocation42_spill] sm:$0xff] }
 0x345   : > { %4683 = vmatpush.msra.mxu1 %v16932_v22  ;;  %v16936_v30 = vld [vmem:[#allocation76_spill] sm:$0xff]  ;;  %16937 = vst [vmem:[#allocation17_spill] sm:$0xff] %v10626_v33 }
 0x346   : > { %v2796_v9 = vpop.f32.mrf.mxu3  ;;  %v2647_v55 = vpop.f32.mrf.mxu2  ;;  %v2024_v48 = vadd.f32 %v16936_v30, %v16935_v17  ;;  %v16940_v30 = vld [vmem:[#allocation158_spill] sm:$0xff] }
 0x347   : > { %v10613_v5 = vadd.f32 %v2796_v9, %v2496_v41  ;;  %v10615_v3 = vadd.f32 %v2647_v55, %v2503_v20  ;;  %v10617_v15 = vpop.f32.mrf.mxu0  ;;  %v16939_v9 = vld [vmem:[#allocation77_spill] sm:$0xff] }
 0x348   : > { %v1875_v63 = vadd.f32 %v16939_v9, %v16938_v11  ;;  %v8394_v55 = vld [vmem:[%s9003_s26 + $0x2d0] sm:$0xff]  ;;  %v2498_v6 = vadd.f32 %v16940_v30, %v2024_v48  ;;  %v16944_v9 = vld [vmem:[#allocation35_spill] sm:$0xff]  ;;  %v8396_v30 = vld [vmem:[%s9003_s26 + $0x2d8] sm:$0xff] }
 0x349   : > { %16933 = vst [vmem:[#allocation57_spill] sm:$0xff] %v10615_v3  ;;  %v10619_v29 = vpop.f32.mrf.mxu1  ;;  %v16945_v3 = vld [vmem:[#allocation80_spill] sm:$0xff]  ;;  %v16948_v48 = vld [vmem:[#allocation81_spill] sm:$0xff] }
 0x34a   : > { %16934 = vst [vmem:[#allocation144_spill] sm:$0xff] %v10619_v29  ;;  %7693 = vmatmul.msk.f32.gmra.mxu0 %vm1191_vm1, %v10626_v33  ;;  %v2027_v29 = vadd.f32 %v16945_v3, %v16944_v9  ;;  %v16949_v3 = vld [vmem:[#allocation161_spill] sm:$0xff] }
 0x34b   : > { %7668 = vmatmul.msk.f32.gmra.mxu3 %vm1191_vm1, %v10510_v53  ;;  %7623 = vmatmul.msk.f32.gmra.mxu2 %vm1191_vm1, %v8394_v55  ;;  %v2505_v53 = vadd.f32 %v10176_v27, %v1875_v63  ;;  %v16947_v27 = vld [vmem:[#allocation44_spill] sm:$0xff] }
 0x34c   : > { %7742 = vmatmul.msk.f32.gmra.mxu1 %vm1191_vm1, %v10626_v33  ;;  %v10651_v33 = vld [vmem:[%s9003_s26 + $0x58] sm:$0xff]  ;;  %v1878_v63 = vadd.f32 %v16948_v48, %v16947_v27 }
 0x34d   : > { %16946 = vst [vmem:[#allocation147_spill] sm:$0xff] %v10651_v33  ;;  %v16953_v48 = vld [vmem:[#allocation38_spill] sm:$0xff] }
 0x34e   : > { %v2799_v17 = vpop.f32.mrf.mxu3  ;;  %v2650_v41 = vpop.f32.mrf.mxu2 }
 0x34f   : > { %v10638_v47 = vadd.f32 %v2799_v17, %v2498_v6  ;;  %v10640_v22 = vadd.f32 %v2650_v41, %v2505_v53  ;;  %v10642_v20 = vpop.f32.mrf.mxu0  ;;  %v2500_v6 = vadd.f32 %v16949_v3, %v2027_v29  ;;  %v16957_v29 = vld [vmem:[#allocation85_spill] sm:$0xff]  ;;  %v8398_v3 = vld [vmem:[%s9003_s26 + $0x2e0] sm:$0xff] }
 0x351   : > { %16941 = vst [vmem:[#allocation60_spill] sm:$0xff] %v10638_v47  ;;  %v10644_v11 = vpop.f32.mrf.mxu1 }
 0x352   : > { %16942 = vst [vmem:[#allocation31_spill] sm:$0xff] %v10640_v22  ;;  %7694 = vmatmul.msk.f32.gmra.mxu0 %vm1191_vm1, %v10651_v33 }
 0x353   : > { %16943 = vst [vmem:[#allocation61_spill] sm:$0xff] %v10644_v11  ;;  %7669 = vmatmul.msk.f32.gmra.mxu3 %vm1191_vm1, %v10533_v38  ;;  %7624 = vmatmul.msk.f32.gmra.mxu2 %vm1191_vm1, %v8396_v30  ;;  %v2507_v38 = vadd.f32 %v10191_v57, %v1878_v63  ;;  %v16954_v11 = vld [vmem:[#allocation84_spill] sm:$0xff]  ;;  %v16956_v57 = vld [vmem:[#allocation46_spill] sm:$0xff] }
 0x354   : > { %7743 = vmatmul.msk.f32.gmra.mxu1 %vm1191_vm1, %v10651_v33  ;;  %v2030_v47 = vadd.f32 %v16954_v11, %v16953_v48  ;;  %v10676_v33 = vld [vmem:[%s9003_s26 + $0x60] sm:$0xff]  ;;  %v1881_v63 = vadd.f32 %v16957_v29, %v16956_v57  ;;  %v16958_v11 = vld [vmem:[#allocation164_spill] sm:$0xff]  ;;  %v16962_v29 = vld [vmem:[#allocation41_spill] sm:$0xff] }
 0x355   : > { %16955 = vst [vmem:[#allocation65_spill] sm:$0xff] %v10676_v33 }
 0x356   : > { %v2802_v53 = vpop.f32.mrf.mxu3  ;;  %v2653_v17 = vpop.f32.mrf.mxu2 }
 0x357   : > { %v10663_v41 = vadd.f32 %v2802_v53, %v2500_v6  ;;  %v10665_v9 = vadd.f32 %v2653_v17, %v2507_v38  ;;  %v10667_v22 = vpop.f32.mrf.mxu0  ;;  %v2502_v6 = vadd.f32 %v16958_v11, %v2030_v47  ;;  %v16966_v47 = vld [vmem:[#allocation89_spill] sm:$0xff]  ;;  %v8400_v11 = vld [vmem:[%s9003_s26 + $0x2e8] sm:$0xff] }
 0x359   : > { %16950 = vst [vmem:[#allocation21_spill] sm:$0xff] %v10663_v41  ;;  %v10669_v27 = vpop.f32.mrf.mxu1 }
 0x35a   : > { %16951 = vst [vmem:[#allocation64_spill] sm:$0xff] %v10665_v9  ;;  %7695 = vmatmul.msk.f32.gmra.mxu0 %vm1191_vm1, %v10676_v33 }
 0x35b   : > { %16952 = vst [vmem:[#allocation34_spill] sm:$0xff] %v10669_v27  ;;  %7670 = vmatmul.msk.f32.gmra.mxu3 %vm1191_vm1, %v10558_v61  ;;  %7625 = vmatmul.msk.f32.gmra.mxu2 %vm1191_vm1, %v8398_v3  ;;  %v2509_v61 = vadd.f32 %v10206_v26, %v1881_v63  ;;  %v16963_v27 = vld [vmem:[#allocation88_spill] sm:$0xff]  ;;  %v16965_v26 = vld [vmem:[#allocation50_spill] sm:$0xff] }
 0x35c   : > { %7744 = vmatmul.msk.f32.gmra.mxu1 %vm1191_vm1, %v10676_v33  ;;  %v2033_v41 = vadd.f32 %v16963_v27, %v16962_v29  ;;  %v10700_v33 = vld [vmem:[%s9003_s26 + $0x68] sm:$0xff]  ;;  %v1884_v63 = vadd.f32 %v16966_v47, %v16965_v26  ;;  %v16971_v47 = vld [vmem:[#allocation43_spill] sm:$0xff] }
 0x35d   : > { %16964 = vst [vmem:[#allocation37_spill] sm:$0xff] %v10700_v33 }
 0x35e   : > { %v2805_v38 = vpop.f32.mrf.mxu3  ;;  %v2656_v53 = vpop.f32.mrf.mxu2 }
 0x35f   : > { %v10688_v17 = vadd.f32 %v2805_v38, %v2502_v6  ;;  %v10690_v48 = vadd.f32 %v2656_v53, %v2509_v61  ;;  %v10692_v9 = vpop.f32.mrf.mxu0  ;;  %v16967_v6 = vld [vmem:[#allocation167_spill] sm:$0xff] }
 0x360   : > { %v2504_v27 = vadd.f32 %v16967_v6, %v2033_v41  ;;  %v16975_v41 = vld [vmem:[#allocation93_spill] sm:$0xff] }
 0x361   : > { %16959 = vst [vmem:[#allocation150_spill] sm:$0xff] %v10688_v17  ;;  %v10694_v57 = vpop.f32.mrf.mxu1  ;;  %v8402_v6 = vld [vmem:[%s9003_s26 + $0x2f0] sm:$0xff] }
 0x362   : > { %16960 = vst [vmem:[#allocation25_spill] sm:$0xff] %v10690_v48  ;;  %7696 = vmatmul.msk.f32.gmra.mxu0 %vm1191_vm1, %v10700_v33 }
 0x363   : > { %16961 = vst [vmem:[#allocation68_spill] sm:$0xff] %v10694_v57  ;;  %7671 = vmatmul.msk.f32.gmra.mxu3 %vm1191_vm1, %v8392_v60  ;;  %7626 = vmatmul.msk.f32.gmra.mxu2 %vm1191_vm1, %v8400_v11  ;;  %v2511_v60 = vadd.f32 %v10235_v18, %v1884_v63  ;;  %v16972_v57 = vld [vmem:[#allocation92_spill] sm:$0xff]  ;;  %v16974_v18 = vld [vmem:[#allocation54_spill] sm:$0xff] }
 0x364   : > { %7745 = vmatmul.msk.f32.gmra.mxu1 %vm1191_vm1, %v10700_v33  ;;  %v2036_v17 = vadd.f32 %v16972_v57, %v16971_v47  ;;  %v10724_v33 = vld [vmem:[%s9003_s26 + $0x70] sm:$0xff]  ;;  %v1887_v63 = vadd.f32 %v16975_v41, %v16974_v18 }
 0x365   : > { %16973 = vst [vmem:[#allocation72_spill] sm:$0xff] %v10724_v33  ;;  %v16981_v41 = vld [vmem:[#allocation45_spill] sm:$0xff] }
 0x366   : > { %v2808_v61 = vpop.f32.mrf.mxu3  ;;  %v2659_v38 = vpop.f32.mrf.mxu2 }
 0x367   : > { %v10712_v53 = vadd.f32 %v2808_v61, %v2504_v27  ;;  %v10714_v29 = vadd.f32 %v2659_v38, %v2511_v60  ;;  %v10716_v48 = vpop.f32.mrf.mxu0  ;;  %v16976_v27 = vld [vmem:[#allocation170_spill] sm:$0xff] }
 0x368   : > { %v2506_v57 = vadd.f32 %v16976_v27, %v2036_v17  ;;  %v16985_v17 = vld [vmem:[#allocation97_spill] sm:$0xff]  ;;  %v8404_v27 = vld [vmem:[%s9003_s26 + $0x2f8] sm:$0xff] }
 0x369   : > { %16968 = vst [vmem:[#allocation69_spill] sm:$0xff] %v10712_v53  ;;  %v10718_v26 = vpop.f32.mrf.mxu1 }
 0x36a   : > { %16969 = vst [vmem:[#allocation153_spill] sm:$0xff] %v10714_v29  ;;  %7697 = vmatmul.msk.f32.gmra.mxu0 %vm1191_vm1, %v10724_v33 }
 0x36b   : > { %16970 = vst [vmem:[#allocation29_spill] sm:$0xff] %v10718_v26  ;;  %7672 = vmatmul.msk.f32.gmra.mxu3 %vm1191_vm1, %v8394_v55  ;;  %7627 = vmatmul.msk.f32.gmra.mxu2 %vm1191_vm1, %v8402_v6  ;;  %v2513_v55 = vadd.f32 %v10268_v34, %v1887_v63  ;;  %v16982_v26 = vld [vmem:[#allocation96_spill] sm:$0xff]  ;;  %v16984_v34 = vld [vmem:[#allocation58_spill] sm:$0xff] }
 0x36c   : > { %7746 = vmatmul.msk.f32.gmra.mxu1 %vm1191_vm1, %v10724_v33  ;;  %v2039_v53 = vadd.f32 %v16982_v26, %v16981_v41  ;;  %v10748_v33 = vld [vmem:[%s9003_s26 + $0x78] sm:$0xff]  ;;  %v1890_v63 = vadd.f32 %v16985_v17, %v16984_v34  ;;  %v16992_v17 = vld [vmem:[#allocation47_spill] sm:$0xff] }
 0x36d   : > { %16983 = vst [vmem:[#allocation32_spill] sm:$0xff] %v10748_v33 }
 0x36e   : > { %v2811_v60 = vpop.f32.mrf.mxu3  ;;  %v2662_v61 = vpop.f32.mrf.mxu2 }
 0x36f   : > { %v10736_v38 = vadd.f32 %v2811_v60, %v2506_v57  ;;  %v10738_v47 = vadd.f32 %v2662_v61, %v2513_v55  ;;  %v10740_v29 = vpop.f32.mrf.mxu0  ;;  %v16986_v57 = vld [vmem:[#allocation173_spill] sm:$0xff] }
 0x370   : > { %16979 = vst [vmem:[#allocation108_spill] sm:$0xff] %v10740_v29  ;;  %v2508_v26 = vadd.f32 %v16986_v57, %v2039_v53  ;;  %v16987_v55 = vld [vmem:[#allocation185_spill] sm:$0xff]  ;;  %v16995_v53 = vld [vmem:[#allocation62_spill] sm:$0xff] }
 0x371   : > { %16977 = vst [vmem:[#allocation40_spill] sm:$0xff] %v10736_v38  ;;  %v10742_v18 = vpop.f32.mrf.mxu1  ;;  %v16993_v38 = vld [vmem:[#allocation100_spill] sm:$0xff] }
 0x372   : > { %16978 = vst [vmem:[#allocation73_spill] sm:$0xff] %v10738_v47  ;;  %7698 = vmatmul.msk.f32.gmra.mxu0 %vm1191_vm1, %v10748_v33  ;;  %v2042_v29 = vadd.f32 %v16993_v38, %v16992_v17 }
 0x373   : > { %16980 = vst [vmem:[#allocation109_spill] sm:$0xff] %v10742_v18  ;;  %7673 = vmatmul.msk.f32.gmra.mxu3 %vm1191_vm1, %v8396_v30  ;;  %7628 = vmatmul.msk.f32.gmra.mxu2 %vm1191_vm1, %v8404_v27  ;;  %v2515_v30 = vadd.f32 %v16987_v55, %v1890_v63  ;;  %v16996_v63 = vld [vmem:[#allocation101_spill] sm:$0xff]  ;;  %v16997_v55 = vld [vmem:[#allocation176_spill] sm:$0xff] }
 0x374   : > { %7747 = vmatmul.msk.f32.gmra.mxu1 %vm1191_vm1, %v10748_v33  ;;  %v10772_v33 = vld [vmem:[%s9003_s26 + $0x80] sm:$0xff]  ;;  %v1893_v57 = vadd.f32 %v16996_v63, %v16995_v53  ;;  %v2510_v38 = vadd.f32 %v16997_v55, %v2042_v29  ;;  %v17005_v29 = vld [vmem:[#allocation66_spill] sm:$0xff] }
 0x375   : > { %16994 = vst [vmem:[#allocation35_spill] sm:$0xff] %v10772_v33  ;;  %v17002_v63 = vld [vmem:[#allocation51_spill] sm:$0xff] }
 0x376   : > { %v2814_v60 = vpop.f32.mrf.mxu3  ;;  %v2665_v61 = vpop.f32.mrf.mxu2 }
 0x377   : > { %v10760_v41 = vadd.f32 %v2814_v60, %v2508_v26  ;;  %v10762_v47 = vadd.f32 %v2665_v61, %v2515_v30  ;;  %v10764_v18 = vpop.f32.mrf.mxu0  ;;  %v8406_v26 = vld [vmem:[%s9003_s26 + $0x300] sm:$0xff]  ;;  %v16998_v30 = vld [vmem:[#allocation189_spill] sm:$0xff] }
 0x378   : > { %16990 = vst [vmem:[#allocation77_spill] sm:$0xff] %v10764_v18 }
 0x379   : > { %16988 = vst [vmem:[#allocation76_spill] sm:$0xff] %v10760_v41  ;;  %v10766_v34 = vpop.f32.mrf.mxu1  ;;  %v17003_v41 = vld [vmem:[#allocation104_spill] sm:$0xff] }
 0x37a   : > { %16989 = vst [vmem:[#allocation42_spill] sm:$0xff] %v10762_v47  ;;  %7699 = vmatmul.msk.f32.gmra.mxu0 %vm1191_vm1, %v10772_v33  ;;  %v2045_v18 = vadd.f32 %v17003_v41, %v17002_v63 }
 0x37b   : > { %16991 = vst [vmem:[#allocation158_spill] sm:$0xff] %v10766_v34  ;;  %7674 = vmatmul.msk.f32.gmra.mxu3 %vm1191_vm1, %v8398_v3  ;;  %7629 = vmatmul.msk.f32.gmra.mxu2 %vm1191_vm1, %v8406_v26  ;;  %v2517_v3 = vadd.f32 %v16998_v30, %v1893_v57  ;;  %v17006_v57 = vld [vmem:[#allocation105_spill] sm:$0xff]  ;;  %v17007_v30 = vld [vmem:[#allocation179_spill] sm:$0xff] }
 0x37c   : > { %7748 = vmatmul.msk.f32.gmra.mxu1 %vm1191_vm1, %v10772_v33  ;;  %v10796_v33 = vld [vmem:[%s9003_s26 + $0x88] sm:$0xff]  ;;  %v1896_v55 = vadd.f32 %v17006_v57, %v17005_v29  ;;  %v2512_v41 = vadd.f32 %v17007_v30, %v2045_v18  ;;  %v17011_v57 = vld [vmem:[#allocation55_spill] sm:$0xff]  ;;  %v8410_v30 = vld [vmem:[%s9003_s26 + $0x310] sm:$0xff] }
 0x37d   : > { %17004 = vst [vmem:[#allocation161_spill] sm:$0xff] %v10796_v33  ;;  %v17015_v18 = vld [vmem:[#allocation111_spill] sm:$0xff] }
 0x37e   : > { %v2817_v60 = vpop.f32.mrf.mxu3  ;;  %v2668_v61 = vpop.f32.mrf.mxu2 }
 0x37f   : > { %v10784_v17 = vadd.f32 %v2817_v60, %v2510_v38  ;;  %v10786_v47 = vadd.f32 %v2668_v61, %v2517_v3  ;;  %v10788_v34 = vpop.f32.mrf.mxu0  ;;  %v8408_v38 = vld [vmem:[%s9003_s26 + $0x308] sm:$0xff] }
 0x381   : > { %16999 = vst [vmem:[#allocation80_spill] sm:$0xff] %v10784_v17  ;;  %v10790_v53 = vpop.f32.mrf.mxu1 }
 0x382   : > { %17000 = vst [vmem:[#allocation44_spill] sm:$0xff] %v10786_v47  ;;  %7700 = vmatmul.msk.f32.gmra.mxu0 %vm1191_vm1, %v10796_v33 }
 0x383   : > { %17001 = vst [vmem:[#allocation81_spill] sm:$0xff] %v10790_v53  ;;  %7675 = vmatmul.msk.f32.gmra.mxu3 %vm1191_vm1, %v8400_v11  ;;  %7630 = vmatmul.msk.f32.gmra.mxu2 %vm1191_vm1, %v8408_v38  ;;  %v2519_v11 = vadd.f32 %v10316_v1, %v1896_v55  ;;  %v17012_v53 = vld [vmem:[#allocation110_spill] sm:$0xff] }
 0x384   : > { %7749 = vmatmul.msk.f32.gmra.mxu1 %vm1191_vm1, %v10796_v33  ;;  %v2048_v17 = vadd.f32 %v17012_v53, %v17011_v57  ;;  %v10820_v33 = vld [vmem:[%s9003_s26 + $0x90] sm:$0xff]  ;;  %v17014_v1 = vld [vmem:[#allocation70_spill] sm:$0xff] }
 0x385   : > { %17013 = vst [vmem:[#allocation85_spill] sm:$0xff] %v10820_v33  ;;  %v1899_v55 = vadd.f32 %v17015_v18, %v17014_v1  ;;  %v17020_v18 = vld [vmem:[#allocation59_spill] sm:$0xff] }
 0x386   : > { %v2820_v3 = vpop.f32.mrf.mxu3  ;;  %v2671_v60 = vpop.f32.mrf.mxu2 }
 0x387   : > { %v10808_v61 = vadd.f32 %v2820_v3, %v2512_v41  ;;  %v10810_v63 = vadd.f32 %v2671_v60, %v2519_v11  ;;  %v10812_v47 = vpop.f32.mrf.mxu0  ;;  %v17016_v41 = vld [vmem:[#allocation182_spill] sm:$0xff] }
 0x388   : > { %v2514_v53 = vadd.f32 %v17016_v41, %v2048_v17  ;;  %v17024_v17 = vld [vmem:[#allocation115_spill] sm:$0xff]  ;;  %v8412_v41 = vld [vmem:[%s9003_s26 + $0x318] sm:$0xff] }
 0x389   : > { %17008 = vst [vmem:[#allocation38_spill] sm:$0xff] %v10808_v61  ;;  %v10814_v29 = vpop.f32.mrf.mxu1 }
 0x38a   : > { %17009 = vst [vmem:[#allocation84_spill] sm:$0xff] %v10810_v63  ;;  %7701 = vmatmul.msk.f32.gmra.mxu0 %vm1191_vm1, %v10820_v33 }
 0x38b   : > { %17010 = vst [vmem:[#allocation46_spill] sm:$0xff] %v10814_v29  ;;  %7676 = vmatmul.msk.f32.gmra.mxu3 %vm1191_vm1, %v8402_v6  ;;  %7631 = vmatmul.msk.f32.gmra.mxu2 %vm1191_vm1, %v8410_v30  ;;  %v2521_v6 = vadd.f32 %v10334_v39, %v1899_v55  ;;  %v17021_v29 = vld [vmem:[#allocation114_spill] sm:$0xff] }
 0x38c   : > { %7750 = vmatmul.msk.f32.gmra.mxu1 %vm1191_vm1, %v10820_v33  ;;  %v2051_v61 = vadd.f32 %v17021_v29, %v17020_v18  ;;  %v10844_v33 = vld [vmem:[%s9003_s26 + $0x98] sm:$0xff] }
 0x38d   : > { %17022 = vst [vmem:[#allocation50_spill] sm:$0xff] %v10844_v33  ;;  %v17023_v39 = vld [vmem:[#allocation74_spill] sm:$0xff] }
 0x38e   : > { %v2823_v11 = vpop.f32.mrf.mxu3  ;;  %v2674_v3 = vpop.f32.mrf.mxu2  ;;  %v1902_v55 = vadd.f32 %v17024_v17, %v17023_v39  ;;  %v17029_v17 = vld [vmem:[#allocation63_spill] sm:$0xff] }
 0x38f   : > { %v10832_v60 = vadd.f32 %v2823_v11, %v2514_v53  ;;  %v10834_v57 = vadd.f32 %v2674_v3, %v2521_v6  ;;  %v10836_v63 = vpop.f32.mrf.mxu0  ;;  %v17025_v53 = vld [vmem:[#allocation186_spill] sm:$0xff] }
 0x390   : > { %v2516_v29 = vadd.f32 %v17025_v53, %v2051_v61  ;;  %v17033_v61 = vld [vmem:[#allocation119_spill] sm:$0xff] }
 0x391   : > { %17017 = vst [vmem:[#allocation164_spill] sm:$0xff] %v10832_v60  ;;  %v10838_v1 = vpop.f32.mrf.mxu1  ;;  %v10875_v53 = vld [vmem:[%s9003_s26 + $0x320] sm:$0xff] }
 0x392   : > { %17018 = vst [vmem:[#allocation41_spill] sm:$0xff] %v10834_v57  ;;  %7702 = vmatmul.msk.f32.gmra.mxu0 %vm1191_vm1, %v10844_v33 }
 0x393   : > { %17019 = vst [vmem:[#allocation88_spill] sm:$0xff] %v10838_v1  ;;  %7677 = vmatmul.msk.f32.gmra.mxu3 %vm1191_vm1, %v8404_v27  ;;  %7632 = vmatmul.msk.f32.gmra.mxu2 %vm1191_vm1, %v8412_v41  ;;  %v2523_v27 = vadd.f32 %v10352_v13, %v1902_v55  ;;  %v17030_v1 = vld [vmem:[#allocation118_spill] sm:$0xff] }
 0x394   : > { %7751 = vmatmul.msk.f32.gmra.mxu1 %vm1191_vm1, %v10844_v33  ;;  %v2054_v60 = vadd.f32 %v17030_v1, %v17029_v17  ;;  %v10868_v33 = vld [vmem:[%s9003_s26 + $0xa0] sm:$0xff]  ;;  %v17032_v13 = vld [vmem:[#allocation78_spill] sm:$0xff] }
 0x395   : > { %17031 = vst [vmem:[#allocation92_spill] sm:$0xff] %v10868_v33  ;;  %v1905_v55 = vadd.f32 %v17033_v61, %v17032_v13  ;;  %v17034_v1 = vld [vmem:[#allocation190_spill] sm:$0xff] }
 0x396   : > { %v2826_v6 = vpop.f32.mrf.mxu3  ;;  %v2677_v11 = vpop.f32.mrf.mxu2 }
 0x397   : > { %v10856_v3 = vadd.f32 %v2826_v6, %v2516_v29  ;;  %v10858_v18 = vadd.f32 %v2677_v11, %v2523_v27  ;;  %v10860_v57 = vpop.f32.mrf.mxu0  ;;  %v2525_v29 = vadd.f32 %v10370_v51, %v1905_v55  ;;  %v17040_v51 = vld [vmem:[#allocation82_spill] sm:$0xff] }
 0x399   : > { %17026 = vst [vmem:[#allocation89_spill] sm:$0xff] %v10856_v3  ;;  %v10862_v39 = vpop.f32.mrf.mxu1 }
 0x39a   : > { %17027 = vst [vmem:[#allocation167_spill] sm:$0xff] %v10858_v18  ;;  %7703 = vmatmul.msk.f32.gmra.mxu0 %vm1191_vm1, %v10868_v33  ;;  %v17037_v18 = vld [vmem:[#allocation67_spill] sm:$0xff] }
 0x39b   : > { %17028 = vst [vmem:[#allocation43_spill] sm:$0xff] %v10862_v39  ;;  %7678 = vmatmul.msk.f32.gmra.mxu3 %vm1191_vm1, %v8406_v26  ;;  %7633 = vmatmul.msk.f32.gmra.mxu2 %vm1191_vm1, %v10875_v53  ;;  %v2518_v26 = vadd.f32 %v17034_v1, %v2054_v60  ;;  %v17038_v39 = vld [vmem:[#allocation122_spill] sm:$0xff]  ;;  %v17041_v60 = vld [vmem:[#allocation123_spill] sm:$0xff]  ;;  %v10902_v1 = vld [vmem:[%s9003_s26 + $0x328] sm:$0xff] }
 0x39c   : > { %7752 = vmatmul.msk.f32.gmra.mxu1 %vm1191_vm1, %v10868_v33  ;;  %v2057_v3 = vadd.f32 %v17038_v39, %v17037_v18  ;;  %v10895_v33 = vld [vmem:[%s9003_s26 + $0xa8] sm:$0xff]  ;;  %v1908_v55 = vadd.f32 %v17041_v60, %v17040_v51  ;;  %v17044_v60 = vld [vmem:[#allocation71_spill] sm:$0xff] }
 0x39d   : > { %17039 = vst [vmem:[#allocation170_spill] sm:$0xff] %v10895_v33 }
 0x39e   : > { %v2829_v27 = vpop.f32.mrf.mxu3  ;;  %v2680_v6 = vpop.f32.mrf.mxu2  ;;  %v2527_v18 = vadd.f32 %v10391_v45, %v1908_v55  ;;  %v17048_v45 = vld [vmem:[#allocation127_spill] sm:$0xff]  ;;  %v10929_v55 = vld [vmem:[%s9003_s26 + $0x330] sm:$0xff] }
 0x39f   : > { %v10883_v11 = vadd.f32 %v2829_v27, %v2518_v26  ;;  %v10885_v17 = vadd.f32 %v2680_v6, %v2525_v29  ;;  %v10887_v13 = vpop.f32.mrf.mxu0 }
 0x3a1   : > { %17035 = vst [vmem:[#allocation54_spill] sm:$0xff] %v10885_v17  ;;  %v10889_v61 = vpop.f32.mrf.mxu1  ;;  %v17045_v17 = vld [vmem:[#allocation126_spill] sm:$0xff] }
 0x3a2   : > { %17036 = vst [vmem:[#allocation93_spill] sm:$0xff] %v10889_v61  ;;  %7704 = vmatmul.msk.f32.gmra.mxu0 %vm1191_vm1, %v10895_v33  ;;  %v2060_v61 = vadd.f32 %v17045_v17, %v17044_v60 }
 0x3a3   : > { %7679 = vmatmul.msk.f32.gmra.mxu3 %vm1191_vm1, %v8408_v38  ;;  %7634 = vmatmul.msk.f32.gmra.mxu2 %vm1191_vm1, %v10902_v1  ;;  %v2520_v38 = vadd.f32 %v10318_v37, %v2057_v3  ;;  %v17047_v37 = vld [vmem:[#allocation86_spill] sm:$0xff] }
 0x3a4   : > { %7753 = vmatmul.msk.f32.gmra.mxu1 %vm1191_vm1, %v10895_v33  ;;  %v10922_v33 = vld [vmem:[%s9003_s26 + $0xb0] sm:$0xff]  ;;  %v1911_v3 = vadd.f32 %v17048_v45, %v17047_v37  ;;  %v17051_v45 = vld [vmem:[#allocation75_spill] sm:$0xff] }
 0x3a5   : > { %17046 = vst [vmem:[#allocation58_spill] sm:$0xff] %v10922_v33 }
 0x3a6   : > { %v2832_v39 = vpop.f32.mrf.mxu3  ;;  %v2683_v26 = vpop.f32.mrf.mxu2  ;;  %v2529_v17 = vadd.f32 %v10412_v23, %v1911_v3  ;;  %v17055_v23 = vld [vmem:[#allocation131_spill] sm:$0xff]  ;;  %v10956_v3 = vld [vmem:[%s9003_s26 + $0x338] sm:$0xff] }
 0x3a7   : > { %v10910_v29 = vadd.f32 %v2832_v39, %v2520_v38  ;;  %v10912_v27 = vadd.f32 %v2683_v26, %v2527_v18  ;;  %v10914_v6 = vpop.f32.mrf.mxu0 }
 0x3a9   : > { %17042 = vst [vmem:[#allocation45_spill] sm:$0xff] %v10912_v27  ;;  %v10916_v51 = vpop.f32.mrf.mxu1  ;;  %v17052_v27 = vld [vmem:[#allocation130_spill] sm:$0xff] }
 0x3aa   : > { %17043 = vst [vmem:[#allocation96_spill] sm:$0xff] %v10916_v51  ;;  %7705 = vmatmul.msk.f32.gmra.mxu0 %vm1191_vm1, %v10922_v33  ;;  %v2063_v51 = vadd.f32 %v17052_v27, %v17051_v45 }
 0x3ab   : > { %7680 = vmatmul.msk.f32.gmra.mxu3 %vm1191_vm1, %v8410_v30  ;;  %7635 = vmatmul.msk.f32.gmra.mxu2 %vm1191_vm1, %v10929_v55  ;;  %v2522_v30 = vadd.f32 %v10336_v40, %v2060_v61  ;;  %v17054_v40 = vld [vmem:[#allocation90_spill] sm:$0xff] }
 0x3ac   : > { %7754 = vmatmul.msk.f32.gmra.mxu1 %vm1191_vm1, %v10922_v33  ;;  %v10949_v33 = vld [vmem:[%s9003_s26 + $0xb8] sm:$0xff]  ;;  %v1914_v61 = vadd.f32 %v17055_v23, %v17054_v40 }
 0x3ad   : > { %17053 = vst [vmem:[#allocation185_spill] sm:$0xff] %v10949_v33 }
 0x3ae   : > { %v2835_v38 = vpop.f32.mrf.mxu3  ;;  %v2686_v18 = vpop.f32.mrf.mxu2  ;;  %v2531_v27 = vadd.f32 %v10433_v43, %v1914_v61  ;;  %v10982_v43 = vld [vmem:[%s9003_s26 + $0xc0] sm:$0xff]  ;;  %v17061_v61 = vld [vmem:[#allocation133_spill] sm:$0xff] }
 0x3af   : > { %v10937_v39 = vadd.f32 %v2835_v38, %v2522_v30  ;;  %v10939_v26 = vadd.f32 %v2686_v18, %v2529_v17  ;;  %v10941_v60 = vpop.f32.mrf.mxu0 }
 0x3b1   : > { %17049 = vst [vmem:[#allocation97_spill] sm:$0xff] %v10939_v26  ;;  %v10943_v37 = vpop.f32.mrf.mxu1  ;;  %v10972_v26 = vld [vmem:[%s9003_s26 + $0x340] sm:$0xff] }
 0x3b2   : > { %17050 = vst [vmem:[#allocation173_spill] sm:$0xff] %v10943_v37  ;;  %7706 = vmatmul.msk.f32.gmra.mxu0 %vm1191_vm1, %v10949_v33 }
 0x3b3   : > { %7681 = vmatmul.msk.f32.gmra.mxu3 %vm1191_vm1, %v8412_v41  ;;  %7636 = vmatmul.msk.f32.gmra.mxu2 %vm1191_vm1, %v10956_v3  ;;  %v2524_v41 = vadd.f32 %v10354_v59, %v2063_v51  ;;  %v17059_v59 = vld [vmem:[#allocation132_spill] sm:$0xff] }
 0x3b4   : > { %7755 = vmatmul.msk.f32.gmra.mxu1 %vm1191_vm1, %v10949_v33  ;;  %v17058_v33 = vld [vmem:[#allocation79_spill] sm:$0xff] }
 0x3b5   : > { %v2066_v51 = vadd.f32 %v17059_v59, %v17058_v33 }
 0x3b6   : > { %v2838_v30 = vpop.f32.mrf.mxu3  ;;  %v2689_v17 = vpop.f32.mrf.mxu2 }
 0x3b7   : > { %v10964_v38 = vadd.f32 %v2838_v30, %v2524_v41  ;;  %v10966_v18 = vadd.f32 %v2689_v17, %v2531_v27  ;;  %v3044_v45 = vpop.f32.mrf.mxu0 }
 0x3b8   : > { %v10969_v40 = vadd.f32 %v3044_v45, %v10314_v35  ;;  %v17060_v35 = vld [vmem:[#allocation94_spill] sm:$0xff] }
 0x3b9   : > { %v3205_v23 = vpop.f32.mrf.mxu1  ;;  %v1917_v41 = vadd.f32 %v17061_v61, %v17060_v35  ;;  %v11004_v61 = vld [vmem:[%s9003_s26 + $0x348] sm:$0xff] }
 0x3ba   : > { %17056 = vst [vmem:[#allocation47_spill] sm:$0xff] %v10969_v40  ;;  %v10975_v37 = vadd.f32 %v3205_v23, %v10387_v62  ;;  %7707 = vmatmul.msk.f32.gmra.mxu0 %vm1191_vm1, %v10982_v43  ;;  %v2526_v62 = vadd.f32 %v10372_v24, %v2066_v51  ;;  %v17065_v24 = vld [vmem:[#allocation134_spill] sm:$0xff]  ;;  %v17143_v40 = vld [vmem:[#allocation125_spill] sm:$0xff] }
 0x3bb   : > { %7682 = vmatmul.msk.f32.gmra.mxu3 %vm1191_vm1, %v10875_v53  ;;  %7637 = vmatmul.msk.f32.gmra.mxu2 %vm1191_vm1, %v10972_v26  ;;  %v2533_v33 = vadd.f32 %v10454_v32, %v1917_v41  ;;  %v11014_v32 = vld [vmem:[%s9003_s26 + $0xc8] sm:$0xff]  ;;  %v17067_v41 = vld [vmem:[#allocation135_spill] sm:$0xff] }
 0x3bc   : > { %17057 = vst [vmem:[#allocation100_spill] sm:$0xff] %v10975_v37  ;;  %7756 = vmatmul.msk.f32.gmra.mxu1 %vm1191_vm1, %v10982_v43  ;;  %v17064_v37 = vld [vmem:[#allocation83_spill] sm:$0xff] }
 0x3bd   : > { %v2069_v51 = vadd.f32 %v17065_v24, %v17064_v37 }
 0x3be   : > { %v2841_v53 = vpop.f32.mrf.mxu3  ;;  %v2692_v30 = vpop.f32.mrf.mxu2 }
 0x3bf   : > { %v10996_v17 = vadd.f32 %v2841_v53, %v2526_v62  ;;  %v10998_v45 = vadd.f32 %v2692_v30, %v2533_v33  ;;  %v3047_v23 = vpop.f32.mrf.mxu0 }
 0x3c0   : > { %v11001_v59 = vadd.f32 %v3047_v23, %v10332_v19  ;;  %v17066_v19 = vld [vmem:[#allocation98_spill] sm:$0xff] }
 0x3c1   : > { %v3208_v35 = vpop.f32.mrf.mxu1  ;;  %v1920_v62 = vadd.f32 %v17067_v41, %v17066_v19  ;;  %v11036_v41 = vld [vmem:[%s9003_s26 + $0x350] sm:$0xff] }
 0x3c2   : > { %17062 = vst [vmem:[#allocation62_spill] sm:$0xff] %v11001_v59  ;;  %v11007_v27 = vadd.f32 %v3208_v35, %v10408_v4  ;;  %7708 = vmatmul.msk.f32.gmra.mxu0 %vm1191_vm1, %v11014_v32  ;;  %v2528_v4 = vadd.f32 %v10393_v10, %v2069_v51  ;;  %v17071_v10 = vld [vmem:[#allocation136_spill] sm:$0xff] }
 0x3c3   : > { %7683 = vmatmul.msk.f32.gmra.mxu3 %vm1191_vm1, %v10902_v1  ;;  %7638 = vmatmul.msk.f32.gmra.mxu2 %vm1191_vm1, %v11004_v61  ;;  %v2535_v1 = vadd.f32 %v10474_v28, %v1920_v62  ;;  %v11046_v28 = vld [vmem:[%s9003_s26 + $0xd0] sm:$0xff] }
 0x3c4   : > { %17063 = vst [vmem:[#allocation101_spill] sm:$0xff] %v11007_v27  ;;  %7757 = vmatmul.msk.f32.gmra.mxu1 %vm1191_vm1, %v11014_v32  ;;  %v17070_v27 = vld [vmem:[#allocation87_spill] sm:$0xff]  ;;  %v17073_v62 = vld [vmem:[#allocation137_spill] sm:$0xff] }
 0x3c5   : > { %v2072_v51 = vadd.f32 %v17071_v10, %v17070_v27 }
 0x3c6   : > { %v2844_v37 = vpop.f32.mrf.mxu3  ;;  %v2695_v53 = vpop.f32.mrf.mxu2 }
 0x3c7   : > { %v11028_v30 = vadd.f32 %v2844_v37, %v2528_v4  ;;  %v11030_v23 = vadd.f32 %v2695_v53, %v2535_v1  ;;  %v3050_v35 = vpop.f32.mrf.mxu0 }
 0x3c8   : > { %v11033_v24 = vadd.f32 %v3050_v35, %v10350_v42  ;;  %v17072_v42 = vld [vmem:[#allocation102_spill] sm:$0xff] }
 0x3c9   : > { %v3211_v19 = vpop.f32.mrf.mxu1  ;;  %v1923_v4 = vadd.f32 %v17073_v62, %v17072_v42  ;;  %v11068_v62 = vld [vmem:[%s9003_s26 + $0x358] sm:$0xff] }
 0x3ca   : > { %17068 = vst [vmem:[#allocation176_spill] sm:$0xff] %v11033_v24  ;;  %v11039_v33 = vadd.f32 %v3211_v19, %v10429_v25  ;;  %7709 = vmatmul.msk.f32.gmra.mxu0 %vm1191_vm1, %v11046_v28  ;;  %v2530_v25 = vadd.f32 %v10414_v14, %v2072_v51  ;;  %v17077_v14 = vld [vmem:[#allocation139_spill] sm:$0xff] }
 0x3cb   : > { %7684 = vmatmul.msk.f32.gmra.mxu3 %vm1191_vm1, %v10929_v55  ;;  %7639 = vmatmul.msk.f32.gmra.mxu2 %vm1191_vm1, %v11036_v41  ;;  %v2537_v55 = vadd.f32 %v10497_v46, %v1923_v4  ;;  %v11078_v46 = vld [vmem:[%s9003_s26 + $0xd8] sm:$0xff]  ;;  %v17133_v24 = vld [vmem:[#allocation159_spill] sm:$0xff] }
 0x3cc   : > { %17069 = vst [vmem:[#allocation189_spill] sm:$0xff] %v11039_v33  ;;  %7758 = vmatmul.msk.f32.gmra.mxu1 %vm1191_vm1, %v11046_v28  ;;  %v17076_v33 = vld [vmem:[#allocation91_spill] sm:$0xff]  ;;  %v17078_v4 = vld [vmem:[#allocation106_spill] sm:$0xff] }
 0x3cd   : > { %v2075_v51 = vadd.f32 %v17077_v14, %v17076_v33 }
 0x3ce   : > { %v2847_v27 = vpop.f32.mrf.mxu3  ;;  %v2698_v37 = vpop.f32.mrf.mxu2 }
 0x3cf   : > { %v11060_v53 = vadd.f32 %v2847_v27, %v2530_v25  ;;  %v11062_v35 = vadd.f32 %v2698_v37, %v2537_v55  ;;  %v3053_v19 = vpop.f32.mrf.mxu0  ;;  %v17082_v55 = vld [vmem:[#allocation95_spill] sm:$0xff] }
 0x3d0   : > { %v11065_v10 = vadd.f32 %v3053_v19, %v10368_v56  ;;  %v17079_v56 = vld [vmem:[#allocation140_spill] sm:$0xff] }
 0x3d1   : > { %v3214_v42 = vpop.f32.mrf.mxu1  ;;  %v1926_v25 = vadd.f32 %v17079_v56, %v17078_v4 }
 0x3d2   : > { %17074 = vst [vmem:[#allocation51_spill] sm:$0xff] %v11065_v10  ;;  %v11071_v1 = vadd.f32 %v3214_v42, %v10450_v2  ;;  %7710 = vmatmul.msk.f32.gmra.mxu0 %vm1191_vm1, %v11078_v46  ;;  %v2532_v2 = vadd.f32 %v10435_v8, %v2075_v51  ;;  %v17084_v51 = vld [vmem:[#allocation112_spill] sm:$0xff] }
 0x3d3   : > { %7685 = vmatmul.msk.f32.gmra.mxu3 %vm1191_vm1, %v10956_v3  ;;  %7640 = vmatmul.msk.f32.gmra.mxu2 %vm1191_vm1, %v11068_v62  ;;  %v2539_v3 = vadd.f32 %v10520_v52, %v1926_v25  ;;  %v11107_v52 = vld [vmem:[%s9003_s26 + $0xe0] sm:$0xff] }
 0x3d4   : > { %17075 = vst [vmem:[#allocation104_spill] sm:$0xff] %v11071_v1  ;;  %7759 = vmatmul.msk.f32.gmra.mxu1 %vm1191_vm1, %v11078_v46  ;;  %v17083_v1 = vld [vmem:[#allocation142_spill] sm:$0xff]  ;;  %v17085_v25 = vld [vmem:[#allocation143_spill] sm:$0xff] }
 0x3d5   : > { %v2078_v8 = vadd.f32 %v17083_v1, %v17082_v55  ;;  %v8427_v1 = vld [vmem:[%s16513_s1 + $0x130] sm:$0xf] }
 0x3d6   : > { %v2850_v33 = vpop.f32.mrf.mxu3  ;;  %v2701_v27 = vpop.f32.mrf.mxu2 }
 0x3d7   : > { %v11092_v37 = vadd.f32 %v2850_v33, %v2532_v2  ;;  %v11094_v19 = vadd.f32 %v2701_v27, %v2539_v3  ;;  %v3056_v42 = vpop.f32.mrf.mxu0  ;;  %v1929_v2 = vadd.f32 %v17085_v25, %v17084_v51 }
 0x3d8   : > { %v11097_v14 = vadd.f32 %v3056_v42, %v10389_v50  ;;  %v8428_v42 = vld [vmem:[%s16513_s1 + $0x120] sm:$0xff] }
 0x3d9   : > { %v3217_v4 = vpop.f32.mrf.mxu1  ;;  %v2541_v55 = vadd.f32 %v10543_v54, %v1929_v2  ;;  %v8429_v54 = vld [vmem:[%s16513_s1 + $0x110] sm:$0xff]  ;;  %v17088_v2 = vld [vmem:[#allocation99_spill] sm:$0xff] }
 0x3da   : > { %17080 = vst [vmem:[#allocation66_spill] sm:$0xff] %v11097_v14  ;;  %v11100_v56 = vadd.f32 %v3217_v4, %v10470_v12  ;;  %7711 = vmatmul.msk.f32.gmra.mxu0 %vm1191_vm1, %v11107_v52  ;;  %v11118_v12 = vld [vmem:[%s9003_s26 + $0x20] sm:$0xff]  ;;  %v17112_v14 = vld [vmem:[#allocation154_spill] sm:$0xff] }
 0x3db   : > { %7686 = vmatmul.msk.f32.gmra.mxu3 %vm1191_vm1, %v10972_v26  ;;  %7789 = vmatmul.msk.f32.vlgmr.msrb.gmra.mxu2 %vm1191_vm1, %v11118_v12  ;;  %v2534_v26 = vadd.f32 %v10457_v36, %v2078_v8 }
 0x3dc   : > { %17081 = vst [vmem:[#allocation105_spill] sm:$0xff] %v11100_v56  ;;  %7760 = vmatmul.msk.f32.gmra.mxu1 %vm1191_vm1, %v11107_v52  ;;  %8180 = vmatpush.msk.msrb.mxu2 %vm1336_vm0, %v8427_v1  ;;  %v17111_v56 = vld [vmem:[#allocation113_spill] sm:$0xff] }
 0x3dd   : > { %v2090_v10 = vadd.f32 %v17112_v14, %v17111_v56  ;;  %v17116_v14 = vld [vmem:[#allocation24_spill] sm:$0xff] }
 0x3de   : > { %v2853_v3 = vpop.f32.mrf.mxu3  ;;  %v2704_v33 = vpop.f32.mrf.mxu2  ;;  %4950 = vmatpush.msrb.mxu2 %v8428_v42 }
 0x3df   : > { %v11128_v27 = vadd.f32 %v2853_v3, %v2534_v26  ;;  %v11133_v36 = vadd.f32 %v2704_v33, %v2541_v55  ;;  %v3059_v4 = vpop.f32.mrf.mxu0  ;;  %v17089_v26 = vld [vmem:[#allocation145_spill] sm:$0xff]  ;;  %v11149_v55 = vld [vmem:[%s9003_s26 + $0xe8] sm:$0xff]  ;;  %v17091_v3 = vld [vmem:[#allocation146_spill] sm:$0xff]  ;;  %v2542_v56 = vadd.f32 %v17116_v14, %v2090_v10 }
 0x3e0   : > { %v11136_v8 = vadd.f32 %v3059_v4, %v10410_v21  ;;  %4951 = vmatpush.msrb.mxu2 %v8429_v54  ;;  %v2081_v1 = vadd.f32 %v17089_v26, %v17088_v2  ;;  %v17090_v21 = vld [vmem:[#allocation116_spill] sm:$0xff]  ;;  %v8432_v4 = vld [vmem:[%s16513_s1 + $0x100] sm:$0xff] }
 0x3e1   : > { %v3220_v51 = vpop.f32.mrf.mxu1  ;;  %v1932_v33 = vadd.f32 %v17091_v3, %v17090_v21 }
 0x3e2   : > { %17086 = vst [vmem:[#allocation179_spill] sm:$0xff] %v11136_v8  ;;  %v11142_v25 = vadd.f32 %v3220_v51, %v10493_v7  ;;  %7712 = vmatmul.msk.f32.gmra.mxu0 %vm1191_vm1, %v11149_v55  ;;  %v11160_v7 = vld [vmem:[%s9003_s26 + $0x28] sm:$0xff]  ;;  %4952 = vmatpush.msrb.mxu2 %v8432_v4  ;;  %v17102_v8 = vld [vmem:[#allocation151_spill] sm:$0xff] }
 0x3e3   : > { %7687 = vmatmul.msk.f32.gmra.mxu3 %vm1191_vm1, %v11004_v61  ;;  %7790 = vmatmul.msk.f32.gmra.mxu2 %vm1191_vm1, %v11160_v7  ;;  %v2536_v61 = vadd.f32 %v10477_v31, %v2081_v1  ;;  %v2543_v51 = vadd.f32 %v10584_v49, %v1932_v33  ;;  %v17094_v1 = vld [vmem:[#allocation103_spill] sm:$0xff]  ;;  %v11184_v49 = vld [vmem:[%s9003_s26 + $0xf0] sm:$0xff]  ;;  %v17096_v33 = vld [vmem:[#allocation120_spill] sm:$0xff] }
 0x3e4   : > { %17087 = vst [vmem:[#allocation55_spill] sm:$0xff] %v11142_v25  ;;  %7761 = vmatmul.msk.f32.gmra.mxu1 %vm1191_vm1, %v11149_v55  ;;  %v17095_v25 = vld [vmem:[#allocation148_spill] sm:$0xff] }
 0x3e5   : > { %v2084_v4 = vadd.f32 %v17095_v25, %v17094_v1 }
 0x3e6   : > { %v2856_v54 = vpop.f32.mrf.mxu3  ;;  %v2707_v2 = vpop.f32.mrf.mxu2 }
 0x3e7   : > { %v11169_v26 = vadd.f32 %v2856_v54, %v2536_v61  ;;  %v11171_v21 = vadd.f32 %v2707_v2, %v2543_v51  ;;  %v3062_v3 = vpop.f32.mrf.mxu0  ;;  %v17097_v61 = vld [vmem:[#allocation149_spill] sm:$0xff] }
 0x3e8   : > { %v11174_v42 = vadd.f32 %v3062_v3, %v10431_v44  ;;  %v1935_v51 = vadd.f32 %v17097_v61, %v17096_v33  ;;  %v17099_v44 = vld [vmem:[#allocation11_spill] sm:$0xff] }
 0x3e9   : > { %v3223_v50 = vpop.f32.mrf.mxu1 }
 0x3ea   : > { %17092 = vst [vmem:[#allocation110_spill] sm:$0xff] %v11174_v42  ;;  %v11177_v31 = vadd.f32 %v3223_v50, %v10516_v0  ;;  %7713 = vmatmul.msk.f32.gmra.mxu0 %vm1191_vm1, %v11184_v49  ;;  %v11195_v0 = vld [vmem:[%s9003_s26 + $0x30] sm:$0xff]  ;;  %v2545_v50 = vadd.f32 %v10617_v15, %v1935_v51  ;;  %v17101_v42 = vld [vmem:[#allocation107_spill] sm:$0xff]  ;;  %v11216_v15 = vld [vmem:[%s9003_s26 + $0xf8] sm:$0xff] }
 0x3eb   : > { %7688 = vmatmul.msk.f32.gmra.mxu3 %vm1191_vm1, %v11036_v41  ;;  %7791 = vmatmul.msk.f32.gmra.mxu2 %vm1191_vm1, %v11195_v0  ;;  %v2538_v41 = vadd.f32 %v10500_v58, %v2084_v4  ;;  %v2087_v58 = vadd.f32 %v17102_v8, %v17101_v42  ;;  %v17103_v4 = vld [vmem:[#allocation124_spill] sm:$0xff] }
 0x3ec   : > { %17093 = vst [vmem:[#allocation70_spill] sm:$0xff] %v11177_v31  ;;  %7762 = vmatmul.msk.f32.gmra.mxu1 %vm1191_vm1, %v11184_v49  ;;  %v17104_v51 = vld [vmem:[#allocation152_spill] sm:$0xff] }
 0x3ee   : > { %v2859_v25 = vpop.f32.mrf.mxu3  ;;  %v2710_v54 = vpop.f32.mrf.mxu2 }
 0x3ef   : > { %v11201_v2 = vadd.f32 %v2859_v25, %v2538_v41  ;;  %v11203_v3 = vadd.f32 %v2710_v54, %v2545_v50  ;;  %v3065_v1 = vpop.f32.mrf.mxu0  ;;  %v1938_v41 = vadd.f32 %v17104_v51, %v17103_v4  ;;  %v17107_v4 = vld [vmem:[#allocation48_spill] sm:$0xff] }
 0x3f0   : > { %v11206_v33 = vadd.f32 %v3065_v1, %v10452_v16 }
 0x3f1   : > { %v3226_v61 = vpop.f32.mrf.mxu1  ;;  %v2547_v42 = vadd.f32 %v10642_v20, %v1938_v41  ;;  %v17113_v20 = vld [vmem:[#allocation128_spill] sm:$0xff]  ;;  %v17114_v41 = vld [vmem:[#allocation155_spill] sm:$0xff] }
 0x3f2   : > { %17098 = vst [vmem:[#allocation111_spill] sm:$0xff] %v11206_v33  ;;  %v11209_v31 = vadd.f32 %v3226_v61, %v17099_v44  ;;  %7714 = vmatmul.msk.f32.gmra.mxu0 %vm1191_vm1, %v11216_v15  ;;  %v11227_v44 = vld [vmem:[%s9003_s26 + $0x38] sm:$0xff] }
 0x3f3   : > { %7689 = vmatmul.msk.f32.gmra.mxu3 %vm1191_vm1, %v11068_v62  ;;  %7792 = vmatmul.msk.f32.gmra.mxu2 %vm1191_vm1, %v11227_v44  ;;  %v17105_v62 = vld [vmem:[#allocation138_spill] sm:$0xff] }
 0x3f4   : > { %17100 = vst [vmem:[#allocation182_spill] sm:$0xff] %v11209_v31  ;;  %7763 = vmatmul.msk.f32.gmra.mxu1 %vm1191_vm1, %v11216_v15  ;;  %v2540_v8 = vadd.f32 %v17105_v62, %v2087_v58  ;;  %v17109_v31 = vld [vmem:[#allocation141_spill] sm:$0xff]  ;;  %v11246_v58 = vld [vmem:[%s9003_s26 + $0x100] sm:$0xff]  ;;  %v1941_v62 = vadd.f32 %v17114_v41, %v17113_v20  ;;  %v17118_v20 = vld [vmem:[#allocation20_spill] sm:$0xff] }
 0x3f6   : > { %v2862_v50 = vpop.f32.mrf.mxu3  ;;  %v2713_v25 = vpop.f32.mrf.mxu2 }
 0x3f7   : > { %v11233_v54 = vadd.f32 %v2862_v50, %v2540_v8  ;;  %v11235_v1 = vadd.f32 %v2713_v25, %v2547_v42  ;;  %v3068_v61 = vpop.f32.mrf.mxu0  ;;  %v11285_v8 = vld [vmem:[%s9003_s26 + $0x108] sm:$0xff] }
 0x3f8   : > { %v11238_v51 = vadd.f32 %v3068_v61, %v17107_v4  ;;  %v8439_v61 = vld [vmem:[%s16513_s1 + $0x128] sm:$0xff] }
 0x3f9   : > { %17106 = vst [vmem:[#allocation59_spill] sm:$0xff] %v11235_v1  ;;  %v3229_v16 = vpop.f32.mrf.mxu1 }
 0x3fa   : > { %17108 = vst [vmem:[#allocation114_spill] sm:$0xff] %v11238_v51  ;;  %v11241_v33 = vadd.f32 %v3229_v16, %v17109_v31  ;;  %7715 = vmatmul.msk.f32.gmra.mxu0 %vm1191_vm1, %v11246_v58  ;;  %v17115_v31 = vld [vmem:[#allocation53_spill] sm:$0xff]  ;;  %v8438_v16 = vld [vmem:[%s16513_s1 + $0x138] sm:$0xf]  ;;  %v17130_v51 = vld [vmem:[#allocation60_spill] sm:$0xff] }
 0x3fb   : > { %7838 = vmatmul.msk.f32.vlgmr.msra.gmra.mxu3 %vm1191_vm1, %v11118_v12  ;;  %7793 = vmatmul.msk.f32.gmra.mxu2 %vm1191_vm1, %v17115_v31  ;;  %v2549_v12 = vadd.f32 %v10667_v22, %v1941_v62  ;;  %v8440_v22 = vld [vmem:[%s16513_s1 + $0x118] sm:$0xff] }
 0x3fc   : > { %17110 = vst [vmem:[#allocation74_spill] sm:$0xff] %v11241_v33  ;;  %7764 = vmatmul.msk.f32.gmra.mxu1 %vm1191_vm1, %v11246_v58  ;;  %8229 = vmatpush.msk.msra.mxu3 %vm1336_vm0, %v8438_v16  ;;  %v17122_v16 = vld [vmem:[#allocation156_spill] sm:$0xff] }
 0x3fe   : > { %v2865_v42 = vpop.f32.mrf.mxu3  ;;  %v2716_v50 = vpop.f32.mrf.mxu2  ;;  %5111 = vmatpush.msra.mxu3 %v8439_v61 }
 0x3ff   : > { %v11266_v25 = vadd.f32 %v2865_v42, %v2542_v56  ;;  %v11271_v4 = vadd.f32 %v2716_v50, %v2549_v12  ;;  %v3071_v10 = vpop.f32.mrf.mxu0  ;;  %v17121_v56 = vld [vmem:[#allocation117_spill] sm:$0xff]  ;;  %v17123_v12 = vld [vmem:[#allocation3_spill] sm:$0xff] }
 0x400   : > { %v11274_v41 = vadd.f32 %v3071_v10, %v17118_v20  ;;  %5112 = vmatpush.msra.mxu3 %v8440_v22  ;;  %v2093_v42 = vadd.f32 %v17122_v16, %v17121_v56  ;;  %v17124_v50 = vld [vmem:[#allocation157_spill] sm:$0xff]  ;;  %v17126_v20 = vld [vmem:[#allocation56_spill] sm:$0xff] }
 0x401   : > { %17117 = vst [vmem:[#allocation115_spill] sm:$0xff] %v11271_v4  ;;  %v3232_v14 = vpop.f32.mrf.mxu1  ;;  %v1944_v61 = vadd.f32 %v17124_v50, %v17123_v12  ;;  %v8442_v22 = vld [vmem:[%s16513_s1 + $0x108] sm:$0xff] }
 0x402   : > { %17119 = vst [vmem:[#allocation186_spill] sm:$0xff] %v11274_v41  ;;  %v11280_v62 = vadd.f32 %v3232_v14, %v10613_v5  ;;  %7716 = vmatmul.msk.f32.gmra.mxu0 %vm1191_vm1, %v11285_v8  ;;  %v17125_v5 = vld [vmem:[#allocation28_spill] sm:$0xff]  ;;  %v2544_v14 = vadd.f32 %v17126_v20, %v2093_v42  ;;  %5113 = vmatpush.msra.mxu3 %v8442_v22  ;;  %v17132_v20 = vld [vmem:[#allocation121_spill] sm:$0xff] }
 0x403   : > { %7839 = vmatmul.msk.f32.gmra.mxu3 %vm1191_vm1, %v11160_v7  ;;  %7794 = vmatmul.msk.f32.gmra.mxu2 %vm1191_vm1, %v17125_v5  ;;  %v2551_v7 = vadd.f32 %v10692_v9, %v1944_v61  ;;  %v2096_v59 = vadd.f32 %v17133_v24, %v17132_v20  ;;  %v11317_v22 = vld [vmem:[%s9003_s26 + $0x110] sm:$0xff]  ;;  %v17135_v61 = vld [vmem:[#allocation160_spill] sm:$0xff] }
 0x404   : > { %17120 = vst [vmem:[#allocation63_spill] sm:$0xff] %v11280_v62  ;;  %7765 = vmatmul.msk.f32.gmra.mxu1 %vm1191_vm1, %v11285_v8  ;;  %v17128_v62 = vld [vmem:[#allocation49_spill] sm:$0xff]  ;;  %v17137_v24 = vld [vmem:[#allocation144_spill] sm:$0xff] }
 0x405   : > { %v17134_v9 = vld [vmem:[#allocation5_spill] sm:$0xff] }
 0x406   : > { %v2868_v56 = vpop.f32.mrf.mxu3  ;;  %v2719_v16 = vpop.f32.mrf.mxu2 }
 0x407   : > { %v11304_v12 = vadd.f32 %v2868_v56, %v2544_v14  ;;  %v11306_v50 = vadd.f32 %v2719_v16, %v2551_v7  ;;  %v3074_v10 = vpop.f32.mrf.mxu0 }
 0x408   : > { %v11309_v41 = vadd.f32 %v3074_v10, %v17128_v62  ;;  %v1947_v62 = vadd.f32 %v17135_v61, %v17134_v9  ;;  %v17139_v9 = vld [vmem:[#allocation52_spill] sm:$0xff] }
 0x409   : > { %17127 = vst [vmem:[#allocation118_spill] sm:$0xff] %v11306_v50  ;;  %v3235_v33 = vpop.f32.mrf.mxu1  ;;  %v17144_v50 = vld [vmem:[#allocation162_spill] sm:$0xff] }
 0x40a   : > { %17129 = vst [vmem:[#allocation78_spill] sm:$0xff] %v11309_v41  ;;  %v11312_v42 = vadd.f32 %v3235_v33, %v17130_v51  ;;  %7717 = vmatmul.msk.f32.gmra.mxu0 %vm1191_vm1, %v11317_v22  ;;  %v17136_v33 = vld [vmem:[#allocation17_spill] sm:$0xff]  ;;  %v2546_v51 = vadd.f32 %v17137_v24, %v2096_v59  ;;  %v2553_v14 = vadd.f32 %v10716_v48, %v1947_v62  ;;  %v11346_v59 = vld [vmem:[%s9003_s26 + $0x118] sm:$0xff]  ;;  %v17146_v48 = vld [vmem:[#allocation7_spill] sm:$0xff] }
 0x40b   : > { %7840 = vmatmul.msk.f32.gmra.mxu3 %vm1191_vm1, %v11195_v0  ;;  %7795 = vmatmul.msk.f32.gmra.mxu2 %vm1191_vm1, %v17136_v33  ;;  %v2099_v4 = vadd.f32 %v17144_v50, %v17143_v40  ;;  %17145 = vst [vmem:[#allocation82_spill] sm:$0xff] %v11346_v59  ;;  %v17147_v62 = vld [vmem:[#allocation163_spill] sm:$0xff]  ;;  %v17149_v40 = vld [vmem:[#allocation61_spill] sm:$0xff] }
 0x40c   : > { %17131 = vst [vmem:[#allocation119_spill] sm:$0xff] %v11312_v42  ;;  %7766 = vmatmul.msk.f32.gmra.mxu1 %vm1191_vm1, %v11317_v22  ;;  %v17141_v42 = vld [vmem:[#allocation21_spill] sm:$0xff]  ;;  %v1950_v24 = vadd.f32 %v17147_v62, %v17146_v48  ;;  %v17153_v48 = vld [vmem:[#allocation14_spill] sm:$0xff] }
 0x40d   : > { %v2548_v50 = vadd.f32 %v17149_v40, %v2099_v4  ;;  %v11375_v4 = vld [vmem:[%s9003_s26 + $0x120] sm:$0xff]  ;;  %v17161_v40 = vld [vmem:[#allocation166_spill] sm:$0xff] }
 0x40e   : > { %v2871_v7 = vpop.f32.mrf.mxu3  ;;  %v2722_v56 = vpop.f32.mrf.mxu2  ;;  %17159 = vst [vmem:[#allocation127_spill] sm:$0xff] %v11375_v4 }
 0x40f   : > { %v11333_v0 = vadd.f32 %v2871_v7, %v2546_v51  ;;  %v11335_v16 = vadd.f32 %v2722_v56, %v2553_v14  ;;  %v3077_v20 = vpop.f32.mrf.mxu0 }
 0x410   : > { %v11338_v61 = vadd.f32 %v3077_v20, %v17139_v9 }
 0x411   : > { %17138 = vst [vmem:[#allocation190_spill] sm:$0xff] %v11335_v16  ;;  %v3238_v10 = vpop.f32.mrf.mxu1  ;;  %v17157_v16 = vld [vmem:[#allocation129_spill] sm:$0xff] }
 0x412   : > { %17140 = vst [vmem:[#allocation67_spill] sm:$0xff] %v11338_v61  ;;  %v11341_v41 = vadd.f32 %v3238_v10, %v17141_v42  ;;  %7718 = vmatmul.msk.f32.gmra.mxu0 %vm1191_vm1, %v11346_v59  ;;  %v17148_v42 = vld [vmem:[#allocation147_spill] sm:$0xff]  ;;  %v17150_v10 = vld [vmem:[#allocation108_spill] sm:$0xff] }
 0x413   : > { %7841 = vmatmul.msk.f32.gmra.mxu3 %vm1191_vm1, %v11227_v44  ;;  %7796 = vmatmul.msk.f32.gmra.mxu2 %vm1191_vm1, %v17148_v42  ;;  %v2555_v14 = vadd.f32 %v17150_v10, %v1950_v24  ;;  %v17160_v24 = vld [vmem:[#allocation9_spill] sm:$0xff] }
 0x414   : > { %17142 = vst [vmem:[#allocation122_spill] sm:$0xff] %v11341_v41  ;;  %7767 = vmatmul.msk.f32.gmra.mxu1 %vm1191_vm1, %v11346_v59  ;;  %v17155_v41 = vld [vmem:[#allocation150_spill] sm:$0xff]  ;;  %v17158_v59 = vld [vmem:[#allocation165_spill] sm:$0xff] }
 0x415   : > { %v2102_v1 = vadd.f32 %v17158_v59, %v17157_v16  ;;  %v17163_v16 = vld [vmem:[#allocation34_spill] sm:$0xff] }
 0x416   : > { %v2874_v7 = vpop.f32.mrf.mxu3  ;;  %v2725_v56 = vpop.f32.mrf.mxu2 }
 0x417   : > { %v11362_v44 = vadd.f32 %v2874_v7, %v2548_v50  ;;  %v11364_v20 = vadd.f32 %v2725_v56, %v2555_v14  ;;  %v3080_v9 = vpop.f32.mrf.mxu0  ;;  %v1953_v50 = vadd.f32 %v17161_v40, %v17160_v24  ;;  %v2550_v59 = vadd.f32 %v17163_v16, %v2102_v1  ;;  %v17166_v24 = vld [vmem:[#allocation57_spill] sm:$0xff]  ;;  %v11404_v1 = vld [vmem:[%s9003_s26 + $0x128] sm:$0xff] }
 0x418   : > { %v11367_v62 = vadd.f32 %v3080_v9, %v17153_v48  ;;  %17172 = vst [vmem:[#allocation131_spill] sm:$0xff] %v11404_v1  ;;  %v17174_v16 = vld [vmem:[#allocation169_spill] sm:$0xff] }
 0x419   : > { %17151 = vst [vmem:[#allocation123_spill] sm:$0xff] %v11362_v44  ;;  %v3241_v51 = vpop.f32.mrf.mxu1 }
 0x41a   : > { %17152 = vst [vmem:[#allocation71_spill] sm:$0xff] %v11364_v20  ;;  %v11370_v61 = vadd.f32 %v3241_v51, %v17155_v41  ;;  %7719 = vmatmul.msk.f32.gmra.mxu0 %vm1191_vm1, %v11375_v4  ;;  %v17162_v41 = vld [vmem:[#allocation65_spill] sm:$0xff]  ;;  %v17170_v20 = vld [vmem:[#allocation4_spill] sm:$0xff] }
 0x41b   : > { %17154 = vst [vmem:[#allocation126_spill] sm:$0xff] %v11367_v62  ;;  %7842 = vmatmul.msk.f32.gmra.mxu3 %vm1191_vm1, %v17115_v31  ;;  %7797 = vmatmul.msk.f32.gmra.mxu2 %vm1191_vm1, %v17162_v41  ;;  %v17164_v51 = vld [vmem:[#allocation77_spill] sm:$0xff] }
 0x41c   : > { %17156 = vst [vmem:[#allocation86_spill] sm:$0xff] %v11370_v61  ;;  %7768 = vmatmul.msk.f32.gmra.mxu1 %vm1191_vm1, %v11375_v4  ;;  %v2557_v14 = vadd.f32 %v17164_v51, %v1953_v50  ;;  %v17168_v61 = vld [vmem:[#allocation69_spill] sm:$0xff]  ;;  %v17171_v4 = vld [vmem:[#allocation168_spill] sm:$0xff] }
 0x41d   : > { %v2105_v44 = vadd.f32 %v17171_v4, %v17170_v20  ;;  %v17173_v50 = vld [vmem:[#allocation12_spill] sm:$0xff] }
 0x41e   : > { %v2877_v7 = vpop.f32.mrf.mxu3  ;;  %v2728_v56 = vpop.f32.mrf.mxu2  ;;  %v17176_v20 = vld [vmem:[#allocation68_spill] sm:$0xff] }
 0x41f   : > { %v11391_v31 = vadd.f32 %v2877_v7, %v2550_v59  ;;  %v11393_v9 = vadd.f32 %v2728_v56, %v2557_v14  ;;  %v3083_v48 = vpop.f32.mrf.mxu0  ;;  %v1956_v59 = vadd.f32 %v17174_v16, %v17173_v50  ;;  %v2552_v4 = vadd.f32 %v17176_v20, %v2105_v44  ;;  %v17180_v51 = vld [vmem:[#allocation40_spill] sm:$0xff]  ;;  %v11433_v44 = vld [vmem:[%s9003_s26 + $0x130] sm:$0xff] }
 0x420   : > { %v11396_v40 = vadd.f32 %v3083_v48, %v17166_v24  ;;  %v17178_v24 = vld [vmem:[#allocation31_spill] sm:$0xff]  ;;  %17184 = vst [vmem:[#allocation133_spill] sm:$0xff] %v11433_v44 }
 0x421   : > { %17165 = vst [vmem:[#allocation75_spill] sm:$0xff] %v11393_v9  ;;  %v3244_v10 = vpop.f32.mrf.mxu1  ;;  %v17183_v9 = vld [vmem:[#allocation171_spill] sm:$0xff] }
 0x422   : > { %17167 = vst [vmem:[#allocation130_spill] sm:$0xff] %v11396_v40  ;;  %v11399_v62 = vadd.f32 %v3244_v10, %v17168_v61  ;;  %7720 = vmatmul.msk.f32.gmra.mxu0 %vm1191_vm1, %v11404_v1  ;;  %v17175_v61 = vld [vmem:[#allocation37_spill] sm:$0xff]  ;;  %v2559_v10 = vadd.f32 %v10788_v34, %v1956_v59  ;;  %v17182_v40 = vld [vmem:[#allocation6_spill] sm:$0xff]  ;;  %v17185_v34 = vld [vmem:[#allocation15_spill] sm:$0xff] }
 0x423   : > { %7843 = vmatmul.msk.f32.gmra.mxu3 %vm1191_vm1, %v17125_v5  ;;  %7798 = vmatmul.msk.f32.gmra.mxu2 %vm1191_vm1, %v17175_v61  ;;  %v17186_v59 = vld [vmem:[#allocation172_spill] sm:$0xff] }
 0x424   : > { %17169 = vst [vmem:[#allocation90_spill] sm:$0xff] %v11399_v62  ;;  %7769 = vmatmul.msk.f32.gmra.mxu1 %vm1191_vm1, %v11404_v1  ;;  %v2108_v1 = vadd.f32 %v17183_v9, %v17182_v40  ;;  %v1959_v20 = vadd.f32 %v17186_v59, %v17185_v34  ;;  %v17188_v9 = vld [vmem:[#allocation29_spill] sm:$0xff] }
 0x426   : > { %v2880_v14 = vpop.f32.mrf.mxu3  ;;  %v2731_v7 = vpop.f32.mrf.mxu2  ;;  %v2554_v40 = vadd.f32 %v17188_v9, %v2108_v1  ;;  %v11462_v1 = vld [vmem:[%s9003_s26 + $0x138] sm:$0xff] }
 0x427   : > { %v11420_v5 = vadd.f32 %v2880_v14, %v2552_v4  ;;  %v11422_v56 = vadd.f32 %v2731_v7, %v2559_v10  ;;  %v3086_v48 = vpop.f32.mrf.mxu0  ;;  %v2561_v10 = vadd.f32 %v10812_v47, %v1959_v20  ;;  %v17192_v4 = vld [vmem:[#allocation76_spill] sm:$0xff]  ;;  %17196 = vst [vmem:[#allocation135_spill] sm:$0xff] %v11462_v1  ;;  %v17197_v47 = vld [vmem:[#allocation18_spill] sm:$0xff]  ;;  %v17198_v20 = vld [vmem:[#allocation175_spill] sm:$0xff] }
 0x428   : > { %v11425_v50 = vadd.f32 %v3086_v48, %v17178_v24  ;;  %v1962_v9 = vadd.f32 %v17198_v20, %v17197_v47 }
 0x429   : > { %17177 = vst [vmem:[#allocation79_spill] sm:$0xff] %v11422_v56  ;;  %v3247_v16 = vpop.f32.mrf.mxu1  ;;  %v17195_v56 = vld [vmem:[#allocation174_spill] sm:$0xff] }
 0x42a   : > { %17179 = vst [vmem:[#allocation132_spill] sm:$0xff] %v11425_v50  ;;  %v11428_v62 = vadd.f32 %v3247_v16, %v17180_v51  ;;  %7721 = vmatmul.msk.f32.gmra.mxu0 %vm1191_vm1, %v11433_v44  ;;  %v17187_v51 = vld [vmem:[#allocation72_spill] sm:$0xff] }
 0x42b   : > { %7844 = vmatmul.msk.f32.gmra.mxu3 %vm1191_vm1, %v17136_v33  ;;  %7799 = vmatmul.msk.f32.gmra.mxu2 %vm1191_vm1, %v17187_v51  ;;  %v17190_v16 = vld [vmem:[#allocation64_spill] sm:$0xff] }
 0x42c   : > { %17181 = vst [vmem:[#allocation94_spill] sm:$0xff] %v11428_v62  ;;  %7770 = vmatmul.msk.f32.gmra.mxu1 %vm1191_vm1, %v11433_v44  ;;  %v17194_v50 = vld [vmem:[#allocation8_spill] sm:$0xff] }
 0x42d   : > { %v2111_v44 = vadd.f32 %v17195_v56, %v17194_v50  ;;  %v17200_v56 = vld [vmem:[#allocation109_spill] sm:$0xff] }
 0x42e   : > { %v2883_v14 = vpop.f32.mrf.mxu3  ;;  %v2734_v7 = vpop.f32.mrf.mxu2 }
 0x42f   : > { %v11449_v33 = vadd.f32 %v2883_v14, %v2554_v40  ;;  %v11451_v48 = vadd.f32 %v2734_v7, %v2561_v10  ;;  %v3089_v24 = vpop.f32.mrf.mxu0  ;;  %v2556_v50 = vadd.f32 %v17200_v56, %v2111_v44  ;;  %v2563_v10 = vadd.f32 %v10836_v63, %v1962_v9  ;;  %v17204_v40 = vld [vmem:[#allocation80_spill] sm:$0xff]  ;;  %v11491_v44 = vld [vmem:[%s9003_s26 + $0x140] sm:$0xff]  ;;  %v17209_v63 = vld [vmem:[#allocation22_spill] sm:$0xff] }
 0x430   : > { %v11454_v34 = vadd.f32 %v3089_v24, %v17190_v16  ;;  %17208 = vst [vmem:[#allocation137_spill] sm:$0xff] %v11491_v44  ;;  %v17210_v9 = vld [vmem:[#allocation178_spill] sm:$0xff] }
 0x431   : > { %17189 = vst [vmem:[#allocation83_spill] sm:$0xff] %v11451_v48  ;;  %v3250_v59 = vpop.f32.mrf.mxu1  ;;  %v17207_v48 = vld [vmem:[#allocation177_spill] sm:$0xff]  ;;  %v1965_v56 = vadd.f32 %v17210_v9, %v17209_v63 }
 0x432   : > { %17191 = vst [vmem:[#allocation134_spill] sm:$0xff] %v11454_v34  ;;  %v11457_v62 = vadd.f32 %v3250_v59, %v17192_v4  ;;  %7722 = vmatmul.msk.f32.gmra.mxu0 %vm1191_vm1, %v11462_v1  ;;  %v17199_v4 = vld [vmem:[#allocation32_spill] sm:$0xff]  ;;  %v17202_v59 = vld [vmem:[#allocation25_spill] sm:$0xff]  ;;  %v17206_v34 = vld [vmem:[#allocation10_spill] sm:$0xff] }
 0x433   : > { %7845 = vmatmul.msk.f32.gmra.mxu3 %vm1191_vm1, %v17148_v42  ;;  %7800 = vmatmul.msk.f32.gmra.mxu2 %vm1191_vm1, %v17199_v4 }
 0x434   : > { %17193 = vst [vmem:[#allocation98_spill] sm:$0xff] %v11457_v62  ;;  %7771 = vmatmul.msk.f32.gmra.mxu1 %vm1191_vm1, %v11462_v1  ;;  %v2114_v1 = vadd.f32 %v17207_v48, %v17206_v34  ;;  %v17212_v48 = vld [vmem:[#allocation158_spill] sm:$0xff] }
 0x436   : > { %v2886_v14 = vpop.f32.mrf.mxu3  ;;  %v2737_v7 = vpop.f32.mrf.mxu2  ;;  %v2558_v34 = vadd.f32 %v17212_v48, %v2114_v1  ;;  %v11520_v1 = vld [vmem:[%s9003_s26 + $0x148] sm:$0xff] }
 0x437   : > { %v11478_v42 = vadd.f32 %v2886_v14, %v2556_v50  ;;  %v11480_v24 = vadd.f32 %v2737_v7, %v2563_v10  ;;  %v3092_v16 = vpop.f32.mrf.mxu0  ;;  %v2565_v10 = vadd.f32 %v10860_v57, %v1965_v56  ;;  %v17216_v50 = vld [vmem:[#allocation38_spill] sm:$0xff]  ;;  %17220 = vst [vmem:[#allocation140_spill] sm:$0xff] %v11520_v1  ;;  %v17222_v56 = vld [vmem:[#allocation181_spill] sm:$0xff] }
 0x438   : > { %v11483_v47 = vadd.f32 %v3092_v16, %v17202_v59  ;;  %v17221_v57 = vld [vmem:[#allocation26_spill] sm:$0xff] }
 0x439   : > { %17201 = vst [vmem:[#allocation87_spill] sm:$0xff] %v11480_v24  ;;  %v3253_v20 = vpop.f32.mrf.mxu1  ;;  %v17219_v24 = vld [vmem:[#allocation180_spill] sm:$0xff]  ;;  %v1968_v48 = vadd.f32 %v17222_v56, %v17221_v57 }
 0x43a   : > { %17203 = vst [vmem:[#allocation136_spill] sm:$0xff] %v11483_v47  ;;  %v11486_v62 = vadd.f32 %v3253_v20, %v17204_v40  ;;  %7723 = vmatmul.msk.f32.gmra.mxu0 %vm1191_vm1, %v11491_v44  ;;  %v17211_v40 = vld [vmem:[#allocation35_spill] sm:$0xff]  ;;  %v17214_v20 = vld [vmem:[#allocation153_spill] sm:$0xff] }
 0x43b   : > { %7846 = vmatmul.msk.f32.gmra.mxu3 %vm1191_vm1, %v17162_v41  ;;  %7801 = vmatmul.msk.f32.gmra.mxu2 %vm1191_vm1, %v17211_v40  ;;  %v17218_v47 = vld [vmem:[#allocation13_spill] sm:$0xff] }
 0x43c   : > { %17205 = vst [vmem:[#allocation102_spill] sm:$0xff] %v11486_v62  ;;  %7772 = vmatmul.msk.f32.gmra.mxu1 %vm1191_vm1, %v11491_v44  ;;  %v2117_v44 = vadd.f32 %v17219_v24, %v17218_v47  ;;  %v17224_v24 = vld [vmem:[#allocation81_spill] sm:$0xff] }
 0x43e   : > { %v2889_v14 = vpop.f32.mrf.mxu3  ;;  %v2740_v7 = vpop.f32.mrf.mxu2  ;;  %v2560_v47 = vadd.f32 %v17224_v24, %v2117_v44  ;;  %v11549_v44 = vld [vmem:[%s9003_s26 + $0x150] sm:$0xff] }
 0x43f   : > { %v11507_v41 = vadd.f32 %v2889_v14, %v2558_v34  ;;  %v11509_v16 = vadd.f32 %v2740_v7, %v2565_v10  ;;  %v3095_v59 = vpop.f32.mrf.mxu0  ;;  %v2567_v10 = vadd.f32 %v10887_v13, %v1968_v48  ;;  %v17228_v34 = vld [vmem:[#allocation164_spill] sm:$0xff]  ;;  %17232 = vst [vmem:[#allocation143_spill] sm:$0xff] %v11549_v44  ;;  %v17233_v13 = vld [vmem:[#allocation30_spill] sm:$0xff] }
 0x440   : > { %v11512_v63 = vadd.f32 %v3095_v59, %v17214_v20  ;;  %v17234_v48 = vld [vmem:[#allocation184_spill] sm:$0xff] }
 0x441   : > { %17213 = vst [vmem:[#allocation91_spill] sm:$0xff] %v11509_v16  ;;  %v3256_v9 = vpop.f32.mrf.mxu1  ;;  %v17231_v16 = vld [vmem:[#allocation183_spill] sm:$0xff]  ;;  %v1971_v24 = vadd.f32 %v17234_v48, %v17233_v13 }
 0x442   : > { %17215 = vst [vmem:[#allocation139_spill] sm:$0xff] %v11512_v63  ;;  %v11515_v62 = vadd.f32 %v3256_v9, %v17216_v50  ;;  %7724 = vmatmul.msk.f32.gmra.mxu0 %vm1191_vm1, %v11520_v1  ;;  %v17223_v50 = vld [vmem:[#allocation161_spill] sm:$0xff]  ;;  %v17230_v63 = vld [vmem:[#allocation16_spill] sm:$0xff] }
 0x443   : > { %7847 = vmatmul.msk.f32.gmra.mxu3 %vm1191_vm1, %v17175_v61  ;;  %7802 = vmatmul.msk.f32.gmra.mxu2 %vm1191_vm1, %v17223_v50  ;;  %v17226_v9 = vld [vmem:[#allocation73_spill] sm:$0xff] }
 0x444   : > { %17217 = vst [vmem:[#allocation106_spill] sm:$0xff] %v11515_v62  ;;  %7773 = vmatmul.msk.f32.gmra.mxu1 %vm1191_vm1, %v11520_v1  ;;  %v2120_v1 = vadd.f32 %v17231_v16, %v17230_v63  ;;  %v17236_v16 = vld [vmem:[#allocation46_spill] sm:$0xff] }
 0x446   : > { %v2892_v14 = vpop.f32.mrf.mxu3  ;;  %v2743_v7 = vpop.f32.mrf.mxu2  ;;  %v2562_v63 = vadd.f32 %v17236_v16, %v2120_v1  ;;  %v11578_v1 = vld [vmem:[%s9003_s26 + $0x158] sm:$0xff] }
 0x447   : > { %v11536_v61 = vadd.f32 %v2892_v14, %v2560_v47  ;;  %v11538_v59 = vadd.f32 %v2743_v7, %v2567_v10  ;;  %v3098_v20 = vpop.f32.mrf.mxu0  ;;  %v2569_v10 = vadd.f32 %v10914_v6, %v1971_v24  ;;  %v17240_v47 = vld [vmem:[#allocation89_spill] sm:$0xff]  ;;  %v17245_v24 = vld [vmem:[#allocation188_spill] sm:$0xff] }
 0x448   : > { %v11541_v57 = vadd.f32 %v3098_v20, %v17226_v9  ;;  %v17244_v6 = vld [vmem:[#allocation33_spill] sm:$0xff] }
 0x449   : > { %17225 = vst [vmem:[#allocation95_spill] sm:$0xff] %v11538_v59  ;;  %v3259_v56 = vpop.f32.mrf.mxu1  ;;  %v17243_v59 = vld [vmem:[#allocation187_spill] sm:$0xff]  ;;  %v1974_v16 = vadd.f32 %v17245_v24, %v17244_v6 }
 0x44a   : > { %17227 = vst [vmem:[#allocation142_spill] sm:$0xff] %v11541_v57  ;;  %v11544_v62 = vadd.f32 %v3259_v56, %v17228_v34  ;;  %7725 = vmatmul.msk.f32.gmra.mxu0 %vm1191_vm1, %v11549_v44  ;;  %v17235_v34 = vld [vmem:[#allocation85_spill] sm:$0xff]  ;;  %v17238_v56 = vld [vmem:[#allocation42_spill] sm:$0xff]  ;;  %v17242_v57 = vld [vmem:[#allocation19_spill] sm:$0xff] }
 0x44b   : > { %7848 = vmatmul.msk.f32.gmra.mxu3 %vm1191_vm1, %v17187_v51  ;;  %7803 = vmatmul.msk.f32.gmra.mxu2 %vm1191_vm1, %v17235_v34 }
 0x44c   : > { %17229 = vst [vmem:[#allocation112_spill] sm:$0xff] %v11544_v62  ;;  %7774 = vmatmul.msk.f32.gmra.mxu1 %vm1191_vm1, %v11549_v44  ;;  %v2123_v44 = vadd.f32 %v17243_v59, %v17242_v57  ;;  %v17247_v59 = vld [vmem:[#allocation88_spill] sm:$0xff] }
 0x44e   : > { %v2895_v14 = vpop.f32.mrf.mxu3  ;;  %v2746_v7 = vpop.f32.mrf.mxu2  ;;  %v2564_v57 = vadd.f32 %v17247_v59, %v2123_v44  ;;  %v11607_v44 = vld [vmem:[%s9003_s26 + $0x160] sm:$0xff] }
 0x44f   : > { %v11565_v51 = vadd.f32 %v2895_v14, %v2562_v63  ;;  %v11567_v20 = vadd.f32 %v2746_v7, %v2569_v10  ;;  %v3101_v9 = vpop.f32.mrf.mxu0  ;;  %v2571_v10 = vadd.f32 %v10941_v60, %v1974_v16  ;;  %v17255_v16 = vld [vmem:[#allocation43_spill] sm:$0xff] }
 0x450   : > { %v11570_v13 = vadd.f32 %v3101_v9, %v17238_v56 }
 0x451   : > { %17237 = vst [vmem:[#allocation99_spill] sm:$0xff] %v11567_v20  ;;  %v3262_v48 = vpop.f32.mrf.mxu1 }
 0x452   : > { %17239 = vst [vmem:[#allocation145_spill] sm:$0xff] %v11570_v13  ;;  %v11573_v62 = vadd.f32 %v3262_v48, %v17240_v47  ;;  %7726 = vmatmul.msk.f32.gmra.mxu0 %vm1191_vm1, %v11578_v1  ;;  %v17246_v47 = vld [vmem:[#allocation50_spill] sm:$0xff]  ;;  %v17249_v48 = vld [vmem:[#allocation44_spill] sm:$0xff]  ;;  %v17253_v13 = vld [vmem:[#allocation191_spill] sm:$0xff] }
 0x453   : > { %7849 = vmatmul.msk.f32.gmra.mxu3 %vm1191_vm1, %v17199_v4  ;;  %7804 = vmatmul.msk.f32.gmra.mxu2 %vm1191_vm1, %v17246_v47 }
 0x454   : > { %17241 = vst [vmem:[#allocation116_spill] sm:$0xff] %v11573_v62  ;;  %7775 = vmatmul.msk.f32.gmra.mxu1 %vm1191_vm1, %v11578_v1  ;;  %v17252_v62 = vld [vmem:[#allocation23_spill] sm:$0xff] }
 0x455   : > { %v2126_v20 = vadd.f32 %v17253_v13, %v17252_v62 }
 0x456   : > { %v2898_v14 = vpop.f32.mrf.mxu3  ;;  %v2749_v7 = vpop.f32.mrf.mxu2 }
 0x457   : > { %v11594_v4 = vadd.f32 %v2898_v14, %v2564_v57  ;;  %v11596_v9 = vadd.f32 %v2749_v7, %v2571_v10  ;;  %v3104_v56 = vpop.f32.mrf.mxu0  ;;  %v2566_v62 = vadd.f32 %v17255_v16, %v2126_v20  ;;  %v17257_v14 = vld [vmem:[#allocation84_spill] sm:$0xff]  ;;  %v17263_v16 = vld [vmem:[#allocation93_spill] sm:$0xff] }
 0x458   : > { %v11599_v6 = vadd.f32 %v3104_v56, %v17249_v48  ;;  %v17260_v48 = vld [vmem:[#allocation27_spill] sm:$0xff] }
 0x459   : > { %17248 = vst [vmem:[#allocation146_spill] sm:$0xff] %v11596_v9  ;;  %v3265_v24 = vpop.f32.mrf.mxu1  ;;  %v11685_v9 = vld [vmem:[%s9003_s26 + $0x178] sm:$0xff] }
 0x45a   : > { %17250 = vst [vmem:[#allocation103_spill] sm:$0xff] %v11599_v6  ;;  %v11602_v63 = vadd.f32 %v3265_v24, %v10883_v11  ;;  %7727 = vmatmul.msk.f32.gmra.mxu0 %vm1191_vm1, %v11607_v44  ;;  %v17254_v11 = vld [vmem:[#allocation92_spill] sm:$0xff] }
 0x45b   : > { %7850 = vmatmul.msk.f32.gmra.mxu3 %vm1191_vm1, %v17211_v40  ;;  %7805 = vmatmul.msk.f32.gmra.mxu2 %vm1191_vm1, %v17254_v11  ;;  %v17261_v24 = vld [vmem:[#allocation192_spill] sm:$0xff] }
 0x45c   : > { %17251 = vst [vmem:[#allocation148_spill] sm:$0xff] %v11602_v63  ;;  %7776 = vmatmul.msk.f32.gmra.mxu1 %vm1191_vm1, %v11607_v44  ;;  %v2129_v60 = vadd.f32 %v17261_v24, %v17260_v48  ;;  %v11633_v63 = vld [vmem:[%s9003_s26 + $0x168] sm:$0xff]  ;;  %v17265_v48 = vld [vmem:[#allocation41_spill] sm:$0xff] }
 0x45e   : > { %v2901_v13 = vpop.f32.mrf.mxu3  ;;  %v11622_v57 = vpop.f32.mrf.mxu2 }
 0x45f   : > { %v11620_v59 = vadd.f32 %v2901_v13, %v2566_v62  ;;  %17256 = vst [vmem:[#allocation120_spill] sm:$0xff] %v11622_v57  ;;  %v3107_v10 = vpop.f32.mrf.mxu0  ;;  %v2568_v62 = vadd.f32 %v17263_v16, %v2129_v60  ;;  %v11659_v57 = vld [vmem:[%s9003_s26 + $0x170] sm:$0xff]  ;;  %v17271_v16 = vld [vmem:[#allocation96_spill] sm:$0xff] }
 0x460   : > { %v11625_v7 = vadd.f32 %v3107_v10, %v17257_v14 }
 0x461   : > { %v3268_v40 = vpop.f32.mrf.mxu1 }
 0x462   : > { %17258 = vst [vmem:[#allocation149_spill] sm:$0xff] %v11625_v7  ;;  %v11628_v56 = vadd.f32 %v3268_v40, %v10910_v29  ;;  %7728 = vmatmul.msk.f32.gmra.mxu0 %vm1191_vm1, %v11633_v63  ;;  %v17262_v29 = vld [vmem:[#allocation170_spill] sm:$0xff]  ;;  %v17269_v7 = vld [vmem:[#allocation193_spill] sm:$0xff] }
 0x463   : > { %7851 = vmatmul.msk.f32.gmra.mxu3 %vm1191_vm1, %v17223_v50  ;;  %7806 = vmatmul.msk.f32.gmra.mxu2 %vm1191_vm1, %v17262_v29 }
 0x464   : > { %17259 = vst [vmem:[#allocation11_spill] sm:$0xff] %v11628_v56  ;;  %7777 = vmatmul.msk.f32.gmra.mxu1 %vm1191_vm1, %v11633_v63  ;;  %v17268_v56 = vld [vmem:[#allocation36_spill] sm:$0xff] }
 0x465   : > { %v2132_v6 = vadd.f32 %v17269_v7, %v17268_v56 }
 0x466   : > { %v2904_v13 = vpop.f32.mrf.mxu3  ;;  %v11648_v14 = vpop.f32.mrf.mxu2 }
 0x467   : > { %v11646_v10 = vadd.f32 %v2904_v13, %v2568_v62  ;;  %17264 = vst [vmem:[#allocation107_spill] sm:$0xff] %v11648_v14  ;;  %v3110_v40 = vpop.f32.mrf.mxu0  ;;  %v2570_v7 = vadd.f32 %v17271_v16, %v2132_v6  ;;  %v17278_v16 = vld [vmem:[#allocation173_spill] sm:$0xff] }
 0x468   : > { %v11651_v24 = vadd.f32 %v3110_v40, %v17265_v48  ;;  %v17272_v48 = vld [vmem:[#allocation167_spill] sm:$0xff] }
 0x469   : > { %v3271_v50 = vpop.f32.mrf.mxu1 }
 0x46a   : > { %17266 = vst [vmem:[#allocation151_spill] sm:$0xff] %v11651_v24  ;;  %v11654_v20 = vadd.f32 %v3271_v50, %v10937_v39  ;;  %7729 = vmatmul.msk.f32.gmra.mxu0 %vm1191_vm1, %v11659_v57  ;;  %v17270_v39 = vld [vmem:[#allocation58_spill] sm:$0xff] }
 0x46b   : > { %7852 = vmatmul.msk.f32.gmra.mxu3 %vm1191_vm1, %v17235_v34  ;;  %7807 = vmatmul.msk.f32.gmra.mxu2 %vm1191_vm1, %v17270_v39  ;;  %v17276_v24 = vld [vmem:[#allocation194_spill] sm:$0xff] }
 0x46c   : > { %17267 = vst [vmem:[#allocation124_spill] sm:$0xff] %v11654_v20  ;;  %7778 = vmatmul.msk.f32.gmra.mxu1 %vm1191_vm1, %v11659_v57  ;;  %v17275_v20 = vld [vmem:[#allocation39_spill] sm:$0xff] }
 0x46d   : > { %v2135_v14 = vadd.f32 %v17276_v24, %v17275_v20 }
 0x46e   : > { %v2907_v56 = vpop.f32.mrf.mxu3  ;;  %v11674_v13 = vpop.f32.mrf.mxu2 }
 0x46f   : > { %v11672_v62 = vadd.f32 %v2907_v56, %v2570_v7  ;;  %v3113_v40 = vpop.f32.mrf.mxu0  ;;  %v2572_v7 = vadd.f32 %v17278_v16, %v2135_v14  ;;  %v11755_v14 = vld [vmem:[%s9003_s26 + $0x190] sm:$0xff] }
 0x470   : > { %v11677_v50 = vadd.f32 %v3113_v40, %v17272_v48  ;;  %v17279_v48 = vld [vmem:[#allocation54_spill] sm:$0xff] }
 0x471   : > { %v3274_v34 = vpop.f32.mrf.mxu1 }
 0x472   : > { %17273 = vst [vmem:[#allocation152_spill] sm:$0xff] %v11677_v50  ;;  %v11680_v60 = vadd.f32 %v3274_v34, %v10964_v38  ;;  %7730 = vmatmul.msk.f32.gmra.mxu0 %vm1191_vm1, %v11685_v9  ;;  %v17277_v38 = vld [vmem:[#allocation185_spill] sm:$0xff] }
 0x473   : > { %7853 = vmatmul.msk.f32.gmra.mxu3 %vm1191_vm1, %v17246_v47  ;;  %7808 = vmatmul.msk.f32.gmra.mxu2 %vm1191_vm1, %v17277_v38 }
 0x474   : > { %17274 = vst [vmem:[#allocation138_spill] sm:$0xff] %v11680_v60  ;;  %7779 = vmatmul.msk.f32.gmra.mxu1 %vm1191_vm1, %v11685_v9  ;;  %v11709_v60 = vld [vmem:[%s9003_s26 + $0x180] sm:$0xff] }
 0x476   : > { %v2910_v20 = vpop.f32.mrf.mxu3  ;;  %v11700_v56 = vpop.f32.mrf.mxu2 }
 0x477   : > { %v11698_v24 = vadd.f32 %v2910_v20, %v2572_v7  ;;  %v3116_v40 = vpop.f32.mrf.mxu0  ;;  %v17282_v20 = vld [vmem:[#allocation45_spill] sm:$0xff] }
 0x478   : > { %v11703_v47 = vadd.f32 %v3116_v40, %v17279_v48 }
 0x479   : > { %v3277_v34 = vpop.f32.mrf.mxu1 }
 0x47a   : > { %17280 = vst [vmem:[#allocation48_spill] sm:$0xff] %v11703_v47  ;;  %v11706_v6 = vadd.f32 %v3277_v34, %v10996_v17  ;;  %7731 = vmatmul.msk.f32.gmra.mxu0 %vm1191_vm1, %v11709_v60  ;;  %v11732_v34 = vld [vmem:[%s9003_s26 + $0x188] sm:$0xff] }
 0x47b   : > { %7854 = vmatmul.msk.f32.gmra.mxu3 %vm1191_vm1, %v17254_v11  ;;  %7809 = vmatmul.msk.f32.gmra.mxu2 %vm1191_vm1, %v10982_v43 }
 0x47c   : > { %17281 = vst [vmem:[#allocation141_spill] sm:$0xff] %v11706_v6  ;;  %7780 = vmatmul.msk.f32.gmra.mxu1 %vm1191_vm1, %v11709_v60 }
 0x47e   : > { %v11721_v16 = vpop.f32.mrf.mxu3  ;;  %v11723_v17 = vpop.f32.mrf.mxu2 }
 0x47f   : > { %v3119_v7 = vpop.f32.mrf.mxu0 }
 0x480   : > { %v11726_v40 = vadd.f32 %v3119_v7, %v17282_v20 }
 0x481   : > { %v3280_v48 = vpop.f32.mrf.mxu1 }
 0x482   : > { %17283 = vst [vmem:[#allocation113_spill] sm:$0xff] %v11726_v40  ;;  %v11729_v11 = vadd.f32 %v3280_v48, %v11028_v30  ;;  %7732 = vmatmul.msk.f32.gmra.mxu0 %vm1191_vm1, %v11732_v34  ;;  %v17285_v48 = vld [vmem:[#allocation97_spill] sm:$0xff] }
 0x483   : > { %7855 = vmatmul.msk.f32.gmra.mxu3 %vm1191_vm1, %v17262_v29  ;;  %7810 = vmatmul.msk.f32.gmra.mxu2 %vm1191_vm1, %v11014_v32 }
 0x484   : > { %17284 = vst [vmem:[#allocation154_spill] sm:$0xff] %v11729_v11  ;;  %7781 = vmatmul.msk.f32.gmra.mxu1 %vm1191_vm1, %v11732_v34  ;;  %v11778_v11 = vld [vmem:[%s9003_s26 + $0x198] sm:$0xff] }
 0x486   : > { %v11744_v7 = vpop.f32.mrf.mxu3  ;;  %v11746_v30 = vpop.f32.mrf.mxu2 }
 0x487   : > { %v3122_v20 = vpop.f32.mrf.mxu0 }
 0x488   : > { %v11749_v6 = vadd.f32 %v3122_v20, %v17285_v48 }
 0x489   : > { %v3283_v47 = vpop.f32.mrf.mxu1 }
 0x48a   : > { %17286 = vst [vmem:[#allocation128_spill] sm:$0xff] %v11749_v6  ;;  %v11752_v29 = vadd.f32 %v3283_v47, %v11060_v53  ;;  %7733 = vmatmul.msk.f32.gmra.mxu0 %vm1191_vm1, %v11755_v14 }
 0x48b   : > { %7856 = vmatmul.msk.f32.gmra.mxu3 %vm1191_vm1, %v17270_v39  ;;  %7811 = vmatmul.msk.f32.gmra.mxu2 %vm1191_vm1, %v11046_v28 }
 0x48c   : > { %17287 = vst [vmem:[#allocation155_spill] sm:$0xff] %v11752_v29  ;;  %7782 = vmatmul.msk.f32.gmra.mxu1 %vm1191_vm1, %v11755_v14 }
 0x48e   : > { %v11767_v53 = vpop.f32.mrf.mxu3  ;;  %v11769_v47 = vpop.f32.mrf.mxu2 }
 0x48f   : > { %v3125_v20 = vpop.f32.mrf.mxu0 }
 0x490   : > { %v11772_v48 = vadd.f32 %v3125_v20, %v10966_v18  ;;  %v867_v20 = vld [vmem:[%s9003_s26 + $0x1a0] sm:$0xff] }
 0x491   : > { %v3286_v40 = vpop.f32.mrf.mxu1 }
 0x492   : > { %17288 = vst [vmem:[#allocation53_spill] sm:$0xff] %v11772_v48  ;;  %v11775_v39 = vadd.f32 %v3286_v40, %v11092_v37  ;;  %7734 = vmatmul.msk.f32.gmra.mxu0 %vm1191_vm1, %v11778_v11 }
 0x493   : > { %7857 = vmatmul.msk.f32.gmra.mxu3 %vm1191_vm1, %v17277_v38  ;;  %7812 = vmatmul.msk.f32.gmra.mxu2 %vm1191_vm1, %v11078_v46 }
 0x494   : > { %17289 = vst [vmem:[#allocation24_spill] sm:$0xff] %v11775_v39  ;;  %7783 = vmatmul.msk.f32.gmra.mxu1 %vm1191_vm1, %v11778_v11 }
 0x496   : > { %v11790_v18 = vpop.f32.mrf.mxu3  ;;  %v11792_v37 = vpop.f32.mrf.mxu2 }
 0x497   : > { %17290 = vst [vmem:[#allocation20_spill] sm:$0xff] %v11792_v37  ;;  %v3128_v40 = vpop.f32.mrf.mxu0  ;;  %v12784_v37 = vld [vmem:[%s9003_s26 + $0x328] sm:$0xff] }
 0x498   : > { %v11796_v6 = vadd.f32 %v3128_v40, %v10998_v45 }
 0x499   : > { %v3289_v38 = vpop.f32.mrf.mxu1 }
 0x49a   : > { %17291 = vst [vmem:[#allocation117_spill] sm:$0xff] %v11796_v6  ;;  %v11799_v50 = vadd.f32 %v3289_v38, %v11128_v27  ;;  %7735 = vmatmul.msk.f32.gmra.mxu0 %vm1191_vm1, %v867_v20  ;;  %v868_v38 = vld [vmem:[%s9003_s26 + $0x1a8] sm:$0xff] }
 0x49b   : > { %7858 = vmatmul.msk.f32.gmra.mxu3 %vm1191_vm1, %v10982_v43  ;;  %7813 = vmatmul.msk.f32.gmra.mxu2 %vm1191_vm1, %v11107_v52 }
 0x49c   : > { %17292 = vst [vmem:[#allocation156_spill] sm:$0xff] %v11799_v50  ;;  %7784 = vmatmul.msk.f32.gmra.mxu1 %vm1191_vm1, %v867_v20 }
 0x49e   : > { %v11809_v45 = vpop.f32.mrf.mxu3  ;;  %v11811_v40 = vpop.f32.mrf.mxu2 }
 0x49f   : > { %17293 = vst [vmem:[#allocation3_spill] sm:$0xff] %v11811_v40  ;;  %v3131_v27 = vpop.f32.mrf.mxu0  ;;  %v12740_v40 = vld [vmem:[%s9003_s26 + $0x318] sm:$0xff] }
 0x4a0   : > { %v11815_v39 = vadd.f32 %v3131_v27, %v11030_v23 }
 0x4a1   : > { %v3292_v48 = vpop.f32.mrf.mxu1 }
 0x4a2   : > { %17294 = vst [vmem:[#allocation157_spill] sm:$0xff] %v11815_v39  ;;  %v11818_v43 = vadd.f32 %v3292_v48, %v11169_v26  ;;  %7736 = vmatmul.msk.f32.gmra.mxu0 %vm1191_vm1, %v868_v38  ;;  %v869_v48 = vld [vmem:[%s9003_s26 + $0x1b0] sm:$0xff] }
 0x4a3   : > { %7859 = vmatmul.msk.f32.gmra.mxu3 %vm1191_vm1, %v11014_v32  ;;  %7814 = vmatmul.msk.f32.gmra.mxu2 %vm1191_vm1, %v11149_v55 }
 0x4a4   : > { %17295 = vst [vmem:[#allocation28_spill] sm:$0xff] %v11818_v43  ;;  %7785 = vmatmul.msk.f32.gmra.mxu1 %vm1191_vm1, %v868_v38 }
 0x4a6   : > { %v11828_v23 = vpop.f32.mrf.mxu3  ;;  %v11830_v27 = vpop.f32.mrf.mxu2 }
 0x4a7   : > { %17296 = vst [vmem:[#allocation56_spill] sm:$0xff] %v11830_v27  ;;  %v3134_v26 = vpop.f32.mrf.mxu0  ;;  %v12702_v27 = vld [vmem:[%s9003_s26 + $0x308] sm:$0xff] }
 0x4a8   : > { %v11834_v29 = vadd.f32 %v3134_v26, %v11062_v35 }
 0x4a9   : > { %v3295_v50 = vpop.f32.mrf.mxu1 }
 0x4aa   : > { %17297 = vst [vmem:[#allocation49_spill] sm:$0xff] %v11834_v29  ;;  %v11837_v32 = vadd.f32 %v3295_v50, %v11201_v2  ;;  %7737 = vmatmul.msk.f32.gmra.mxu0 %vm1191_vm1, %v869_v48  ;;  %v870_v2 = vld [vmem:[%s9003_s26 + $0x1b8] sm:$0xff] }
 0x4ab   : > { %7860 = vmatmul.msk.f32.gmra.mxu3 %vm1191_vm1, %v11046_v28  ;;  %7815 = vmatmul.msk.f32.gmra.mxu2 %vm1191_vm1, %v11184_v49 }
 0x4ac   : > { %17298 = vst [vmem:[#allocation60_spill] sm:$0xff] %v11837_v32  ;;  %7786 = vmatmul.msk.f32.gmra.mxu1 %vm1191_vm1, %v869_v48  ;;  %v8462_v48 = vld [vmem:[%s9003_s26 + $0x1c8] sm:$0xff] }
 0x4ae   : > { %v11847_v20 = vpop.f32.mrf.mxu3  ;;  %v11849_v35 = vpop.f32.mrf.mxu2 }
 0x4af   : > { %17299 = vst [vmem:[#allocation121_spill] sm:$0xff] %v11849_v35  ;;  %v3137_v26 = vpop.f32.mrf.mxu0  ;;  %v12417_v35 = vld [vmem:[%s9003_s26 + $0x290] sm:$0xff] }
 0x4b0   : > { %v11853_v50 = vadd.f32 %v3137_v26, %v11094_v19 }
 0x4b1   : > { %v3298_v43 = vpop.f32.mrf.mxu1 }
 0x4b2   : > { %17300 = vst [vmem:[#allocation159_spill] sm:$0xff] %v11853_v50  ;;  %v11856_v28 = vadd.f32 %v3298_v43, %v11233_v54  ;;  %7738 = vmatmul.msk.f32.gmra.mxu0 %vm1191_vm1, %v870_v2 }
 0x4b3   : > { %7861 = vmatmul.msk.f32.gmra.mxu3 %vm1191_vm1, %v11078_v46  ;;  %7816 = vmatmul.msk.f32.gmra.mxu2 %vm1191_vm1, %v11216_v15 }
 0x4b4   : > { %17301 = vst [vmem:[#allocation5_spill] sm:$0xff] %v11856_v28  ;;  %7787 = vmatmul.msk.f32.gmra.mxu1 %vm1191_vm1, %v870_v2  ;;  %v8461_v2 = vld [vmem:[%s9003_s26 + $0x1c0] sm:$0xff] }
 0x4b6   : > { %v11866_v38 = vpop.f32.mrf.mxu3  ;;  %v11868_v19 = vpop.f32.mrf.mxu2 }
 0x4b7   : > { %17302 = vst [vmem:[#allocation160_spill] sm:$0xff] %v11866_v38  ;;  %v3140_v26 = vpop.f32.mrf.mxu0  ;;  %v12759_v38 = vld [vmem:[%s9003_s26 + $0x320] sm:$0xff] }
 0x4b8   : > { %17303 = vst [vmem:[#allocation17_spill] sm:$0xff] %v11868_v19  ;;  %v11871_v54 = vadd.f32 %v3140_v26, %v11133_v36  ;;  %v12398_v19 = vld [vmem:[%s9003_s26 + $0x288] sm:$0xff] }
 0x4b9   : > { %v3301_v43 = vpop.f32.mrf.mxu1 }
 0x4ba   : > { %17304 = vst [vmem:[#allocation144_spill] sm:$0xff] %v11871_v54  ;;  %v11874_v46 = vadd.f32 %v3301_v43, %v11266_v25  ;;  %7887 = vmatmul.msk.f32.vlgmr.msrb.gmra.mxu0 %vm1191_vm1, %v8461_v2 }
 0x4bb   : > { %7862 = vmatmul.msk.f32.gmra.mxu3 %vm1191_vm1, %v11107_v52  ;;  %7817 = vmatmul.msk.f32.gmra.mxu2 %vm1191_vm1, %v11246_v58 }
 0x4bc   : > { %17305 = vst [vmem:[#allocation52_spill] sm:$0xff] %v11874_v46  ;;  %7936 = vmatmul.msk.f32.vlgmr.msrb.gmra.mxu1 %vm1191_vm1, %v8461_v2  ;;  %v8463_v2 = vld [vmem:[%s9003_s26 + $0x1d0] sm:$0xff] }
 0x4be   : > { %v11885_v36 = vpop.f32.mrf.mxu3  ;;  %v11887_v26 = vpop.f32.mrf.mxu2 }
 0x4bf   : > { %17306 = vst [vmem:[#allocation21_spill] sm:$0xff] %v11885_v36  ;;  %v3143_v25 = vpop.f32.mrf.mxu0  ;;  %v12721_v36 = vld [vmem:[%s9003_s26 + $0x310] sm:$0xff] }
 0x4c0   : > { %17307 = vst [vmem:[#allocation125_spill] sm:$0xff] %v11887_v26  ;;  %v11890_v43 = vadd.f32 %v3143_v25, %v11171_v21 }
 0x4c1   : > { %v3304_v52 = vpop.f32.mrf.mxu1 }
 0x4c2   : > { %17308 = vst [vmem:[#allocation162_spill] sm:$0xff] %v11890_v43  ;;  %v11893_v28 = vadd.f32 %v3304_v52, %v11304_v12  ;;  %7888 = vmatmul.msk.f32.gmra.mxu0 %vm1191_vm1, %v8462_v48  ;;  %v17318_v43 = vld [vmem:[#allocation123_spill] sm:$0xff] }
 0x4c3   : > { %7863 = vmatmul.msk.f32.gmra.mxu3 %vm1191_vm1, %v11149_v55  ;;  %7818 = vmatmul.msk.f32.gmra.mxu2 %vm1191_vm1, %v11285_v8 }
 0x4c4   : > { %17309 = vst [vmem:[#allocation7_spill] sm:$0xff] %v11893_v28  ;;  %7937 = vmatmul.msk.f32.gmra.mxu1 %vm1191_vm1, %v8462_v48  ;;  %v8464_v48 = vld [vmem:[%s9003_s26 + $0x1d8] sm:$0xff] }
 0x4c6   : > { %v11904_v21 = vpop.f32.mrf.mxu3  ;;  %v11906_v25 = vpop.f32.mrf.mxu2 }
 0x4c7   : > { %17310 = vst [vmem:[#allocation163_spill] sm:$0xff] %v11904_v21  ;;  %v3146_v12 = vpop.f32.mrf.mxu0  ;;  %v12664_v21 = vld [vmem:[%s9003_s26 + $0x2f8] sm:$0xff] }
 0x4c8   : > { %17311 = vst [vmem:[#allocation147_spill] sm:$0xff] %v11906_v25  ;;  %v11909_v52 = vadd.f32 %v3146_v12, %v11203_v3 }
 0x4c9   : > { %v3307_v55 = vpop.f32.mrf.mxu1 }
 0x4ca   : > { %17312 = vst [vmem:[#allocation61_spill] sm:$0xff] %v11909_v52  ;;  %v11912_v46 = vadd.f32 %v3307_v55, %v11333_v0  ;;  %7889 = vmatmul.msk.f32.gmra.mxu0 %vm1191_vm1, %v8463_v2  ;;  %v17316_v55 = vld [vmem:[#allocation59_spill] sm:$0xff] }
 0x4cb   : > { %7864 = vmatmul.msk.f32.gmra.mxu3 %vm1191_vm1, %v11184_v49  ;;  %7819 = vmatmul.msk.f32.gmra.mxu2 %vm1191_vm1, %v11317_v22 }
 0x4cc   : > { %17313 = vst [vmem:[#allocation108_spill] sm:$0xff] %v11912_v46  ;;  %7938 = vmatmul.msk.f32.gmra.mxu1 %vm1191_vm1, %v8463_v2  ;;  %v17320_v46 = vld [vmem:[#allocation82_spill] sm:$0xff]  ;;  %v11955_v2 = vld [vmem:[%s9003_s26 + $0x1e0] sm:$0xff] }
 0x4ce   : > { %v11923_v3 = vpop.f32.mrf.mxu3  ;;  %v11925_v12 = vpop.f32.mrf.mxu2 }
 0x4cf   : > { %17314 = vst [vmem:[#allocation14_spill] sm:$0xff] %v11923_v3  ;;  %v3149_v0 = vpop.f32.mrf.mxu0 }
 0x4d0   : > { %17315 = vst [vmem:[#allocation150_spill] sm:$0xff] %v11925_v12  ;;  %v11928_v28 = vadd.f32 %v3149_v0, %v17316_v55 }
 0x4d1   : > { %v3310_v49 = vpop.f32.mrf.mxu1 }
 0x4d2   : > { %17317 = vst [vmem:[#allocation129_spill] sm:$0xff] %v11928_v28  ;;  %v11931_v54 = vadd.f32 %v3310_v49, %v17318_v43  ;;  %7890 = vmatmul.msk.f32.gmra.mxu0 %vm1191_vm1, %v8464_v48  ;;  %v17323_v49 = vld [vmem:[#allocation115_spill] sm:$0xff] }
 0x4d3   : > { %7865 = vmatmul.msk.f32.gmra.mxu3 %vm1191_vm1, %v11216_v15  ;;  %7820 = vmatmul.msk.f32.gmra.mxu2 %vm1191_vm1, %v17320_v46 }
 0x4d4   : > { %17319 = vst [vmem:[#allocation165_spill] sm:$0xff] %v11931_v54  ;;  %7939 = vmatmul.msk.f32.gmra.mxu1 %vm1191_vm1, %v8464_v48  ;;  %v17326_v54 = vld [vmem:[#allocation127_spill] sm:$0xff]  ;;  %v11978_v48 = vld [vmem:[%s9003_s26 + $0x1e8] sm:$0xff] }
 0x4d6   : > { %v11942_v0 = vpop.f32.mrf.mxu3  ;;  %v11944_v55 = vpop.f32.mrf.mxu2 }
 0x4d7   : > { %17321 = vst [vmem:[#allocation9_spill] sm:$0xff] %v11942_v0  ;;  %v3152_v43 = vpop.f32.mrf.mxu0 }
 0x4d8   : > { %17322 = vst [vmem:[#allocation166_spill] sm:$0xff] %v11944_v55  ;;  %v11947_v52 = vadd.f32 %v3152_v43, %v17323_v49 }
 0x4d9   : > { %v3313_v15 = vpop.f32.mrf.mxu1 }
 0x4da   : > { %17324 = vst [vmem:[#allocation65_spill] sm:$0xff] %v11947_v52  ;;  %v11950_v50 = vadd.f32 %v3313_v15, %v11391_v31  ;;  %7891 = vmatmul.msk.f32.gmra.mxu0 %vm1191_vm1, %v11955_v2  ;;  %v17332_v52 = vld [vmem:[#allocation131_spill] sm:$0xff] }
 0x4db   : > { %7866 = vmatmul.msk.f32.gmra.mxu3 %vm1191_vm1, %v11246_v58  ;;  %7821 = vmatmul.msk.f32.gmra.mxu2 %vm1191_vm1, %v17326_v54  ;;  %v17329_v58 = vld [vmem:[#allocation118_spill] sm:$0xff] }
 0x4dc   : > { %17325 = vst [vmem:[#allocation34_spill] sm:$0xff] %v11950_v50  ;;  %7940 = vmatmul.msk.f32.gmra.mxu1 %vm1191_vm1, %v11955_v2  ;;  %v12001_v50 = vld [vmem:[%s9003_s26 + $0x1f0] sm:$0xff] }
 0x4de   : > { %v11965_v43 = vpop.f32.mrf.mxu3  ;;  %v11967_v31 = vpop.f32.mrf.mxu2 }
 0x4df   : > { %17327 = vst [vmem:[#allocation77_spill] sm:$0xff] %v11965_v43  ;;  %v3155_v49 = vpop.f32.mrf.mxu0 }
 0x4e0   : > { %17328 = vst [vmem:[#allocation57_spill] sm:$0xff] %v11967_v31  ;;  %v11970_v15 = vadd.f32 %v3155_v49, %v17329_v58 }
 0x4e1   : > { %v3316_v28 = vpop.f32.mrf.mxu1 }
 0x4e2   : > { %17330 = vst [vmem:[#allocation69_spill] sm:$0xff] %v11970_v15  ;;  %v11973_v32 = vadd.f32 %v3316_v28, %v11420_v5  ;;  %7892 = vmatmul.msk.f32.gmra.mxu0 %vm1191_vm1, %v11978_v48  ;;  %v17338_v15 = vld [vmem:[#allocation133_spill] sm:$0xff] }
 0x4e3   : > { %7867 = vmatmul.msk.f32.gmra.mxu3 %vm1191_vm1, %v11285_v8  ;;  %7822 = vmatmul.msk.f32.gmra.mxu2 %vm1191_vm1, %v17332_v52  ;;  %v17335_v8 = vld [vmem:[#allocation190_spill] sm:$0xff] }
 0x4e4   : > { %17331 = vst [vmem:[#allocation4_spill] sm:$0xff] %v11973_v32  ;;  %7941 = vmatmul.msk.f32.gmra.mxu1 %vm1191_vm1, %v11978_v48  ;;  %v12024_v32 = vld [vmem:[%s9003_s26 + $0x1f8] sm:$0xff] }
 0x4e6   : > { %v11988_v49 = vpop.f32.mrf.mxu3  ;;  %v11990_v5 = vpop.f32.mrf.mxu2 }
 0x4e7   : > { %17333 = vst [vmem:[#allocation168_spill] sm:$0xff] %v11988_v49  ;;  %v3158_v28 = vpop.f32.mrf.mxu0 }
 0x4e8   : > { %17334 = vst [vmem:[#allocation12_spill] sm:$0xff] %v11990_v5  ;;  %v11993_v58 = vadd.f32 %v3158_v28, %v17335_v8 }
 0x4e9   : > { %v3319_v29 = vpop.f32.mrf.mxu1 }
 0x4ea   : > { %17336 = vst [vmem:[#allocation169_spill] sm:$0xff] %v11993_v58  ;;  %v11996_v39 = vadd.f32 %v3319_v29, %v11449_v33  ;;  %7893 = vmatmul.msk.f32.gmra.mxu0 %vm1191_vm1, %v12001_v50  ;;  %v17344_v58 = vld [vmem:[#allocation135_spill] sm:$0xff] }
 0x4eb   : > { %7868 = vmatmul.msk.f32.gmra.mxu3 %vm1191_vm1, %v11317_v22  ;;  %7823 = vmatmul.msk.f32.gmra.mxu2 %vm1191_vm1, %v17338_v15  ;;  %v17341_v22 = vld [vmem:[#allocation71_spill] sm:$0xff] }
 0x4ec   : > { %17337 = vst [vmem:[#allocation37_spill] sm:$0xff] %v11996_v39  ;;  %7942 = vmatmul.msk.f32.gmra.mxu1 %vm1191_vm1, %v12001_v50  ;;  %v12047_v39 = vld [vmem:[%s9003_s26 + $0x200] sm:$0xff] }
 0x4ee   : > { %v12011_v28 = vpop.f32.mrf.mxu3  ;;  %v12013_v33 = vpop.f32.mrf.mxu2 }
 0x4ef   : > { %17339 = vst [vmem:[#allocation68_spill] sm:$0xff] %v12011_v28  ;;  %v3161_v29 = vpop.f32.mrf.mxu0 }
 0x4f0   : > { %17340 = vst [vmem:[#allocation31_spill] sm:$0xff] %v12013_v33  ;;  %v12016_v8 = vadd.f32 %v3161_v29, %v17341_v22 }
 0x4f1   : > { %v3322_v6 = vpop.f32.mrf.mxu1 }
 0x4f2   : > { %17342 = vst [vmem:[#allocation40_spill] sm:$0xff] %v12016_v8  ;;  %v12019_v5 = vadd.f32 %v3322_v6, %v11478_v42  ;;  %7894 = vmatmul.msk.f32.gmra.mxu0 %vm1191_vm1, %v12024_v32  ;;  %v17350_v8 = vld [vmem:[#allocation137_spill] sm:$0xff] }
 0x4f3   : > { %7869 = vmatmul.msk.f32.gmra.mxu3 %vm1191_vm1, %v17320_v46  ;;  %7824 = vmatmul.msk.f32.gmra.mxu2 %vm1191_vm1, %v17344_v58  ;;  %v17347_v46 = vld [vmem:[#allocation75_spill] sm:$0xff] }
 0x4f4   : > { %17343 = vst [vmem:[#allocation6_spill] sm:$0xff] %v12019_v5  ;;  %7943 = vmatmul.msk.f32.gmra.mxu1 %vm1191_vm1, %v12024_v32  ;;  %v12070_v5 = vld [vmem:[%s9003_s26 + $0x208] sm:$0xff] }
 0x4f6   : > { %v12034_v29 = vpop.f32.mrf.mxu3  ;;  %v12036_v42 = vpop.f32.mrf.mxu2 }
 0x4f7   : > { %17345 = vst [vmem:[#allocation171_spill] sm:$0xff] %v12034_v29  ;;  %v3164_v6 = vpop.f32.mrf.mxu0 }
 0x4f8   : > { %17346 = vst [vmem:[#allocation15_spill] sm:$0xff] %v12036_v42  ;;  %v12039_v22 = vadd.f32 %v3164_v6, %v17347_v46 }
 0x4f9   : > { %v3325_v33 = vpop.f32.mrf.mxu1 }
 0x4fa   : > { %17348 = vst [vmem:[#allocation172_spill] sm:$0xff] %v12039_v22  ;;  %v12042_v31 = vadd.f32 %v3325_v33, %v11507_v41  ;;  %7895 = vmatmul.msk.f32.gmra.mxu0 %vm1191_vm1, %v12047_v39  ;;  %v17356_v22 = vld [vmem:[#allocation140_spill] sm:$0xff] }
 0x4fb   : > { %7870 = vmatmul.msk.f32.gmra.mxu3 %vm1191_vm1, %v17326_v54  ;;  %7825 = vmatmul.msk.f32.gmra.mxu2 %vm1191_vm1, %v17350_v8  ;;  %v17353_v54 = vld [vmem:[#allocation79_spill] sm:$0xff] }
 0x4fc   : > { %17349 = vst [vmem:[#allocation72_spill] sm:$0xff] %v12042_v31  ;;  %7944 = vmatmul.msk.f32.gmra.mxu1 %vm1191_vm1, %v12047_v39  ;;  %v12093_v31 = vld [vmem:[%s9003_s26 + $0x210] sm:$0xff] }
 0x4fe   : > { %v12057_v6 = vpop.f32.mrf.mxu3  ;;  %v12059_v41 = vpop.f32.mrf.mxu2 }
 0x4ff   : > { %17351 = vst [vmem:[#allocation29_spill] sm:$0xff] %v12057_v6  ;;  %v3167_v33 = vpop.f32.mrf.mxu0 }
 0x500   : > { %17352 = vst [vmem:[#allocation64_spill] sm:$0xff] %v12059_v41  ;;  %v12062_v46 = vadd.f32 %v3167_v33, %v17353_v54 }
 0x501   : > { %v3328_v42 = vpop.f32.mrf.mxu1 }
 0x502   : > { %17354 = vst [vmem:[#allocation76_spill] sm:$0xff] %v12062_v46  ;;  %v12065_v29 = vadd.f32 %v3328_v42, %v11536_v61  ;;  %7896 = vmatmul.msk.f32.gmra.mxu0 %vm1191_vm1, %v12070_v5  ;;  %v17362_v46 = vld [vmem:[#allocation143_spill] sm:$0xff] }
 0x503   : > { %7871 = vmatmul.msk.f32.gmra.mxu3 %vm1191_vm1, %v17332_v52  ;;  %7826 = vmatmul.msk.f32.gmra.mxu2 %vm1191_vm1, %v17356_v22  ;;  %v17359_v52 = vld [vmem:[#allocation83_spill] sm:$0xff] }
 0x504   : > { %17355 = vst [vmem:[#allocation8_spill] sm:$0xff] %v12065_v29  ;;  %7945 = vmatmul.msk.f32.gmra.mxu1 %vm1191_vm1, %v12070_v5  ;;  %v12116_v29 = vld [vmem:[%s9003_s26 + $0x218] sm:$0xff] }
 0x506   : > { %v12080_v33 = vpop.f32.mrf.mxu3  ;;  %v12082_v61 = vpop.f32.mrf.mxu2 }
 0x507   : > { %17357 = vst [vmem:[#allocation174_spill] sm:$0xff] %v12080_v33  ;;  %v3170_v42 = vpop.f32.mrf.mxu0 }
 0x508   : > { %17358 = vst [vmem:[#allocation18_spill] sm:$0xff] %v12082_v61  ;;  %v12085_v54 = vadd.f32 %v3170_v42, %v17359_v52 }
 0x509   : > { %v3331_v41 = vpop.f32.mrf.mxu1 }
 0x50a   : > { %17360 = vst [vmem:[#allocation175_spill] sm:$0xff] %v12085_v54  ;;  %v12088_v6 = vadd.f32 %v3331_v41, %v11565_v51  ;;  %7897 = vmatmul.msk.f32.gmra.mxu0 %vm1191_vm1, %v12093_v31 }
 0x50b   : > { %7872 = vmatmul.msk.f32.gmra.mxu3 %vm1191_vm1, %v17338_v15  ;;  %7827 = vmatmul.msk.f32.gmra.mxu2 %vm1191_vm1, %v17362_v46  ;;  %v17365_v15 = vld [vmem:[#allocation87_spill] sm:$0xff] }
 0x50c   : > { %17361 = vst [vmem:[#allocation32_spill] sm:$0xff] %v12088_v6  ;;  %7946 = vmatmul.msk.f32.gmra.mxu1 %vm1191_vm1, %v12093_v31  ;;  %v12139_v6 = vld [vmem:[%s9003_s26 + $0x220] sm:$0xff] }
 0x50e   : > { %v12103_v42 = vpop.f32.mrf.mxu3  ;;  %v12105_v51 = vpop.f32.mrf.mxu2 }
 0x50f   : > { %17363 = vst [vmem:[#allocation109_spill] sm:$0xff] %v12103_v42  ;;  %v3173_v41 = vpop.f32.mrf.mxu0 }
 0x510   : > { %17364 = vst [vmem:[#allocation25_spill] sm:$0xff] %v12105_v51  ;;  %v12108_v52 = vadd.f32 %v3173_v41, %v17365_v15 }
 0x511   : > { %v3334_v61 = vpop.f32.mrf.mxu1 }
 0x512   : > { %17366 = vst [vmem:[#allocation80_spill] sm:$0xff] %v12108_v52  ;;  %v12111_v33 = vadd.f32 %v3334_v61, %v11594_v4  ;;  %7898 = vmatmul.msk.f32.gmra.mxu0 %vm1191_vm1, %v12116_v29 }
 0x513   : > { %7873 = vmatmul.msk.f32.gmra.mxu3 %vm1191_vm1, %v17344_v58  ;;  %7828 = vmatmul.msk.f32.gmra.mxu2 %vm1191_vm1, %v11578_v1  ;;  %v17370_v58 = vld [vmem:[#allocation91_spill] sm:$0xff] }
 0x514   : > { %17367 = vst [vmem:[#allocation10_spill] sm:$0xff] %v12111_v33  ;;  %7947 = vmatmul.msk.f32.gmra.mxu1 %vm1191_vm1, %v12116_v29  ;;  %v12162_v33 = vld [vmem:[%s9003_s26 + $0x228] sm:$0xff] }
 0x516   : > { %v12126_v41 = vpop.f32.mrf.mxu3  ;;  %v12128_v4 = vpop.f32.mrf.mxu2 }
 0x517   : > { %17368 = vst [vmem:[#allocation177_spill] sm:$0xff] %v12126_v41  ;;  %v3176_v61 = vpop.f32.mrf.mxu0 }
 0x518   : > { %17369 = vst [vmem:[#allocation22_spill] sm:$0xff] %v12128_v4  ;;  %v12131_v15 = vadd.f32 %v3176_v61, %v17370_v58 }
 0x519   : > { %v3337_v54 = vpop.f32.mrf.mxu1 }
 0x51a   : > { %17371 = vst [vmem:[#allocation178_spill] sm:$0xff] %v12131_v15  ;;  %v12134_v51 = vadd.f32 %v3337_v54, %v11620_v59  ;;  %7899 = vmatmul.msk.f32.gmra.mxu0 %vm1191_vm1, %v12139_v6 }
 0x51b   : > { %7874 = vmatmul.msk.f32.gmra.mxu3 %vm1191_vm1, %v17350_v8  ;;  %7829 = vmatmul.msk.f32.gmra.mxu2 %vm1191_vm1, %v11607_v44  ;;  %v17375_v8 = vld [vmem:[#allocation95_spill] sm:$0xff] }
 0x51c   : > { %17372 = vst [vmem:[#allocation35_spill] sm:$0xff] %v12134_v51  ;;  %7948 = vmatmul.msk.f32.gmra.mxu1 %vm1191_vm1, %v12139_v6  ;;  %v12185_v51 = vld [vmem:[%s9003_s26 + $0x230] sm:$0xff] }
 0x51e   : > { %v12149_v61 = vpop.f32.mrf.mxu3  ;;  %v12151_v59 = vpop.f32.mrf.mxu2 }
 0x51f   : > { %17373 = vst [vmem:[#allocation158_spill] sm:$0xff] %v12149_v61  ;;  %v3179_v54 = vpop.f32.mrf.mxu0 }
 0x520   : > { %17374 = vst [vmem:[#allocation153_spill] sm:$0xff] %v12151_v59  ;;  %v12154_v58 = vadd.f32 %v3179_v54, %v17375_v8 }
 0x521   : > { %v3340_v52 = vpop.f32.mrf.mxu1 }
 0x522   : > { %17376 = vst [vmem:[#allocation38_spill] sm:$0xff] %v12154_v58  ;;  %v12157_v4 = vadd.f32 %v3340_v52, %v11646_v10  ;;  %7900 = vmatmul.msk.f32.gmra.mxu0 %vm1191_vm1, %v12162_v33 }
 0x523   : > { %7875 = vmatmul.msk.f32.gmra.mxu3 %vm1191_vm1, %v17356_v22  ;;  %7830 = vmatmul.msk.f32.gmra.mxu2 %vm1191_vm1, %v11633_v63  ;;  %v17380_v22 = vld [vmem:[#allocation99_spill] sm:$0xff] }
 0x524   : > { %17377 = vst [vmem:[#allocation13_spill] sm:$0xff] %v12157_v4  ;;  %7949 = vmatmul.msk.f32.gmra.mxu1 %vm1191_vm1, %v12162_v33  ;;  %v12208_v4 = vld [vmem:[%s9003_s26 + $0x238] sm:$0xff] }
 0x526   : > { %v12172_v54 = vpop.f32.mrf.mxu3  ;;  %v12174_v10 = vpop.f32.mrf.mxu2 }
 0x527   : > { %17378 = vst [vmem:[#allocation180_spill] sm:$0xff] %v12172_v54  ;;  %v3182_v52 = vpop.f32.mrf.mxu0 }
 0x528   : > { %17379 = vst [vmem:[#allocation26_spill] sm:$0xff] %v12174_v10  ;;  %v12177_v8 = vadd.f32 %v3182_v52, %v17380_v22 }
 0x529   : > { %v3343_v15 = vpop.f32.mrf.mxu1 }
 0x52a   : > { %17381 = vst [vmem:[#allocation181_spill] sm:$0xff] %v12177_v8  ;;  %v12180_v59 = vadd.f32 %v3343_v15, %v11672_v62  ;;  %7901 = vmatmul.msk.f32.gmra.mxu0 %vm1191_vm1, %v12185_v51  ;;  %v17385_v15 = vld [vmem:[#allocation146_spill] sm:$0xff] }
 0x52b   : > { %7876 = vmatmul.msk.f32.gmra.mxu3 %vm1191_vm1, %v17362_v46  ;;  %7831 = vmatmul.msk.f32.gmra.mxu2 %vm1191_vm1, %v11659_v57 }
 0x52c   : > { %17382 = vst [vmem:[#allocation161_spill] sm:$0xff] %v12180_v59  ;;  %7950 = vmatmul.msk.f32.gmra.mxu1 %vm1191_vm1, %v12185_v51 }
 0x52e   : > { %v12195_v52 = vpop.f32.mrf.mxu3  ;;  %v12197_v62 = vpop.f32.mrf.mxu2 }
 0x52f   : > { %17383 = vst [vmem:[#allocation81_spill] sm:$0xff] %v12195_v52  ;;  %v3185_v46 = vpop.f32.mrf.mxu0 }
 0x530   : > { %17384 = vst [vmem:[#allocation73_spill] sm:$0xff] %v12197_v62  ;;  %v12200_v22 = vadd.f32 %v3185_v46, %v17385_v15  ;;  %v12229_v15 = vld [vmem:[%s9003_s26 + $0x240] sm:$0xff] }
 0x531   : > { %v3346_v58 = vpop.f32.mrf.mxu1 }
 0x532   : > { %17386 = vst [vmem:[#allocation164_spill] sm:$0xff] %v12200_v22  ;;  %v12203_v10 = vadd.f32 %v3346_v58, %v11698_v24  ;;  %7902 = vmatmul.msk.f32.gmra.mxu0 %vm1191_vm1, %v12208_v4 }
 0x533   : > { %7877 = vmatmul.msk.f32.gmra.mxu3 %vm1191_vm1, %v11578_v1  ;;  %7832 = vmatmul.msk.f32.gmra.mxu2 %vm1191_vm1, %v11685_v9 }
 0x534   : > { %17387 = vst [vmem:[#allocation16_spill] sm:$0xff] %v12203_v10  ;;  %7951 = vmatmul.msk.f32.gmra.mxu1 %vm1191_vm1, %v12208_v4 }
 0x536   : > { %v12218_v24 = vpop.f32.mrf.mxu3  ;;  %v12220_v58 = vpop.f32.mrf.mxu2 }
 0x537   : > { %17388 = vst [vmem:[#allocation183_spill] sm:$0xff] %v12218_v24  ;;  %v12222_v1 = vpop.f32.mrf.mxu0 }
 0x538   : > { %17389 = vst [vmem:[#allocation30_spill] sm:$0xff] %v12220_v58 }
 0x539   : > { %v12224_v46 = vpop.f32.mrf.mxu1 }
 0x53a   : > { %7903 = vmatmul.msk.f32.gmra.mxu0 %vm1191_vm1, %v12229_v15 }
 0x53b   : > { %7878 = vmatmul.msk.f32.gmra.mxu3 %vm1191_vm1, %v11607_v44  ;;  %7833 = vmatmul.msk.f32.gmra.mxu2 %vm1191_vm1, %v11709_v60  ;;  %v12248_v44 = vld [vmem:[%s9003_s26 + $0x248] sm:$0xff] }
 0x53c   : > { %7952 = vmatmul.msk.f32.gmra.mxu1 %vm1191_vm1, %v12229_v15 }
 0x53e   : > { %v12237_v59 = vpop.f32.mrf.mxu3  ;;  %v12239_v10 = vpop.f32.mrf.mxu2 }
 0x53f   : > { %17390 = vst [vmem:[#allocation184_spill] sm:$0xff] %v12237_v59  ;;  %v12241_v22 = vpop.f32.mrf.mxu0 }
 0x540   : > { %17391 = vst [vmem:[#allocation85_spill] sm:$0xff] %v12239_v10 }
 0x541   : > { %v12243_v8 = vpop.f32.mrf.mxu1 }
 0x542   : > { %7904 = vmatmul.msk.f32.gmra.mxu0 %vm1191_vm1, %v12248_v44 }
 0x543   : > { %7879 = vmatmul.msk.f32.gmra.mxu3 %vm1191_vm1, %v11633_v63  ;;  %7834 = vmatmul.msk.f32.gmra.mxu2 %vm1191_vm1, %v11732_v34  ;;  %v12267_v63 = vld [vmem:[%s9003_s26 + $0x250] sm:$0xff] }
 0x544   : > { %7953 = vmatmul.msk.f32.gmra.mxu1 %vm1191_vm1, %v12248_v44 }
 0x546   : > { %v12256_v10 = vpop.f32.mrf.mxu3  ;;  %v12258_v58 = vpop.f32.mrf.mxu2 }
 0x547   : > { %17392 = vst [vmem:[#allocation46_spill] sm:$0xff] %v12256_v10  ;;  %v12260_v62 = vpop.f32.mrf.mxu0 }
 0x548   : > { %17393 = vst [vmem:[#allocation42_spill] sm:$0xff] %v12258_v58 }
 0x549   : > { %v12262_v59 = vpop.f32.mrf.mxu1 }
 0x54a   : > { %7905 = vmatmul.msk.f32.gmra.mxu0 %vm1191_vm1, %v12267_v63 }
 0x54b   : > { %7880 = vmatmul.msk.f32.gmra.mxu3 %vm1191_vm1, %v11659_v57  ;;  %7835 = vmatmul.msk.f32.gmra.mxu2 %vm1191_vm1, %v11755_v14  ;;  %v12286_v57 = vld [vmem:[%s9003_s26 + $0x258] sm:$0xff] }
 0x54c   : > { %7954 = vmatmul.msk.f32.gmra.mxu1 %vm1191_vm1, %v12267_v63 }
 0x54e   : > { %v12275_v58 = vpop.f32.mrf.mxu3  ;;  %v12277_v10 = vpop.f32.mrf.mxu2 }
 0x54f   : > { %17394 = vst [vmem:[#allocation89_spill] sm:$0xff] %v12275_v58  ;;  %v12279_v24 = vpop.f32.mrf.mxu0 }
 0x550   : > { %17395 = vst [vmem:[#allocation19_spill] sm:$0xff] %v12277_v10 }
 0x551   : > { %v12281_v52 = vpop.f32.mrf.mxu1 }
 0x552   : > { %7906 = vmatmul.msk.f32.gmra.mxu0 %vm1191_vm1, %v12286_v57 }
 0x553   : > { %7881 = vmatmul.msk.f32.gmra.mxu3 %vm1191_vm1, %v11685_v9  ;;  %7836 = vmatmul.msk.f32.gmra.mxu2 %vm1191_vm1, %v11778_v11  ;;  %v12305_v9 = vld [vmem:[%s9003_s26 + $0x260] sm:$0xff] }
 0x554   : > { %7955 = vmatmul.msk.f32.gmra.mxu1 %vm1191_vm1, %v12286_v57 }
 0x556   : > { %v12294_v10 = vpop.f32.mrf.mxu3  ;;  %v12296_v58 = vpop.f32.mrf.mxu2 }
 0x557   : > { %17396 = vst [vmem:[#allocation187_spill] sm:$0xff] %v12294_v10  ;;  %v12298_v54 = vpop.f32.mrf.mxu0 }
 0x558   : > { %17397 = vst [vmem:[#allocation33_spill] sm:$0xff] %v12296_v58 }
 0x559   : > { %v12300_v61 = vpop.f32.mrf.mxu1 }
 0x55a   : > { %7907 = vmatmul.msk.f32.gmra.mxu0 %vm1191_vm1, %v12305_v9 }
 0x55b   : > { %7882 = vmatmul.msk.f32.gmra.mxu3 %vm1191_vm1, %v11709_v60  ;;  %7985 = vmatmul.msk.f32.vlgmr.msra.gmra.mxu2 %vm1191_vm1, %v11955_v2  ;;  %v12324_v60 = vld [vmem:[%s9003_s26 + $0x268] sm:$0xff] }
 0x55c   : > { %7956 = vmatmul.msk.f32.gmra.mxu1 %vm1191_vm1, %v12305_v9 }
 0x55e   : > { %v12313_v58 = vpop.f32.mrf.mxu3  ;;  %v12315_v10 = vpop.f32.mrf.mxu2 }
 0x55f   : > { %17398 = vst [vmem:[#allocation188_spill] sm:$0xff] %v12313_v58  ;;  %v12317_v41 = vpop.f32.mrf.mxu0 }
 0x560   : > { %17399 = vst [vmem:[#allocation50_spill] sm:$0xff] %v12315_v10 }
 0x561   : > { %v12319_v42 = vpop.f32.mrf.mxu1 }
 0x562   : > { %7908 = vmatmul.msk.f32.gmra.mxu0 %vm1191_vm1, %v12324_v60 }
 0x563   : > { %7883 = vmatmul.msk.f32.gmra.mxu3 %vm1191_vm1, %v11732_v34  ;;  %7986 = vmatmul.msk.f32.gmra.mxu2 %vm1191_vm1, %v11978_v48  ;;  %v12343_v34 = vld [vmem:[%s9003_s26 + $0x270] sm:$0xff] }
 0x564   : > { %7957 = vmatmul.msk.f32.gmra.mxu1 %vm1191_vm1, %v12324_v60 }
 0x566   : > { %v12332_v10 = vpop.f32.mrf.mxu3  ;;  %v12334_v58 = vpop.f32.mrf.mxu2 }
 0x567   : > { %17400 = vst [vmem:[#allocation88_spill] sm:$0xff] %v12332_v10  ;;  %v12336_v55 = vpop.f32.mrf.mxu0 }
 0x568   : > { %17401 = vst [vmem:[#allocation44_spill] sm:$0xff] %v12334_v58 }
 0x569   : > { %v12338_v28 = vpop.f32.mrf.mxu1 }
 0x56a   : > { %17402 = vst [vmem:[#allocation23_spill] sm:$0xff] %v12338_v28  ;;  %7909 = vmatmul.msk.f32.gmra.mxu0 %vm1191_vm1, %v12343_v34  ;;  %v8509_v28 = vld [vmem:[%s9003_s26 + $0x40] sm:$0xff] }
 0x56b   : > { %7884 = vmatmul.msk.f32.gmra.mxu3 %vm1191_vm1, %v11755_v14  ;;  %7987 = vmatmul.msk.f32.gmra.mxu2 %vm1191_vm1, %v12001_v50  ;;  %v12362_v14 = vld [vmem:[%s9003_s26 + $0x278] sm:$0xff] }
 0x56c   : > { %7958 = vmatmul.msk.f32.gmra.mxu1 %vm1191_vm1, %v12343_v34 }
 0x56e   : > { %v12351_v58 = vpop.f32.mrf.mxu3  ;;  %v12353_v10 = vpop.f32.mrf.mxu2 }
 0x56f   : > { %17403 = vst [vmem:[#allocation191_spill] sm:$0xff] %v12351_v58  ;;  %v12355_v12 = vpop.f32.mrf.mxu0 }
 0x570   : > { %17404 = vst [vmem:[#allocation92_spill] sm:$0xff] %v12353_v10 }
 0x571   : > { %17405 = vst [vmem:[#allocation43_spill] sm:$0xff] %v12355_v12  ;;  %v12357_v49 = vpop.f32.mrf.mxu1 }
 0x572   : > { %17406 = vst [vmem:[#allocation84_spill] sm:$0xff] %v12357_v49  ;;  %7910 = vmatmul.msk.f32.gmra.mxu0 %vm1191_vm1, %v12362_v14 }
 0x573   : > { %7885 = vmatmul.msk.f32.gmra.mxu3 %vm1191_vm1, %v11778_v11  ;;  %7988 = vmatmul.msk.f32.gmra.mxu2 %vm1191_vm1, %v12024_v32  ;;  %v12379_v11 = vld [vmem:[%s9003_s26 + $0x280] sm:$0xff] }
 0x574   : > { %7959 = vmatmul.msk.f32.gmra.mxu1 %vm1191_vm1, %v12362_v14 }
 0x576   : > { %v12370_v10 = vpop.f32.mrf.mxu3  ;;  %v12372_v58 = vpop.f32.mrf.mxu2 }
 0x577   : > { %17407 = vst [vmem:[#allocation27_spill] sm:$0xff] %v12370_v10  ;;  %v12374_v25 = vpop.f32.mrf.mxu0 }
 0x578   : > { %17408 = vst [vmem:[#allocation192_spill] sm:$0xff] %v12372_v58 }
 0x579   : > { %17409 = vst [vmem:[#allocation170_spill] sm:$0xff] %v12374_v25  ;;  %v12376_v43 = vpop.f32.mrf.mxu1 }
 0x57a   : > { %17410 = vst [vmem:[#allocation93_spill] sm:$0xff] %v12376_v43  ;;  %7911 = vmatmul.msk.f32.gmra.mxu0 %vm1191_vm1, %v12379_v11 }
 0x57b   : > { %8034 = vmatmul.msk.f32.vlgmr.msrb.gmra.mxu3 %vm1191_vm1, %v11955_v2  ;;  %7989 = vmatmul.msk.f32.gmra.mxu2 %vm1191_vm1, %v12047_v39 }
 0x57c   : > { %7960 = vmatmul.msk.f32.gmra.mxu1 %vm1191_vm1, %v12379_v11 }
 0x57e   : > { %v12389_v58 = vpop.f32.mrf.mxu3  ;;  %v12391_v10 = vpop.f32.mrf.mxu2 }
 0x57f   : > { %17411 = vst [vmem:[#allocation41_spill] sm:$0xff] %v12389_v58  ;;  %v12393_v26 = vpop.f32.mrf.mxu0 }
 0x580   : > { %17412 = vst [vmem:[#allocation36_spill] sm:$0xff] %v12391_v10 }
 0x581   : > { %17413 = vst [vmem:[#allocation193_spill] sm:$0xff] %v12393_v26  ;;  %v12395_v0 = vpop.f32.mrf.mxu1  ;;  %v12683_v26 = vld [vmem:[%s9003_s26 + $0x300] sm:$0xff] }
 0x582   : > { %17414 = vst [vmem:[#allocation58_spill] sm:$0xff] %v12395_v0  ;;  %7912 = vmatmul.msk.f32.gmra.mxu0 %vm1191_vm1, %v12398_v19  ;;  %v12645_v0 = vld [vmem:[%s9003_s26 + $0x2f0] sm:$0xff] }
 0x583   : > { %8035 = vmatmul.msk.f32.gmra.mxu3 %vm1191_vm1, %v11978_v48  ;;  %7990 = vmatmul.msk.f32.gmra.mxu2 %vm1191_vm1, %v12070_v5 }
 0x584   : > { %7961 = vmatmul.msk.f32.gmra.mxu1 %vm1191_vm1, %v12398_v19 }
 0x586   : > { %v12408_v2 = vpop.f32.mrf.mxu3  ;;  %v12410_v10 = vpop.f32.mrf.mxu2 }
 0x587   : > { %17415 = vst [vmem:[#allocation96_spill] sm:$0xff] %v12408_v2  ;;  %v12412_v58 = vpop.f32.mrf.mxu0 }
 0x588   : > { %17416 = vst [vmem:[#allocation167_spill] sm:$0xff] %v12410_v10 }
 0x589   : > { %17417 = vst [vmem:[#allocation39_spill] sm:$0xff] %v12412_v58  ;;  %v12414_v3 = vpop.f32.mrf.mxu1  ;;  %v12436_v58 = vld [vmem:[%s9003_s26 + $0x298] sm:$0xff] }
 0x58a   : > { %17418 = vst [vmem:[#allocation194_spill] sm:$0xff] %v12414_v3  ;;  %7913 = vmatmul.msk.f32.gmra.mxu0 %vm1191_vm1, %v12417_v35 }
 0x58b   : > { %8036 = vmatmul.msk.f32.gmra.mxu3 %vm1191_vm1, %v12001_v50  ;;  %7991 = vmatmul.msk.f32.gmra.mxu2 %vm1191_vm1, %v12093_v31 }
 0x58c   : > { %7962 = vmatmul.msk.f32.gmra.mxu1 %vm1191_vm1, %v12417_v35 }
 0x58e   : > { %v12427_v48 = vpop.f32.mrf.mxu3  ;;  %v12429_v10 = vpop.f32.mrf.mxu2 }
 0x58f   : > { %17419 = vst [vmem:[#allocation185_spill] sm:$0xff] %v12427_v48  ;;  %v12431_v2 = vpop.f32.mrf.mxu0 }
 0x590   : > { %17420 = vst [vmem:[#allocation173_spill] sm:$0xff] %v12429_v10 }
 0x591   : > { %17421 = vst [vmem:[#allocation54_spill] sm:$0xff] %v12431_v2  ;;  %v12433_v3 = vpop.f32.mrf.mxu1  ;;  %v12455_v2 = vld [vmem:[%s9003_s26 + $0x2a0] sm:$0xff] }
 0x592   : > { %17422 = vst [vmem:[#allocation45_spill] sm:$0xff] %v12433_v3  ;;  %7914 = vmatmul.msk.f32.gmra.mxu0 %vm1191_vm1, %v12436_v58 }
 0x593   : > { %8037 = vmatmul.msk.f32.gmra.mxu3 %vm1191_vm1, %v12024_v32  ;;  %7992 = vmatmul.msk.f32.gmra.mxu2 %vm1191_vm1, %v12116_v29 }
 0x594   : > { %7963 = vmatmul.msk.f32.gmra.mxu1 %vm1191_vm1, %v12436_v58 }
 0x596   : > { %v12446_v50 = vpop.f32.mrf.mxu3  ;;  %v12448_v10 = vpop.f32.mrf.mxu2 }
 0x597   : > { %17423 = vst [vmem:[#allocation97_spill] sm:$0xff] %v12446_v50  ;;  %v12450_v48 = vpop.f32.mrf.mxu0 }
 0x598   : > { %17424 = vst [vmem:[#allocation59_spill] sm:$0xff] %v12448_v10 }
 0x599   : > { %17425 = vst [vmem:[#allocation123_spill] sm:$0xff] %v12450_v48  ;;  %v12452_v3 = vpop.f32.mrf.mxu1  ;;  %v12474_v48 = vld [vmem:[%s9003_s26 + $0x2a8] sm:$0xff] }
 0x59a   : > { %17426 = vst [vmem:[#allocation82_spill] sm:$0xff] %v12452_v3  ;;  %7915 = vmatmul.msk.f32.gmra.mxu0 %vm1191_vm1, %v12455_v2 }
 0x59b   : > { %8038 = vmatmul.msk.f32.gmra.mxu3 %vm1191_vm1, %v12047_v39  ;;  %7993 = vmatmul.msk.f32.gmra.mxu2 %vm1191_vm1, %v12139_v6 }
 0x59c   : > { %7964 = vmatmul.msk.f32.gmra.mxu1 %vm1191_vm1, %v12455_v2 }
 0x59e   : > { %v12465_v32 = vpop.f32.mrf.mxu3  ;;  %v12467_v10 = vpop.f32.mrf.mxu2 }
 0x59f   : > { %17427 = vst [vmem:[#allocation115_spill] sm:$0xff] %v12465_v32  ;;  %v12469_v50 = vpop.f32.mrf.mxu0 }
 0x5a0   : > { %17428 = vst [vmem:[#allocation127_spill] sm:$0xff] %v12467_v10 }
 0x5a1   : > { %17429 = vst [vmem:[#allocation118_spill] sm:$0xff] %v12469_v50  ;;  %v12471_v3 = vpop.f32.mrf.mxu1  ;;  %v12493_v50 = vld [vmem:[%s9003_s26 + $0x2b0] sm:$0xff] }
 0x5a2   : > { %17430 = vst [vmem:[#allocation131_spill] sm:$0xff] %v12471_v3  ;;  %7916 = vmatmul.msk.f32.gmra.mxu0 %vm1191_vm1, %v12474_v48 }
 0x5a3   : > { %8039 = vmatmul.msk.f32.gmra.mxu3 %vm1191_vm1, %v12070_v5  ;;  %7994 = vmatmul.msk.f32.gmra.mxu2 %vm1191_vm1, %v12162_v33 }
 0x5a4   : > { %7965 = vmatmul.msk.f32.gmra.mxu1 %vm1191_vm1, %v12474_v48 }
 0x5a6   : > { %v12484_v39 = vpop.f32.mrf.mxu3  ;;  %v12486_v10 = vpop.f32.mrf.mxu2 }
 0x5a7   : > { %17431 = vst [vmem:[#allocation190_spill] sm:$0xff] %v12484_v39  ;;  %v12488_v32 = vpop.f32.mrf.mxu0 }
 0x5a8   : > { %17432 = vst [vmem:[#allocation133_spill] sm:$0xff] %v12486_v10 }
 0x5a9   : > { %17433 = vst [vmem:[#allocation71_spill] sm:$0xff] %v12488_v32  ;;  %v12490_v3 = vpop.f32.mrf.mxu1  ;;  %v12512_v32 = vld [vmem:[%s9003_s26 + $0x2b8] sm:$0xff] }
 0x5aa   : > { %17434 = vst [vmem:[#allocation135_spill] sm:$0xff] %v12490_v3  ;;  %7917 = vmatmul.msk.f32.gmra.mxu0 %vm1191_vm1, %v12493_v50 }
 0x5ab   : > { %8040 = vmatmul.msk.f32.gmra.mxu3 %vm1191_vm1, %v12093_v31  ;;  %7995 = vmatmul.msk.f32.gmra.mxu2 %vm1191_vm1, %v12185_v51 }
 0x5ac   : > { %7966 = vmatmul.msk.f32.gmra.mxu1 %vm1191_vm1, %v12493_v50 }
 0x5ae   : > { %v12503_v5 = vpop.f32.mrf.mxu3  ;;  %v12505_v10 = vpop.f32.mrf.mxu2 }
 0x5af   : > { %17435 = vst [vmem:[#allocation75_spill] sm:$0xff] %v12503_v5  ;;  %v12507_v39 = vpop.f32.mrf.mxu0 }
 0x5b0   : > { %17436 = vst [vmem:[#allocation137_spill] sm:$0xff] %v12505_v10 }
 0x5b1   : > { %17437 = vst [vmem:[#allocation79_spill] sm:$0xff] %v12507_v39  ;;  %v12509_v3 = vpop.f32.mrf.mxu1  ;;  %v12531_v39 = vld [vmem:[%s9003_s26 + $0x2c0] sm:$0xff] }
 0x5b2   : > { %17438 = vst [vmem:[#allocation140_spill] sm:$0xff] %v12509_v3  ;;  %7918 = vmatmul.msk.f32.gmra.mxu0 %vm1191_vm1, %v12512_v32 }
 0x5b3   : > { %8041 = vmatmul.msk.f32.gmra.mxu3 %vm1191_vm1, %v12116_v29  ;;  %7996 = vmatmul.msk.f32.gmra.mxu2 %vm1191_vm1, %v12208_v4 }
 0x5b4   : > { %7967 = vmatmul.msk.f32.gmra.mxu1 %vm1191_vm1, %v12512_v32 }
 0x5b6   : > { %v12522_v31 = vpop.f32.mrf.mxu3  ;;  %v12524_v10 = vpop.f32.mrf.mxu2 }
 0x5b7   : > { %17439 = vst [vmem:[#allocation83_spill] sm:$0xff] %v12522_v31  ;;  %v12526_v5 = vpop.f32.mrf.mxu0 }
 0x5b8   : > { %17440 = vst [vmem:[#allocation143_spill] sm:$0xff] %v12524_v10 }
 0x5b9   : > { %17441 = vst [vmem:[#allocation87_spill] sm:$0xff] %v12526_v5  ;;  %v12528_v3 = vpop.f32.mrf.mxu1  ;;  %v12550_v5 = vld [vmem:[%s9003_s26 + $0x2c8] sm:$0xff] }
 0x5ba   : > { %17442 = vst [vmem:[#allocation91_spill] sm:$0xff] %v12528_v3  ;;  %7919 = vmatmul.msk.f32.gmra.mxu0 %vm1191_vm1, %v12531_v39 }
 0x5bb   : > { %8042 = vmatmul.msk.f32.gmra.mxu3 %vm1191_vm1, %v12139_v6  ;;  %7997 = vmatmul.msk.f32.gmra.mxu2 %vm1191_vm1, %v12229_v15 }
 0x5bc   : > { %7968 = vmatmul.msk.f32.gmra.mxu1 %vm1191_vm1, %v12531_v39 }
 0x5be   : > { %v12541_v29 = vpop.f32.mrf.mxu3  ;;  %v12543_v10 = vpop.f32.mrf.mxu2 }
 0x5bf   : > { %17443 = vst [vmem:[#allocation95_spill] sm:$0xff] %v12541_v29  ;;  %v12545_v31 = vpop.f32.mrf.mxu0 }
 0x5c0   : > { %17444 = vst [vmem:[#allocation99_spill] sm:$0xff] %v12543_v10 }
 0x5c1   : > { %17445 = vst [vmem:[#allocation146_spill] sm:$0xff] %v12545_v31  ;;  %v12547_v3 = vpop.f32.mrf.mxu1  ;;  %v12569_v31 = vld [vmem:[%s9003_s26 + $0x2d0] sm:$0xff] }
 0x5c2   : > { %17446 = vst [vmem:[#allocation195_spill] sm:$0xff] %v12547_v3  ;;  %7920 = vmatmul.msk.f32.gmra.mxu0 %vm1191_vm1, %v12550_v5 }
 0x5c3   : > { %8043 = vmatmul.msk.f32.gmra.mxu3 %vm1191_vm1, %v12162_v33  ;;  %7998 = vmatmul.msk.f32.gmra.mxu2 %vm1191_vm1, %v12248_v44 }
 0x5c4   : > { %7969 = vmatmul.msk.f32.gmra.mxu1 %vm1191_vm1, %v12550_v5 }
 0x5c6   : > { %v12560_v6 = vpop.f32.mrf.mxu3  ;;  %v12562_v10 = vpop.f32.mrf.mxu2 }
 0x5c7   : > { %17447 = vst [vmem:[#allocation196_spill] sm:$0xff] %v12560_v6  ;;  %v12564_v29 = vpop.f32.mrf.mxu0 }
 0x5c8   : > { %17448 = vst [vmem:[#allocation197_spill] sm:$0xff] %v12562_v10 }
 0x5c9   : > { %17449 = vst [vmem:[#allocation198_spill] sm:$0xff] %v12564_v29  ;;  %v12566_v3 = vpop.f32.mrf.mxu1  ;;  %v12588_v29 = vld [vmem:[%s9003_s26 + $0x2d8] sm:$0xff] }
 0x5ca   : > { %17450 = vst [vmem:[#allocation199_spill] sm:$0xff] %v12566_v3  ;;  %7921 = vmatmul.msk.f32.gmra.mxu0 %vm1191_vm1, %v12569_v31 }
 0x5cb   : > { %8044 = vmatmul.msk.f32.gmra.mxu3 %vm1191_vm1, %v12185_v51  ;;  %7999 = vmatmul.msk.f32.gmra.mxu2 %vm1191_vm1, %v12267_v63 }
 0x5cc   : > { %7970 = vmatmul.msk.f32.gmra.mxu1 %vm1191_vm1, %v12569_v31 }
 0x5ce   : > { %v12579_v33 = vpop.f32.mrf.mxu3  ;;  %v12581_v10 = vpop.f32.mrf.mxu2 }
 0x5cf   : > { %17451 = vst [vmem:[#allocation200_spill] sm:$0xff] %v12579_v33  ;;  %v12583_v6 = vpop.f32.mrf.mxu0 }
 0x5d0   : > { %17452 = vst [vmem:[#allocation201_spill] sm:$0xff] %v12581_v10 }
 0x5d1   : > { %17453 = vst [vmem:[#allocation202_spill] sm:$0xff] %v12583_v6  ;;  %v12585_v3 = vpop.f32.mrf.mxu1  ;;  %v12607_v6 = vld [vmem:[%s9003_s26 + $0x2e0] sm:$0xff] }
 0x5d2   : > { %17454 = vst [vmem:[#allocation203_spill] sm:$0xff] %v12585_v3  ;;  %7922 = vmatmul.msk.f32.gmra.mxu0 %vm1191_vm1, %v12588_v29 }
 0x5d3   : > { %8045 = vmatmul.msk.f32.gmra.mxu3 %vm1191_vm1, %v12208_v4  ;;  %8000 = vmatmul.msk.f32.gmra.mxu2 %vm1191_vm1, %v12286_v57 }
 0x5d4   : > { %7971 = vmatmul.msk.f32.gmra.mxu1 %vm1191_vm1, %v12588_v29 }
 0x5d6   : > { %v12598_v51 = vpop.f32.mrf.mxu3  ;;  %v12600_v10 = vpop.f32.mrf.mxu2 }
 0x5d7   : > { %17455 = vst [vmem:[#allocation204_spill] sm:$0xff] %v12598_v51  ;;  %v12602_v33 = vpop.f32.mrf.mxu0 }
 0x5d8   : > { %17456 = vst [vmem:[#allocation205_spill] sm:$0xff] %v12600_v10 }
 0x5d9   : > { %17457 = vst [vmem:[#allocation206_spill] sm:$0xff] %v12602_v33  ;;  %v12604_v3 = vpop.f32.mrf.mxu1  ;;  %v12626_v33 = vld [vmem:[%s9003_s26 + $0x2e8] sm:$0xff] }
 0x5da   : > { %17458 = vst [vmem:[#allocation207_spill] sm:$0xff] %v12604_v3  ;;  %7923 = vmatmul.msk.f32.gmra.mxu0 %vm1191_vm1, %v12607_v6 }
 0x5db   : > { %8046 = vmatmul.msk.f32.gmra.mxu3 %vm1191_vm1, %v12229_v15  ;;  %8001 = vmatmul.msk.f32.gmra.mxu2 %vm1191_vm1, %v12305_v9 }
 0x5dc   : > { %7972 = vmatmul.msk.f32.gmra.mxu1 %vm1191_vm1, %v12607_v6 }
 0x5de   : > { %v12617_v4 = vpop.f32.mrf.mxu3  ;;  %v12619_v10 = vpop.f32.mrf.mxu2 }
 0x5df   : > { %17459 = vst [vmem:[#allocation208_spill] sm:$0xff] %v12617_v4  ;;  %v12621_v51 = vpop.f32.mrf.mxu0 }
 0x5e0   : > { %17460 = vst [vmem:[#allocation209_spill] sm:$0xff] %v12621_v51 }
 0x5e1   : > { %v12623_v3 = vpop.f32.mrf.mxu1 }
 0x5e2   : > { %17461 = vst [vmem:[#allocation210_spill] sm:$0xff] %v12623_v3  ;;  %7924 = vmatmul.msk.f32.gmra.mxu0 %vm1191_vm1, %v12626_v33 }
 0x5e3   : > { %8047 = vmatmul.msk.f32.gmra.mxu3 %vm1191_vm1, %v12248_v44  ;;  %8002 = vmatmul.msk.f32.gmra.mxu2 %vm1191_vm1, %v12324_v60 }
 0x5e4   : > { %7973 = vmatmul.msk.f32.gmra.mxu1 %vm1191_vm1, %v12626_v33 }
 0x5e6   : > { %v12636_v15 = vpop.f32.mrf.mxu3  ;;  %v12638_v4 = vpop.f32.mrf.mxu2 }
 0x5e7   : > { %17462 = vst [vmem:[#allocation211_spill] sm:$0xff] %v12636_v15  ;;  %v12640_v3 = vpop.f32.mrf.mxu0 }
 0x5e8   : > { %17463 = vst [vmem:[#allocation212_spill] sm:$0xff] %v12640_v3 }
 0x5e9   : > { %v12642_v51 = vpop.f32.mrf.mxu1 }
 0x5ea   : > { %17464 = vst [vmem:[#allocation213_spill] sm:$0xff] %v12642_v51  ;;  %7925 = vmatmul.msk.f32.gmra.mxu0 %vm1191_vm1, %v12645_v0 }
 0x5eb   : > { %8048 = vmatmul.msk.f32.gmra.mxu3 %vm1191_vm1, %v12267_v63  ;;  %8003 = vmatmul.msk.f32.gmra.mxu2 %vm1191_vm1, %v12343_v34 }
 0x5ec   : > { %7974 = vmatmul.msk.f32.gmra.mxu1 %vm1191_vm1, %v12645_v0 }
 0x5ee   : > { %v12655_v44 = vpop.f32.mrf.mxu3  ;;  %v12657_v15 = vpop.f32.mrf.mxu2 }
 0x5ef   : > { %17465 = vst [vmem:[#allocation214_spill] sm:$0xff] %v12655_v44  ;;  %v12659_v51 = vpop.f32.mrf.mxu0 }
 0x5f0   : > { %17466 = vst [vmem:[#allocation215_spill] sm:$0xff] %v12659_v51 }
 0x5f1   : > { %v12661_v3 = vpop.f32.mrf.mxu1 }
 0x5f2   : > { %17467 = vst [vmem:[#allocation216_spill] sm:$0xff] %v12661_v3  ;;  %7926 = vmatmul.msk.f32.gmra.mxu0 %vm1191_vm1, %v12664_v21 }
 0x5f3   : > { %8049 = vmatmul.msk.f32.gmra.mxu3 %vm1191_vm1, %v12286_v57  ;;  %8004 = vmatmul.msk.f32.gmra.mxu2 %vm1191_vm1, %v12362_v14 }
 0x5f4   : > { %7975 = vmatmul.msk.f32.gmra.mxu1 %vm1191_vm1, %v12664_v21 }
 0x5f6   : > { %v12674_v63 = vpop.f32.mrf.mxu3  ;;  %v12676_v44 = vpop.f32.mrf.mxu2 }
 0x5f7   : > { %17468 = vst [vmem:[#allocation217_spill] sm:$0xff] %v12674_v63  ;;  %v12678_v3 = vpop.f32.mrf.mxu0 }
 0x5f8   : > { %17469 = vst [vmem:[#allocation218_spill] sm:$0xff] %v12678_v3 }
 0x5f9   : > { %v12680_v51 = vpop.f32.mrf.mxu1 }
 0x5fa   : > { %17470 = vst [vmem:[#allocation219_spill] sm:$0xff] %v12680_v51  ;;  %7927 = vmatmul.msk.f32.gmra.mxu0 %vm1191_vm1, %v12683_v26 }
 0x5fb   : > { %8050 = vmatmul.msk.f32.gmra.mxu3 %vm1191_vm1, %v12305_v9  ;;  %8005 = vmatmul.msk.f32.gmra.mxu2 %vm1191_vm1, %v12379_v11 }
 0x5fc   : > { %7976 = vmatmul.msk.f32.gmra.mxu1 %vm1191_vm1, %v12683_v26 }
 0x5fe   : > { %v12693_v57 = vpop.f32.mrf.mxu3  ;;  %v12695_v63 = vpop.f32.mrf.mxu2 }
 0x5ff   : > { %v12697_v51 = vpop.f32.mrf.mxu0 }
 0x600   : > { %17471 = vst [vmem:[#allocation220_spill] sm:$0xff] %v12697_v51 }
 0x601   : > { %v12699_v3 = vpop.f32.mrf.mxu1 }
 0x602   : > { %17472 = vst [vmem:[#allocation221_spill] sm:$0xff] %v12699_v3  ;;  %7928 = vmatmul.msk.f32.gmra.mxu0 %vm1191_vm1, %v12702_v27 }
 0x603   : > { %8051 = vmatmul.msk.f32.gmra.mxu3 %vm1191_vm1, %v12324_v60  ;;  %8006 = vmatmul.msk.f32.gmra.mxu2 %vm1191_vm1, %v12398_v19 }
 0x604   : > { %7977 = vmatmul.msk.f32.gmra.mxu1 %vm1191_vm1, %v12702_v27 }
 0x606   : > { %v12712_v9 = vpop.f32.mrf.mxu3  ;;  %v12714_v51 = vpop.f32.mrf.mxu2 }
 0x607   : > { %v12716_v3 = vpop.f32.mrf.mxu0 }
 0x608   : > { %17473 = vst [vmem:[#allocation222_spill] sm:$0xff] %v12716_v3 }
 0x609   : > { %v12718_v43 = vpop.f32.mrf.mxu1 }
 0x60a   : > { %17474 = vst [vmem:[#allocation223_spill] sm:$0xff] %v12718_v43  ;;  %7929 = vmatmul.msk.f32.gmra.mxu0 %vm1191_vm1, %v12721_v36 }
 0x60b   : > { %8052 = vmatmul.msk.f32.gmra.mxu3 %vm1191_vm1, %v12343_v34  ;;  %8007 = vmatmul.msk.f32.gmra.mxu2 %vm1191_vm1, %v12417_v35 }
 0x60c   : > { %7978 = vmatmul.msk.f32.gmra.mxu1 %vm1191_vm1, %v12721_v36 }
 0x60e   : > { %v12731_v60 = vpop.f32.mrf.mxu3  ;;  %v12733_v3 = vpop.f32.mrf.mxu2 }
 0x60f   : > { %17475 = vst [vmem:[#allocation224_spill] sm:$0xff] %v12733_v3  ;;  %v12735_v43 = vpop.f32.mrf.mxu0  ;;  %v12822_v3 = vld [vmem:[%s9003_s26 + $0x338] sm:$0xff] }
 0x610   : > { %17476 = vst [vmem:[#allocation225_spill] sm:$0xff] %v12735_v43 }
 0x611   : > { %v12737_v25 = vpop.f32.mrf.mxu1 }
 0x612   : > { %17477 = vst [vmem:[#allocation226_spill] sm:$0xff] %v12737_v25  ;;  %7930 = vmatmul.msk.f32.gmra.mxu0 %vm1191_vm1, %v12740_v40 }
 0x613   : > { %8053 = vmatmul.msk.f32.gmra.mxu3 %vm1191_vm1, %v12362_v14  ;;  %8008 = vmatmul.msk.f32.gmra.mxu2 %vm1191_vm1, %v12436_v58  ;;  %v1029_v14 = vld [vmem:[%s16515_s3 + $0x1f0] sm:$0xff] }
 0x614   : > { %7979 = vmatmul.msk.f32.gmra.mxu1 %vm1191_vm1, %v12740_v40  ;;  %5599 = vmatpush.msrb.mxu0 %v1029_v14 }
 0x616   : > { %v12750_v34 = vpop.f32.mrf.mxu3  ;;  %v12752_v49 = vpop.f32.mrf.mxu2 }
 0x617   : > { %17478 = vst [vmem:[#allocation227_spill] sm:$0xff] %v12752_v49  ;;  %v12754_v25 = vpop.f32.mrf.mxu0 }
 0x618   : > { %17479 = vst [vmem:[#allocation228_spill] sm:$0xff] %v12754_v25 }
 0x619   : > { %v12756_v43 = vpop.f32.mrf.mxu1 }
 0x61a   : > { %17480 = vst [vmem:[#allocation229_spill] sm:$0xff] %v12756_v43  ;;  %7931 = vmatmul.msk.f32.gmra.mxu0 %vm1191_vm1, %v12759_v38  ;;  %v1030_v43 = vld [vmem:[%s16515_s3 + $0x1f8] sm:$0xff] }
 0x61b   : > { %8054 = vmatmul.msk.f32.gmra.mxu3 %vm1191_vm1, %v12379_v11  ;;  %8009 = vmatmul.msk.f32.gmra.mxu2 %vm1191_vm1, %v12455_v2 }
 0x61c   : > { %7980 = vmatmul.msk.f32.gmra.mxu1 %vm1191_vm1, %v12759_v38 }
 0x61d   : > { %5712 = vmatpush.msrb.mxu1 %v1030_v43 }
 0x61e   : > { %v12775_v25 = vpop.f32.mrf.mxu3  ;;  %v12777_v11 = vpop.f32.mrf.mxu2 }
 0x61f   : > { %17481 = vst [vmem:[#allocation230_spill] sm:$0xff] %v12777_v11  ;;  %v12779_v49 = vpop.f32.mrf.mxu0  ;;  %v12803_v11 = vld [vmem:[%s9003_s26 + $0x330] sm:$0xff] }
 0x620   : > { %17482 = vst [vmem:[#allocation231_spill] sm:$0xff] %v12779_v49 }
 0x621   : > { %v12781_v12 = vpop.f32.mrf.mxu1 }
 0x622   : > { %17483 = vst [vmem:[#allocation232_spill] sm:$0xff] %v12781_v12  ;;  %7932 = vmatmul.msk.f32.gmra.mxu0 %vm1191_vm1, %v12784_v37 }
 0x623   : > { %8055 = vmatmul.msk.f32.gmra.mxu3 %vm1191_vm1, %v12398_v19  ;;  %8010 = vmatmul.msk.f32.gmra.mxu2 %vm1191_vm1, %v12474_v48 }
 0x624   : > { %7981 = vmatmul.msk.f32.gmra.mxu1 %vm1191_vm1, %v12784_v37 }
 0x626   : > { %v12794_v43 = vpop.f32.mrf.mxu3  ;;  %v12796_v14 = vpop.f32.mrf.mxu2 }
 0x627   : > { %17484 = vst [vmem:[#allocation233_spill] sm:$0xff] %v12796_v14  ;;  %v12798_v12 = vpop.f32.mrf.mxu0 }
 0x628   : > { %17485 = vst [vmem:[#allocation234_spill] sm:$0xff] %v12798_v12 }
 0x629   : > { %v12800_v49 = vpop.f32.mrf.mxu1 }
 0x62a   : > { %17486 = vst [vmem:[#allocation235_spill] sm:$0xff] %v12800_v49  ;;  %7933 = vmatmul.msk.f32.gmra.mxu0 %vm1191_vm1, %v12803_v11 }
 0x62b   : > { %8056 = vmatmul.msk.f32.gmra.mxu3 %vm1191_vm1, %v12417_v35  ;;  %8011 = vmatmul.msk.f32.gmra.mxu2 %vm1191_vm1, %v12493_v50  ;;  %v1027_v35 = vld [vmem:[%s16515_s3 + $0x1e0] sm:$0xff] }
 0x62c   : > { %7982 = vmatmul.msk.f32.gmra.mxu1 %vm1191_vm1, %v12803_v11  ;;  %5600 = vmatpush.msrb.mxu0 %v1027_v35 }
 0x62e   : > { %v12813_v19 = vpop.f32.mrf.mxu3  ;;  %v12815_v14 = vpop.f32.mrf.mxu2 }
 0x62f   : > { %17487 = vst [vmem:[#allocation236_spill] sm:$0xff] %v12813_v19  ;;  %v12817_v12 = vpop.f32.mrf.mxu0 }
 0x630   : > { %17488 = vst [vmem:[#allocation237_spill] sm:$0xff] %v12815_v14 }
 0x631   : > { %17489 = vst [vmem:[#allocation238_spill] sm:$0xff] %v12817_v12  ;;  %v12819_v49 = vpop.f32.mrf.mxu1 }
 0x632   : > { %17490 = vst [vmem:[#allocation239_spill] sm:$0xff] %v12819_v49  ;;  %7934 = vmatmul.msk.f32.gmra.mxu0 %vm1191_vm1, %v12822_v3  ;;  %v1028_v49 = vld [vmem:[%s16515_s3 + $0x1e8] sm:$0xff] }
 0x633   : > { %8057 = vmatmul.msk.f32.gmra.mxu3 %vm1191_vm1, %v12436_v58  ;;  %8012 = vmatmul.msk.f32.gmra.mxu2 %vm1191_vm1, %v12512_v32 }
 0x634   : > { %7983 = vmatmul.msk.f32.gmra.mxu1 %vm1191_vm1, %v12822_v3 }
 0x635   : > { %5713 = vmatpush.msrb.mxu1 %v1028_v49 }
 0x636   : > { %v12838_v12 = vpop.f32.mrf.mxu3  ;;  %v12840_v58 = vpop.f32.mrf.mxu2 }
 0x637   : > { %17491 = vst [vmem:[#allocation240_spill] sm:$0xff] %v12838_v12  ;;  %v12842_v14 = vpop.f32.mrf.mxu0  ;;  %v8565_v12 = vld [vmem:[%s9003_s26 + $0x160] sm:$0xff] }
 0x638   : > { %17492 = vst [vmem:[#allocation241_spill] sm:$0xff] %v12840_v58 }
 0x639   : > { %17493 = vst [vmem:[#allocation242_spill] sm:$0xff] %v12842_v14  ;;  %v12844_v19 = vpop.f32.mrf.mxu1 }
 0x63a   : > { %17494 = vst [vmem:[#allocation243_spill] sm:$0xff] %v12844_v19  ;;  %8083 = vmatmul.msk.f32.vlgmr.msra.gmra.mxu0 %vm1191_vm1, %v8509_v28 }
 0x63b   : > { %8058 = vmatmul.msk.f32.gmra.mxu3 %vm1191_vm1, %v12455_v2  ;;  %8013 = vmatmul.msk.f32.gmra.mxu2 %vm1191_vm1, %v12531_v39  ;;  %v8510_v2 = vld [vmem:[%s9003_s26 + $0x48] sm:$0xff] }
 0x63c   : > { %8132 = vmatmul.msk.f32.vlgmr.msra.gmra.mxu1 %vm1191_vm1, %v8509_v28 }
 0x63e   : > { %v12853_v49 = vpop.f32.mrf.mxu3  ;;  %v12855_v35 = vpop.f32.mrf.mxu2 }
 0x63f   : > { %17495 = vst [vmem:[#allocation244_spill] sm:$0xff] %v12853_v49  ;;  %v12857_v58 = vpop.f32.mrf.mxu0 }
 0x640   : > { %17496 = vst [vmem:[#allocation245_spill] sm:$0xff] %v12855_v35 }
 0x641   : > { %17497 = vst [vmem:[#allocation246_spill] sm:$0xff] %v12857_v58  ;;  %v12859_v14 = vpop.f32.mrf.mxu1 }
 0x642   : > { %17498 = vst [vmem:[#allocation247_spill] sm:$0xff] %v12859_v14  ;;  %8084 = vmatmul.msk.f32.gmra.mxu0 %vm1191_vm1, %v8510_v2 }
 0x643   : > { %8059 = vmatmul.msk.f32.gmra.mxu3 %vm1191_vm1, %v12474_v48  ;;  %8014 = vmatmul.msk.f32.gmra.mxu2 %vm1191_vm1, %v12550_v5  ;;  %v8511_v48 = vld [vmem:[%s9003_s26 + $0x50] sm:$0xff] }
 0x644   : > { %8133 = vmatmul.msk.f32.gmra.mxu1 %vm1191_vm1, %v8510_v2  ;;  %v1025_v2 = vld [vmem:[%s16515_s3 + $0x1d0] sm:$0xff] }
 0x645   : > { %5601 = vmatpush.msrb.mxu0 %v1025_v2 }
 0x646   : > { %v12868_v28 = vpop.f32.mrf.mxu3  ;;  %v12870_v19 = vpop.f32.mrf.mxu2 }
 0x647   : > { %17499 = vst [vmem:[#allocation248_spill] sm:$0xff] %v12868_v28  ;;  %v12872_v35 = vpop.f32.mrf.mxu0 }
 0x648   : > { %17500 = vst [vmem:[#allocation249_spill] sm:$0xff] %v12870_v19 }
 0x649   : > { %17501 = vst [vmem:[#allocation250_spill] sm:$0xff] %v12872_v35  ;;  %v12874_v58 = vpop.f32.mrf.mxu1  ;;  %v1026_v35 = vld [vmem:[%s16515_s3 + $0x1d8] sm:$0xff] }
 0x64a   : > { %17502 = vst [vmem:[#allocation251_spill] sm:$0xff] %v12874_v58  ;;  %8085 = vmatmul.msk.f32.gmra.mxu0 %vm1191_vm1, %v8511_v48  ;;  %5714 = vmatpush.msrb.mxu1 %v1026_v35 }
 0x64b   : > { %8060 = vmatmul.msk.f32.gmra.mxu3 %vm1191_vm1, %v12493_v50  ;;  %8015 = vmatmul.msk.f32.gmra.mxu2 %vm1191_vm1, %v12569_v31 }
 0x64c   : > { %8134 = vmatmul.msk.f32.gmra.mxu1 %vm1191_vm1, %v8511_v48  ;;  %v8512_v48 = vld [vmem:[%s9003_s26 + $0x58] sm:$0xff] }
 0x64e   : > { %v12889_v50 = vpop.f32.mrf.mxu3  ;;  %v12891_v58 = vpop.f32.mrf.mxu2 }
 0x64f   : > { %17503 = vst [vmem:[#allocation252_spill] sm:$0xff] %v12889_v50  ;;  %v12893_v14 = vpop.f32.mrf.mxu0 }
 0x650   : > { %17504 = vst [vmem:[#allocation253_spill] sm:$0xff] %v12891_v58 }
 0x651   : > { %17505 = vst [vmem:[#allocation254_spill] sm:$0xff] %v12893_v14  ;;  %v12895_v19 = vpop.f32.mrf.mxu1 }
 0x652   : > { %17506 = vst [vmem:[#allocation255_spill] sm:$0xff] %v12895_v19  ;;  %8086 = vmatmul.msk.f32.gmra.mxu0 %vm1191_vm1, %v8512_v48 }
 0x653   : > { %8061 = vmatmul.msk.f32.gmra.mxu3 %vm1191_vm1, %v12512_v32  ;;  %8016 = vmatmul.msk.f32.gmra.mxu2 %vm1191_vm1, %v12588_v29  ;;  %v8513_v32 = vld [vmem:[%s9003_s26 + $0x60] sm:$0xff] }
 0x654   : > { %8135 = vmatmul.msk.f32.gmra.mxu1 %vm1191_vm1, %v8512_v48 }
 0x656   : > { %v12904_v35 = vpop.f32.mrf.mxu3  ;;  %v12906_v2 = vpop.f32.mrf.mxu2 }
 0x657   : > { %17507 = vst [vmem:[#allocation256_spill] sm:$0xff] %v12904_v35  ;;  %v12908_v58 = vpop.f32.mrf.mxu0 }
 0x658   : > { %17508 = vst [vmem:[#allocation257_spill] sm:$0xff] %v12906_v2 }
 0x659   : > { %17509 = vst [vmem:[#allocation258_spill] sm:$0xff] %v12908_v58  ;;  %v12910_v14 = vpop.f32.mrf.mxu1 }
 0x65a   : > { %17510 = vst [vmem:[#allocation259_spill] sm:$0xff] %v12910_v14  ;;  %8087 = vmatmul.msk.f32.gmra.mxu0 %vm1191_vm1, %v8513_v32  ;;  %v1024_v14 = vld [vmem:[%s16515_s3 + $0x1c8] sm:$0xff] }
 0x65b   : > { %8062 = vmatmul.msk.f32.gmra.mxu3 %vm1191_vm1, %v12531_v39  ;;  %8017 = vmatmul.msk.f32.gmra.mxu2 %vm1191_vm1, %v12607_v6  ;;  %v8514_v39 = vld [vmem:[%s9003_s26 + $0x68] sm:$0xff] }
 0x65c   : > { %8136 = vmatmul.msk.f32.gmra.mxu1 %vm1191_vm1, %v8513_v32  ;;  %v1023_v32 = vld [vmem:[%s16515_s3 + $0x1c0] sm:$0xff] }
 0x65d   : > { %5602 = vmatpush.msrb.mxu0 %v1023_v32  ;;  %5715 = vmatpush.msrb.mxu1 %v1024_v14 }
 0x65e   : > { %v12919_v48 = vpop.f32.mrf.mxu3  ;;  %v12921_v19 = vpop.f32.mrf.mxu2 }
 0x65f   : > { %17511 = vst [vmem:[#allocation260_spill] sm:$0xff] %v12919_v48  ;;  %v12923_v2 = vpop.f32.mrf.mxu0  ;;  %v8536_v48 = vld [vmem:[%s9003_s26 + $0x208] sm:$0xff] }
 0x660   : > { %17512 = vst [vmem:[#allocation261_spill] sm:$0xff] %v12921_v19 }
 0x661   : > { %17513 = vst [vmem:[#allocation262_spill] sm:$0xff] %v12923_v2  ;;  %v12925_v58 = vpop.f32.mrf.mxu1 }
 0x662   : > { %17514 = vst [vmem:[#allocation263_spill] sm:$0xff] %v12925_v58  ;;  %8088 = vmatmul.msk.f32.gmra.mxu0 %vm1191_vm1, %v8514_v39 }
 0x663   : > { %8063 = vmatmul.msk.f32.gmra.mxu3 %vm1191_vm1, %v12550_v5  ;;  %8018 = vmatmul.msk.f32.gmra.mxu2 %vm1191_vm1, %v12626_v33 }
 0x664   : > { %8137 = vmatmul.msk.f32.gmra.mxu1 %vm1191_vm1, %v8514_v39  ;;  %v8515_v39 = vld [vmem:[%s9003_s26 + $0x70] sm:$0xff] }
 0x666   : > { %v12940_v5 = vpop.f32.mrf.mxu3  ;;  %v12942_v58 = vpop.f32.mrf.mxu2 }
 0x667   : > { %17515 = vst [vmem:[#allocation264_spill] sm:$0xff] %v12940_v5  ;;  %v12944_v2 = vpop.f32.mrf.mxu0  ;;  %v8535_v5 = vld [vmem:[%s9003_s26 + $0xe8] sm:$0xff] }
 0x668   : > { %17516 = vst [vmem:[#allocation265_spill] sm:$0xff] %v12942_v58 }
 0x669   : > { %17517 = vst [vmem:[#allocation266_spill] sm:$0xff] %v12944_v2  ;;  %v12946_v19 = vpop.f32.mrf.mxu1 }
 0x66a   : > { %17518 = vst [vmem:[#allocation267_spill] sm:$0xff] %v12946_v19  ;;  %8089 = vmatmul.msk.f32.gmra.mxu0 %vm1191_vm1, %v8515_v39 }
 0x66b   : > { %8064 = vmatmul.msk.f32.gmra.mxu3 %vm1191_vm1, %v12569_v31  ;;  %8019 = vmatmul.msk.f32.gmra.mxu2 %vm1191_vm1, %v12645_v0  ;;  %v8516_v31 = vld [vmem:[%s9003_s26 + $0x78] sm:$0xff] }
 0x66c   : > { %8138 = vmatmul.msk.f32.gmra.mxu1 %vm1191_vm1, %v8515_v39 }
 0x66e   : > { %v12955_v14 = vpop.f32.mrf.mxu3  ;;  %v12957_v32 = vpop.f32.mrf.mxu2 }
 0x66f   : > { %17519 = vst [vmem:[#allocation268_spill] sm:$0xff] %v12955_v14  ;;  %v12959_v58 = vpop.f32.mrf.mxu0 }
 0x670   : > { %17520 = vst [vmem:[#allocation269_spill] sm:$0xff] %v12957_v32 }
 0x671   : > { %17521 = vst [vmem:[#allocation270_spill] sm:$0xff] %v12959_v58  ;;  %v12961_v2 = vpop.f32.mrf.mxu1 }
 0x672   : > { %17522 = vst [vmem:[#allocation271_spill] sm:$0xff] %v12961_v2  ;;  %8090 = vmatmul.msk.f32.gmra.mxu0 %vm1191_vm1, %v8516_v31  ;;  %v1022_v2 = vld [vmem:[%s16515_s3 + $0x1b8] sm:$0xff] }
 0x673   : > { %8065 = vmatmul.msk.f32.gmra.mxu3 %vm1191_vm1, %v12588_v29  ;;  %8020 = vmatmul.msk.f32.gmra.mxu2 %vm1191_vm1, %v12664_v21  ;;  %v8517_v29 = vld [vmem:[%s9003_s26 + $0x80] sm:$0xff] }
 0x674   : > { %8139 = vmatmul.msk.f32.gmra.mxu1 %vm1191_vm1, %v8516_v31  ;;  %v1021_v31 = vld [vmem:[%s16515_s3 + $0x1b0] sm:$0xff] }
 0x675   : > { %5603 = vmatpush.msrb.mxu0 %v1021_v31  ;;  %5716 = vmatpush.msrb.mxu1 %v1022_v2 }
 0x676   : > { %v12970_v39 = vpop.f32.mrf.mxu3  ;;  %v12972_v19 = vpop.f32.mrf.mxu2 }
 0x677   : > { %17523 = vst [vmem:[#allocation272_spill] sm:$0xff] %v12970_v39  ;;  %v12974_v32 = vpop.f32.mrf.mxu0  ;;  %v8534_v39 = vld [vmem:[%s9003_s26 + $0x200] sm:$0xff] }
 0x678   : > { %17524 = vst [vmem:[#allocation273_spill] sm:$0xff] %v12972_v19 }
 0x679   : > { %17525 = vst [vmem:[#allocation274_spill] sm:$0xff] %v12974_v32  ;;  %v12976_v58 = vpop.f32.mrf.mxu1 }
 0x67a   : > { %17526 = vst [vmem:[#allocation275_spill] sm:$0xff] %v12976_v58  ;;  %8091 = vmatmul.msk.f32.gmra.mxu0 %vm1191_vm1, %v8517_v29 }
 0x67b   : > { %8066 = vmatmul.msk.f32.gmra.mxu3 %vm1191_vm1, %v12607_v6  ;;  %8021 = vmatmul.msk.f32.gmra.mxu2 %vm1191_vm1, %v12683_v26 }
 0x67c   : > { %8140 = vmatmul.msk.f32.gmra.mxu1 %vm1191_vm1, %v8517_v29  ;;  %v8518_v29 = vld [vmem:[%s9003_s26 + $0x88] sm:$0xff] }
 0x67e   : > { %v12991_v6 = vpop.f32.mrf.mxu3  ;;  %v12993_v58 = vpop.f32.mrf.mxu2 }
 0x67f   : > { %17527 = vst [vmem:[#allocation276_spill] sm:$0xff] %v12991_v6  ;;  %v12995_v32 = vpop.f32.mrf.mxu0 }
 0x680   : > { %17528 = vst [vmem:[#allocation277_spill] sm:$0xff] %v12993_v58 }
 0x681   : > { %17529 = vst [vmem:[#allocation278_spill] sm:$0xff] %v12995_v32  ;;  %v12997_v19 = vpop.f32.mrf.mxu1 }
 0x682   : > { %17530 = vst [vmem:[#allocation279_spill] sm:$0xff] %v12997_v19  ;;  %8092 = vmatmul.msk.f32.gmra.mxu0 %vm1191_vm1, %v8518_v29 }
 0x683   : > { %8067 = vmatmul.msk.f32.gmra.mxu3 %vm1191_vm1, %v12626_v33  ;;  %8022 = vmatmul.msk.f32.gmra.mxu2 %vm1191_vm1, %v12702_v27  ;;  %v8519_v33 = vld [vmem:[%s9003_s26 + $0x90] sm:$0xff] }
 0x684   : > { %8141 = vmatmul.msk.f32.gmra.mxu1 %vm1191_vm1, %v8518_v29 }
 0x686   : > { %v13006_v2 = vpop.f32.mrf.mxu3  ;;  %v13008_v31 = vpop.f32.mrf.mxu2 }
 0x687   : > { %17531 = vst [vmem:[#allocation280_spill] sm:$0xff] %v13006_v2  ;;  %v13010_v58 = vpop.f32.mrf.mxu0  ;;  %v8532_v2 = vld [vmem:[%s9003_s26 + $0x358] sm:$0xff] }
 0x688   : > { %17532 = vst [vmem:[#allocation281_spill] sm:$0xff] %v13008_v31 }
 0x689   : > { %17533 = vst [vmem:[#allocation282_spill] sm:$0xff] %v13010_v58  ;;  %v13012_v32 = vpop.f32.mrf.mxu1 }
 0x68a   : > { %17534 = vst [vmem:[#allocation283_spill] sm:$0xff] %v13012_v32  ;;  %8093 = vmatmul.msk.f32.gmra.mxu0 %vm1191_vm1, %v8519_v33  ;;  %v1020_v32 = vld [vmem:[%s16515_s3 + $0x1a8] sm:$0xff] }
 0x68b   : > { %8068 = vmatmul.msk.f32.gmra.mxu3 %vm1191_vm1, %v12645_v0  ;;  %8023 = vmatmul.msk.f32.gmra.mxu2 %vm1191_vm1, %v12721_v36  ;;  %v8520_v0 = vld [vmem:[%s9003_s26 + $0x98] sm:$0xff] }
 0x68c   : > { %8142 = vmatmul.msk.f32.gmra.mxu1 %vm1191_vm1, %v8519_v33  ;;  %v1019_v33 = vld [vmem:[%s16515_s3 + $0x1a0] sm:$0xff] }
 0x68d   : > { %5604 = vmatpush.msrb.mxu0 %v1019_v33  ;;  %5717 = vmatpush.msrb.mxu1 %v1020_v32 }
 0x68e   : > { %v13021_v29 = vpop.f32.mrf.mxu3  ;;  %v13023_v19 = vpop.f32.mrf.mxu2 }
 0x68f   : > { %17535 = vst [vmem:[#allocation284_spill] sm:$0xff] %v13021_v29  ;;  %v13025_v31 = vpop.f32.mrf.mxu0  ;;  %v8530_v29 = vld [vmem:[%s9003_s26 + $0x350] sm:$0xff] }
 0x690   : > { %17536 = vst [vmem:[#allocation285_spill] sm:$0xff] %v13023_v19 }
 0x691   : > { %17537 = vst [vmem:[#allocation286_spill] sm:$0xff] %v13025_v31  ;;  %v13027_v58 = vpop.f32.mrf.mxu1 }
 0x692   : > { %17538 = vst [vmem:[#allocation287_spill] sm:$0xff] %v13027_v58  ;;  %8094 = vmatmul.msk.f32.gmra.mxu0 %vm1191_vm1, %v8520_v0 }
 0x693   : > { %8069 = vmatmul.msk.f32.gmra.mxu3 %vm1191_vm1, %v12664_v21  ;;  %8024 = vmatmul.msk.f32.gmra.mxu2 %vm1191_vm1, %v12740_v40 }
 0x694   : > { %8143 = vmatmul.msk.f32.gmra.mxu1 %vm1191_vm1, %v8520_v0  ;;  %v8521_v0 = vld [vmem:[%s9003_s26 + $0xa0] sm:$0xff] }
 0x696   : > { %v13042_v21 = vpop.f32.mrf.mxu3  ;;  %v13044_v58 = vpop.f32.mrf.mxu2 }
 0x697   : > { %17539 = vst [vmem:[#allocation288_spill] sm:$0xff] %v13042_v21  ;;  %v13046_v31 = vpop.f32.mrf.mxu0 }
 0x698   : > { %17540 = vst [vmem:[#allocation289_spill] sm:$0xff] %v13044_v58 }
 0x699   : > { %17541 = vst [vmem:[#allocation290_spill] sm:$0xff] %v13046_v31  ;;  %v13048_v19 = vpop.f32.mrf.mxu1 }
 0x69a   : > { %17542 = vst [vmem:[#allocation291_spill] sm:$0xff] %v13048_v19  ;;  %8095 = vmatmul.msk.f32.gmra.mxu0 %vm1191_vm1, %v8521_v0 }
 0x69b   : > { %8070 = vmatmul.msk.f32.gmra.mxu3 %vm1191_vm1, %v12683_v26  ;;  %8025 = vmatmul.msk.f32.gmra.mxu2 %vm1191_vm1, %v12759_v38  ;;  %v8522_v26 = vld [vmem:[%s9003_s26 + $0xa8] sm:$0xff] }
 0x69c   : > { %8144 = vmatmul.msk.f32.gmra.mxu1 %vm1191_vm1, %v8521_v0 }
 0x69e   : > { %v13057_v32 = vpop.f32.mrf.mxu3  ;;  %v13059_v33 = vpop.f32.mrf.mxu2 }
 0x69f   : > { %17543 = vst [vmem:[#allocation292_spill] sm:$0xff] %v13057_v32  ;;  %v13061_v58 = vpop.f32.mrf.mxu0 }
 0x6a0   : > { %17544 = vst [vmem:[#allocation293_spill] sm:$0xff] %v13059_v33 }
 0x6a1   : > { %17545 = vst [vmem:[#allocation294_spill] sm:$0xff] %v13061_v58  ;;  %v13063_v31 = vpop.f32.mrf.mxu1 }
 0x6a2   : > { %17546 = vst [vmem:[#allocation295_spill] sm:$0xff] %v13063_v31  ;;  %8096 = vmatmul.msk.f32.gmra.mxu0 %vm1191_vm1, %v8522_v26  ;;  %v1018_v31 = vld [vmem:[%s16515_s3 + $0x198] sm:$0xff] }
 0x6a3   : > { %8071 = vmatmul.msk.f32.gmra.mxu3 %vm1191_vm1, %v12702_v27  ;;  %8026 = vmatmul.msk.f32.gmra.mxu2 %vm1191_vm1, %v12784_v37  ;;  %v8523_v27 = vld [vmem:[%s9003_s26 + $0xb0] sm:$0xff] }
 0x6a4   : > { %8145 = vmatmul.msk.f32.gmra.mxu1 %vm1191_vm1, %v8522_v26  ;;  %v1017_v26 = vld [vmem:[%s16515_s3 + $0x190] sm:$0xff] }
 0x6a5   : > { %5605 = vmatpush.msrb.mxu0 %v1017_v26  ;;  %5718 = vmatpush.msrb.mxu1 %v1018_v31 }
 0x6a6   : > { %v13072_v0 = vpop.f32.mrf.mxu3  ;;  %v13074_v19 = vpop.f32.mrf.mxu2 }
 0x6a7   : > { %17547 = vst [vmem:[#allocation296_spill] sm:$0xff] %v13072_v0  ;;  %v13076_v33 = vpop.f32.mrf.mxu0  ;;  %v8528_v0 = vld [vmem:[%s9003_s26 + $0x348] sm:$0xff] }
 0x6a8   : > { %17548 = vst [vmem:[#allocation297_spill] sm:$0xff] %v13074_v19 }
 0x6a9   : > { %17549 = vst [vmem:[#allocation298_spill] sm:$0xff] %v13076_v33  ;;  %v13078_v58 = vpop.f32.mrf.mxu1 }
 0x6aa   : > { %17550 = vst [vmem:[#allocation299_spill] sm:$0xff] %v13078_v58  ;;  %8097 = vmatmul.msk.f32.gmra.mxu0 %vm1191_vm1, %v8523_v27 }
 0x6ab   : > { %8072 = vmatmul.msk.f32.gmra.mxu3 %vm1191_vm1, %v12721_v36  ;;  %8027 = vmatmul.msk.f32.gmra.mxu2 %vm1191_vm1, %v12803_v11 }
 0x6ac   : > { %8146 = vmatmul.msk.f32.gmra.mxu1 %vm1191_vm1, %v8523_v27  ;;  %v8524_v27 = vld [vmem:[%s9003_s26 + $0xb8] sm:$0xff] }
 0x6ae   : > { %v13093_v36 = vpop.f32.mrf.mxu3  ;;  %v13095_v58 = vpop.f32.mrf.mxu2 }
 0x6af   : > { %17551 = vst [vmem:[#allocation300_spill] sm:$0xff] %v13093_v36  ;;  %v13097_v33 = vpop.f32.mrf.mxu0 }
 0x6b0   : > { %17552 = vst [vmem:[#allocation301_spill] sm:$0xff] %v13095_v58  ;;  %v8526_v58 = vld [vmem:[%s9003_s26 + $0x340] sm:$0xff] }
 0x6b1   : > { %17553 = vst [vmem:[#allocation302_spill] sm:$0xff] %v13097_v33  ;;  %v13099_v19 = vpop.f32.mrf.mxu1 }
 0x6b2   : > { %17554 = vst [vmem:[#allocation303_spill] sm:$0xff] %v13099_v19  ;;  %8098 = vmatmul.msk.f32.gmra.mxu0 %vm1191_vm1, %v8524_v27 }
 0x6b3   : > { %8073 = vmatmul.msk.f32.gmra.mxu3 %vm1191_vm1, %v12740_v40  ;;  %8028 = vmatmul.msk.f32.gmra.mxu2 %vm1191_vm1, %v12822_v3  ;;  %v8525_v40 = vld [vmem:[%s9003_s26 + $0xc0] sm:$0xff] }
 0x6b4   : > { %8147 = vmatmul.msk.f32.gmra.mxu1 %vm1191_vm1, %v8524_v27 }
 0x6b6   : > { %v13108_v31 = vpop.f32.mrf.mxu3  ;;  %v13110_v26 = vpop.f32.mrf.mxu2 }
 0x6b7   : > { %17555 = vst [vmem:[#allocation304_spill] sm:$0xff] %v13108_v31  ;;  %v13112_v33 = vpop.f32.mrf.mxu0 }
 0x6b8   : > { %17556 = vst [vmem:[#allocation305_spill] sm:$0xff] %v13110_v26 }
 0x6b9   : > { %v13114_v19 = vpop.f32.mrf.mxu1 }
 0x6ba   : > { %8099 = vmatmul.msk.f32.gmra.mxu0 %vm1191_vm1, %v8525_v40 }
 0x6bb   : > { %8074 = vmatmul.msk.f32.gmra.mxu3 %vm1191_vm1, %v12759_v38  ;;  %8029 = vmatmul.msk.f32.gmra.mxu2 %vm1191_vm1, %v8526_v58  ;;  %v8527_v38 = vld [vmem:[%s9003_s26 + $0xc8] sm:$0xff] }
 0x6bc   : > { %8148 = vmatmul.msk.f32.gmra.mxu1 %vm1191_vm1, %v8525_v40  ;;  %v1015_v40 = vld [vmem:[%s16515_s3 + $0x180] sm:$0xff] }
 0x6bd   : > { %5606 = vmatpush.msrb.mxu0 %v1015_v40 }
 0x6be   : > { %v13123_v27 = vpop.f32.mrf.mxu3  ;;  %v13125_v31 = vpop.f32.mrf.mxu2 }
 0x6bf   : > { %17557 = vst [vmem:[#allocation306_spill] sm:$0xff] %v13123_v27  ;;  %v13127_v26 = vpop.f32.mrf.mxu0 }
 0x6c0   : > { %17558 = vst [vmem:[#allocation307_spill] sm:$0xff] %v13125_v31  ;;  %v1016_v31 = vld [vmem:[%s16515_s3 + $0x188] sm:$0xff] }
 0x6c1   : > { %v13129_v36 = vpop.f32.mrf.mxu1  ;;  %5719 = vmatpush.msrb.mxu1 %v1016_v31 }
 0x6c2   : > { %8100 = vmatmul.msk.f32.gmra.mxu0 %vm1191_vm1, %v8527_v38 }
 0x6c3   : > { %8075 = vmatmul.msk.f32.gmra.mxu3 %vm1191_vm1, %v12784_v37  ;;  %8030 = vmatmul.msk.f32.gmra.mxu2 %vm1191_vm1, %v8528_v0 }
 0x6c4   : > { %8149 = vmatmul.msk.f32.gmra.mxu1 %vm1191_vm1, %v8527_v38  ;;  %v8529_v38 = vld [vmem:[%s9003_s26 + $0xd0] sm:$0xff] }
 0x6c6   : > { %v13144_v37 = vpop.f32.mrf.mxu3  ;;  %v13146_v27 = vpop.f32.mrf.mxu2 }
 0x6c7   : > { %17559 = vst [vmem:[#allocation308_spill] sm:$0xff] %v13144_v37  ;;  %v13148_v32 = vpop.f32.mrf.mxu0 }
 0x6c8   : > { %17560 = vst [vmem:[#allocation309_spill] sm:$0xff] %v13146_v27 }
 0x6c9   : > { %v13150_v21 = vpop.f32.mrf.mxu1 }
 0x6ca   : > { %8101 = vmatmul.msk.f32.gmra.mxu0 %vm1191_vm1, %v8529_v38 }
 0x6cb   : > { %8076 = vmatmul.msk.f32.gmra.mxu3 %vm1191_vm1, %v12803_v11  ;;  %8031 = vmatmul.msk.f32.gmra.mxu2 %vm1191_vm1, %v8530_v29  ;;  %v8531_v11 = vld [vmem:[%s9003_s26 + $0xd8] sm:$0xff] }
 0x6cc   : > { %8150 = vmatmul.msk.f32.gmra.mxu1 %vm1191_vm1, %v8529_v38 }
 0x6ce   : > { %v13159_v31 = vpop.f32.mrf.mxu3  ;;  %v13161_v40 = vpop.f32.mrf.mxu2 }
 0x6cf   : > { %17561 = vst [vmem:[#allocation310_spill] sm:$0xff] %v13159_v31  ;;  %v13163_v27 = vpop.f32.mrf.mxu0 }
 0x6d0   : > { %17562 = vst [vmem:[#allocation311_spill] sm:$0xff] %v13161_v40 }
 0x6d1   : > { %v13165_v37 = vpop.f32.mrf.mxu1 }
 0x6d2   : > { %8102 = vmatmul.msk.f32.gmra.mxu0 %vm1191_vm1, %v8531_v11 }
 0x6d3   : > { %8077 = vmatmul.msk.f32.gmra.mxu3 %vm1191_vm1, %v12822_v3  ;;  %8032 = vmatmul.msk.f32.gmra.mxu2 %vm1191_vm1, %v8532_v2  ;;  %v8533_v3 = vld [vmem:[%s9003_s26 + $0xe0] sm:$0xff] }
 0x6d4   : > { %8151 = vmatmul.msk.f32.gmra.mxu1 %vm1191_vm1, %v8531_v11  ;;  %v1013_v11 = vld [vmem:[%s16515_s3 + $0x170] sm:$0xff] }
 0x6d5   : > { %5607 = vmatpush.msrb.mxu0 %v1013_v11 }
 0x6d6   : > { %v13174_v38 = vpop.f32.mrf.mxu3  ;;  %v13176_v31 = vpop.f32.mrf.mxu2 }
 0x6d7   : > { %17563 = vst [vmem:[#allocation312_spill] sm:$0xff] %v13174_v38  ;;  %v13178_v40 = vpop.f32.mrf.mxu0 }
 0x6d8   : > { %17564 = vst [vmem:[#allocation313_spill] sm:$0xff] %v13176_v31  ;;  %v1014_v31 = vld [vmem:[%s16515_s3 + $0x178] sm:$0xff] }
 0x6d9   : > { %v13180_v6 = vpop.f32.mrf.mxu1  ;;  %5720 = vmatpush.msrb.mxu1 %v1014_v31 }
 0x6da   : > { %8103 = vmatmul.msk.f32.gmra.mxu0 %vm1191_vm1, %v8533_v3 }
 0x6db   : > { %8078 = vmatmul.msk.f32.gmra.mxu3 %vm1191_vm1, %v8526_v58  ;;  %8181 = vmatmul.msk.f32.vlgmr.msrb.gmra.mxu2 %vm1191_vm1, %v8534_v39 }
 0x6dc   : > { %8152 = vmatmul.msk.f32.gmra.mxu1 %vm1191_vm1, %v8533_v3 }
 0x6de   : > { %v13194_v58 = vpop.f32.mrf.mxu3  ;;  %v13196_v38 = vpop.f32.mrf.mxu2 }
 0x6df   : > { %17565 = vst [vmem:[#allocation314_spill] sm:$0xff] %v13194_v58  ;;  %v13198_v14 = vpop.f32.mrf.mxu0 }
 0x6e0   : > { %17566 = vst [vmem:[#allocation315_spill] sm:$0xff] %v13196_v38 }
 0x6e1   : > { %v13200_v3 = vpop.f32.mrf.mxu1 }
 0x6e2   : > { %8104 = vmatmul.msk.f32.gmra.mxu0 %vm1191_vm1, %v8535_v5 }
 0x6e3   : > { %8079 = vmatmul.msk.f32.gmra.mxu3 %vm1191_vm1, %v8528_v0  ;;  %8182 = vmatmul.msk.f32.gmra.mxu2 %vm1191_vm1, %v8536_v48  ;;  %v8537_v0 = vld [vmem:[%s9003_s26 + $0xf0] sm:$0xff] }
 0x6e4   : > { %8153 = vmatmul.msk.f32.gmra.mxu1 %vm1191_vm1, %v8535_v5  ;;  %v8538_v5 = vld [vmem:[%s9003_s26 + $0x210] sm:$0xff] }
 0x6e6   : > { %v13208_v31 = vpop.f32.mrf.mxu3  ;;  %v13210_v11 = vpop.f32.mrf.mxu2 }
 0x6e7   : > { %17567 = vst [vmem:[#allocation316_spill] sm:$0xff] %v13208_v31  ;;  %v13212_v38 = vpop.f32.mrf.mxu0 }
 0x6e8   : > { %17568 = vst [vmem:[#allocation317_spill] sm:$0xff] %v13210_v11 }
 0x6e9   : > { %v13214_v58 = vpop.f32.mrf.mxu1 }
 0x6ea   : > { %17569 = vst [vmem:[#allocation318_spill] sm:$0xff] %v13214_v58  ;;  %8105 = vmatmul.msk.f32.gmra.mxu0 %vm1191_vm1, %v8537_v0  ;;  %v8567_v58 = vld [vmem:[%s9003_s26 + $0x168] sm:$0xff] }
 0x6eb   : > { %8080 = vmatmul.msk.f32.gmra.mxu3 %vm1191_vm1, %v8530_v29  ;;  %8183 = vmatmul.msk.f32.gmra.mxu2 %vm1191_vm1, %v8538_v5  ;;  %v8539_v29 = vld [vmem:[%s9003_s26 + $0xf8] sm:$0xff] }
 0x6ec   : > { %8154 = vmatmul.msk.f32.gmra.mxu1 %vm1191_vm1, %v8537_v0  ;;  %v8540_v0 = vld [vmem:[%s9003_s26 + $0x218] sm:$0xff] }
 0x6ee   : > { %v13222_v35 = vpop.f32.mrf.mxu3  ;;  %v13224_v31 = vpop.f32.mrf.mxu2 }
 0x6ef   : > { %17570 = vst [vmem:[#allocation319_spill] sm:$0xff] %v13222_v35  ;;  %v13226_v11 = vpop.f32.mrf.mxu0  ;;  %v1012_v35 = vld [vmem:[%s16515_s3 + $0x168] sm:$0xff] }
 0x6f0   : > { %17571 = vst [vmem:[#allocation320_spill] sm:$0xff] %v13224_v31  ;;  %v1011_v31 = vld [vmem:[%s16515_s3 + $0x160] sm:$0xff]  ;;  %5721 = vmatpush.msrb.mxu1 %v1012_v35 }
 0x6f1   : > { %17572 = vst [vmem:[#allocation321_spill] sm:$0xff] %v13226_v11  ;;  %v13228_v50 = vpop.f32.mrf.mxu1  ;;  %5608 = vmatpush.msrb.mxu0 %v1011_v31  ;;  %v8542_v11 = vld [vmem:[%s9003_s26 + $0x220] sm:$0xff] }
 0x6f2   : > { %17573 = vst [vmem:[#allocation322_spill] sm:$0xff] %v13228_v50  ;;  %8106 = vmatmul.msk.f32.gmra.mxu0 %vm1191_vm1, %v8539_v29  ;;  %v8541_v50 = vld [vmem:[%s9003_s26 + $0x100] sm:$0xff] }
 0x6f3   : > { %8081 = vmatmul.msk.f32.gmra.mxu3 %vm1191_vm1, %v8532_v2  ;;  %8184 = vmatmul.msk.f32.gmra.mxu2 %vm1191_vm1, %v8540_v0 }
 0x6f4   : > { %8155 = vmatmul.msk.f32.gmra.mxu1 %vm1191_vm1, %v8539_v29 }
 0x6f6   : > { %v13242_v2 = vpop.f32.mrf.mxu3  ;;  %v13244_v28 = vpop.f32.mrf.mxu2 }
 0x6f7   : > { %17574 = vst [vmem:[#allocation323_spill] sm:$0xff] %v13242_v2  ;;  %v13246_v49 = vpop.f32.mrf.mxu0 }
 0x6f8   : > { %17575 = vst [vmem:[#allocation324_spill] sm:$0xff] %v13244_v28 }
 0x6f9   : > { %17576 = vst [vmem:[#allocation325_spill] sm:$0xff] %v13246_v49  ;;  %v13248_v29 = vpop.f32.mrf.mxu1  ;;  %v8548_v49 = vld [vmem:[%s9003_s26 + $0x238] sm:$0xff] }
 0x6fa   : > { %17577 = vst [vmem:[#allocation326_spill] sm:$0xff] %v13248_v29  ;;  %8107 = vmatmul.msk.f32.gmra.mxu0 %vm1191_vm1, %v8541_v50  ;;  %v8543_v29 = vld [vmem:[%s9003_s26 + $0x108] sm:$0xff] }
 0x6fb   : > { %8230 = vmatmul.msk.f32.vlgmr.msra.gmra.mxu3 %vm1191_vm1, %v8534_v39  ;;  %8185 = vmatmul.msk.f32.gmra.mxu2 %vm1191_vm1, %v8542_v11 }
 0x6fc   : > { %8156 = vmatmul.msk.f32.gmra.mxu1 %vm1191_vm1, %v8541_v50  ;;  %v8544_v50 = vld [vmem:[%s9003_s26 + $0x228] sm:$0xff] }
 0x6fe   : > { %v13256_v35 = vpop.f32.mrf.mxu3  ;;  %v13258_v31 = vpop.f32.mrf.mxu2 }
 0x6ff   : > { %17578 = vst [vmem:[#allocation327_spill] sm:$0xff] %v13256_v35  ;;  %v13260_v28 = vpop.f32.mrf.mxu0 }
 0x700   : > { %17579 = vst [vmem:[#allocation328_spill] sm:$0xff] %v13258_v31 }
 0x701   : > { %17580 = vst [vmem:[#allocation329_spill] sm:$0xff] %v13260_v28  ;;  %v13262_v2 = vpop.f32.mrf.mxu1 }
 0x702   : > { %17581 = vst [vmem:[#allocation330_spill] sm:$0xff] %v13262_v2  ;;  %8108 = vmatmul.msk.f32.gmra.mxu0 %vm1191_vm1, %v8543_v29  ;;  %v8545_v2 = vld [vmem:[%s9003_s26 + $0x110] sm:$0xff] }
 0x703   : > { %8231 = vmatmul.msk.f32.gmra.mxu3 %vm1191_vm1, %v8536_v48  ;;  %8186 = vmatmul.msk.f32.gmra.mxu2 %vm1191_vm1, %v8544_v50  ;;  %v8546_v48 = vld [vmem:[%s9003_s26 + $0x230] sm:$0xff] }
 0x704   : > { %8157 = vmatmul.msk.f32.gmra.mxu1 %vm1191_vm1, %v8543_v29  ;;  %v1009_v29 = vld [vmem:[%s16515_s3 + $0x150] sm:$0xff] }
 0x705   : > { %5609 = vmatpush.msrb.mxu0 %v1009_v29  ;;  %v998_v29 = vld [vmem:[%s16515_s3 + $0xf8] sm:$0xff] }
 0x706   : > { %v13270_v39 = vpop.f32.mrf.mxu3  ;;  %v13272_v35 = vpop.f32.mrf.mxu2  ;;  %5938 = vmatpush.msrb.mxu3 %v998_v29 }
 0x707   : > { %17582 = vst [vmem:[#allocation331_spill] sm:$0xff] %v13270_v39  ;;  %v13274_v31 = vpop.f32.mrf.mxu0 }
 0x708   : > { %17583 = vst [vmem:[#allocation332_spill] sm:$0xff] %v13272_v35  ;;  %v1010_v35 = vld [vmem:[%s16515_s3 + $0x158] sm:$0xff] }
 0x709   : > { %17584 = vst [vmem:[#allocation333_spill] sm:$0xff] %v13274_v31  ;;  %v13276_v28 = vpop.f32.mrf.mxu1  ;;  %5722 = vmatpush.msrb.mxu1 %v1010_v35  ;;  %v8547_v31 = vld [vmem:[%s9003_s26 + $0x118] sm:$0xff]  ;;  %v997_v35 = vld [vmem:[%s16515_s3 + $0xf0] sm:$0xff] }
 0x70a   : > { %17585 = vst [vmem:[#allocation334_spill] sm:$0xff] %v13276_v28  ;;  %8109 = vmatmul.msk.f32.gmra.mxu0 %vm1191_vm1, %v8545_v2  ;;  %5825 = vmatpush.msra.mxu2 %v997_v35 }
 0x70b   : > { %8232 = vmatmul.msk.f32.gmra.mxu3 %vm1191_vm1, %v8538_v5  ;;  %8187 = vmatmul.msk.f32.gmra.mxu2 %vm1191_vm1, %v8546_v48 }
 0x70c   : > { %8158 = vmatmul.msk.f32.gmra.mxu1 %vm1191_vm1, %v8545_v2 }
 0x70e   : > { %v13290_v39 = vpop.f32.mrf.mxu3  ;;  %v13292_v28 = vpop.f32.mrf.mxu2 }
 0x70f   : > { %17586 = vst [vmem:[#allocation335_spill] sm:$0xff] %v13290_v39  ;;  %v13294_v5 = vpop.f32.mrf.mxu0 }
 0x710   : > { %17587 = vst [vmem:[#allocation336_spill] sm:$0xff] %v13292_v28 }
 0x711   : > { %17588 = vst [vmem:[#allocation337_spill] sm:$0xff] %v13294_v5  ;;  %v13296_v2 = vpop.f32.mrf.mxu1  ;;  %v8550_v5 = vld [vmem:[%s9003_s26 + $0x240] sm:$0xff] }
 0x712   : > { %17589 = vst [vmem:[#allocation338_spill] sm:$0xff] %v13296_v2  ;;  %8110 = vmatmul.msk.f32.gmra.mxu0 %vm1191_vm1, %v8547_v31  ;;  %v8549_v2 = vld [vmem:[%s9003_s26 + $0x120] sm:$0xff] }
 0x713   : > { %8233 = vmatmul.msk.f32.gmra.mxu3 %vm1191_vm1, %v8540_v0  ;;  %8188 = vmatmul.msk.f32.gmra.mxu2 %vm1191_vm1, %v8548_v49 }
 0x714   : > { %8159 = vmatmul.msk.f32.gmra.mxu1 %vm1191_vm1, %v8547_v31 }
 0x716   : > { %v13310_v28 = vpop.f32.mrf.mxu3  ;;  %v13312_v0 = vpop.f32.mrf.mxu2 }
 0x717   : > { %17590 = vst [vmem:[#allocation339_spill] sm:$0xff] %v13310_v28  ;;  %v13314_v39 = vpop.f32.mrf.mxu0 }
 0x718   : > { %17591 = vst [vmem:[#allocation340_spill] sm:$0xff] %v13312_v0 }
 0x719   : > { %17592 = vst [vmem:[#allocation341_spill] sm:$0xff] %v13314_v39  ;;  %v13316_v31 = vpop.f32.mrf.mxu1  ;;  %v8554_v39 = vld [vmem:[%s9003_s26 + $0x250] sm:$0xff] }
 0x71a   : > { %17593 = vst [vmem:[#allocation342_spill] sm:$0xff] %v13316_v31  ;;  %8111 = vmatmul.msk.f32.gmra.mxu0 %vm1191_vm1, %v8549_v2  ;;  %v8551_v31 = vld [vmem:[%s9003_s26 + $0x128] sm:$0xff] }
 0x71b   : > { %8234 = vmatmul.msk.f32.gmra.mxu3 %vm1191_vm1, %v8542_v11  ;;  %8189 = vmatmul.msk.f32.gmra.mxu2 %vm1191_vm1, %v8550_v5  ;;  %v8552_v11 = vld [vmem:[%s9003_s26 + $0x248] sm:$0xff] }
 0x71c   : > { %8160 = vmatmul.msk.f32.gmra.mxu1 %vm1191_vm1, %v8549_v2  ;;  %v1007_v2 = vld [vmem:[%s16515_s3 + $0x140] sm:$0xff] }
 0x71d   : > { %5610 = vmatpush.msrb.mxu0 %v1007_v2  ;;  %v996_v2 = vld [vmem:[%s16515_s3 + $0xe8] sm:$0xff] }
 0x71e   : > { %v13324_v35 = vpop.f32.mrf.mxu3  ;;  %v13326_v29 = vpop.f32.mrf.mxu2  ;;  %5939 = vmatpush.msrb.mxu3 %v996_v2 }
 0x71f   : > { %17594 = vst [vmem:[#allocation343_spill] sm:$0xff] %v13324_v35  ;;  %v13328_v0 = vpop.f32.mrf.mxu0 }
 0x720   : > { %17595 = vst [vmem:[#allocation344_spill] sm:$0xff] %v13326_v29  ;;  %v1008_v29 = vld [vmem:[%s16515_s3 + $0x148] sm:$0xff] }
 0x721   : > { %17596 = vst [vmem:[#allocation345_spill] sm:$0xff] %v13328_v0  ;;  %v13330_v28 = vpop.f32.mrf.mxu1  ;;  %5723 = vmatpush.msrb.mxu1 %v1008_v29  ;;  %v8553_v0 = vld [vmem:[%s9003_s26 + $0x130] sm:$0xff]  ;;  %v995_v29 = vld [vmem:[%s16515_s3 + $0xe0] sm:$0xff] }
 0x722   : > { %17597 = vst [vmem:[#allocation346_spill] sm:$0xff] %v13330_v28  ;;  %8112 = vmatmul.msk.f32.gmra.mxu0 %vm1191_vm1, %v8551_v31  ;;  %5826 = vmatpush.msra.mxu2 %v995_v29 }
 0x723   : > { %8235 = vmatmul.msk.f32.gmra.mxu3 %vm1191_vm1, %v8544_v50  ;;  %8190 = vmatmul.msk.f32.gmra.mxu2 %vm1191_vm1, %v8552_v11 }
 0x724   : > { %8161 = vmatmul.msk.f32.gmra.mxu1 %vm1191_vm1, %v8551_v31 }
 0x726   : > { %v13344_v35 = vpop.f32.mrf.mxu3  ;;  %v13346_v28 = vpop.f32.mrf.mxu2 }
 0x727   : > { %17598 = vst [vmem:[#allocation347_spill] sm:$0xff] %v13344_v35  ;;  %v13348_v50 = vpop.f32.mrf.mxu0 }
 0x728   : > { %17599 = vst [vmem:[#allocation348_spill] sm:$0xff] %v13346_v28 }
 0x729   : > { %17600 = vst [vmem:[#allocation349_spill] sm:$0xff] %v13348_v50  ;;  %v13350_v31 = vpop.f32.mrf.mxu1  ;;  %v8556_v50 = vld [vmem:[%s9003_s26 + $0x258] sm:$0xff] }
 0x72a   : > { %17601 = vst [vmem:[#allocation350_spill] sm:$0xff] %v13350_v31  ;;  %8113 = vmatmul.msk.f32.gmra.mxu0 %vm1191_vm1, %v8553_v0  ;;  %v8555_v31 = vld [vmem:[%s9003_s26 + $0x138] sm:$0xff] }
 0x72b   : > { %8236 = vmatmul.msk.f32.gmra.mxu3 %vm1191_vm1, %v8546_v48  ;;  %8191 = vmatmul.msk.f32.gmra.mxu2 %vm1191_vm1, %v8554_v39 }
 0x72c   : > { %8162 = vmatmul.msk.f32.gmra.mxu1 %vm1191_vm1, %v8553_v0 }
 0x72e   : > { %v13364_v28 = vpop.f32.mrf.mxu3  ;;  %v13366_v48 = vpop.f32.mrf.mxu2 }
 0x72f   : > { %17602 = vst [vmem:[#allocation351_spill] sm:$0xff] %v13364_v28  ;;  %v13368_v35 = vpop.f32.mrf.mxu0 }
 0x730   : > { %17603 = vst [vmem:[#allocation352_spill] sm:$0xff] %v13366_v48 }
 0x731   : > { %17604 = vst [vmem:[#allocation353_spill] sm:$0xff] %v13368_v35  ;;  %v13370_v0 = vpop.f32.mrf.mxu1  ;;  %v8560_v35 = vld [vmem:[%s9003_s26 + $0x268] sm:$0xff] }
 0x732   : > { %17605 = vst [vmem:[#allocation354_spill] sm:$0xff] %v13370_v0  ;;  %8114 = vmatmul.msk.f32.gmra.mxu0 %vm1191_vm1, %v8555_v31  ;;  %v8557_v0 = vld [vmem:[%s9003_s26 + $0x140] sm:$0xff] }
 0x733   : > { %8237 = vmatmul.msk.f32.gmra.mxu3 %vm1191_vm1, %v8548_v49  ;;  %8192 = vmatmul.msk.f32.gmra.mxu2 %vm1191_vm1, %v8556_v50  ;;  %v8558_v49 = vld [vmem:[%s9003_s26 + $0x260] sm:$0xff] }
 0x734   : > { %8163 = vmatmul.msk.f32.gmra.mxu1 %vm1191_vm1, %v8555_v31  ;;  %v1005_v31 = vld [vmem:[%s16515_s3 + $0x130] sm:$0xff] }
 0x735   : > { %5611 = vmatpush.msrb.mxu0 %v1005_v31  ;;  %v994_v31 = vld [vmem:[%s16515_s3 + $0xd8] sm:$0xff] }
 0x736   : > { %v13378_v29 = vpop.f32.mrf.mxu3  ;;  %v13380_v2 = vpop.f32.mrf.mxu2  ;;  %5940 = vmatpush.msrb.mxu3 %v994_v31 }
 0x737   : > { %17606 = vst [vmem:[#allocation355_spill] sm:$0xff] %v13378_v29  ;;  %v13382_v48 = vpop.f32.mrf.mxu0 }
 0x738   : > { %17607 = vst [vmem:[#allocation356_spill] sm:$0xff] %v13380_v2  ;;  %v1006_v2 = vld [vmem:[%s16515_s3 + $0x138] sm:$0xff] }
 0x739   : > { %17608 = vst [vmem:[#allocation357_spill] sm:$0xff] %v13382_v48  ;;  %v13384_v28 = vpop.f32.mrf.mxu1  ;;  %5724 = vmatpush.msrb.mxu1 %v1006_v2  ;;  %v8559_v48 = vld [vmem:[%s9003_s26 + $0x148] sm:$0xff]  ;;  %v993_v2 = vld [vmem:[%s16515_s3 + $0xd0] sm:$0xff] }
 0x73a   : > { %17609 = vst [vmem:[#allocation358_spill] sm:$0xff] %v13384_v28  ;;  %8115 = vmatmul.msk.f32.gmra.mxu0 %vm1191_vm1, %v8557_v0  ;;  %5827 = vmatpush.msra.mxu2 %v993_v2 }
 0x73b   : > { %8238 = vmatmul.msk.f32.gmra.mxu3 %vm1191_vm1, %v8550_v5  ;;  %8193 = vmatmul.msk.f32.gmra.mxu2 %vm1191_vm1, %v8558_v49 }
 0x73c   : > { %8164 = vmatmul.msk.f32.gmra.mxu1 %vm1191_vm1, %v8557_v0 }
 0x73e   : > { %v13398_v29 = vpop.f32.mrf.mxu3  ;;  %v13400_v28 = vpop.f32.mrf.mxu2 }
 0x73f   : > { %17610 = vst [vmem:[#allocation359_spill] sm:$0xff] %v13398_v29  ;;  %v13402_v5 = vpop.f32.mrf.mxu0 }
 0x740   : > { %17611 = vst [vmem:[#allocation360_spill] sm:$0xff] %v13400_v28 }
 0x741   : > { %17612 = vst [vmem:[#allocation361_spill] sm:$0xff] %v13402_v5  ;;  %v13404_v0 = vpop.f32.mrf.mxu1  ;;  %v8562_v5 = vld [vmem:[%s9003_s26 + $0x270] sm:$0xff] }
 0x742   : > { %17613 = vst [vmem:[#allocation362_spill] sm:$0xff] %v13404_v0  ;;  %8116 = vmatmul.msk.f32.gmra.mxu0 %vm1191_vm1, %v8559_v48  ;;  %v8561_v0 = vld [vmem:[%s9003_s26 + $0x150] sm:$0xff] }
 0x743   : > { %8239 = vmatmul.msk.f32.gmra.mxu3 %vm1191_vm1, %v8552_v11  ;;  %8194 = vmatmul.msk.f32.gmra.mxu2 %vm1191_vm1, %v8560_v35 }
 0x744   : > { %8165 = vmatmul.msk.f32.gmra.mxu1 %vm1191_vm1, %v8559_v48 }
 0x746   : > { %v13418_v28 = vpop.f32.mrf.mxu3  ;;  %v13420_v11 = vpop.f32.mrf.mxu2 }
 0x747   : > { %17614 = vst [vmem:[#allocation363_spill] sm:$0xff] %v13418_v28  ;;  %v13422_v29 = vpop.f32.mrf.mxu0 }
 0x748   : > { %17615 = vst [vmem:[#allocation364_spill] sm:$0xff] %v13420_v11 }
 0x749   : > { %17616 = vst [vmem:[#allocation365_spill] sm:$0xff] %v13422_v29  ;;  %v13424_v48 = vpop.f32.mrf.mxu1 }
 0x74a   : > { %17617 = vst [vmem:[#allocation366_spill] sm:$0xff] %v13424_v48  ;;  %8117 = vmatmul.msk.f32.gmra.mxu0 %vm1191_vm1, %v8561_v0  ;;  %v8563_v48 = vld [vmem:[%s9003_s26 + $0x158] sm:$0xff] }
 0x74b   : > { %8240 = vmatmul.msk.f32.gmra.mxu3 %vm1191_vm1, %v8554_v39  ;;  %8195 = vmatmul.msk.f32.gmra.mxu2 %vm1191_vm1, %v8562_v5  ;;  %v13445_v39 = vld [vmem:[%s9003_s26 + $0x278] sm:$0xff] }
 0x74c   : > { %8166 = vmatmul.msk.f32.gmra.mxu1 %vm1191_vm1, %v8561_v0  ;;  %v1003_v0 = vld [vmem:[%s16515_s3 + $0x120] sm:$0xff] }
 0x74d   : > { %5612 = vmatpush.msrb.mxu0 %v1003_v0 }
 0x74e   : > { %v13432_v2 = vpop.f32.mrf.mxu3  ;;  %v13434_v31 = vpop.f32.mrf.mxu2 }
 0x74f   : > { %17618 = vst [vmem:[#allocation367_spill] sm:$0xff] %v13432_v2  ;;  %v13436_v11 = vpop.f32.mrf.mxu0 }
 0x750   : > { %17619 = vst [vmem:[#allocation368_spill] sm:$0xff] %v13434_v31  ;;  %v1004_v31 = vld [vmem:[%s16515_s3 + $0x128] sm:$0xff] }
 0x751   : > { %17620 = vst [vmem:[#allocation369_spill] sm:$0xff] %v13436_v11  ;;  %v13438_v28 = vpop.f32.mrf.mxu1  ;;  %5725 = vmatpush.msrb.mxu1 %v1004_v31  ;;  %v17626_v11 = vld [vmem:[#allocation120_spill] sm:$0xff]  ;;  %v13471_v31 = vld [vmem:[%s9003_s26 + $0x280] sm:$0xff] }
 0x752   : > { %17621 = vst [vmem:[#allocation370_spill] sm:$0xff] %v13438_v28  ;;  %8118 = vmatmul.msk.f32.gmra.mxu0 %vm1191_vm1, %v8563_v48  ;;  %v3785_v29 = vadd.f32 %v12222_v1, %v17626_v11  ;;  %v992_v1 = vld [vmem:[%s16515_s3 + $0xc8] sm:$0xff] }
 0x753   : > { %8241 = vmatmul.msk.f32.gmra.mxu3 %vm1191_vm1, %v8556_v50  ;;  %8196 = vmatmul.msk.f32.gmra.mxu2 %vm1191_vm1, %v13445_v39 }
 0x754   : > { %8167 = vmatmul.msk.f32.gmra.mxu1 %vm1191_vm1, %v8563_v48  ;;  %v4411_v0 = vadd.f32 %v12619_v10, %v3785_v29  ;;  %5941 = vmatpush.msrb.mxu3 %v992_v1 }
 0x756   : > { %v13455_v2 = vpop.f32.mrf.mxu3  ;;  %v13457_v50 = vpop.f32.mrf.mxu2  ;;  %v4829_v10 = vadd.f32 %v13112_v33, %v4411_v0 }
 0x757   : > { %17622 = vst [vmem:[#allocation371_spill] sm:$0xff] %v13455_v2  ;;  %v13459_v48 = vpop.f32.mrf.mxu0 }
 0x758   : > { %17623 = vst [vmem:[#allocation372_spill] sm:$0xff] %v13457_v50  ;;  %v991_v50 = vld [vmem:[%s16515_s3 + $0xc0] sm:$0xff] }
 0x759   : > { %17624 = vst [vmem:[#allocation373_spill] sm:$0xff] %v13459_v48  ;;  %v13461_v28 = vpop.f32.mrf.mxu1  ;;  %5828 = vmatpush.msra.mxu2 %v991_v50  ;;  %v13498_v50 = vld [vmem:[%s9003_s26 + $0x288] sm:$0xff] }
 0x75a   : > { %17625 = vst [vmem:[#allocation374_spill] sm:$0xff] %v13461_v28  ;;  %8119 = vmatmul.msk.f32.gmra.mxu0 %vm1191_vm1, %v8565_v12  ;;  %v17628_v28 = vld [vmem:[#allocation107_spill] sm:$0xff] }
 0x75b   : > { %8242 = vmatmul.msk.f32.gmra.mxu3 %vm1191_vm1, %v8558_v49  ;;  %8197 = vmatmul.msk.f32.gmra.mxu2 %vm1191_vm1, %v13471_v31  ;;  %v3788_v48 = vadd.f32 %v12241_v22, %v17628_v28 }
 0x75c   : > { %8168 = vmatmul.msk.f32.gmra.mxu1 %vm1191_vm1, %v8565_v12 }
 0x75d   : > { %v4413_v33 = vadd.f32 %v12638_v4, %v3788_v48  ;;  %v3791_v4 = vadd.f32 %v12260_v62, %v11674_v13  ;;  %v13519_v48 = vld [vmem:[%s9003_s26 + $0x290] sm:$0xff]  ;;  %v1002_v13 = vld [vmem:[%s16515_s3 + $0x118] sm:$0xff] }
 0x75e   : > { %v13482_v29 = vpop.f32.mrf.mxu3  ;;  %v4954_v12 = vpop.f32.mrf.mxu2  ;;  %5726 = vmatpush.msrb.mxu1 %v1002_v13 }
 0x75f   : > { %17627 = vst [vmem:[#allocation120_spill] sm:$0xff] %v13482_v29  ;;  %v13484_v49 = vadd.f32 %v4954_v12, %v4829_v10  ;;  %v13486_v11 = vpop.f32.mrf.mxu0  ;;  %v4831_v0 = vadd.f32 %v13127_v26, %v4413_v33  ;;  %v4415_v26 = vadd.f32 %v12657_v15, %v3791_v4  ;;  %v1001_v12 = vld [vmem:[%s16515_s3 + $0x110] sm:$0xff]  ;;  %v3794_v4 = vadd.f32 %v12279_v24, %v11700_v56  ;;  %v990_v24 = vld [vmem:[%s16515_s3 + $0xb8] sm:$0xff]  ;;  %v17699_v29 = vld [vmem:[#allocation63_spill] sm:$0xff] }
 0x760   : > { %5613 = vmatpush.msrb.mxu0 %v1001_v12  ;;  %v989_v56 = vld [vmem:[%s16515_s3 + $0xb0] sm:$0xff]  ;;  %5942 = vmatpush.msrb.mxu3 %v990_v24  ;;  %v3949_v24 = vadd.f32 %v12243_v8, %v11744_v7  ;;  %v13601_v7 = vld [vmem:[%s9003_s26 + $0x2a8] sm:$0xff] }
 0x761   : > { %v13488_v2 = vpop.f32.mrf.mxu1  ;;  %v4833_v62 = vadd.f32 %v13148_v32, %v4415_v26  ;;  %v4417_v32 = vadd.f32 %v12676_v44, %v3794_v4  ;;  %v13547_v26 = vld [vmem:[%s9003_s26 + $0x298] sm:$0xff]  ;;  %5829 = vmatpush.msra.mxu2 %v989_v56 }
 0x762   : > { %8120 = vmatmul.msk.f32.gmra.mxu0 %vm1191_vm1, %v8567_v58 }
 0x763   : > { %8243 = vmatmul.msk.f32.gmra.mxu3 %vm1191_vm1, %v8560_v35  ;;  %8198 = vmatmul.msk.f32.gmra.mxu2 %vm1191_vm1, %v13498_v50  ;;  %v4835_v44 = vadd.f32 %v13163_v27, %v4417_v32  ;;  %v13575_v27 = vld [vmem:[%s9003_s26 + $0x2a0] sm:$0xff] }
 0x764   : > { %8169 = vmatmul.msk.f32.gmra.mxu1 %vm1191_vm1, %v8567_v58  ;;  %v8569_v58 = vld [vmem:[%s9003_s26 + $0x170] sm:$0xff] }
 0x766   : > { %v13503_v1 = vpop.f32.mrf.mxu3  ;;  %v4957_v22 = vpop.f32.mrf.mxu2 }
 0x767   : > { %17629 = vst [vmem:[#allocation107_spill] sm:$0xff] %v13503_v1  ;;  %v13505_v28 = vadd.f32 %v4957_v22, %v4831_v0  ;;  %v13507_v10 = vpop.f32.mrf.mxu0 }
 0x769   : > { %v13509_v35 = vpop.f32.mrf.mxu1 }
 0x76a   : > { %8121 = vmatmul.msk.f32.gmra.mxu0 %vm1191_vm1, %v8569_v58 }
 0x76b   : > { %8244 = vmatmul.msk.f32.gmra.mxu3 %vm1191_vm1, %v8562_v5  ;;  %8199 = vmatmul.msk.f32.gmra.mxu2 %vm1191_vm1, %v13519_v48 }
 0x76c   : > { %8170 = vmatmul.msk.f32.gmra.mxu1 %vm1191_vm1, %v8569_v58  ;;  %v8571_v58 = vld [vmem:[%s9003_s26 + $0x178] sm:$0xff] }
 0x76e   : > { %v13530_v15 = vpop.f32.mrf.mxu3  ;;  %v4960_v5 = vpop.f32.mrf.mxu2 }
 0x76f   : > { %17630 = vst [vmem:[#allocation375_spill] sm:$0xff] %v13530_v15  ;;  %v13532_v33 = vadd.f32 %v4960_v5, %v4833_v62  ;;  %v13534_v0 = vpop.f32.mrf.mxu0  ;;  %v3946_v5 = vadd.f32 %v12224_v46, %v11721_v16  ;;  %v8573_v15 = vld [vmem:[%s9003_s26 + $0x180] sm:$0xff] }
 0x771   : > { %v13536_v22 = vpop.f32.mrf.mxu1 }
 0x772   : > { %8122 = vmatmul.msk.f32.gmra.mxu0 %vm1191_vm1, %v8571_v58 }
 0x773   : > { %8245 = vmatmul.msk.f32.gmra.mxu3 %vm1191_vm1, %v13445_v39  ;;  %8200 = vmatmul.msk.f32.gmra.mxu2 %vm1191_vm1, %v13547_v26 }
 0x774   : > { %8171 = vmatmul.msk.f32.gmra.mxu1 %vm1191_vm1, %v8571_v58  ;;  %v4412_v58 = vadd.f32 %v12693_v57, %v3946_v5  ;;  %v17633_v5 = vld [vmem:[#allocation100_spill] sm:$0xff] }
 0x776   : > { %v13558_v39 = vpop.f32.mrf.mxu3  ;;  %v4963_v12 = vpop.f32.mrf.mxu2  ;;  %v4830_v16 = vadd.f32 %v13114_v19, %v4412_v58  ;;  %v8575_v19 = vld [vmem:[%s9003_s26 + $0x188] sm:$0xff]  ;;  %v999_v58 = vld [vmem:[%s16515_s3 + $0x100] sm:$0xff] }
 0x777   : > { %17631 = vst [vmem:[#allocation376_spill] sm:$0xff] %v13558_v39  ;;  %v13560_v13 = vadd.f32 %v4963_v12, %v4835_v44  ;;  %v13562_v62 = vpop.f32.mrf.mxu0  ;;  %v4414_v44 = vadd.f32 %v12712_v9, %v3949_v24  ;;  %v17632_v12 = vld [vmem:[#allocation47_spill] sm:$0xff]  ;;  %5614 = vmatpush.msrb.mxu0 %v999_v58 }
 0x778   : > { %v17634_v39 = vmax.f32 %v17632_v12, %v17633_v5 }
 0x779   : > { %v13566_v4 = vpop.f32.mrf.mxu1  ;;  %v4832_v8 = vadd.f32 %v13129_v36, %v4414_v44  ;;  %v3952_v36 = vadd.f32 %v12262_v59, %v11767_v53  ;;  %v17636_v44 = vld [vmem:[#allocation101_spill] sm:$0xff] }
 0x77a   : > { %8123 = vmatmul.msk.f32.gmra.mxu0 %vm1191_vm1, %v8573_v15  ;;  %v13633_v53 = vld [vmem:[%s9003_s26 + $0x2b0] sm:$0xff] }
 0x77b   : > { %8246 = vmatmul.msk.f32.gmra.mxu3 %vm1191_vm1, %v13471_v31  ;;  %8201 = vmatmul.msk.f32.gmra.mxu2 %vm1191_vm1, %v13575_v27  ;;  %v4416_v24 = vadd.f32 %v12731_v60, %v3952_v36  ;;  %v987_v60 = vld [vmem:[%s16515_s3 + $0xa0] sm:$0xff] }
 0x77c   : > { %8172 = vmatmul.msk.f32.gmra.mxu1 %vm1191_vm1, %v8573_v15  ;;  %5830 = vmatpush.msra.mxu2 %v987_v60  ;;  %v3958_v60 = vadd.f32 %v12300_v61, %v11809_v45  ;;  %v1061_v61 = vld [vmem:[%s16515_s3 + $0x2f0] sm:$0xff] }
 0x77d   : > { %v4834_v59 = vadd.f32 %v13150_v21, %v4416_v24  ;;  %v3955_v21 = vadd.f32 %v12281_v52, %v11790_v18  ;;  %v17639_v24 = vld [vmem:[#allocation189_spill] sm:$0xff]  ;;  %v13665_v18 = vld [vmem:[%s9003_s26 + $0x2b8] sm:$0xff]  ;;  %6051 = vmatpush.msra.mxu0 %v1061_v61 }
 0x77e   : > { %v5115_v46 = vpop.f32.mrf.mxu3  ;;  %v13580_v32 = vpop.f32.mrf.mxu2 }
 0x77f   : > { %v5260_v57 = vadd.f32 %v5115_v46, %v4830_v16  ;;  %v13582_v56 = vpop.f32.mrf.mxu0  ;;  %v4418_v36 = vadd.f32 %v12750_v34, %v3955_v21  ;;  %v17641_v21 = vld [vmem:[#allocation51_spill] sm:$0xff] }
 0x781   : > { %v5403_v31 = vmax.f32 %v13484_v49, %v5260_v57  ;;  %v13587_v15 = vpop.f32.mrf.mxu1  ;;  %v4836_v52 = vadd.f32 %v13165_v37, %v4418_v36  ;;  %v4420_v37 = vadd.f32 %v12775_v25, %v3958_v60  ;;  %v17644_v60 = vld [vmem:[#allocation66_spill] sm:$0xff] }
 0x782   : > { %8124 = vmatmul.msk.f32.gmra.mxu0 %vm1191_vm1, %v8575_v19 }
 0x783   : > { %v13593_v1 = vmax.f32 %v17634_v39, %v5403_v31  ;;  %8247 = vmatmul.msk.f32.gmra.mxu3 %vm1191_vm1, %v13498_v50  ;;  %8202 = vmatmul.msk.f32.gmra.mxu2 %vm1191_vm1, %v13601_v7  ;;  %v1000_v50 = vld [vmem:[%s16515_s3 + $0x108] sm:$0xff]  ;;  %v17635_v31 = vld [vmem:[#allocation62_spill] sm:$0xff]  ;;  %v4838_v25 = vadd.f32 %v13180_v6, %v4420_v37  ;;  %v3800_v6 = vadd.f32 %v12317_v41, %v11746_v30 }
 0x784   : > { %8173 = vmatmul.msk.f32.gmra.mxu1 %vm1191_vm1, %v8575_v19  ;;  %v17637_v12 = vmax.f32 %v17635_v31, %v17636_v44  ;;  %v8577_v19 = vld [vmem:[%s9003_s26 + $0x190] sm:$0xff]  ;;  %v8583_v37 = vld [vmem:[%s9003_s26 + $0x1a8] sm:$0xff] }
 0x785   : > { %5727 = vmatpush.msrb.mxu1 %v1000_v50  ;;  %v13728_v30 = vld [vmem:[%s9003_s26 + $0x2c8] sm:$0xff] }
 0x786   : > { %v5118_v9 = vpop.f32.mrf.mxu3  ;;  %v13606_v49 = vpop.f32.mrf.mxu2 }
 0x787   : > { %v5262_v39 = vadd.f32 %v5118_v9, %v4832_v8  ;;  %v13614_v16 = vpop.f32.mrf.mxu0 }
 0x789   : > { %v5404_v46 = vmax.f32 %v13505_v28, %v5262_v39  ;;  %v13619_v57 = vpop.f32.mrf.mxu1  ;;  %v988_v28 = vld [vmem:[%s16515_s3 + $0xa8] sm:$0xff] }
 0x78a   : > { %8125 = vmatmul.msk.f32.gmra.mxu0 %vm1191_vm1, %v8577_v19  ;;  %5943 = vmatpush.msrb.mxu3 %v988_v28 }
 0x78b   : > { %v13625_v5 = vmax.f32 %v17637_v12, %v5404_v46  ;;  %8248 = vmatmul.msk.f32.gmra.mxu3 %vm1191_vm1, %v13519_v48  ;;  %8203 = vmatmul.msk.f32.gmra.mxu2 %vm1191_vm1, %v13633_v53  ;;  %v17638_v46 = vld [vmem:[#allocation176_spill] sm:$0xff]  ;;  %v8579_v12 = vld [vmem:[%s9003_s26 + $0x198] sm:$0xff] }
 0x78c   : > { %8174 = vmatmul.msk.f32.gmra.mxu1 %vm1191_vm1, %v8577_v19  ;;  %v17640_v31 = vmax.f32 %v17638_v46, %v17639_v24  ;;  %v8581_v24 = vld [vmem:[%s9003_s26 + $0x1a0] sm:$0xff] }
 0x78e   : > { %v5121_v48 = vpop.f32.mrf.mxu3  ;;  %v13644_v8 = vpop.f32.mrf.mxu2 }
 0x78f   : > { %v5264_v9 = vadd.f32 %v5121_v48, %v4834_v59  ;;  %v13646_v39 = vpop.f32.mrf.mxu0 }
 0x791   : > { %v5405_v58 = vmax.f32 %v13532_v33, %v5264_v9  ;;  %v13651_v50 = vpop.f32.mrf.mxu1 }
 0x792   : > { %8126 = vmatmul.msk.f32.gmra.mxu0 %vm1191_vm1, %v8579_v12 }
 0x793   : > { %v13657_v44 = vmax.f32 %v17640_v31, %v5405_v58  ;;  %8249 = vmatmul.msk.f32.gmra.mxu3 %vm1191_vm1, %v13547_v26  ;;  %8204 = vmatmul.msk.f32.gmra.mxu2 %vm1191_vm1, %v13665_v18  ;;  %v3797_v26 = vadd.f32 %v12298_v54, %v11723_v17  ;;  %v17642_v58 = vld [vmem:[#allocation104_spill] sm:$0xff]  ;;  %v13694_v17 = vld [vmem:[%s9003_s26 + $0x2c0] sm:$0xff]  ;;  %v1062_v54 = vld [vmem:[%s16515_s3 + $0x2f8] sm:$0xff] }
 0x794   : > { %8175 = vmatmul.msk.f32.gmra.mxu1 %vm1191_vm1, %v8579_v12  ;;  %v17643_v36 = vmax.f32 %v17641_v21, %v17642_v58  ;;  %v3961_v12 = vadd.f32 %v12319_v42, %v11828_v23  ;;  %v986_v58 = vld [vmem:[%s16515_s3 + $0x98] sm:$0xff] }
 0x795   : > { %v4419_v9 = vadd.f32 %v12695_v63, %v3797_v26  ;;  %6164 = vmatpush.msra.mxu1 %v1062_v54  ;;  %5944 = vmatpush.msrb.mxu3 %v986_v58  ;;  %v17649_v54 = vld [vmem:[#allocation236_spill] sm:$0xff] }
 0x796   : > { %v5124_v34 = vpop.f32.mrf.mxu3  ;;  %v13670_v33 = vpop.f32.mrf.mxu2  ;;  %v4422_v26 = vadd.f32 %v12794_v43, %v3961_v12 }
 0x797   : > { %v5266_v19 = vadd.f32 %v5124_v34, %v4836_v52  ;;  %v13672_v59 = vpop.f32.mrf.mxu0  ;;  %v4837_v45 = vadd.f32 %v13178_v40, %v4419_v9 }
 0x798   : > { %v4840_v42 = vadd.f32 %v13200_v3, %v4422_v26  ;;  %v17647_v3 = vld [vmem:[#allocation23_spill] sm:$0xff] }
 0x799   : > { %v5406_v28 = vmax.f32 %v13560_v13, %v5266_v19  ;;  %v13679_v48 = vpop.f32.mrf.mxu1  ;;  %v5267_v13 = vadd.f32 %v13580_v32, %v4837_v45  ;;  %v4421_v19 = vadd.f32 %v12714_v51, %v3800_v6  ;;  %v17645_v32 = vld [vmem:[#allocation105_spill] sm:$0xff] }
 0x79a   : > { %8127 = vmatmul.msk.f32.gmra.mxu0 %vm1191_vm1, %v8581_v24 }
 0x79b   : > { %v13686_v46 = vmax.f32 %v17643_v36, %v5406_v28  ;;  %8250 = vmatmul.msk.f32.gmra.mxu3 %vm1191_vm1, %v13575_v27  ;;  %8205 = vmatmul.msk.f32.gmra.mxu2 %vm1191_vm1, %v13694_v17  ;;  %v17646_v28 = vmax.f32 %v17644_v60, %v17645_v32  ;;  %v4839_v23 = vadd.f32 %v13198_v14, %v4421_v19 }
 0x79c   : > { %8176 = vmatmul.msk.f32.gmra.mxu1 %vm1191_vm1, %v8581_v24  ;;  %v3803_v14 = vadd.f32 %v12336_v55, %v11769_v47  ;;  %v13762_v47 = vld [vmem:[%s9003_s26 + $0x2d0] sm:$0xff]  ;;  %v17653_v55 = vld [vmem:[#allocation318_spill] sm:$0xff] }
 0x79d   : > { %v5269_v51 = vadd.f32 %v13606_v49, %v4839_v23  ;;  %v3964_v49 = vadd.f32 %v17647_v3, %v11847_v20 }
 0x79e   : > { %v5127_v63 = vpop.f32.mrf.mxu3  ;;  %v13707_v27 = vpop.f32.mrf.mxu2 }
 0x79f   : > { %v5268_v40 = vadd.f32 %v5127_v63, %v4838_v25  ;;  %v13709_v31 = vpop.f32.mrf.mxu0  ;;  %v17648_v25 = vld [vmem:[#allocation224_spill] sm:$0xff]  ;;  %v4424_v63 = vadd.f32 %v17649_v54, %v3964_v49  ;;  %v17661_v54 = vld [vmem:[#allocation70_spill] sm:$0xff] }
 0x7a0   : > { %v4423_v61 = vadd.f32 %v17648_v25, %v3803_v14  ;;  %v17658_v14 = vld [vmem:[#allocation227_spill] sm:$0xff]  ;;  %v17659_v49 = vld [vmem:[#allocation240_spill] sm:$0xff] }
 0x7a1   : > { %v5407_v52 = vmax.f32 %v5267_v13, %v5268_v40  ;;  %v13715_v34 = vpop.f32.mrf.mxu1  ;;  %v17650_v13 = vld [vmem:[#allocation179_spill] sm:$0xff]  ;;  %v4842_v19 = vadd.f32 %v17653_v55, %v4424_v63  ;;  %v17664_v55 = vld [vmem:[#allocation322_spill] sm:$0xff] }
 0x7a2   : > { %8128 = vmatmul.msk.f32.gmra.mxu0 %vm1191_vm1, %v8583_v37  ;;  %v17651_v40 = vld [vmem:[#allocation55_spill] sm:$0xff]  ;;  %v4841_v20 = vadd.f32 %v13212_v38, %v4423_v61  ;;  %v17654_v38 = vld [vmem:[#allocation20_spill] sm:$0xff]  ;;  %v17660_v61 = vld [vmem:[#allocation110_spill] sm:$0xff] }
 0x7a3   : > { %v5455_v9 = vmax.f32 %v17646_v28, %v5407_v52  ;;  %8251 = vmatmul.msk.f32.gmra.mxu3 %vm1191_vm1, %v13601_v7  ;;  %8206 = vmatmul.msk.f32.gmra.mxu2 %vm1191_vm1, %v13728_v30  ;;  %v985_v7 = vld [vmem:[%s16515_s3 + $0x90] sm:$0xff]  ;;  %v17652_v6 = vmax.f32 %v17650_v13, %v17651_v40  ;;  %v13790_v25 = vld [vmem:[%s16514_s2] ss:$0 sm:$0xff]  ;;  %v17662_v63 = vmax.f32 %v17660_v61, %v17661_v54  ;;  %v8587_v40 = vld [vmem:[%s9003_s26 + $0x1b8] sm:$0xff] }
 0x7a4   : > { %8177 = vmatmul.msk.f32.gmra.mxu1 %vm1191_vm1, %v8583_v37  ;;  %5831 = vmatpush.msra.mxu2 %v985_v7  ;;  %v8585_v52 = vld [vmem:[%s9003_s26 + $0x1b0] sm:$0xff]  ;;  %v5271_v60 = vadd.f32 %v13644_v8, %v4841_v20  ;;  %v1060_v37 = vld [vmem:[%s16515_s3 + $0x2e8] sm:$0xff]  ;;  %v17671_v61 = vld [vmem:[#allocation111_spill] sm:$0xff] }
 0x7a5   : > { %6165 = vmatpush.msra.mxu1 %v1060_v37  ;;  %v17672_v54 = vld [vmem:[#allocation182_spill] sm:$0xff] }
 0x7a6   : > { %v5130_v41 = vpop.f32.mrf.mxu3  ;;  %v13735_v43 = vpop.f32.mrf.mxu2 }
 0x7a7   : > { %v5270_v21 = vadd.f32 %v5130_v41, %v4840_v42  ;;  %v13743_v36 = vpop.f32.mrf.mxu0  ;;  %v17655_v42 = vld [vmem:[#allocation43_spill] sm:$0xff]  ;;  %v17656_v41 = vld [vmem:[#allocation160_spill] sm:$0xff] }
 0x7a8   : > { %v3806_v8 = vadd.f32 %v17655_v42, %v17654_v38  ;;  %v17665_v38 = vld [vmem:[#allocation3_spill] sm:$0xff]  ;;  %v17666_v42 = vld [vmem:[#allocation170_spill] sm:$0xff] }
 0x7a9   : > { %v5408_v24 = vmax.f32 %v5269_v51, %v5270_v21  ;;  %v13749_v45 = vpop.f32.mrf.mxu1  ;;  %v17657_v51 = vld [vmem:[#allocation84_spill] sm:$0xff] }
 0x7aa   : > { %8129 = vmatmul.msk.f32.gmra.mxu0 %vm1191_vm1, %v8585_v52  ;;  %v3967_v21 = vadd.f32 %v17657_v51, %v17656_v41  ;;  %v4425_v3 = vadd.f32 %v17658_v14, %v3806_v8  ;;  %v3809_v8 = vadd.f32 %v17666_v42, %v17665_v38  ;;  %v17667_v41 = vld [vmem:[#allocation21_spill] sm:$0xff]  ;;  %v983_v42 = vld [vmem:[%s16515_s3 + $0x80] sm:$0xff] }
 0x7ab   : > { %v5456_v12 = vmax.f32 %v17652_v6, %v5408_v24  ;;  %8252 = vmatmul.msk.f32.gmra.mxu3 %vm1191_vm1, %v13633_v53  ;;  %8207 = vmatmul.msk.f32.gmra.mxu2 %vm1191_vm1, %v13762_v47  ;;  %v1059_v53 = vld [vmem:[%s16515_s3 + $0x2e0] sm:$0xff]  ;;  %v13801_v6 = vld [vmem:[%s9003_s26 + $0x2d8] sm:$0xff]  ;;  %v17668_v51 = vld [vmem:[#allocation93_spill] sm:$0xff] }
 0x7ac   : > { %8178 = vmatmul.msk.f32.gmra.mxu1 %vm1191_vm1, %v8585_v52  ;;  %6052 = vmatpush.msra.mxu0 %v1059_v53  ;;  %v4426_v24 = vadd.f32 %v17659_v49, %v3967_v21  ;;  %v17663_v52 = vld [vmem:[#allocation321_spill] sm:$0xff]  ;;  %v3970_v21 = vadd.f32 %v17668_v51, %v17667_v41 }
 0x7ad   : > { %v4843_v20 = vadd.f32 %v17663_v52, %v4425_v3  ;;  %v13830_v52 = vld [vmem:[%s9003_s26 + $0x2e0] sm:$0xff]  ;;  %v1057_v41 = vld [vmem:[%s16515_s3 + $0x2d0] sm:$0xff]  ;;  %5832 = vmatpush.msra.mxu2 %v983_v42 }
 0x7ae   : > { %v5133_v26 = vpop.f32.mrf.mxu3  ;;  %v13769_v32 = vpop.f32.mrf.mxu2  ;;  %6053 = vmatpush.msra.mxu0 %v1057_v41  ;;  %v17688_v41 = vld [vmem:[#allocation330_spill] sm:$0xff] }
 0x7af   : > { %v5272_v28 = vadd.f32 %v5133_v26, %v4842_v19  ;;  %v13777_v23 = vpop.f32.mrf.mxu0  ;;  %v4844_v19 = vadd.f32 %v17664_v55, %v4426_v24  ;;  %v5507_v26 = vadd.f32 %v13790_v25, %v5455_v9  ;;  %v17669_v9 = vld [vmem:[#allocation230_spill] sm:$0xff]  ;;  %v17670_v24 = vld [vmem:[#allocation244_spill] sm:$0xff] }
 0x7b0   : > { %v4427_v49 = vadd.f32 %v17669_v9, %v3809_v8  ;;  %v984_v8 = vld [vmem:[%s16515_s3 + $0x88] sm:$0xff]  ;;  %v17679_v9 = vld [vmem:[#allocation163_spill] sm:$0xff] }
 0x7b1   : > { %v5409_v7 = vmax.f32 %v5271_v60, %v5272_v28  ;;  %v13783_v58 = vpop.f32.mrf.mxu1  ;;  %v5273_v28 = vadd.f32 %v13670_v33, %v4843_v20  ;;  %v4428_v33 = vadd.f32 %v17670_v24, %v3970_v21  ;;  %v17674_v20 = vld [vmem:[#allocation325_spill] sm:$0xff]  ;;  %5945 = vmatpush.msrb.mxu3 %v984_v8 }
 0x7b2   : > { %8130 = vmatmul.msk.f32.gmra.mxu0 %vm1191_vm1, %v8587_v40  ;;  %v4845_v55 = vadd.f32 %v17674_v20, %v4427_v49  ;;  %v17678_v21 = vld [vmem:[#allocation193_spill] sm:$0xff]  ;;  %v17680_v49 = vld [vmem:[#allocation58_spill] sm:$0xff] }
 0x7b3   : > { %v5457_v13 = vmax.f32 %v17662_v63, %v5409_v7  ;;  %8253 = vmatmul.msk.f32.gmra.mxu3 %vm1191_vm1, %v13665_v18  ;;  %8208 = vmatmul.msk.f32.gmra.mxu2 %vm1191_vm1, %v13801_v6  ;;  %v13817_v7 = vmax.f32 %v5507_v26, 0.0  ;;  %v17673_v63 = vmax.f32 %v17671_v61, %v17672_v54  ;;  %v3973_v24 = vadd.f32 %v17680_v49, %v17679_v9 }
 0x7b4   : > { %8179 = vmatmul.msk.f32.gmra.mxu1 %vm1191_vm1, %v8587_v40 }
 0x7b6   : > { %v5136_v60 = vpop.f32.mrf.mxu3  ;;  %v13809_v53 = vpop.f32.mrf.mxu2 }
 0x7b7   : > { %v5274_v18 = vadd.f32 %v5136_v60, %v4844_v19  ;;  %v13811_v37 = vpop.f32.mrf.mxu0  ;;  %v17675_v19 = vld [vmem:[#allocation326_spill] sm:$0xff]  ;;  %v5508_v60 = vadd.f32 %v13790_v25, %v5456_v12  ;;  %v17677_v12 = vld [vmem:[#allocation56_spill] sm:$0xff] }
 0x7b8   : > { %v4846_v26 = vadd.f32 %v17675_v19, %v4428_v33 }
 0x7b9   : > { %v5410_v14 = vmax.f32 %v5273_v28, %v5274_v18  ;;  %v13819_v3 = vpop.f32.mrf.mxu1  ;;  %v5275_v18 = vadd.f32 %v13707_v27, %v4845_v55  ;;  %v1058_v27 = vld [vmem:[%s16515_s3 + $0x2d8] sm:$0xff]  ;;  %v13861_v54 = vmax.f32 %v5508_v60, 0.0  ;;  %v17683_v55 = vld [vmem:[#allocation248_spill] sm:$0xff]  ;;  %v17687_v60 = vld [vmem:[#allocation329_spill] sm:$0xff] }
 0x7ba   : > { %5615 = vmatmul.f32.vlgmr.msrb.gmra.mxu0 %v13817_v7  ;;  %6166 = vmatpush.msra.mxu1 %v1058_v27  ;;  %v4430_v19 = vadd.f32 %v17683_v55, %v3973_v24  ;;  %v17690_v24 = vld [vmem:[#allocation121_spill] sm:$0xff]  ;;  %v17692_v55 = vld [vmem:[#allocation14_spill] sm:$0xff] }
 0x7bb   : > { %v5458_v40 = vmax.f32 %v17673_v63, %v5410_v14  ;;  %8254 = vmatmul.msk.f32.gmra.mxu3 %vm1191_vm1, %v13694_v17  ;;  %8209 = vmatmul.msk.f32.gmra.mxu2 %vm1191_vm1, %v13830_v52  ;;  %v3812_v14 = vadd.f32 %v17678_v21, %v17677_v12  ;;  %v17682_v63 = vld [vmem:[#allocation233_spill] sm:$0xff]  ;;  %v5509_v12 = vadd.f32 %v13790_v25, %v5457_v13 }
 0x7bc   : > { %5728 = vmatmul.f32.vlgmr.msrb.gmra.mxu1 %v13817_v7  ;;  %v4848_v27 = vadd.f32 %v17688_v41, %v4430_v19  ;;  %v17696_v13 = vld [vmem:[#allocation237_spill] sm:$0xff]  ;;  %v17697_v41 = vld [vmem:[#allocation252_spill] sm:$0xff] }
 0x7bd   : > { %v4429_v20 = vadd.f32 %v17682_v63, %v3812_v14  ;;  %v13891_v19 = vmax.f32 %v5509_v12, 0.0  ;;  %v17701_v12 = vld [vmem:[#allocation333_spill] sm:$0xff] }
 0x7be   : > { %v5139_v28 = vpop.f32.mrf.mxu3  ;;  %v13839_v38 = vpop.f32.mrf.mxu2 }
 0x7bf   : > { %v5276_v17 = vadd.f32 %v5139_v28, %v4846_v26  ;;  %v13850_v51 = vpop.f32.mrf.mxu0  ;;  %v17684_v26 = vld [vmem:[#allocation114_spill] sm:$0xff]  ;;  %17695 = vst [vmem:[#allocation176_spill] sm:$0xff] %v13891_v19 }
 0x7c0   : > { %17676 = vst [vmem:[#allocation47_spill] sm:$0xff] %v13850_v51  ;;  %v17685_v28 = vld [vmem:[#allocation74_spill] sm:$0xff] }
 0x7c1   : > { %v5411_v33 = vmax.f32 %v5275_v18, %v5276_v17  ;;  %v13859_v61 = vpop.f32.mrf.mxu1  ;;  %v17686_v42 = vmax.f32 %v17684_v26, %v17685_v28  ;;  %v13872_v18 = vld [vmem:[%s9003_s26 + $0x2e8] sm:$0xff]  ;;  %v4847_v17 = vadd.f32 %v17687_v60, %v4429_v20  ;;  %v17693_v26 = vld [vmem:[#allocation194_spill] sm:$0xff] }
 0x7c2   : > { %17681 = vst [vmem:[#allocation100_spill] sm:$0xff] %v13859_v61  ;;  %5618 = vmatmul.f32.gmra.mxu0 %v13861_v54  ;;  %v3976_v28 = vadd.f32 %v17693_v26, %v17692_v55 }
 0x7c3   : > { %v5459_v8 = vmax.f32 %v17686_v42, %v5411_v33  ;;  %8255 = vmatmul.msk.f32.gmra.mxu3 %vm1191_vm1, %v13728_v30  ;;  %8210 = vmatmul.msk.f32.gmra.mxu2 %vm1191_vm1, %v13872_v18  ;;  %v5277_v14 = vadd.f32 %v13735_v43, %v4847_v17  ;;  %v17691_v33 = vld [vmem:[#allocation39_spill] sm:$0xff]  ;;  %v17698_v17 = vld [vmem:[#allocation186_spill] sm:$0xff] }
 0x7c4   : > { %5731 = vmatmul.f32.gmra.mxu1 %v13861_v54  ;;  %v3815_v63 = vadd.f32 %v17691_v33, %v17690_v24  ;;  %v4432_v43 = vadd.f32 %v17697_v41, %v3976_v28  ;;  %v13902_v24 = vld [vmem:[%s9003_s26 + $0x2f0] sm:$0xff]  ;;  %v1055_v28 = vld [vmem:[%s16515_s3 + $0x2c0] sm:$0xff] }
 0x7c5   : > { %6054 = vmatpush.msra.mxu0 %v1055_v28 }
 0x7c6   : > { %v5142_v21 = vpop.f32.mrf.mxu3  ;;  %v13881_v30 = vpop.f32.mrf.mxu2  ;;  %v4431_v60 = vadd.f32 %v17696_v13, %v3815_v63  ;;  %v5510_v63 = vadd.f32 %v13790_v25, %v5458_v40  ;;  %v17704_v40 = vld [vmem:[#allocation17_spill] sm:$0xff] }
 0x7c7   : > { %v5278_v9 = vadd.f32 %v5142_v21, %v4848_v27  ;;  %v13883_v49 = vpop.f32.mrf.mxu0  ;;  %v17700_v27 = vmax.f32 %v17698_v17, %v17699_v29 }
 0x7c8   : > { %17689 = vst [vmem:[#allocation62_spill] sm:$0xff] %v13883_v49  ;;  %v17712_v49 = vld [vmem:[#allocation78_spill] sm:$0xff] }
 0x7c9   : > { %v5412_v20 = vmax.f32 %v5277_v14, %v5278_v9  ;;  %v13889_v42 = vpop.f32.mrf.mxu1  ;;  %v4849_v14 = vadd.f32 %v17701_v12, %v4431_v60  ;;  %v17702_v9 = vld [vmem:[#allocation334_spill] sm:$0xff] }
 0x7ca   : > { %17694 = vst [vmem:[#allocation101_spill] sm:$0xff] %v13889_v42  ;;  %5621 = vmatmul.f32.gmra.mxu0 %v13891_v19  ;;  %v4850_v33 = vadd.f32 %v17702_v9, %v4432_v43  ;;  %v17705_v60 = vld [vmem:[#allocation54_spill] sm:$0xff]  ;;  %v17707_v43 = vld [vmem:[#allocation45_spill] sm:$0xff] }
 0x7cb   : > { %v5460_v21 = vmax.f32 %v17700_v27, %v5412_v20  ;;  %8256 = vmatmul.msk.f32.gmra.mxu3 %vm1191_vm1, %v13762_v47  ;;  %8211 = vmatmul.msk.f32.gmra.mxu2 %vm1191_vm1, %v13902_v24  ;;  %v5279_v55 = vadd.f32 %v13769_v32, %v4849_v14  ;;  %v1056_v20 = vld [vmem:[%s16515_s3 + $0x2c8] sm:$0xff]  ;;  %v3818_v41 = vadd.f32 %v17705_v60, %v17704_v40  ;;  %v17706_v32 = vld [vmem:[#allocation9_spill] sm:$0xff]  ;;  %v13927_v14 = vmax.f32 %v5510_v63, 0.0 }
 0x7cc   : > { %5734 = vmatmul.f32.gmra.mxu1 %v13891_v19  ;;  %v3979_v17 = vadd.f32 %v17707_v43, %v17706_v32  ;;  %v17710_v9 = vld [vmem:[#allocation241_spill] sm:$0xff]  ;;  %v17713_v19 = vld [vmem:[#allocation119_spill] sm:$0xff]  ;;  %v5511_v60 = vadd.f32 %v13790_v25, %v5459_v8  ;;  %v982_v32 = vld [vmem:[%s16515_s3 + $0x78] sm:$0xff] }
 0x7cd   : > { %6167 = vmatpush.msra.mxu1 %v1056_v20  ;;  %17709 = vst [vmem:[#allocation104_spill] sm:$0xff] %v13927_v14  ;;  %v13938_v20 = vld [vmem:[%s9003_s26 + $0x2f8] sm:$0xff]  ;;  %v17715_v63 = vld [vmem:[#allocation337_spill] sm:$0xff]  ;;  %5946 = vmatpush.msrb.mxu3 %v982_v32  ;;  %v13974_v32 = vld [vmem:[%s9003_s26 + $0x300] sm:$0xff] }
 0x7ce   : > { %v5145_v29 = vpop.f32.mrf.mxu3  ;;  %v13911_v26 = vpop.f32.mrf.mxu2  ;;  %v17717_v8 = vld [vmem:[#allocation125_spill] sm:$0xff] }
 0x7cf   : > { %v5280_v47 = vadd.f32 %v5145_v29, %v4850_v33  ;;  %v13919_v13 = vpop.f32.mrf.mxu0  ;;  %v4433_v33 = vadd.f32 %v17710_v9, %v3818_v41  ;;  %v17711_v29 = vld [vmem:[#allocation256_spill] sm:$0xff]  ;;  %v981_v41 = vld [vmem:[%s16515_s3 + $0x70] sm:$0xff] }
 0x7d0   : > { %17703 = vst [vmem:[#allocation189_spill] sm:$0xff] %v13919_v13  ;;  %v4434_v42 = vadd.f32 %v17711_v29, %v3979_v17  ;;  %v17714_v13 = vmax.f32 %v17712_v49, %v17713_v19  ;;  %5833 = vmatpush.msra.mxu2 %v981_v41 }
 0x7d1   : > { %v5413_v27 = vmax.f32 %v5279_v55, %v5280_v47  ;;  %v13925_v12 = vpop.f32.mrf.mxu1  ;;  %v4851_v55 = vadd.f32 %v17715_v63, %v4433_v33  ;;  %v17716_v47 = vld [vmem:[#allocation338_spill] sm:$0xff]  ;;  %v13961_v33 = vmax.f32 %v5511_v60, 0.0  ;;  %v17728_v60 = vld [vmem:[#allocation341_spill] sm:$0xff] }
 0x7d2   : > { %17708 = vst [vmem:[#allocation51_spill] sm:$0xff] %v13925_v12  ;;  %5624 = vmatmul.f32.gmra.mxu0 %v13927_v14  ;;  %v4852_v40 = vadd.f32 %v17716_v47, %v4434_v42  ;;  %v17718_v42 = vld [vmem:[#allocation123_spill] sm:$0xff] }
 0x7d3   : > { %v5461_v28 = vmax.f32 %v17714_v13, %v5413_v27  ;;  %8257 = vmatmul.msk.f32.gmra.mxu3 %vm1191_vm1, %v13801_v6  ;;  %8212 = vmatmul.msk.f32.gmra.mxu2 %vm1191_vm1, %v13938_v20  ;;  %v5281_v19 = vadd.f32 %v13809_v53, %v4851_v55  ;;  %v3821_v17 = vadd.f32 %v17718_v42, %v17717_v8  ;;  %v17719_v53 = vld [vmem:[#allocation77_spill] sm:$0xff]  ;;  %v17720_v27 = vld [vmem:[#allocation82_spill] sm:$0xff]  ;;  %v17725_v12 = vld [vmem:[#allocation67_spill] sm:$0xff] }
 0x7d4   : > { %5737 = vmatmul.f32.gmra.mxu1 %v13927_v14  ;;  %v3982_v9 = vadd.f32 %v17720_v27, %v17719_v53  ;;  %17721 = vst [vmem:[#allocation66_spill] sm:$0xff] %v13961_v33  ;;  %v17723_v55 = vld [vmem:[#allocation245_spill] sm:$0xff]  ;;  %v17726_v14 = vld [vmem:[#allocation122_spill] sm:$0xff]  ;;  %v5512_v42 = vadd.f32 %v13790_v25, %v5460_v21  ;;  %v17731_v21 = vld [vmem:[#allocation147_spill] sm:$0xff] }
 0x7d5   : > { %v4435_v47 = vadd.f32 %v17723_v55, %v3821_v17  ;;  %v17727_v61 = vmax.f32 %v17725_v12, %v17726_v14  ;;  %v1053_v17 = vld [vmem:[%s16515_s3 + $0x2b0] sm:$0xff]  ;;  %v1054_v53 = vld [vmem:[%s16515_s3 + $0x2b8] sm:$0xff]  ;;  %v17734_v55 = vld [vmem:[#allocation131_spill] sm:$0xff] }
 0x7d6   : > { %v5148_v49 = vpop.f32.mrf.mxu3  ;;  %v13947_v13 = vpop.f32.mrf.mxu2  ;;  %6055 = vmatpush.msra.mxu0 %v1053_v17  ;;  %6168 = vmatpush.msra.mxu1 %v1054_v53  ;;  %v14010_v53 = vld [vmem:[%s9003_s26 + $0x308] sm:$0xff] }
 0x7d7   : > { %v5282_v6 = vadd.f32 %v5148_v49, %v4852_v40  ;;  %v13955_v43 = vpop.f32.mrf.mxu0  ;;  %v17724_v40 = vld [vmem:[#allocation260_spill] sm:$0xff] }
 0x7d8   : > { %v4436_v49 = vadd.f32 %v17724_v40, %v3982_v9  ;;  %v17732_v9 = vld [vmem:[#allocation118_spill] sm:$0xff]  ;;  %v13997_v40 = vmax.f32 %v5512_v42, 0.0  ;;  %v17742_v42 = vld [vmem:[#allocation345_spill] sm:$0xff] }
 0x7d9   : > { %v5414_v29 = vmax.f32 %v5281_v19, %v5282_v6  ;;  %v13963_v63 = vpop.f32.mrf.mxu1  ;;  %v4853_v19 = vadd.f32 %v17728_v60, %v4435_v47  ;;  %v17729_v6 = vld [vmem:[#allocation342_spill] sm:$0xff] }
 0x7da   : > { %17722 = vst [vmem:[#allocation105_spill] sm:$0xff] %v13963_v63  ;;  %5627 = vmatmul.f32.gmra.mxu0 %v13961_v33  ;;  %v4854_v8 = vadd.f32 %v17729_v6, %v4436_v49  ;;  %v17739_v63 = vld [vmem:[#allocation126_spill] sm:$0xff] }
 0x7db   : > { %v5462_v41 = vmax.f32 %v17727_v61, %v5414_v29  ;;  %8258 = vmatmul.msk.f32.gmra.mxu3 %vm1191_vm1, %v13830_v52  ;;  %8213 = vmatmul.msk.f32.gmra.mxu2 %vm1191_vm1, %v13974_v32  ;;  %v5283_v61 = vadd.f32 %v13839_v38, %v4853_v19  ;;  %v3824_v29 = vadd.f32 %v17732_v9, %v17731_v21  ;;  %v17733_v38 = vld [vmem:[#allocation168_spill] sm:$0xff]  ;;  %v17737_v19 = vld [vmem:[#allocation249_spill] sm:$0xff] }
 0x7dc   : > { %5740 = vmatmul.f32.gmra.mxu1 %v13961_v33  ;;  %v3985_v47 = vadd.f32 %v17734_v55, %v17733_v38  ;;  %17735 = vst [vmem:[#allocation224_spill] sm:$0xff] %v13997_v40  ;;  %v17740_v33 = vld [vmem:[#allocation86_spill] sm:$0xff]  ;;  %v5513_v9 = vadd.f32 %v13790_v25, %v5461_v28  ;;  %v17746_v55 = vld [vmem:[#allocation71_spill] sm:$0xff]  ;;  %v17751_v28 = vld [vmem:[#allocation253_spill] sm:$0xff] }
 0x7dd   : > { %v4437_v6 = vadd.f32 %v17737_v19, %v3824_v29  ;;  %v17745_v38 = vld [vmem:[#allocation150_spill] sm:$0xff]  ;;  %v17748_v19 = vld [vmem:[#allocation135_spill] sm:$0xff] }
 0x7de   : > { %v5151_v12 = vpop.f32.mrf.mxu3  ;;  %v13983_v14 = vpop.f32.mrf.mxu2 }
 0x7df   : > { %v5284_v52 = vadd.f32 %v5151_v12, %v4854_v8  ;;  %v13991_v27 = vpop.f32.mrf.mxu0  ;;  %v17738_v8 = vld [vmem:[#allocation264_spill] sm:$0xff] }
 0x7e0   : > { %17730 = vst [vmem:[#allocation23_spill] sm:$0xff] %v13991_v27  ;;  %v4438_v12 = vadd.f32 %v17738_v8, %v3985_v47  ;;  %v17741_v27 = vmax.f32 %v17739_v63, %v17740_v33  ;;  %v3827_v47 = vadd.f32 %v17746_v55, %v17745_v38  ;;  %v14040_v38 = vld [vmem:[%s9003_s26 + $0x310] sm:$0xff]  ;;  %v5514_v55 = vadd.f32 %v13790_v25, %v5462_v41  ;;  %v17759_v41 = vld [vmem:[#allocation166_spill] sm:$0xff] }
 0x7e1   : > { %v5415_v49 = vmax.f32 %v5283_v61, %v5284_v52  ;;  %v13999_v60 = vpop.f32.mrf.mxu1  ;;  %v4855_v61 = vadd.f32 %v17742_v42, %v4437_v6  ;;  %v17743_v52 = vld [vmem:[#allocation346_spill] sm:$0xff]  ;;  %v14027_v6 = vmax.f32 %v5513_v9, 0.0  ;;  %v17756_v9 = vld [vmem:[#allocation349_spill] sm:$0xff] }
 0x7e2   : > { %17736 = vst [vmem:[#allocation236_spill] sm:$0xff] %v13999_v60  ;;  %5630 = vmatmul.f32.gmra.mxu0 %v13997_v40  ;;  %v4856_v21 = vadd.f32 %v17743_v52, %v4438_v12  ;;  %v4439_v52 = vadd.f32 %v17751_v28, %v3827_v47  ;;  %v17752_v60 = vld [vmem:[#allocation268_spill] sm:$0xff] }
 0x7e3   : > { %v5463_v17 = vmax.f32 %v17741_v27, %v5415_v49  ;;  %8259 = vmatmul.msk.f32.gmra.mxu3 %vm1191_vm1, %v13872_v18  ;;  %8214 = vmatmul.msk.f32.gmra.mxu2 %vm1191_vm1, %v14010_v53  ;;  %v5285_v63 = vadd.f32 %v13881_v30, %v4855_v61  ;;  %v17747_v49 = vld [vmem:[#allocation68_spill] sm:$0xff]  ;;  %17749 = vst [vmem:[#allocation55_spill] sm:$0xff] %v14027_v6  ;;  %v17753_v61 = vld [vmem:[#allocation130_spill] sm:$0xff] }
 0x7e4   : > { %5743 = vmatmul.f32.gmra.mxu1 %v13997_v40  ;;  %v3988_v8 = vadd.f32 %v17748_v19, %v17747_v49  ;;  %v17754_v40 = vld [vmem:[#allocation90_spill] sm:$0xff]  ;;  %v979_v19 = vld [vmem:[%s16515_s3 + $0x60] sm:$0xff] }
 0x7e5   : > { %5834 = vmatpush.msra.mxu2 %v979_v19 }
 0x7e6   : > { %v5154_v33 = vpop.f32.mrf.mxu3  ;;  %v14019_v18 = vpop.f32.mrf.mxu2  ;;  %v4440_v30 = vadd.f32 %v17752_v60, %v3988_v8  ;;  %v980_v8 = vld [vmem:[%s16515_s3 + $0x68] sm:$0xff] }
 0x7e7   : > { %v5286_v27 = vadd.f32 %v5154_v33, %v4856_v21  ;;  %v14021_v29 = vpop.f32.mrf.mxu0  ;;  %v17755_v21 = vmax.f32 %v17753_v61, %v17754_v40  ;;  %5947 = vmatpush.msrb.mxu3 %v980_v8  ;;  %v17761_v61 = vld [vmem:[#allocation171_spill] sm:$0xff]  ;;  %v17766_v8 = vld [vmem:[#allocation272_spill] sm:$0xff] }
 0x7e8   : > { %17744 = vst [vmem:[#allocation179_spill] sm:$0xff] %v14021_v29 }
 0x7e9   : > { %v5416_v12 = vmax.f32 %v5285_v63, %v5286_v27  ;;  %v14029_v42 = vpop.f32.mrf.mxu1  ;;  %v4857_v63 = vadd.f32 %v17756_v9, %v4439_v52  ;;  %v17757_v27 = vld [vmem:[#allocation350_spill] sm:$0xff]  ;;  %v17760_v52 = vld [vmem:[#allocation79_spill] sm:$0xff] }
 0x7ea   : > { %17750 = vst [vmem:[#allocation318_spill] sm:$0xff] %v14029_v42  ;;  %5633 = vmatmul.f32.gmra.mxu0 %v14027_v6  ;;  %v4858_v60 = vadd.f32 %v17757_v27, %v4440_v30  ;;  %v3830_v30 = vadd.f32 %v17760_v52, %v17759_v41  ;;  %v5515_v41 = vadd.f32 %v13790_v25, %v5463_v17  ;;  %v17779_v17 = vld [vmem:[#allocation261_spill] sm:$0xff] }
 0x7eb   : > { %v5464_v33 = vmax.f32 %v17755_v21, %v5416_v12  ;;  %8260 = vmatmul.msk.f32.gmra.mxu3 %vm1191_vm1, %v13902_v24  ;;  %8215 = vmatmul.msk.f32.gmra.mxu2 %vm1191_vm1, %v14040_v38  ;;  %v5287_v47 = vadd.f32 %v13911_v26, %v4857_v63  ;;  %v1051_v12 = vld [vmem:[%s16515_s3 + $0x2a0] sm:$0xff]  ;;  %v1052_v26 = vld [vmem:[%s16515_s3 + $0x2a8] sm:$0xff]  ;;  %v14069_v63 = vmax.f32 %v5514_v55, 0.0  ;;  %v14082_v55 = vld [vmem:[%s9003_s26 + $0x318] sm:$0xff] }
 0x7ec   : > { %5746 = vmatmul.f32.gmra.mxu1 %v14027_v6  ;;  %v17762_v21 = vld [vmem:[#allocation140_spill] sm:$0xff]  ;;  %6056 = vmatpush.msra.mxu0 %v1051_v12  ;;  %v17771_v12 = vld [vmem:[#allocation354_spill] sm:$0xff] }
 0x7ed   : > { %v3991_v9 = vadd.f32 %v17762_v21, %v17761_v61  ;;  %17763 = vst [vmem:[#allocation43_spill] sm:$0xff] %v14069_v63  ;;  %6169 = vmatpush.msra.mxu1 %v1052_v26  ;;  %v17767_v6 = vld [vmem:[#allocation132_spill] sm:$0xff]  ;;  %v17774_v61 = vld [vmem:[#allocation87_spill] sm:$0xff] }
 0x7ee   : > { %v5157_v40 = vpop.f32.mrf.mxu3  ;;  %v14049_v49 = vpop.f32.mrf.mxu2 }
 0x7ef   : > { %v5288_v24 = vadd.f32 %v5157_v40, %v4858_v60  ;;  %v14060_v28 = vpop.f32.mrf.mxu0  ;;  %v17765_v40 = vld [vmem:[#allocation257_spill] sm:$0xff]  ;;  %v4442_v42 = vadd.f32 %v17766_v8, %v3991_v9 }
 0x7f0   : > { %17758 = vst [vmem:[#allocation20_spill] sm:$0xff] %v14060_v28  ;;  %v4441_v19 = vadd.f32 %v17765_v40, %v3830_v30  ;;  %v17768_v28 = vld [vmem:[#allocation94_spill] sm:$0xff]  ;;  %v17773_v30 = vld [vmem:[#allocation57_spill] sm:$0xff] }
 0x7f1   : > { %v5417_v27 = vmax.f32 %v5287_v47, %v5288_v24  ;;  %v14071_v60 = vpop.f32.mrf.mxu1  ;;  %v17769_v29 = vmax.f32 %v17767_v6, %v17768_v28  ;;  %v17770_v47 = vld [vmem:[#allocation353_spill] sm:$0xff]  ;;  %v4860_v26 = vadd.f32 %v17771_v12, %v4442_v42  ;;  %v3833_v21 = vadd.f32 %v17774_v61, %v17773_v30  ;;  %v17780_v12 = vld [vmem:[#allocation276_spill] sm:$0xff]  ;;  %v14112_v30 = vld [vmem:[%s9003_s26 + $0x320] sm:$0xff] }
 0x7f2   : > { %17764 = vst [vmem:[#allocation160_spill] sm:$0xff] %v14071_v60  ;;  %5636 = vmatmul.f32.gmra.mxu0 %v14069_v63  ;;  %v4859_v24 = vadd.f32 %v17770_v47, %v4441_v19  ;;  %v17775_v9 = vld [vmem:[#allocation29_spill] sm:$0xff]  ;;  %v14099_v19 = vmax.f32 %v5515_v41, 0.0  ;;  %v17782_v60 = vld [vmem:[#allocation98_spill] sm:$0xff] }
 0x7f3   : > { %v5465_v51 = vmax.f32 %v17769_v29, %v5417_v27  ;;  %8261 = vmatmul.msk.f32.gmra.mxu3 %vm1191_vm1, %v13938_v20  ;;  %8216 = vmatmul.msk.f32.gmra.mxu2 %vm1191_vm1, %v14082_v55  ;;  %v17776_v27 = vld [vmem:[#allocation91_spill] sm:$0xff]  ;;  %v4443_v47 = vadd.f32 %v17779_v17, %v3833_v21  ;;  %v17784_v41 = vld [vmem:[#allocation357_spill] sm:$0xff]  ;;  %v5516_v21 = vadd.f32 %v13790_v25, %v5464_v33  ;;  %v17787_v33 = vld [vmem:[#allocation12_spill] sm:$0xff] }
 0x7f4   : > { %5749 = vmatmul.f32.gmra.mxu1 %v14069_v63  ;;  %v5289_v6 = vadd.f32 %v13947_v13, %v4859_v24  ;;  %v3994_v40 = vadd.f32 %v17776_v27, %v17775_v9  ;;  %17777 = vst [vmem:[#allocation227_spill] sm:$0xff] %v14099_v19  ;;  %v17781_v24 = vld [vmem:[#allocation134_spill] sm:$0xff] }
 0x7f5   : > { %v17796_v63 = vld [vmem:[#allocation102_spill] sm:$0xff] }
 0x7f6   : > { %v5160_v29 = vpop.f32.mrf.mxu3  ;;  %v14091_v20 = vpop.f32.mrf.mxu2  ;;  %v4444_v13 = vadd.f32 %v17780_v12, %v3994_v40  ;;  %v1049_v40 = vld [vmem:[%s16515_s3 + $0x290] sm:$0xff] }
 0x7f7   : > { %v5290_v28 = vadd.f32 %v5160_v29, %v4860_v26  ;;  %v14093_v52 = vpop.f32.mrf.mxu0  ;;  %v17783_v26 = vmax.f32 %v17781_v24, %v17782_v60  ;;  %6057 = vmatpush.msra.mxu0 %v1049_v40 }
 0x7f8   : > { %17772 = vst [vmem:[#allocation84_spill] sm:$0xff] %v14093_v52 }
 0x7f9   : > { %v5418_v42 = vmax.f32 %v5289_v6, %v5290_v28  ;;  %v14101_v8 = vpop.f32.mrf.mxu1  ;;  %v4861_v6 = vadd.f32 %v17784_v41, %v4443_v47  ;;  %v17785_v28 = vld [vmem:[#allocation358_spill] sm:$0xff] }
 0x7fa   : > { %17778 = vst [vmem:[#allocation240_spill] sm:$0xff] %v14101_v8  ;;  %5639 = vmatmul.f32.gmra.mxu0 %v14099_v19  ;;  %v4862_v61 = vadd.f32 %v17785_v28, %v4444_v13  ;;  %v17788_v47 = vld [vmem:[#allocation146_spill] sm:$0xff]  ;;  %v17790_v13 = vld [vmem:[#allocation195_spill] sm:$0xff]  ;;  %v17793_v28 = vld [vmem:[#allocation265_spill] sm:$0xff] }
 0x7fb   : > { %v5466_v29 = vmax.f32 %v17783_v26, %v5418_v42  ;;  %8262 = vmatmul.msk.f32.gmra.mxu3 %vm1191_vm1, %v13974_v32  ;;  %8217 = vmatmul.msk.f32.gmra.mxu2 %vm1191_vm1, %v14112_v30  ;;  %v5291_v9 = vadd.f32 %v13983_v14, %v4861_v6  ;;  %v1050_v42 = vld [vmem:[%s16515_s3 + $0x298] sm:$0xff]  ;;  %v3836_v12 = vadd.f32 %v17788_v47, %v17787_v33  ;;  %v14135_v26 = vmax.f32 %v5516_v21, 0.0  ;;  %v17798_v21 = vld [vmem:[#allocation361_spill] sm:$0xff] }
 0x7fc   : > { %5752 = vmatmul.f32.gmra.mxu1 %v14099_v19  ;;  %v17789_v14 = vld [vmem:[#allocation174_spill] sm:$0xff]  ;;  %v17795_v19 = vld [vmem:[#allocation136_spill] sm:$0xff]  ;;  %v5517_v47 = vadd.f32 %v13790_v25, %v5465_v51  ;;  %v17801_v51 = vld [vmem:[#allocation31_spill] sm:$0xff] }
 0x7fd   : > { %6170 = vmatpush.msra.mxu1 %v1050_v42  ;;  %v3997_v24 = vadd.f32 %v17790_v13, %v17789_v14  ;;  %17791 = vst [vmem:[#allocation70_spill] sm:$0xff] %v14135_v26  ;;  %v14148_v42 = vld [vmem:[%s9003_s26 + $0x328] sm:$0xff]  ;;  %v978_v14 = vld [vmem:[%s16515_s3 + $0x58] sm:$0xff] }
 0x7fe   : > { %v5163_v60 = vpop.f32.mrf.mxu3  ;;  %v14121_v27 = vpop.f32.mrf.mxu2  ;;  %5948 = vmatpush.msrb.mxu3 %v978_v14  ;;  %v14184_v14 = vld [vmem:[%s9003_s26 + $0x330] sm:$0xff] }
 0x7ff   : > { %v5292_v32 = vadd.f32 %v5163_v60, %v4862_v61  ;;  %v14129_v17 = vpop.f32.mrf.mxu0  ;;  %v4445_v61 = vadd.f32 %v17793_v28, %v3836_v12  ;;  %v17794_v60 = vld [vmem:[#allocation280_spill] sm:$0xff]  ;;  %v977_v12 = vld [vmem:[%s16515_s3 + $0x50] sm:$0xff] }
 0x800   : > { %17786 = vst [vmem:[#allocation110_spill] sm:$0xff] %v14129_v17  ;;  %v4446_v8 = vadd.f32 %v17794_v60, %v3997_v24  ;;  %v17797_v17 = vmax.f32 %v17795_v19, %v17796_v63  ;;  %5835 = vmatpush.msra.mxu2 %v977_v12 }
 0x801   : > { %v5419_v41 = vmax.f32 %v5291_v9, %v5292_v32  ;;  %v14137_v6 = vpop.f32.mrf.mxu1  ;;  %v4863_v9 = vadd.f32 %v17798_v21, %v4445_v61  ;;  %v17799_v32 = vld [vmem:[#allocation362_spill] sm:$0xff]  ;;  %v14171_v61 = vmax.f32 %v5517_v47, 0.0  ;;  %v17812_v47 = vld [vmem:[#allocation365_spill] sm:$0xff] }
 0x802   : > { %17792 = vst [vmem:[#allocation321_spill] sm:$0xff] %v14137_v6  ;;  %5642 = vmatmul.f32.gmra.mxu0 %v14135_v26  ;;  %v4864_v33 = vadd.f32 %v17799_v32, %v4446_v8  ;;  %v17802_v8 = vld [vmem:[#allocation198_spill] sm:$0xff]  ;;  %v17809_v6 = vld [vmem:[#allocation139_spill] sm:$0xff] }
 0x803   : > { %v5467_v40 = vmax.f32 %v17797_v17, %v5419_v41  ;;  %8263 = vmatmul.msk.f32.gmra.mxu3 %vm1191_vm1, %v14010_v53  ;;  %8218 = vmatmul.msk.f32.gmra.mxu2 %vm1191_vm1, %v14148_v42  ;;  %v5293_v19 = vadd.f32 %v14019_v18, %v4863_v9  ;;  %v3839_v24 = vadd.f32 %v17802_v8, %v17801_v51  ;;  %v17803_v18 = vld [vmem:[#allocation109_spill] sm:$0xff]  ;;  %v17804_v41 = vld [vmem:[#allocation199_spill] sm:$0xff] }
 0x804   : > { %5755 = vmatmul.f32.gmra.mxu1 %v14135_v26  ;;  %v4000_v28 = vadd.f32 %v17804_v41, %v17803_v18  ;;  %17805 = vst [vmem:[#allocation3_spill] sm:$0xff] %v14171_v61  ;;  %v17807_v9 = vld [vmem:[#allocation269_spill] sm:$0xff]  ;;  %v17810_v26 = vld [vmem:[#allocation106_spill] sm:$0xff]  ;;  %v5518_v8 = vadd.f32 %v13790_v25, %v5466_v29  ;;  %v1048_v18 = vld [vmem:[%s16515_s3 + $0x288] sm:$0xff] }
 0x805   : > { %v4447_v32 = vadd.f32 %v17807_v9, %v3839_v24  ;;  %v1047_v24 = vld [vmem:[%s16515_s3 + $0x280] sm:$0xff]  ;;  %6171 = vmatpush.msra.mxu1 %v1048_v18  ;;  %v14220_v18 = vld [vmem:[%s9003_s26 + $0x338] sm:$0xff] }
 0x806   : > { %v5166_v63 = vpop.f32.mrf.mxu3  ;;  %v14157_v17 = vpop.f32.mrf.mxu2  ;;  %6058 = vmatpush.msra.mxu0 %v1047_v24  ;;  %v17815_v29 = vld [vmem:[#allocation15_spill] sm:$0xff] }
 0x807   : > { %v5294_v53 = vadd.f32 %v5166_v63, %v4864_v33  ;;  %v14165_v13 = vpop.f32.mrf.mxu0  ;;  %v17808_v33 = vld [vmem:[#allocation284_spill] sm:$0xff]  ;;  %v17818_v9 = vld [vmem:[#allocation203_spill] sm:$0xff] }
 0x808   : > { %17800 = vst [vmem:[#allocation322_spill] sm:$0xff] %v14165_v13  ;;  %v4448_v63 = vadd.f32 %v17808_v33, %v4000_v28  ;;  %v17811_v13 = vmax.f32 %v17809_v6, %v17810_v26  ;;  %v17816_v28 = vld [vmem:[#allocation202_spill] sm:$0xff]  ;;  %v14207_v33 = vmax.f32 %v5518_v8, 0.0  ;;  %v17826_v8 = vld [vmem:[#allocation369_spill] sm:$0xff] }
 0x809   : > { %v5420_v60 = vmax.f32 %v5293_v19, %v5294_v53  ;;  %v14173_v21 = vpop.f32.mrf.mxu1  ;;  %v4865_v19 = vadd.f32 %v17812_v47, %v4447_v32  ;;  %v17813_v53 = vld [vmem:[#allocation366_spill] sm:$0xff] }
 0x80a   : > { %17806 = vst [vmem:[#allocation170_spill] sm:$0xff] %v14173_v21  ;;  %5645 = vmatmul.f32.gmra.mxu0 %v14171_v61  ;;  %v4866_v51 = vadd.f32 %v17813_v53, %v4448_v63  ;;  %v17823_v21 = vld [vmem:[#allocation142_spill] sm:$0xff] }
 0x80b   : > { %v5468_v12 = vmax.f32 %v17811_v13, %v5420_v60  ;;  %8264 = vmatmul.msk.f32.gmra.mxu3 %vm1191_vm1, %v14040_v38  ;;  %8219 = vmatmul.msk.f32.gmra.mxu2 %vm1191_vm1, %v14184_v14  ;;  %v5295_v6 = vadd.f32 %v14049_v49, %v4865_v19  ;;  %v3842_v60 = vadd.f32 %v17816_v28, %v17815_v29  ;;  %v17817_v49 = vld [vmem:[#allocation177_spill] sm:$0xff] }
 0x80c   : > { %5758 = vmatmul.f32.gmra.mxu1 %v14171_v61  ;;  %v4003_v32 = vadd.f32 %v17818_v9, %v17817_v49  ;;  %17819 = vst [vmem:[#allocation93_spill] sm:$0xff] %v14207_v33  ;;  %v17821_v19 = vld [vmem:[#allocation273_spill] sm:$0xff]  ;;  %v17824_v61 = vld [vmem:[#allocation112_spill] sm:$0xff]  ;;  %v5519_v28 = vadd.f32 %v13790_v25, %v5467_v40  ;;  %v17830_v9 = vld [vmem:[#allocation206_spill] sm:$0xff] }
 0x80d   : > { %v4449_v53 = vadd.f32 %v17821_v19, %v3842_v60  ;;  %v17829_v49 = vld [vmem:[#allocation64_spill] sm:$0xff]  ;;  %v17832_v19 = vld [vmem:[#allocation207_spill] sm:$0xff]  ;;  %v17835_v40 = vld [vmem:[#allocation277_spill] sm:$0xff] }
 0x80e   : > { %v5169_v26 = vpop.f32.mrf.mxu3  ;;  %v14193_v13 = vpop.f32.mrf.mxu2 }
 0x80f   : > { %v5296_v38 = vadd.f32 %v5169_v26, %v4866_v51  ;;  %v14201_v41 = vpop.f32.mrf.mxu0  ;;  %v17822_v51 = vld [vmem:[#allocation288_spill] sm:$0xff] }
 0x810   : > { %17814 = vst [vmem:[#allocation21_spill] sm:$0xff] %v14201_v41  ;;  %v4450_v26 = vadd.f32 %v17822_v51, %v4003_v32  ;;  %v17825_v41 = vmax.f32 %v17823_v21, %v17824_v61  ;;  %v3845_v32 = vadd.f32 %v17830_v9, %v17829_v49  ;;  %v14250_v49 = vld [vmem:[%s9003_s26 + $0x340] sm:$0xff]  ;;  %v5520_v9 = vadd.f32 %v13790_v25, %v5468_v12  ;;  %v17843_v12 = vld [vmem:[#allocation18_spill] sm:$0xff] }
 0x811   : > { %v5421_v63 = vmax.f32 %v5295_v6, %v5296_v38  ;;  %v14209_v47 = vpop.f32.mrf.mxu1  ;;  %v4867_v6 = vadd.f32 %v17826_v8, %v4449_v53  ;;  %v17827_v38 = vld [vmem:[#allocation370_spill] sm:$0xff]  ;;  %v14237_v53 = vmax.f32 %v5519_v28, 0.0  ;;  %v17840_v28 = vld [vmem:[#allocation373_spill] sm:$0xff] }
 0x812   : > { %17820 = vst [vmem:[#allocation230_spill] sm:$0xff] %v14209_v47  ;;  %5648 = vmatmul.f32.gmra.mxu0 %v14207_v33  ;;  %v4868_v29 = vadd.f32 %v17827_v38, %v4450_v26  ;;  %v4451_v38 = vadd.f32 %v17835_v40, %v3845_v32  ;;  %v17836_v47 = vld [vmem:[#allocation292_spill] sm:$0xff] }
 0x813   : > { %v5469_v24 = vmax.f32 %v17825_v41, %v5421_v63  ;;  %8265 = vmatmul.msk.f32.gmra.mxu3 %vm1191_vm1, %v14082_v55  ;;  %8220 = vmatmul.msk.f32.gmra.mxu2 %vm1191_vm1, %v14220_v18  ;;  %v5297_v21 = vadd.f32 %v14091_v20, %v4867_v6  ;;  %v17831_v63 = vld [vmem:[#allocation158_spill] sm:$0xff]  ;;  %17833 = vst [vmem:[#allocation111_spill] sm:$0xff] %v14237_v53  ;;  %v17837_v6 = vld [vmem:[#allocation145_spill] sm:$0xff] }
 0x814   : > { %5761 = vmatmul.f32.gmra.mxu1 %v14207_v33  ;;  %v4006_v51 = vadd.f32 %v17832_v19, %v17831_v63  ;;  %v17838_v33 = vld [vmem:[#allocation116_spill] sm:$0xff]  ;;  %v975_v19 = vld [vmem:[%s16515_s3 + $0x40] sm:$0xff] }
 0x815   : > { %5836 = vmatpush.msra.mxu2 %v975_v19 }
 0x816   : > { %v5172_v61 = vpop.f32.mrf.mxu3  ;;  %v14229_v55 = vpop.f32.mrf.mxu2  ;;  %v4452_v20 = vadd.f32 %v17836_v47, %v4006_v51  ;;  %v976_v51 = vld [vmem:[%s16515_s3 + $0x48] sm:$0xff] }
 0x817   : > { %v5298_v41 = vadd.f32 %v5172_v61, %v4868_v29  ;;  %v14231_v60 = vpop.f32.mrf.mxu0  ;;  %v17839_v29 = vmax.f32 %v17837_v6, %v17838_v33  ;;  %5949 = vmatpush.msrb.mxu3 %v976_v51  ;;  %v17845_v6 = vld [vmem:[#allocation180_spill] sm:$0xff] }
 0x818   : > { %17828 = vst [vmem:[#allocation244_spill] sm:$0xff] %v14231_v60  ;;  %v17848_v51 = vld [vmem:[#allocation296_spill] sm:$0xff] }
 0x819   : > { %v5422_v26 = vmax.f32 %v5297_v21, %v5298_v41  ;;  %v14239_v8 = vpop.f32.mrf.mxu1  ;;  %v4869_v21 = vadd.f32 %v17840_v28, %v4451_v38  ;;  %v17841_v41 = vld [vmem:[#allocation374_spill] sm:$0xff]  ;;  %v17844_v38 = vld [vmem:[#allocation209_spill] sm:$0xff] }
 0x81a   : > { %17834 = vst [vmem:[#allocation182_spill] sm:$0xff] %v14239_v8  ;;  %5651 = vmatmul.f32.gmra.mxu0 %v14237_v53  ;;  %v4870_v47 = vadd.f32 %v17841_v41, %v4452_v20  ;;  %v3848_v20 = vadd.f32 %v17844_v38, %v17843_v12  ;;  %v17852_v12 = vld [vmem:[#allocation25_spill] sm:$0xff]  ;;  %v17853_v38 = vld [vmem:[#allocation212_spill] sm:$0xff] }
 0x81b   : > { %v5470_v61 = vmax.f32 %v17839_v29, %v5422_v26  ;;  %8266 = vmatmul.msk.f32.gmra.mxu3 %vm1191_vm1, %v14112_v30  ;;  %8221 = vmatmul.msk.f32.gmra.mxu2 %vm1191_vm1, %v14250_v49  ;;  %v5299_v32 = vadd.f32 %v14121_v27, %v4869_v21  ;;  %v1045_v26 = vld [vmem:[%s16515_s3 + $0x270] sm:$0xff]  ;;  %v1046_v27 = vld [vmem:[%s16515_s3 + $0x278] sm:$0xff]  ;;  %v14279_v21 = vmax.f32 %v5520_v9, 0.0  ;;  %v14292_v9 = vld [vmem:[%s9003_s26 + $0x348] sm:$0xff] }
 0x81c   : > { %5764 = vmatmul.f32.gmra.mxu1 %v14237_v53  ;;  %v17846_v29 = vld [vmem:[#allocation210_spill] sm:$0xff]  ;;  %6059 = vmatpush.msra.mxu0 %v1045_v26  ;;  %v17849_v53 = vld [vmem:[#allocation103_spill] sm:$0xff]  ;;  %v5521_v26 = vadd.f32 %v13790_v25, %v5469_v24  ;;  %v17857_v24 = vld [vmem:[#allocation285_spill] sm:$0xff] }
 0x81d   : > { %v4009_v28 = vadd.f32 %v17846_v29, %v17845_v6  ;;  %6172 = vmatpush.msra.mxu1 %v1046_v27  ;;  %v17854_v6 = vld [vmem:[#allocation81_spill] sm:$0xff] }
 0x81e   : > { %v5175_v33 = vpop.f32.mrf.mxu3  ;;  %v14259_v63 = vpop.f32.mrf.mxu2  ;;  %v17855_v29 = vld [vmem:[#allocation213_spill] sm:$0xff] }
 0x81f   : > { %v5300_v30 = vadd.f32 %v5175_v33, %v4870_v47  ;;  %v14270_v40 = vpop.f32.mrf.mxu0  ;;  %v17847_v33 = vld [vmem:[#allocation281_spill] sm:$0xff]  ;;  %v4454_v8 = vadd.f32 %v17848_v51, %v4009_v28  ;;  %v4012_v28 = vadd.f32 %v17855_v29, %v17854_v6  ;;  %v17860_v51 = vld [vmem:[#allocation11_spill] sm:$0xff]  ;;  %v1044_v29 = vld [vmem:[%s16515_s3 + $0x268] sm:$0xff] }
 0x820   : > { %17842 = vst [vmem:[#allocation325_spill] sm:$0xff] %v14270_v40  ;;  %v4453_v19 = vadd.f32 %v17847_v33, %v3848_v20  ;;  %v17850_v40 = vld [vmem:[#allocation148_spill] sm:$0xff]  ;;  %v3851_v20 = vadd.f32 %v17853_v38, %v17852_v12  ;;  %v1043_v6 = vld [vmem:[%s16515_s3 + $0x260] sm:$0xff]  ;;  %6173 = vmatpush.msra.mxu1 %v1044_v29  ;;  %v14362_v29 = vld [vmem:[%s9003_s26 + $0x358] sm:$0xff] }
 0x821   : > { %v5423_v41 = vmax.f32 %v5299_v32, %v5300_v30  ;;  %v14281_v47 = vpop.f32.mrf.mxu1  ;;  %v17851_v60 = vmax.f32 %v17849_v53, %v17850_v40  ;;  %v4872_v30 = vadd.f32 %v13488_v2, %v4454_v8  ;;  %v17858_v33 = vld [vmem:[#allocation300_spill] sm:$0xff]  ;;  %6060 = vmatpush.msra.mxu0 %v1043_v6 }
 0x822   : > { %5654 = vmatmul.f32.gmra.mxu0 %v14279_v21  ;;  %v4871_v32 = vadd.f32 %v13486_v11, %v4453_v19  ;;  %v14309_v11 = vmax.f32 %v5521_v26, 0.0  ;;  %v17859_v19 = vld [vmem:[#allocation149_spill] sm:$0xff] }
 0x823   : > { %v5471_v52 = vmax.f32 %v17851_v60, %v5423_v41  ;;  %8267 = vmatmul.msk.f32.gmra.mxu3 %vm1191_vm1, %v14148_v42  ;;  %8222 = vmatmul.msk.f32.gmra.mxu2 %vm1191_vm1, %v14292_v9  ;;  %v4455_v41 = vadd.f32 %v17857_v24, %v3851_v20 }
 0x824   : > { %5767 = vmatmul.f32.gmra.mxu1 %v14279_v21  ;;  %v5301_v53 = vadd.f32 %v14157_v17, %v4871_v32  ;;  %v4456_v17 = vadd.f32 %v17858_v33, %v4012_v28  ;;  %v17861_v32 = vmax.f32 %v17859_v19, %v17860_v51  ;;  %v17866_v19 = vld [vmem:[#allocation289_spill] sm:$0xff] }
 0x825   : > { %v4873_v26 = vadd.f32 %v13507_v10, %v4455_v41 }
 0x826   : > { %v5178_v60 = vpop.f32.mrf.mxu3  ;;  %v14301_v42 = vpop.f32.mrf.mxu2 }
 0x827   : > { %v5302_v40 = vadd.f32 %v5178_v60, %v4872_v30  ;;  %v14303_v27 = vpop.f32.mrf.mxu0  ;;  %v14324_v60 = vld [vmem:[%s9003_s26 + $0x350] sm:$0xff]  ;;  %v5303_v38 = vadd.f32 %v14193_v13, %v4873_v26  ;;  %v17864_v13 = vld [vmem:[#allocation183_spill] sm:$0xff] }
 0x829   : > { %v5424_v2 = vmax.f32 %v5301_v53, %v5302_v40  ;;  %v14311_v8 = vpop.f32.mrf.mxu1  ;;  %v4874_v53 = vadd.f32 %v13509_v35, %v4456_v17  ;;  %v5522_v40 = vadd.f32 %v13790_v25, %v5470_v61  ;;  %v17862_v35 = vld [vmem:[#allocation22_spill] sm:$0xff]  ;;  %v17863_v61 = vld [vmem:[#allocation215_spill] sm:$0xff] }
 0x82a   : > { %17856 = vst [vmem:[#allocation326_spill] sm:$0xff] %v14311_v8  ;;  %5657 = vmatmul.f32.gmra.mxu0 %v14309_v11  ;;  %v3854_v28 = vadd.f32 %v17863_v61, %v17862_v35  ;;  %v971_v35 = vld [vmem:[%s16515_s3 + $0x20] sm:$0xff] }
 0x82b   : > { %v14318_v30 = vmax.f32 %v17861_v32, %v5424_v2  ;;  %8268 = vmatmul.msk.f32.gmra.mxu3 %vm1191_vm1, %v14184_v14  ;;  %8223 = vmatmul.msk.f32.gmra.mxu2 %vm1191_vm1, %v14324_v60  ;;  %v17865_v2 = vld [vmem:[#allocation216_spill] sm:$0xff]  ;;  %v14347_v41 = vmax.f32 %v5522_v40, 0.0  ;;  %v973_v40 = vld [vmem:[%s16515_s3 + $0x30] sm:$0xff] }
 0x82c   : > { %5770 = vmatmul.f32.gmra.mxu1 %v14309_v11  ;;  %v4015_v24 = vadd.f32 %v17865_v2, %v17864_v13  ;;  %v4457_v51 = vadd.f32 %v17866_v19, %v3854_v28  ;;  %v17867_v32 = vld [vmem:[#allocation304_spill] sm:$0xff]  ;;  %5837 = vmatpush.msra.mxu2 %v973_v40  ;;  %v17871_v2 = vld [vmem:[#allocation153_spill] sm:$0xff]  ;;  %v967_v40 = vld [vmem:[%s16515_s3] sm:$0xff] }
 0x82d   : > { %v17873_v19 = vld [vmem:[#allocation184_spill] sm:$0xff] }
 0x82e   : > { %v5181_v12 = vpop.f32.mrf.mxu3  ;;  %v14333_v20 = vpop.f32.mrf.mxu2  ;;  %v4458_v26 = vadd.f32 %v17867_v32, %v4015_v24  ;;  %5838 = vmatpush.msra.mxu2 %v971_v35  ;;  %v17872_v24 = vld [vmem:[#allocation218_spill] sm:$0xff] }
 0x82f   : > { %v5304_v14 = vadd.f32 %v5181_v12, %v4874_v53  ;;  %v14341_v10 = vpop.f32.mrf.mxu0  ;;  %v17868_v53 = vld [vmem:[#allocation151_spill] sm:$0xff]  ;;  %v17869_v12 = vld [vmem:[#allocation124_spill] sm:$0xff] }
 0x830   : > { %v17870_v8 = vmax.f32 %v17868_v53, %v17869_v12  ;;  %v14396_v12 = vld [vmem:[%s9003_s26 + $0x360] sm:$0xff] }
 0x831   : > { %v5425_v33 = vmax.f32 %v5303_v38, %v5304_v14  ;;  %v14349_v17 = vpop.f32.mrf.mxu1  ;;  %v4875_v38 = vadd.f32 %v13534_v0, %v4457_v51  ;;  %v5523_v14 = vadd.f32 %v13790_v25, %v5471_v52  ;;  %v974_v0 = vld [vmem:[%s16515_s3 + $0x38] sm:$0xff]  ;;  %v969_v52 = vld [vmem:[%s16515_s3 + $0x10] sm:$0xff] }
 0x832   : > { %5660 = vmatmul.f32.gmra.mxu0 %v14347_v41  ;;  %5950 = vmatpush.msrb.mxu3 %v974_v0  ;;  %v17878_v0 = vld [vmem:[#allocation152_spill] sm:$0xff] }
 0x833   : > { %v14356_v6 = vmax.f32 %v17870_v8, %v5425_v33  ;;  %8269 = vmatmul.msk.f32.gmra.mxu3 %vm1191_vm1, %v14220_v18  ;;  %8224 = vmatmul.msk.f32.gmra.mxu2 %vm1191_vm1, %v14362_v29  ;;  %v4876_v8 = vadd.f32 %v13536_v22, %v4458_v26  ;;  %v5305_v61 = vadd.f32 %v14229_v55, %v4875_v38  ;;  %v17874_v55 = vld [vmem:[#allocation219_spill] sm:$0xff]  ;;  %v14391_v32 = vmax.f32 %v5523_v14, 0.0  ;;  %v17876_v38 = vld [vmem:[#allocation293_spill] sm:$0xff] }
 0x834   : > { %5773 = vmatmul.f32.gmra.mxu1 %v14347_v41  ;;  %v3857_v33 = vadd.f32 %v17872_v24, %v17871_v2  ;;  %v4018_v51 = vadd.f32 %v17874_v55, %v17873_v19  ;;  %5839 = vmatpush.msra.mxu2 %v969_v52  ;;  %v17879_v2 = vld [vmem:[#allocation138_spill] sm:$0xff] }
 0x835   : > { %v17880_v24 = vmax.f32 %v17878_v0, %v17879_v2  ;;  %v14436_v2 = vld [vmem:[%s9003_s26 + $0x368] sm:$0xff] }
 0x836   : > { %v5184_v18 = vpop.f32.mrf.mxu3  ;;  %v14377_v28 = vpop.f32.mrf.mxu2  ;;  %5840 = vmatpush.msra.mxu2 %v967_v40 }
 0x837   : > { %v5306_v13 = vadd.f32 %v5184_v18, %v4876_v8  ;;  %v14382_v22 = vpop.f32.mrf.mxu0  ;;  %v4459_v8 = vadd.f32 %v17876_v38, %v3857_v33  ;;  %v17877_v18 = vld [vmem:[#allocation306_spill] sm:$0xff] }
 0x838   : > { %v4460_v35 = vadd.f32 %v17877_v18, %v4018_v51  ;;  %v1041_v51 = vld [vmem:[%s16515_s3 + $0x250] sm:$0xff]  ;;  %v17884_v38 = vld [vmem:[#allocation46_spill] sm:$0xff] }
 0x839   : > { %v5426_v26 = vmax.f32 %v5305_v61, %v5306_v13  ;;  %v14393_v53 = vpop.f32.mrf.mxu1  ;;  %v4877_v14 = vadd.f32 %v13562_v62, %v4459_v8  ;;  %v5524_v13 = vadd.f32 %v13790_v25, %v14318_v30  ;;  %v1042_v62 = vld [vmem:[%s16515_s3 + $0x258] sm:$0xff]  ;;  %6061 = vmatpush.msra.mxu0 %v1041_v51  ;;  %v17889_v51 = vld [vmem:[#allocation141_spill] sm:$0xff] }
 0x83a   : > { %17875 = vst [vmem:[#allocation56_spill] sm:$0xff] %v14393_v53  ;;  %5663 = vmatmul.f32.gmra.mxu0 %v14391_v32  ;;  %v4878_v61 = vadd.f32 %v13566_v4, %v4460_v35  ;;  %6174 = vmatpush.msra.mxu1 %v1042_v62  ;;  %v17882_v30 = vld [vmem:[#allocation26_spill] sm:$0xff] }
 0x83b   : > { %v5474_v19 = vmax.f32 %v17880_v24, %v5426_v26  ;;  %8270 = vmatmul.msk.f32.gmra.mxu3 %vm1191_vm1, %v14250_v49  ;;  %8225 = vmatmul.msk.f32.gmra.mxu2 %vm1191_vm1, %v14396_v12  ;;  %v5307_v33 = vadd.f32 %v14259_v63, %v4877_v14  ;;  %v17883_v26 = vld [vmem:[#allocation220_spill] sm:$0xff]  ;;  %v17885_v63 = vld [vmem:[#allocation221_spill] sm:$0xff]  ;;  %v14431_v18 = vmax.f32 %v5524_v13, 0.0 }
 0x83c   : > { %5776 = vmatmul.f32.gmra.mxu1 %v14391_v32  ;;  %v3860_v40 = vadd.f32 %v17883_v26, %v17882_v30  ;;  %v4021_v8 = vadd.f32 %v17885_v63, %v17884_v38  ;;  %v17886_v24 = vld [vmem:[#allocation297_spill] sm:$0xff]  ;;  %v17893_v63 = vld [vmem:[#allocation222_spill] sm:$0xff] }
 0x83d   : > { %v17892_v38 = vld [vmem:[#allocation73_spill] sm:$0xff] }
 0x83e   : > { %v5187_v52 = vpop.f32.mrf.mxu3  ;;  %v14417_v49 = vpop.f32.mrf.mxu2  ;;  %v4461_v14 = vadd.f32 %v17886_v24, %v3860_v40  ;;  %v17895_v24 = vld [vmem:[#allocation223_spill] sm:$0xff] }
 0x83f   : > { %v5308_v55 = vadd.f32 %v5187_v52, %v4878_v61  ;;  %v14425_v4 = vpop.f32.mrf.mxu0  ;;  %v17887_v61 = vld [vmem:[#allocation308_spill] sm:$0xff] }
 0x840   : > { %17881 = vst [vmem:[#allocation193_spill] sm:$0xff] %v14425_v4  ;;  %v4462_v52 = vadd.f32 %v17887_v61, %v4021_v8  ;;  %v17888_v4 = vld [vmem:[#allocation48_spill] sm:$0xff]  ;;  %v4879_v13 = vadd.f32 %v13582_v56, %v4461_v14  ;;  %v3863_v8 = vadd.f32 %v17893_v63, %v17892_v38 }
 0x841   : > { %v5427_v35 = vmax.f32 %v5307_v33, %v5308_v55  ;;  %v14433_v0 = vpop.f32.mrf.mxu1  ;;  %v17890_v62 = vmax.f32 %v17888_v4, %v17889_v51  ;;  %v5525_v55 = vadd.f32 %v13790_v25, %v14356_v6  ;;  %v14467_v6 = vld [vmem:[%s9003_s26 + $0x370] sm:$0xff]  ;;  %v17898_v51 = vld [vmem:[#allocation310_spill] sm:$0xff] }
 0x842   : > { %5666 = vmatmul.f32.gmra.mxu0 %v14431_v18  ;;  %v4880_v33 = vadd.f32 %v13587_v15, %v4462_v52  ;;  %v5309_v30 = vadd.f32 %v14301_v42, %v4879_v13  ;;  %v17897_v52 = vld [vmem:[#allocation301_spill] sm:$0xff] }
 0x843   : > { %v5475_v53 = vmax.f32 %v17890_v62, %v5427_v35  ;;  %8271 = vmatmul.msk.f32.gmra.mxu3 %vm1191_vm1, %v14292_v9  ;;  %8226 = vmatmul.msk.f32.gmra.mxu2 %vm1191_vm1, %v14436_v2  ;;  %v17894_v35 = vld [vmem:[#allocation89_spill] sm:$0xff]  ;;  %v14462_v56 = vmax.f32 %v5525_v55, 0.0  ;;  %v4463_v42 = vadd.f32 %v17897_v52, %v3863_v8  ;;  %v17906_v52 = vld [vmem:[#allocation226_spill] sm:$0xff] }
 0x844   : > { %5779 = vmatmul.f32.gmra.mxu1 %v14431_v18  ;;  %v4024_v61 = vadd.f32 %v17895_v24, %v17894_v35  ;;  %v17899_v13 = vld [vmem:[#allocation113_spill] sm:$0xff]  ;;  %v972_v35 = vld [vmem:[%s16515_s3 + $0x28] sm:$0xff]  ;;  %v1039_v24 = vld [vmem:[%s16515_s3 + $0x240] sm:$0xff] }
 0x845   : > { %v4881_v55 = vadd.f32 %v13614_v16, %v4463_v42  ;;  %v1040_v16 = vld [vmem:[%s16515_s3 + $0x248] sm:$0xff]  ;;  %5951 = vmatpush.msrb.mxu3 %v972_v35  ;;  %6062 = vmatpush.msra.mxu0 %v1039_v24  ;;  %v17910_v24 = vld [vmem:[#allocation155_spill] sm:$0xff] }
 0x846   : > { %v5190_v4 = vpop.f32.mrf.mxu3  ;;  %v14454_v26 = vpop.f32.mrf.mxu2  ;;  %v4464_v62 = vadd.f32 %v17898_v51, %v4024_v61  ;;  %6175 = vmatpush.msra.mxu1 %v1040_v16  ;;  %v17909_v35 = vld [vmem:[#allocation128_spill] sm:$0xff]  ;;  %v14524_v16 = vadd.f32 %v13790_v25, %v13593_v1 }
 0x847   : > { %v5310_v9 = vadd.f32 %v5190_v4, %v4880_v33  ;;  %v14456_v40 = vpop.f32.mrf.mxu0  ;;  %v17900_v33 = vld [vmem:[#allocation154_spill] sm:$0xff]  ;;  %v5311_v63 = vadd.f32 %v14333_v20, %v4881_v55 }
 0x848   : > { %17891 = vst [vmem:[#allocation163_spill] sm:$0xff] %v14456_v40  ;;  %v17901_v4 = vmax.f32 %v17899_v13, %v17900_v33  ;;  %v17903_v20 = vld [vmem:[#allocation30_spill] sm:$0xff] }
 0x849   : > { %v5428_v15 = vmax.f32 %v5309_v30, %v5310_v9  ;;  %v14464_v14 = vpop.f32.mrf.mxu1  ;;  %v4882_v30 = vadd.f32 %v13619_v57, %v4464_v62  ;;  %v5526_v9 = vadd.f32 %v13790_v25, %v5474_v19  ;;  %v17904_v19 = vld [vmem:[#allocation225_spill] sm:$0xff]  ;;  %v14506_v33 = vld [vmem:[%s9003_s26 + $0x378] sm:$0xff]  ;;  %s7296_s26 = sshll.u32 %s7289_s12, 2 }
 0x84a   : > { %17896 = vst [vmem:[#allocation58_spill] sm:$0xff] %v14464_v14  ;;  %5669 = vmatmul.f32.gmra.mxu0 %v14462_v56  ;;  %v3866_v61 = vadd.f32 %v17904_v19, %v17903_v20  ;;  %p810_p8 = scmp.lt.s32.totalorder %s7296_s26, 7 }
 0x84b   : > { %v5476_v40 = vmax.f32 %v17901_v4, %v5428_v15  ;;  %8272 = vmatmul.msk.f32.gmra.mxu3 %vm1191_vm1, %v14324_v60  ;;  %8227 = vmatmul.msk.f32.gmra.mxu2 %vm1191_vm1, %v14467_v6  ;;  %v17905_v15 = vld [vmem:[#allocation187_spill] sm:$0xff]  ;;  %v14501_v51 = vmax.f32 %v5526_v9, 0.0  ;;  %v17907_v4 = vld [vmem:[#allocation305_spill] sm:$0xff] }
 0x84c   : > { %5782 = vmatmul.f32.gmra.mxu1 %v14462_v56  ;;  %v4027_v42 = vadd.f32 %v17906_v52, %v17905_v15  ;;  %v4465_v55 = vadd.f32 %v17907_v4, %v3866_v61  ;;  %v17912_v15 = vld [vmem:[#allocation85_spill] sm:$0xff]  ;;  %s18472_s26 = smov (!%p810_p8, %s7296_s26), 7 }
 0x84d   : > { %s7297_s17 = sshll.u32 %s18472_s26, 3 }
 0x84e   : > { %v5193_v38 = vpop.f32.mrf.mxu3  ;;  %v14484_v8 = vpop.f32.mrf.mxu2  ;;  %v4883_v9 = vadd.f32 %v13646_v39, %v4465_v55  ;;  %v970_v39 = vld [vmem:[%s16515_s3 + $0x18] sm:$0xff]  ;;  %s813_s20 = scalar_lea.vmem %s16521_s9, %s7297_s17 }
 0x84f   : > { %v5312_v60 = vadd.f32 %v5193_v38, %v4882_v30  ;;  %v14495_v57 = vpop.f32.mrf.mxu0  ;;  %v17908_v30 = vld [vmem:[#allocation312_spill] sm:$0xff]  ;;  %5952 = vmatpush.msrb.mxu3 %v970_v39 }
 0x850   : > { %17902 = vst [vmem:[#allocation233_spill] sm:$0xff] %v14495_v57  ;;  %v4466_v38 = vadd.f32 %v17908_v30, %v4027_v42  ;;  %v17911_v57 = vmax.f32 %v17909_v35, %v17910_v24  ;;  %v17915_v42 = vld [vmem:[#allocation229_spill] sm:$0xff]  ;;  %v968_v30 = vld [vmem:[%s16515_s3 + $0x8] sm:$0xff]  ;;  %v17917_v24 = vld [vmem:[#allocation314_spill] sm:$0xff] }
 0x851   : > { %v5429_v62 = vmax.f32 %v5311_v63, %v5312_v60  ;;  %v14503_v13 = vpop.f32.mrf.mxu1  ;;  %v5527_v60 = vadd.f32 %v13790_v25, %v5475_v53  ;;  %v17914_v53 = vld [vmem:[#allocation188_spill] sm:$0xff]  ;;  %5953 = vmatpush.msrb.mxu3 %v968_v30 }
 0x852   : > { %5672 = vmatmul.f32.gmra.mxu0 %v14501_v51  ;;  %v4884_v63 = vadd.f32 %v13651_v50, %v4466_v38  ;;  %v17913_v50 = vld [vmem:[#allocation228_spill] sm:$0xff]  ;;  %v17916_v38 = vld [vmem:[#allocation307_spill] sm:$0xff] }
 0x853   : > { %v5477_v14 = vmax.f32 %v17911_v57, %v5429_v62  ;;  %8273 = vmatmul.msk.f32.gmra.mxu3 %vm1191_vm1, %v14362_v29  ;;  %8228 = vmatmul.msk.f32.gmra.mxu2 %vm1191_vm1, %v14506_v33  ;;  %v5313_v29 = vadd.f32 %v14377_v28, %v4883_v9  ;;  %v3869_v52 = vadd.f32 %v17913_v50, %v17912_v15  ;;  %v14538_v1 = vmax.f32 %v5527_v60, 0.0  ;;  %v17924_v30 = vld [vmem:[#allocation88_spill] sm:$0xff] }
 0x854   : > { %5785 = vmatmul.f32.gmra.mxu1 %v14501_v51  ;;  %v4030_v62 = vadd.f32 %v17915_v42, %v17914_v53  ;;  %v16690_v28 = vmax.f32 %v14524_v16, 0.0 }
 0x855   : > { %v4467_v35 = vadd.f32 %v17916_v38, %v3869_v52  ;;  %v14563_v52 = vld [vmem:[%s16514_s2] ss:$0 sm:$0xff] }
 0x856   : > { %v5196_v57 = vpop.f32.mrf.mxu3  ;;  %v14527_v20 = vpop.f32.mrf.mxu2  ;;  %v4468_v9 = vadd.f32 %v17917_v24, %v4030_v62  ;;  %v17922_v62 = vld [vmem:[#allocation42_spill] sm:$0xff] }
 0x857   : > { %v5314_v19 = vadd.f32 %v5196_v57, %v4884_v63  ;;  %v14529_v61 = vpop.f32.mrf.mxu0  ;;  %v17918_v63 = vld [vmem:[#allocation53_spill] sm:$0xff]  ;;  %v17919_v57 = vld [vmem:[#allocation24_spill] sm:$0xff]  ;;  %v4885_v60 = vadd.f32 %v13672_v59, %v4467_v35 }
 0x858   : > { %v17920_v15 = vmax.f32 %v17918_v63, %v17919_v57  ;;  %v17927_v57 = vld [vmem:[#allocation309_spill] sm:$0xff] }
 0x859   : > { %v5430_v4 = vmax.f32 %v5313_v29, %v5314_v19  ;;  %v14540_v55 = vpop.f32.mrf.mxu1  ;;  %v4886_v29 = vadd.f32 %v13679_v48, %v4468_v9  ;;  %v5528_v19 = vadd.f32 %v13790_v25, %v5476_v40  ;;  %v5315_v53 = vadd.f32 %v14417_v49, %v4885_v60  ;;  %v1037_v48 = vld [vmem:[%s16515_s3 + $0x230] sm:$0xff]  ;;  %v1038_v25 = vld [vmem:[%s16515_s3 + $0x238] sm:$0xff]  ;;  %v17925_v49 = vld [vmem:[#allocation232_spill] sm:$0xff] }
 0x85a   : > { %5675 = vmatmul.f32.gmra.mxu0 %v14538_v1  ;;  %6176 = vmatpush.msra.mxu1 %v1038_v25  ;;  %v4033_v38 = vadd.f32 %v17925_v49, %v17924_v30  ;;  %v17928_v60 = vld [vmem:[#allocation316_spill] sm:$0xff] }
 0x85b   : > { %v5478_v50 = vmax.f32 %v17920_v15, %v5430_v4  ;;  %8274 = vmatmul.msk.f32.gmra.mxu3 %vm1191_vm1, %v14396_v12  ;;  %5841 = vmatmul.f32.vlgmr.msra.gmra.mxu2 %v16690_v28  ;;  %v14567_v12 = vadd.f32 %v14563_v52, %v13625_v5  ;;  %v17923_v5 = vld [vmem:[#allocation231_spill] sm:$0xff]  ;;  %v14584_v35 = vmax.f32 %v5528_v19, 0.0 }
 0x85c   : > { %5788 = vmatmul.f32.gmra.mxu1 %v14538_v1  ;;  %6063 = vmatpush.msra.mxu0 %v1037_v48  ;;  %v3872_v4 = vadd.f32 %v17923_v5, %v17922_v62  ;;  %v17930_v48 = vld [vmem:[#allocation156_spill] sm:$0xff]  ;;  %v14605_v5 = vadd.f32 %v14563_v52, %v13657_v44 }
 0x85d   : > { %v16691_v63 = vmax.f32 %v14567_v12, 0.0 }
 0x85e   : > { %v5199_v39 = vpop.f32.mrf.mxu3  ;;  %v14570_v42 = vpop.f32.mrf.mxu2  ;;  %v4469_v15 = vadd.f32 %v17927_v57, %v3872_v4  ;;  %v16692_v44 = vmax.f32 %v14605_v5, 0.0 }
 0x85f   : > { %v5316_v59 = vadd.f32 %v5199_v39, %v4886_v29  ;;  %v14578_v40 = vpop.f32.mrf.mxu0  ;;  %v4470_v29 = vadd.f32 %v17928_v60, %v4033_v38  ;;  %v17929_v39 = vld [vmem:[#allocation117_spill] sm:$0xff]  ;;  %v17933_v38 = vld [vmem:[#allocation19_spill] sm:$0xff] }
 0x860   : > { %17921 = vst [vmem:[#allocation248_spill] sm:$0xff] %v14578_v40  ;;  %v17931_v25 = vmax.f32 %v17929_v39, %v17930_v48  ;;  %v4887_v19 = vadd.f32 %v13709_v31, %v4469_v15  ;;  %v17935_v31 = vld [vmem:[#allocation191_spill] sm:$0xff] }
 0x861   : > { %v5431_v24 = vmax.f32 %v5315_v53, %v5316_v59  ;;  %v14586_v9 = vpop.f32.mrf.mxu1  ;;  %v4888_v53 = vadd.f32 %v13715_v34, %v4470_v29  ;;  %v5529_v59 = vadd.f32 %v14563_v52, %v5477_v14  ;;  %v17936_v15 = vld [vmem:[#allocation235_spill] sm:$0xff] }
 0x862   : > { %17926 = vst [vmem:[#allocation114_spill] sm:$0xff] %v14586_v9  ;;  %5678 = vmatmul.f32.gmra.mxu0 %v14584_v35  ;;  %v4036_v34 = vadd.f32 %v17936_v15, %v17935_v31  ;;  %v17938_v39 = vld [vmem:[#allocation311_spill] sm:$0xff] }
 0x863   : > { %v5479_v28 = vmax.f32 %v17931_v25, %v5431_v24  ;;  %8275 = vmatmul.msk.f32.gmra.mxu3 %vm1191_vm1, %v14436_v2  ;;  %5844 = vmatmul.f32.gmra.mxu2 %v16691_v63  ;;  %v5317_v2 = vadd.f32 %v14454_v26, %v4887_v19  ;;  %v17934_v24 = vld [vmem:[#allocation234_spill] sm:$0xff]  ;;  %v14616_v60 = vmax.f32 %v5529_v59, 0.0  ;;  %v17939_v48 = vld [vmem:[#allocation319_spill] sm:$0xff]  ;;  %v17940_v19 = vld [vmem:[#allocation157_spill] sm:$0xff] }
 0x864   : > { %5791 = vmatmul.f32.gmra.mxu1 %v14584_v35  ;;  %v3875_v57 = vadd.f32 %v17934_v24, %v17933_v38  ;;  %v4472_v25 = vadd.f32 %v17939_v48, %v4036_v34  ;;  %v14637_v24 = vadd.f32 %v14563_v52, %v13686_v46  ;;  %v1035_v15 = vld [vmem:[%s16515_s3 + $0x220] sm:$0xff]  ;;  %v17945_v46 = vld [vmem:[#allocation238_spill] sm:$0xff] }
 0x865   : > { %6064 = vmatpush.msra.mxu0 %v1035_v15  ;;  %v17952_v15 = vld [vmem:[#allocation60_spill] sm:$0xff] }
 0x866   : > { %v5202_v62 = vpop.f32.mrf.mxu3  ;;  %v14608_v4 = vpop.f32.mrf.mxu2  ;;  %v4471_v26 = vadd.f32 %v17938_v39, %v3875_v57 }
 0x867   : > { %v5318_v30 = vadd.f32 %v5202_v62, %v4888_v53  ;;  %v14610_v49 = vpop.f32.mrf.mxu0  ;;  %v17941_v53 = vld [vmem:[#allocation28_spill] sm:$0xff] }
 0x868   : > { %17932 = vst [vmem:[#allocation74_spill] sm:$0xff] %v14610_v49  ;;  %v17942_v62 = vmax.f32 %v17940_v19, %v17941_v53  ;;  %v4889_v59 = vadd.f32 %v13743_v36, %v4471_v26  ;;  %v1036_v36 = vld [vmem:[%s16515_s3 + $0x228] sm:$0xff]  ;;  %v16693_v19 = vmax.f32 %v14637_v24, 0.0  ;;  %v17949_v53 = vld [vmem:[#allocation313_spill] sm:$0xff] }
 0x869   : > { %v5432_v14 = vmax.f32 %v5317_v2, %v5318_v30  ;;  %v14618_v29 = vpop.f32.mrf.mxu1  ;;  %v4890_v2 = vadd.f32 %v13749_v45, %v4472_v25  ;;  %v5530_v30 = vadd.f32 %v14563_v52, %v5478_v50  ;;  %6177 = vmatpush.msra.mxu1 %v1036_v36  ;;  %v17944_v50 = vld [vmem:[#allocation33_spill] sm:$0xff] }
 0x86a   : > { %17937 = vst [vmem:[#allocation329_spill] sm:$0xff] %v14618_v29  ;;  %5681 = vmatmul.f32.gmra.mxu0 %v14616_v60  ;;  %v3878_v34 = vadd.f32 %v17945_v46, %v17944_v50 }
 0x86b   : > { %v5480_v63 = vmax.f32 %v17942_v62, %v5432_v14  ;;  %8276 = vmatmul.msk.f32.gmra.mxu3 %vm1191_vm1, %v14467_v6  ;;  %5847 = vmatmul.f32.gmra.mxu2 %v16692_v44  ;;  %v5319_v6 = vadd.f32 %v14484_v8, %v4889_v59  ;;  %v17946_v14 = vld [vmem:[#allocation27_spill] sm:$0xff]  ;;  %v14654_v26 = vmax.f32 %v5530_v30, 0.0 }
 0x86c   : > { %5794 = vmatmul.f32.gmra.mxu1 %v14616_v60  ;;  %v17947_v8 = vld [vmem:[#allocation239_spill] sm:$0xff]  ;;  %v4473_v62 = vadd.f32 %v17949_v53, %v3878_v34  ;;  %v17957_v53 = vld [vmem:[#allocation41_spill] sm:$0xff] }
 0x86d   : > { %v4039_v39 = vadd.f32 %v17947_v8, %v17946_v14  ;;  %v17950_v59 = vld [vmem:[#allocation323_spill] sm:$0xff]  ;;  %v17955_v8 = vld [vmem:[#allocation50_spill] sm:$0xff] }
 0x86e   : > { %v5205_v38 = vpop.f32.mrf.mxu3  ;;  %v14640_v57 = vpop.f32.mrf.mxu2  ;;  %v4891_v30 = vadd.f32 %v13777_v23, %v4473_v62  ;;  %v17961_v62 = vld [vmem:[#allocation258_spill] sm:$0xff] }
 0x86f   : > { %v5320_v31 = vadd.f32 %v5205_v38, %v4890_v2  ;;  %v14648_v45 = vpop.f32.mrf.mxu0  ;;  %v4474_v2 = vadd.f32 %v17950_v59, %v4039_v39  ;;  %v17951_v38 = vld [vmem:[#allocation49_spill] sm:$0xff]  ;;  %v17956_v39 = vld [vmem:[#allocation242_spill] sm:$0xff]  ;;  %v17958_v59 = vld [vmem:[#allocation243_spill] sm:$0xff] }
 0x870   : > { %17943 = vst [vmem:[#allocation330_spill] sm:$0xff] %v14648_v45  ;;  %v17953_v36 = vmax.f32 %v17951_v38, %v17952_v15  ;;  %v5321_v46 = vadd.f32 %v14527_v20, %v4891_v30  ;;  %v4042_v38 = vadd.f32 %v17958_v59, %v17957_v53  ;;  %v17962_v20 = vld [vmem:[#allocation315_spill] sm:$0xff] }
 0x871   : > { %v5433_v48 = vmax.f32 %v5319_v6, %v5320_v31  ;;  %v14656_v25 = vpop.f32.mrf.mxu1  ;;  %v4892_v6 = vadd.f32 %v13783_v58, %v4474_v2  ;;  %v5531_v31 = vadd.f32 %v14563_v52, %v5479_v28  ;;  %v17960_v28 = vld [vmem:[#allocation36_spill] sm:$0xff]  ;;  %v17963_v30 = vld [vmem:[#allocation327_spill] sm:$0xff] }
 0x872   : > { %17948 = vst [vmem:[#allocation121_spill] sm:$0xff] %v14656_v25  ;;  %5684 = vmatmul.f32.gmra.mxu0 %v14654_v26  ;;  %v3893_v2 = vadd.f32 %v17961_v62, %v17960_v28  ;;  %v17973_v62 = vld [vmem:[#allocation247_spill] sm:$0xff] }
 0x873   : > { %v5481_v44 = vmax.f32 %v17953_v36, %v5433_v48  ;;  %8277 = vmatmul.msk.f32.gmra.mxu3 %vm1191_vm1, %v14506_v33  ;;  %5850 = vmatmul.f32.gmra.mxu2 %v16693_v19  ;;  %v3881_v48 = vadd.f32 %v17956_v39, %v17955_v8  ;;  %v14682_v15 = vmax.f32 %v5531_v31, 0.0  ;;  %v17965_v19 = vld [vmem:[#allocation5_spill] sm:$0xff]  ;;  %v17967_v8 = vmax.f32 %v14524_v16, 0.0  ;;  %v17968_v31 = vld [vmem:[#allocation328_spill] sm:$0xff] }
 0x874   : > { %5797 = vmatmul.f32.gmra.mxu1 %v14654_v26 }
 0x875   : > { %v4475_v36 = vadd.f32 %v17962_v20, %v3881_v48  ;;  %v5532_v48 = vadd.f32 %v14563_v52, %v5480_v63  ;;  %v17971_v63 = vld [vmem:[#allocation246_spill] sm:$0xff] }
 0x876   : > { %v5208_v50 = vpop.f32.mrf.mxu3  ;;  %v14674_v34 = vpop.f32.mrf.mxu2 }
 0x877   : > { %v5322_v14 = vadd.f32 %v5208_v50, %v4892_v6  ;;  %v14676_v33 = vpop.f32.mrf.mxu0  ;;  %v4476_v6 = vadd.f32 %v17963_v30, %v4042_v38  ;;  %v17964_v50 = vld [vmem:[#allocation159_spill] sm:$0xff]  ;;  %v1033_v38 = vld [vmem:[%s16515_s3 + $0x210] sm:$0xff]  ;;  %v14718_v20 = vmax.f32 %v5532_v48, 0.0  ;;  %v17983_v48 = vld [vmem:[#allocation332_spill] sm:$0xff] }
 0x878   : > { %17954 = vst [vmem:[#allocation39_spill] sm:$0xff] %v14676_v33  ;;  %v17966_v33 = vmax.f32 %v17964_v50, %v17965_v19  ;;  %6065 = vmatpush.msra.mxu0 %v1033_v38  ;;  %v17976_v50 = vld [vmem:[#allocation262_spill] sm:$0xff] }
 0x879   : > { %v5434_v23 = vmax.f32 %v5321_v46, %v5322_v14  ;;  %v14684_v58 = vpop.f32.mrf.mxu1  ;;  %v4483_v46 = vadd.f32 %v17968_v31, %v3893_v2  ;;  %v4893_v14 = vadd.f32 %v13811_v37, %v4475_v36  ;;  %v4894_v39 = vadd.f32 %v13819_v3, %v4476_v6  ;;  %v17975_v6 = vld [vmem:[#allocation167_spill] sm:$0xff]  ;;  %v17977_v31 = vld [vmem:[#allocation317_spill] sm:$0xff] }
 0x87a   : > { %17959 = vst [vmem:[#allocation14_spill] sm:$0xff] %v14684_v58  ;;  %5687 = vmatmul.f32.gmra.mxu0 %v14682_v15 }
 0x87b   : > { %v5482_v25 = vmax.f32 %v17966_v33, %v5434_v23  ;;  %5954 = vmatmul.f32.vlgmr.msrb.gmra.mxu3 %v17967_v8  ;;  %5853 = vmatmul.f32.gmra.mxu2 %v13817_v7  ;;  %v4901_v19 = vadd.f32 %v13955_v43, %v4483_v46  ;;  %v5323_v53 = vadd.f32 %v14570_v42, %v4893_v14  ;;  %v1034_v23 = vld [vmem:[%s16515_s3 + $0x218] sm:$0xff]  ;;  %v17970_v43 = vld [vmem:[#allocation44_spill] sm:$0xff]  ;;  %v17978_v14 = vld [vmem:[#allocation331_spill] sm:$0xff] }
 0x87c   : > { %5800 = vmatmul.f32.gmra.mxu1 %v14682_v15  ;;  %v3884_v28 = vadd.f32 %v17971_v63, %v17970_v43  ;;  %v17972_v42 = vld [vmem:[#allocation96_spill] sm:$0xff]  ;;  %v3896_v8 = vadd.f32 %v17976_v50, %v17975_v6 }
 0x87d   : > { %6178 = vmatpush.msra.mxu1 %v1034_v23  ;;  %v4045_v2 = vadd.f32 %v17973_v62, %v17972_v42  ;;  %v17982_v23 = vmax.f32 %v14567_v12, 0.0  ;;  %v17985_v63 = vld [vmem:[#allocation100_spill] sm:$0xff]  ;;  %v5533_v42 = vadd.f32 %v14563_v52, %v5481_v44  ;;  %v17986_v62 = vld [vmem:[#allocation23_spill] sm:$0xff] }
 0x87e   : > { %v5211_v33 = vpop.f32.mrf.mxu3  ;;  %v5062_v59 = vpop.f32.mrf.mxu2  ;;  %v4477_v46 = vadd.f32 %v17977_v31, %v3884_v28 }
 0x87f   : > { %v5324_v16 = vadd.f32 %v5211_v33, %v4894_v39  ;;  %v14710_v37 = vadd.f32 %v5062_v59, %v4901_v19  ;;  %v14712_v3 = vpop.f32.mrf.mxu0  ;;  %v4478_v39 = vadd.f32 %v17978_v14, %v4045_v2  ;;  %v17979_v19 = vld [vmem:[#allocation144_spill] sm:$0xff] }
 0x880   : > { %17969 = vst [vmem:[#allocation194_spill] sm:$0xff] %v14712_v3  ;;  %v17980_v33 = vld [vmem:[#allocation52_spill] sm:$0xff] }
 0x881   : > { %v5435_v36 = vmax.f32 %v5323_v53, %v5324_v16  ;;  %v14720_v30 = vpop.f32.mrf.mxu1  ;;  %v17981_v59 = vmax.f32 %v17979_v19, %v17980_v33  ;;  %v4485_v53 = vadd.f32 %v17983_v48, %v3896_v8  ;;  %v17984_v16 = vld [vmem:[#allocation47_spill] sm:$0xff]  ;;  %v4896_v28 = vadd.f32 %v17985_v63, %v4478_v39  ;;  %v17988_v14 = vld [vmem:[#allocation92_spill] sm:$0xff]  ;;  %v17989_v19 = vld [vmem:[#allocation250_spill] sm:$0xff] }
 0x882   : > { %17974 = vst [vmem:[#allocation237_spill] sm:$0xff] %v14720_v30  ;;  %5690 = vmatmul.f32.gmra.mxu0 %v14718_v20  ;;  %v4895_v43 = vadd.f32 %v17984_v16, %v4477_v46  ;;  %v3887_v33 = vadd.f32 %v17989_v19, %v17988_v14  ;;  %v17991_v46 = vld [vmem:[#allocation251_spill] sm:$0xff]  ;;  %v14748_v39 = vmax.f32 %v5533_v42, 0.0  ;;  %v17994_v16 = vld [vmem:[#allocation266_spill] sm:$0xff]  ;;  %v18000_v14 = vmax.f32 %v14605_v5, 0.0  ;;  %v18001_v42 = vld [vmem:[#allocation336_spill] sm:$0xff] }
 0x883   : > { %v5483_v38 = vmax.f32 %v17981_v59, %v5435_v36  ;;  %5957 = vmatmul.f32.gmra.mxu3 %v17982_v23  ;;  %5856 = vmatmul.f32.gmra.mxu2 %v13861_v54  ;;  %v4903_v2 = vadd.f32 %v17986_v62, %v4485_v53  ;;  %v17990_v59 = vld [vmem:[#allocation185_spill] sm:$0xff]  ;;  %v18003_v19 = vld [vmem:[#allocation62_spill] sm:$0xff] }
 0x884   : > { %5803 = vmatmul.f32.gmra.mxu1 %v14718_v20  ;;  %v5325_v6 = vadd.f32 %v14608_v4, %v4895_v43  ;;  %v4048_v23 = vadd.f32 %v17991_v46, %v17990_v59  ;;  %v17993_v53 = vld [vmem:[#allocation173_spill] sm:$0xff]  ;;  %v17995_v43 = vld [vmem:[#allocation320_spill] sm:$0xff] }
 0x885   : > { %v3899_v4 = vadd.f32 %v17994_v16, %v17993_v53  ;;  %v4479_v63 = vadd.f32 %v17995_v43, %v3887_v33  ;;  %v18004_v33 = vld [vmem:[#allocation101_spill] sm:$0xff]  ;;  %v18005_v53 = vld [vmem:[#allocation179_spill] sm:$0xff] }
 0x886   : > { %v5214_v36 = vpop.f32.mrf.mxu3  ;;  %v5065_v50 = vpop.f32.mrf.mxu2 }
 0x887   : > { %v5326_v12 = vadd.f32 %v5214_v36, %v4896_v28  ;;  %v14740_v31 = vadd.f32 %v5065_v50, %v4903_v2  ;;  %v14742_v8 = vpop.f32.mrf.mxu0  ;;  %v17996_v28 = vld [vmem:[#allocation335_spill] sm:$0xff]  ;;  %v17997_v2 = vld [vmem:[#allocation162_spill] sm:$0xff]  ;;  %v4897_v59 = vadd.f32 %v18003_v19, %v4479_v63 }
 0x888   : > { %17987 = vst [vmem:[#allocation252_spill] sm:$0xff] %v14742_v8  ;;  %v4480_v62 = vadd.f32 %v17996_v28, %v4048_v23  ;;  %v17998_v36 = vld [vmem:[#allocation7_spill] sm:$0xff]  ;;  %v5534_v23 = vadd.f32 %v14563_v52, %v5482_v25  ;;  %v18007_v25 = vld [vmem:[#allocation192_spill] sm:$0xff] }
 0x889   : > { %v5436_v44 = vmax.f32 %v5325_v6, %v5326_v12  ;;  %v14750_v48 = vpop.f32.mrf.mxu1  ;;  %v17999_v50 = vmax.f32 %v17997_v2, %v17998_v36  ;;  %v4487_v6 = vadd.f32 %v18001_v42, %v3899_v4  ;;  %v18002_v12 = vld [vmem:[#allocation176_spill] sm:$0xff]  ;;  %v5327_v43 = vadd.f32 %v14640_v57, %v4897_v59  ;;  %v1031_v4 = vld [vmem:[%s16515_s3 + $0x200] sm:$0xff]  ;;  %v18008_v36 = vld [vmem:[#allocation254_spill] sm:$0xff] }
 0x88a   : > { %17992 = vst [vmem:[#allocation186_spill] sm:$0xff] %v14750_v48  ;;  %5693 = vmatmul.f32.gmra.mxu0 %v14748_v39  ;;  %v4898_v46 = vadd.f32 %v18004_v33, %v4480_v62  ;;  %v1032_v2 = vld [vmem:[%s16515_s3 + $0x208] sm:$0xff]  ;;  %v18009_v57 = vld [vmem:[#allocation97_spill] sm:$0xff]  ;;  %v18012_v33 = vld [vmem:[#allocation59_spill] sm:$0xff] }
 0x88b   : > { %v5484_v8 = vmax.f32 %v17999_v50, %v5436_v44  ;;  %5960 = vmatmul.f32.gmra.mxu3 %v18000_v14  ;;  %5859 = vmatmul.f32.gmra.mxu2 %v18002_v12  ;;  %v4905_v16 = vadd.f32 %v18005_v53, %v4487_v6  ;;  %v3890_v50 = vadd.f32 %v18008_v36, %v18007_v25  ;;  %v18010_v14 = vld [vmem:[#allocation255_spill] sm:$0xff]  ;;  %v14784_v6 = vmax.f32 %v5534_v23, 0.0  ;;  %v18020_v23 = vld [vmem:[#allocation340_spill] sm:$0xff]  ;;  %v18022_v36 = vld [vmem:[#allocation189_spill] sm:$0xff] }
 0x88c   : > { %5806 = vmatmul.f32.gmra.mxu1 %v14748_v39  ;;  %6066 = vmatpush.msra.mxu0 %v1031_v4  ;;  %v4051_v42 = vadd.f32 %v18010_v14, %v18009_v57  ;;  %v18016_v4 = vld [vmem:[#allocation61_spill] sm:$0xff]  ;;  %v18019_v25 = vmax.f32 %v14637_v24, 0.0 }
 0x88d   : > { %6179 = vmatpush.msra.mxu1 %v1032_v2  ;;  %v18017_v2 = vld [vmem:[#allocation108_spill] sm:$0xff] }
 0x88e   : > { %v5217_v44 = vpop.f32.mrf.mxu3  ;;  %v5068_v28 = vpop.f32.mrf.mxu2  ;;  %v18018_v48 = vmax.f32 %v18016_v4, %v18017_v2  ;;  %v18027_v4 = vld [vmem:[#allocation259_spill] sm:$0xff] }
 0x88f   : > { %v5328_v5 = vadd.f32 %v5217_v44, %v4898_v46  ;;  %v14776_v63 = vadd.f32 %v5068_v28, %v4905_v16  ;;  %v14778_v62 = vpop.f32.mrf.mxu0  ;;  %v18013_v46 = vld [vmem:[#allocation270_spill] sm:$0xff]  ;;  %v18014_v16 = vld [vmem:[#allocation324_spill] sm:$0xff]  ;;  %v18015_v28 = vld [vmem:[#allocation339_spill] sm:$0xff] }
 0x890   : > { %18006 = vst [vmem:[#allocation63_spill] sm:$0xff] %v14778_v62  ;;  %v3902_v53 = vadd.f32 %v18013_v46, %v18012_v33  ;;  %v4481_v44 = vadd.f32 %v18014_v16, %v3890_v50  ;;  %v4482_v62 = vadd.f32 %v18015_v28, %v4051_v42  ;;  %v18023_v50 = vld [vmem:[#allocation51_spill] sm:$0xff]  ;;  %v5535_v42 = vadd.f32 %v14563_v52, %v5483_v38  ;;  %v18024_v33 = vld [vmem:[#allocation20_spill] sm:$0xff]  ;;  %v1094_v28 = vld [vmem:[%s16515_s3 + $0x3f8] sm:$0xff] }
 0x891   : > { %v5437_v19 = vmax.f32 %v5327_v43, %v5328_v5  ;;  %v14786_v59 = vpop.f32.mrf.mxu1  ;;  %v18021_v5 = vld [vmem:[#allocation104_spill] sm:$0xff]  ;;  %6454 = vmatpush.msra.mxu3 %v1094_v28  ;;  %v18026_v38 = vld [vmem:[#allocation115_spill] sm:$0xff] }
 0x892   : > { %18011 = vst [vmem:[#allocation333_spill] sm:$0xff] %v14786_v59  ;;  %5696 = vmatmul.f32.gmra.mxu0 %v14784_v6  ;;  %v4489_v43 = vadd.f32 %v18020_v23, %v3902_v53  ;;  %v4899_v57 = vadd.f32 %v18022_v36, %v4481_v44  ;;  %v4900_v14 = vadd.f32 %v18023_v50, %v4482_v62  ;;  %v1093_v53 = vld [vmem:[%s16515_s3 + $0x3f0] sm:$0xff]  ;;  %v18030_v36 = vld [vmem:[#allocation274_spill] sm:$0xff]  ;;  %v18031_v50 = vld [vmem:[#allocation343_spill] sm:$0xff] }
 0x893   : > { %v5485_v30 = vmax.f32 %v18018_v48, %v5437_v19  ;;  %5963 = vmatmul.f32.gmra.mxu3 %v18019_v25  ;;  %5862 = vmatmul.f32.gmra.mxu2 %v18021_v5  ;;  %v4054_v2 = vadd.f32 %v18027_v4, %v18026_v38  ;;  %v5536_v38 = vadd.f32 %v14563_v52, %v5484_v8  ;;  %v18038_v4 = vld [vmem:[#allocation84_spill] sm:$0xff]  ;;  %v18040_v8 = vld [vmem:[#allocation190_spill] sm:$0xff]  ;;  %v18060_v59 = vld [vmem:[#allocation69_spill] sm:$0xff] }
 0x894   : > { %5809 = vmatmul.f32.gmra.mxu1 %v14784_v6  ;;  %v4907_v46 = vadd.f32 %v18024_v33, %v4489_v43  ;;  %v5329_v19 = vadd.f32 %v14674_v34, %v4899_v57  ;;  %6341 = vmatpush.msrb.mxu2 %v1093_v53  ;;  %v14818_v34 = vmax.f32 %v5535_v42, 0.0  ;;  %v18029_v43 = vld [vmem:[#allocation127_spill] sm:$0xff]  ;;  %v18032_v33 = vld [vmem:[#allocation129_spill] sm:$0xff]  ;;  %v18035_v53 = vld [vmem:[#allocation344_spill] sm:$0xff] }
 0x895   : > { %v3905_v57 = vadd.f32 %v18030_v36, %v18029_v43  ;;  %v18036_v42 = vld [vmem:[#allocation66_spill] sm:$0xff] }
 0x896   : > { %v5220_v48 = vpop.f32.mrf.mxu3  ;;  %v5071_v16 = vpop.f32.mrf.mxu2 }
 0x897   : > { %v5330_v24 = vadd.f32 %v5220_v48, %v4900_v14  ;;  %v14812_v44 = vadd.f32 %v5071_v16, %v4907_v46  ;;  %v14814_v62 = vpop.f32.mrf.mxu0  ;;  %v4484_v14 = vadd.f32 %v18031_v50, %v4054_v2  ;;  %v18033_v46 = vld [vmem:[#allocation165_spill] sm:$0xff]  ;;  %v4491_v28 = vadd.f32 %v18035_v53, %v3905_v57 }
 0x898   : > { %18025 = vst [vmem:[#allocation334_spill] sm:$0xff] %v14814_v62  ;;  %v18034_v48 = vmax.f32 %v18032_v33, %v18033_v46 }
 0x899   : > { %v5438_v25 = vmax.f32 %v5329_v19, %v5330_v24  ;;  %v14820_v23 = vpop.f32.mrf.mxu1  ;;  %v18037_v19 = vld [vmem:[#allocation105_spill] sm:$0xff]  ;;  %v4909_v2 = vadd.f32 %v18038_v4, %v4491_v28 }
 0x89a   : > { %18028 = vst [vmem:[#allocation17_spill] sm:$0xff] %v14820_v23  ;;  %5699 = vmatmul.f32.gmra.mxu0 %v14818_v34  ;;  %v4902_v24 = vadd.f32 %v18037_v19, %v4484_v14  ;;  %v18041_v14 = vld [vmem:[#allocation263_spill] sm:$0xff]  ;;  %v18043_v19 = vld [vmem:[#allocation133_spill] sm:$0xff] }
 0x89b   : > { %v5486_v16 = vmax.f32 %v18034_v48, %v5438_v25  ;;  %5966 = vmatmul.f32.gmra.mxu3 %v13817_v7  ;;  %5865 = vmatmul.f32.gmra.mxu2 %v18036_v42  ;;  %v1125_v25 = vld [vmem:[%s16515_s3 + $0x4f0] sm:$0xff]  ;;  %v1126_v7 = vld [vmem:[%s16515_s3 + $0x4f8] sm:$0xff]  ;;  %v4057_v46 = vadd.f32 %v18041_v14, %v18040_v8  ;;  %v14848_v48 = vmax.f32 %v5536_v38, 0.0  ;;  %v18049_v38 = vld [vmem:[#allocation348_spill] sm:$0xff]  ;;  %v5537_v8 = vadd.f32 %v14563_v52, %v5485_v30 }
 0x89c   : > { %5812 = vmatmul.f32.gmra.mxu1 %v14818_v34  ;;  %6631 = vmatpush.msrb.mxu0 %v1125_v25  ;;  %v1091_v14 = vld [vmem:[%s16515_s3 + $0x3e0] sm:$0xff] }
 0x89d   : > { %6744 = vmatpush.msrb.mxu1 %v1126_v7  ;;  %6342 = vmatpush.msrb.mxu2 %v1091_v14  ;;  %v18054_v30 = vld [vmem:[#allocation75_spill] sm:$0xff] }
 0x89e   : > { %v5223_v43 = vpop.f32.mrf.mxu3  ;;  %v5074_v36 = vpop.f32.mrf.mxu2  ;;  %v18059_v14 = vld [vmem:[#allocation351_spill] sm:$0xff] }
 0x89f   : > { %v5332_v50 = vadd.f32 %v5223_v43, %v4902_v24  ;;  %v14842_v57 = vadd.f32 %v5074_v36, %v4909_v2  ;;  %v14844_v33 = vpop.f32.mrf.mxu0  ;;  %v18044_v24 = vld [vmem:[#allocation278_spill] sm:$0xff]  ;;  %v18045_v43 = vld [vmem:[#allocation347_spill] sm:$0xff]  ;;  %v18046_v2 = vld [vmem:[#allocation65_spill] sm:$0xff] }
 0x8a0   : > { %18039 = vst [vmem:[#allocation54_spill] sm:$0xff] %v14844_v33  ;;  %v3908_v4 = vadd.f32 %v18044_v24, %v18043_v19  ;;  %v4486_v23 = vadd.f32 %v18045_v43, %v4057_v46  ;;  %v18047_v36 = vld [vmem:[#allocation34_spill] sm:$0xff]  ;;  %v18055_v43 = vld [vmem:[#allocation267_spill] sm:$0xff] }
 0x8a1   : > { %v5439_v53 = vmax.f32 %v14710_v37, %v5332_v50  ;;  %v14851_v28 = vpop.f32.mrf.mxu1  ;;  %v18048_v62 = vmax.f32 %v18046_v2, %v18047_v36  ;;  %v18050_v37 = vld [vmem:[#allocation224_spill] sm:$0xff]  ;;  %v18052_v46 = vld [vmem:[#allocation110_spill] sm:$0xff]  ;;  %v4060_v2 = vadd.f32 %v18055_v43, %v18054_v30  ;;  %v14881_v36 = vmax.f32 %v5537_v8, 0.0 }
 0x8a2   : > { %18042 = vst [vmem:[#allocation9_spill] sm:$0xff] %v14851_v28  ;;  %5702 = vmatmul.f32.gmra.mxu0 %v14848_v48  ;;  %v4493_v25 = vadd.f32 %v18049_v38, %v3908_v4  ;;  %v18051_v50 = vld [vmem:[#allocation236_spill] sm:$0xff]  ;;  %v18057_v28 = vld [vmem:[#allocation137_spill] sm:$0xff] }
 0x8a3   : > { %v14859_v33 = vmax.f32 %v18048_v62, %v5439_v53  ;;  %5969 = vmatmul.f32.gmra.mxu3 %v13861_v54  ;;  %5868 = vmatmul.f32.gmra.mxu2 %v18050_v37  ;;  %v4904_v7 = vadd.f32 %v18051_v50, %v4486_v23  ;;  %v1092_v62 = vld [vmem:[%s16515_s3 + $0x3e8] sm:$0xff] }
 0x8a4   : > { %5815 = vmatmul.f32.gmra.mxu1 %v14848_v48  ;;  %v4911_v54 = vadd.f32 %v18052_v46, %v4493_v25  ;;  %6455 = vmatpush.msra.mxu3 %v1092_v62  ;;  %v18058_v25 = vld [vmem:[#allocation282_spill] sm:$0xff]  ;;  %v4488_v62 = vadd.f32 %v18059_v14, %v4060_v2  ;;  %v18063_v8 = vld [vmem:[#allocation352_spill] sm:$0xff] }
 0x8a5   : > { %v3911_v46 = vadd.f32 %v18058_v25, %v18057_v28  ;;  %v5538_v28 = vadd.f32 %v14563_v52, %v5486_v16  ;;  %v1124_v43 = vld [vmem:[%s16515_s3 + $0x4e8] sm:$0xff]  ;;  %v18066_v2 = vld [vmem:[#allocation322_spill] sm:$0xff]  ;;  %v18068_v52 = vld [vmem:[#allocation83_spill] sm:$0xff] }
 0x8a6   : > { %v5226_v53 = vpop.f32.mrf.mxu3  ;;  %v5077_v19 = vpop.f32.mrf.mxu2  ;;  %6745 = vmatpush.msrb.mxu1 %v1124_v43  ;;  %v18069_v16 = vld [vmem:[#allocation271_spill] sm:$0xff] }
 0x8a7   : > { %v5334_v24 = vadd.f32 %v5226_v53, %v4904_v7  ;;  %v14875_v4 = vadd.f32 %v5077_v19, %v4911_v54  ;;  %v14877_v23 = vpop.f32.mrf.mxu0  ;;  %v18061_v7 = vld [vmem:[#allocation4_spill] sm:$0xff]  ;;  %v4495_v19 = vadd.f32 %v18063_v8, %v3911_v46 }
 0x8a8   : > { %18053 = vst [vmem:[#allocation45_spill] sm:$0xff] %v14877_v23  ;;  %v18062_v54 = vmax.f32 %v18060_v59, %v18061_v7  ;;  %v1123_v59 = vld [vmem:[%s16515_s3 + $0x4e0] sm:$0xff]  ;;  %v4063_v7 = vadd.f32 %v18069_v16, %v18068_v52  ;;  %v18074_v23 = vld [vmem:[#allocation169_spill] sm:$0xff] }
 0x8a9   : > { %v5440_v38 = vmax.f32 %v14740_v31, %v5334_v24  ;;  %v14884_v50 = vpop.f32.mrf.mxu1  ;;  %v18064_v31 = vld [vmem:[#allocation55_spill] sm:$0xff]  ;;  %v18065_v24 = vld [vmem:[#allocation318_spill] sm:$0xff]  ;;  %6632 = vmatpush.msrb.mxu0 %v1123_v59  ;;  %v18080_v16 = vld [vmem:[#allocation21_spill] sm:$0xff] }
 0x8aa   : > { %18056 = vst [vmem:[#allocation241_spill] sm:$0xff] %v14884_v50  ;;  %5705 = vmatmul.f32.gmra.mxu0 %v14881_v36  ;;  %v4906_v30 = vadd.f32 %v18065_v24, %v4488_v62  ;;  %v18071_v50 = vld [vmem:[#allocation143_spill] sm:$0xff] }
 0x8ab   : > { %v14892_v53 = vmax.f32 %v18062_v54, %v5440_v38  ;;  %5972 = vmatmul.f32.gmra.mxu3 %v18002_v12  ;;  %5871 = vmatmul.f32.gmra.mxu2 %v18064_v31  ;;  %v4913_v12 = vadd.f32 %v18066_v2, %v4495_v19  ;;  %v14914_v54 = vmax.f32 %v5538_v28, 0.0  ;;  %v18072_v19 = vld [vmem:[#allocation286_spill] sm:$0xff]  ;;  %v18073_v59 = vld [vmem:[#allocation355_spill] sm:$0xff]  ;;  %v18077_v28 = vld [vmem:[#allocation356_spill] sm:$0xff] }
 0x8ac   : > { %5818 = vmatmul.f32.gmra.mxu1 %v14881_v36  ;;  %v3914_v2 = vadd.f32 %v18072_v19, %v18071_v50  ;;  %v4490_v43 = vadd.f32 %v18073_v59, %v4063_v7  ;;  %v1089_v50 = vld [vmem:[%s16515_s3 + $0x3d0] sm:$0xff] }
 0x8ad   : > { %6343 = vmatpush.msrb.mxu2 %v1089_v50  ;;  %v18088_v50 = vld [vmem:[#allocation40_spill] sm:$0xff] }
 0x8ae   : > { %v5229_v38 = vpop.f32.mrf.mxu3  ;;  %v5080_v25 = vpop.f32.mrf.mxu2 }
 0x8af   : > { %v5336_v46 = vadd.f32 %v5229_v38, %v4906_v30  ;;  %v14908_v14 = vadd.f32 %v5080_v25, %v4913_v12  ;;  %v14910_v62 = vpop.f32.mrf.mxu0  ;;  %v18075_v30 = vld [vmem:[#allocation37_spill] sm:$0xff]  ;;  %v4497_v25 = vadd.f32 %v18077_v28, %v3914_v2 }
 0x8b0   : > { %18067 = vst [vmem:[#allocation256_spill] sm:$0xff] %v14910_v62  ;;  %v18076_v12 = vmax.f32 %v18074_v23, %v18075_v30  ;;  %v1090_v23 = vld [vmem:[%s16515_s3 + $0x3d8] sm:$0xff]  ;;  %v18083_v30 = vld [vmem:[#allocation275_spill] sm:$0xff] }
 0x8b1   : > { %v5441_v8 = vmax.f32 %v14776_v63, %v5336_v46  ;;  %v14917_v24 = vpop.f32.mrf.mxu1  ;;  %v18078_v63 = vld [vmem:[#allocation43_spill] sm:$0xff]  ;;  %v18079_v46 = vld [vmem:[#allocation160_spill] sm:$0xff]  ;;  %v4915_v7 = vadd.f32 %v18080_v16, %v4497_v25  ;;  %6456 = vmatpush.msra.mxu3 %v1090_v23  ;;  %v18086_v62 = vld [vmem:[#allocation290_spill] sm:$0xff] }
 0x8b2   : > { %18070 = vst [vmem:[#allocation78_spill] sm:$0xff] %v14917_v24  ;;  %5708 = vmatmul.f32.gmra.mxu0 %v14914_v54  ;;  %v4908_v52 = vadd.f32 %v18079_v46, %v4490_v43  ;;  %v18082_v43 = vld [vmem:[#allocation95_spill] sm:$0xff]  ;;  %v18089_v23 = vld [vmem:[#allocation6_spill] sm:$0xff] }
 0x8b3   : > { %v14925_v38 = vmax.f32 %v18076_v12, %v5441_v8  ;;  %5975 = vmatmul.f32.gmra.mxu3 %v18021_v5  ;;  %5874 = vmatmul.f32.gmra.mxu2 %v18078_v63  ;;  %v4066_v12 = vadd.f32 %v18083_v30, %v18082_v43  ;;  %v18085_v24 = vld [vmem:[#allocation99_spill] sm:$0xff]  ;;  %v18090_v58 = vmax.f32 %v18088_v50, %v18089_v23 }
 0x8b4   : > { %5821 = vmatmul.f32.gmra.mxu1 %v14914_v54  ;;  %v3917_v3 = vadd.f32 %v18086_v62, %v18085_v24  ;;  %v18087_v25 = vld [vmem:[#allocation359_spill] sm:$0xff]  ;;  %v1121_v62 = vld [vmem:[%s16515_s3 + $0x4d0] sm:$0xff]  ;;  %v18094_v24 = vld [vmem:[#allocation244_spill] sm:$0xff] }
 0x8b5   : > { %v4492_v16 = vadd.f32 %v18087_v25, %v4066_v12  ;;  %6633 = vmatpush.msrb.mxu0 %v1121_v62  ;;  %v18096_v25 = vld [vmem:[#allocation196_spill] sm:$0xff] }
 0x8b6   : > { %v5232_v8 = vpop.f32.mrf.mxu3  ;;  %v5083_v5 = vpop.f32.mrf.mxu2  ;;  %v18102_v62 = vld [vmem:[#allocation172_spill] sm:$0xff] }
 0x8b7   : > { %v5338_v19 = vadd.f32 %v5232_v8, %v4908_v52  ;;  %v14940_v2 = vadd.f32 %v5083_v5, %v4915_v7  ;;  %v14942_v59 = vpop.f32.mrf.mxu0  ;;  %v18091_v7 = vld [vmem:[#allocation360_spill] sm:$0xff]  ;;  %v18092_v5 = vld [vmem:[#allocation227_spill] sm:$0xff] }
 0x8b8   : > { %18081 = vst [vmem:[#allocation119_spill] sm:$0xff] %v14942_v59  ;;  %v4499_v8 = vadd.f32 %v18091_v7, %v3917_v3 }
 0x8b9   : > { %v5442_v28 = vmax.f32 %v14812_v44, %v5338_v19  ;;  %v14947_v46 = vpop.f32.mrf.mxu1  ;;  %v18093_v44 = vld [vmem:[#allocation240_spill] sm:$0xff] }
 0x8ba   : > { %18084 = vst [vmem:[#allocation337_spill] sm:$0xff] %v14947_v46  ;;  %6067 = vmatmul.f32.vlgmr.msra.gmra.mxu0 %v18036_v42  ;;  %v4910_v19 = vadd.f32 %v18093_v44, %v4492_v16  ;;  %v4917_v43 = vadd.f32 %v18094_v24, %v4499_v8  ;;  %v18097_v16 = vld [vmem:[#allocation279_spill] sm:$0xff]  ;;  %v18099_v44 = vld [vmem:[#allocation197_spill] sm:$0xff]  ;;  %v18100_v46 = vld [vmem:[#allocation294_spill] sm:$0xff] }
 0x8bb   : > { %v14955_v52 = vmax.f32 %v18090_v58, %v5442_v28  ;;  %5978 = vmatmul.f32.gmra.mxu3 %v18036_v42  ;;  %5877 = vmatmul.f32.gmra.mxu2 %v18092_v5  ;;  %v1122_v58 = vld [vmem:[%s16515_s3 + $0x4d8] sm:$0xff]  ;;  %v4069_v50 = vadd.f32 %v18097_v16, %v18096_v25  ;;  %v3920_v59 = vadd.f32 %v18100_v46, %v18099_v44  ;;  %v18101_v8 = vld [vmem:[#allocation363_spill] sm:$0xff]  ;;  %v1088_v46 = vld [vmem:[%s16515_s3 + $0x3c8] sm:$0xff] }
 0x8bc   : > { %6180 = vmatmul.f32.vlgmr.msra.gmra.mxu1 %v18036_v42  ;;  %6457 = vmatpush.msra.mxu3 %v1088_v46  ;;  %v18108_v25 = vld [vmem:[#allocation325_spill] sm:$0xff]  ;;  %v18115_v46 = vld [vmem:[#allocation367_spill] sm:$0xff] }
 0x8bd   : > { %6746 = vmatpush.msrb.mxu1 %v1122_v58  ;;  %v4494_v24 = vadd.f32 %v18101_v8, %v4069_v50  ;;  %v18103_v58 = vld [vmem:[#allocation72_spill] sm:$0xff] }
 0x8be   : > { %v5235_v30 = vpop.f32.mrf.mxu3  ;;  %v5086_v3 = vpop.f32.mrf.mxu2  ;;  %v18104_v45 = vmax.f32 %v18102_v62, %v18103_v58  ;;  %v18110_v8 = vld [vmem:[#allocation200_spill] sm:$0xff]  ;;  %v18111_v62 = vld [vmem:[#allocation283_spill] sm:$0xff] }
 0x8bf   : > { %v5340_v12 = vadd.f32 %v5235_v30, %v4910_v19  ;;  %v14970_v28 = vadd.f32 %v5086_v3, %v4917_v43  ;;  %v14972_v42 = vpop.f32.mrf.mxu0  ;;  %v18105_v43 = vld [vmem:[#allocation364_spill] sm:$0xff]  ;;  %v18106_v3 = vld [vmem:[#allocation70_spill] sm:$0xff]  ;;  %v4072_v58 = vadd.f32 %v18111_v62, %v18110_v8 }
 0x8c0   : > { %18095 = vst [vmem:[#allocation338_spill] sm:$0xff] %v14972_v42  ;;  %v4501_v30 = vadd.f32 %v18105_v43, %v3920_v59  ;;  %v18113_v42 = vld [vmem:[#allocation201_spill] sm:$0xff] }
 0x8c1   : > { %v5443_v23 = vmax.f32 %v14842_v57, %v5340_v12  ;;  %v14977_v7 = vpop.f32.mrf.mxu1  ;;  %v1087_v57 = vld [vmem:[%s16515_s3 + $0x3c0] sm:$0xff] }
 0x8c2   : > { %18098 = vst [vmem:[#allocation125_spill] sm:$0xff] %v14977_v7  ;;  %6070 = vmatmul.f32.gmra.mxu0 %v18050_v37  ;;  %6344 = vmatpush.msrb.mxu2 %v1087_v57  ;;  %v4919_v16 = vadd.f32 %v18108_v25, %v4501_v30  ;;  %v18116_v30 = vld [vmem:[#allocation76_spill] sm:$0xff] }
 0x8c3   : > { %v14985_v19 = vmax.f32 %v18104_v45, %v5443_v23  ;;  %5981 = vmatmul.f32.gmra.mxu3 %v18050_v37  ;;  %5880 = vmatmul.f32.gmra.mxu2 %v18106_v3  ;;  %v18107_v45 = vld [vmem:[#allocation321_spill] sm:$0xff]  ;;  %v18117_v25 = vld [vmem:[#allocation8_spill] sm:$0xff] }
 0x8c4   : > { %6183 = vmatmul.f32.gmra.mxu1 %v18050_v37  ;;  %v4912_v12 = vadd.f32 %v18107_v45, %v4494_v24  ;;  %v18114_v24 = vld [vmem:[#allocation298_spill] sm:$0xff]  ;;  %v4496_v45 = vadd.f32 %v18115_v46, %v4072_v58  ;;  %v18118_v29 = vmax.f32 %v18116_v30, %v18117_v25  ;;  %v18124_v46 = vld [vmem:[#allocation287_spill] sm:$0xff] }
 0x8c5   : > { %v3923_v57 = vadd.f32 %v18114_v24, %v18113_v42  ;;  %v1120_v42 = vld [vmem:[%s16515_s3 + $0x4c8] sm:$0xff] }
 0x8c6   : > { %v5238_v50 = vpop.f32.mrf.mxu3  ;;  %v5089_v59 = vpop.f32.mrf.mxu2  ;;  %6747 = vmatpush.msrb.mxu1 %v1120_v42  ;;  %v18128_v42 = vld [vmem:[#allocation371_spill] sm:$0xff] }
 0x8c7   : > { %v5342_v23 = vadd.f32 %v5238_v50, %v4912_v12  ;;  %v15000_v44 = vadd.f32 %v5089_v59, %v4919_v16  ;;  %v15002_v37 = vpop.f32.mrf.mxu0  ;;  %v18119_v16 = vld [vmem:[#allocation368_spill] sm:$0xff]  ;;  %v18120_v59 = vld [vmem:[#allocation3_spill] sm:$0xff] }
 0x8c8   : > { %18109 = vst [vmem:[#allocation123_spill] sm:$0xff] %v15002_v37  ;;  %v4503_v50 = vadd.f32 %v18119_v16, %v3923_v57  ;;  %v18123_v57 = vld [vmem:[#allocation204_spill] sm:$0xff] }
 0x8c9   : > { %v5444_v43 = vmax.f32 %v14875_v4, %v5342_v23  ;;  %v15007_v7 = vpop.f32.mrf.mxu1  ;;  %v1119_v4 = vld [vmem:[%s16515_s3 + $0x4c0] sm:$0xff]  ;;  %v4075_v30 = vadd.f32 %v18124_v46, %v18123_v57 }
 0x8ca   : > { %18112 = vst [vmem:[#allocation77_spill] sm:$0xff] %v15007_v7  ;;  %6073 = vmatmul.f32.gmra.mxu0 %v18064_v31  ;;  %v4921_v8 = vadd.f32 %v14303_v27, %v4503_v50  ;;  %v18126_v7 = vld [vmem:[#allocation205_spill] sm:$0xff]  ;;  %v18129_v27 = vld [vmem:[#allocation175_spill] sm:$0xff]  ;;  %v18130_v50 = vld [vmem:[#allocation32_spill] sm:$0xff] }
 0x8cb   : > { %v15015_v12 = vmax.f32 %v18118_v29, %v5444_v43  ;;  %5984 = vmatmul.f32.gmra.mxu3 %v18064_v31  ;;  %5883 = vmatmul.f32.gmra.mxu2 %v18120_v59  ;;  %v18121_v29 = vld [vmem:[#allocation170_spill] sm:$0xff]  ;;  %v18131_v37 = vmax.f32 %v18129_v27, %v18130_v50 }
 0x8cc   : > { %6186 = vmatmul.f32.gmra.mxu1 %v18064_v31  ;;  %v4914_v23 = vadd.f32 %v18121_v29, %v4496_v45  ;;  %6634 = vmatpush.msrb.mxu0 %v1119_v4  ;;  %v18127_v45 = vld [vmem:[#allocation302_spill] sm:$0xff]  ;;  %v4498_v29 = vadd.f32 %v18128_v42, %v4075_v30  ;;  %v18137_v42 = vld [vmem:[#allocation291_spill] sm:$0xff] }
 0x8cd   : > { %v3926_v4 = vadd.f32 %v18127_v45, %v18126_v7  ;;  %v1086_v7 = vld [vmem:[%s16515_s3 + $0x3b8] sm:$0xff] }
 0x8ce   : > { %v5241_v62 = vpop.f32.mrf.mxu3  ;;  %v5092_v58 = vpop.f32.mrf.mxu2  ;;  %6458 = vmatpush.msra.mxu3 %v1086_v7  ;;  %v18141_v7 = vld [vmem:[#allocation10_spill] sm:$0xff] }
 0x8cf   : > { %v5344_v43 = vadd.f32 %v5241_v62, %v4914_v23  ;;  %v15030_v24 = vadd.f32 %v5092_v58, %v4921_v8  ;;  %v15032_v31 = vpop.f32.mrf.mxu0  ;;  %v18132_v8 = vld [vmem:[#allocation372_spill] sm:$0xff]  ;;  %v18133_v58 = vld [vmem:[#allocation93_spill] sm:$0xff] }
 0x8d0   : > { %18122 = vst [vmem:[#allocation82_spill] sm:$0xff] %v15032_v31  ;;  %v4505_v62 = vadd.f32 %v18132_v8, %v3926_v4  ;;  %v18136_v4 = vld [vmem:[#allocation208_spill] sm:$0xff]  ;;  %v18151_v31 = vld [vmem:[#allocation35_spill] sm:$0xff] }
 0x8d1   : > { %v5445_v25 = vmax.f32 %v14908_v14, %v5344_v43  ;;  %v15037_v16 = vpop.f32.mrf.mxu1  ;;  %v1085_v14 = vld [vmem:[%s16515_s3 + $0x3b0] sm:$0xff]  ;;  %v4078_v27 = vadd.f32 %v18137_v42, %v18136_v4  ;;  %v18146_v42 = vld [vmem:[#allocation211_spill] sm:$0xff] }
 0x8d2   : > { %18125 = vst [vmem:[#allocation245_spill] sm:$0xff] %v15037_v16  ;;  %6076 = vmatmul.f32.gmra.mxu0 %v18078_v63  ;;  %6345 = vmatpush.msrb.mxu2 %v1085_v14  ;;  %v4923_v57 = vadd.f32 %v14341_v10, %v4505_v62  ;;  %v18139_v16 = vld [vmem:[#allocation120_spill] sm:$0xff]  ;;  %v18143_v62 = vld [vmem:[#allocation111_spill] sm:$0xff] }
 0x8d3   : > { %v15045_v23 = vmax.f32 %v18131_v37, %v5445_v25  ;;  %5987 = vmatmul.f32.gmra.mxu3 %v18078_v63  ;;  %5886 = vmatmul.f32.gmra.mxu2 %v18133_v58  ;;  %v18134_v37 = vld [vmem:[#allocation230_spill] sm:$0xff]  ;;  %v18140_v14 = vld [vmem:[#allocation80_spill] sm:$0xff] }
 0x8d4   : > { %6189 = vmatmul.f32.gmra.mxu1 %v18078_v63  ;;  %v4916_v43 = vadd.f32 %v18134_v37, %v4498_v29  ;;  %v4500_v29 = vadd.f32 %v18139_v16, %v4078_v27  ;;  %v18142_v37 = vmax.f32 %v18140_v14, %v18141_v7  ;;  %v1118_v16 = vld [vmem:[%s16515_s3 + $0x4b8] sm:$0xff]  ;;  %v18147_v27 = vld [vmem:[#allocation295_spill] sm:$0xff] }
 0x8d5   : > { %6748 = vmatpush.msrb.mxu1 %v1118_v16  ;;  %v1084_v16 = vld [vmem:[%s16515_s3 + $0x3a8] sm:$0xff] }
 0x8d6   : > { %v5244_v46 = vpop.f32.mrf.mxu3  ;;  %v5095_v30 = vpop.f32.mrf.mxu2  ;;  %6459 = vmatpush.msra.mxu3 %v1084_v16  ;;  %v18163_v16 = vld [vmem:[#allocation326_spill] sm:$0xff] }
 0x8d7   : > { %v5346_v25 = vadd.f32 %v5244_v46, %v4916_v43  ;;  %v15060_v45 = vadd.f32 %v5095_v30, %v4923_v57  ;;  %v15062_v63 = vpop.f32.mrf.mxu0  ;;  %v18144_v43 = vld [vmem:[#allocation182_spill] sm:$0xff] }
 0x8d8   : > { %18135 = vst [vmem:[#allocation260_spill] sm:$0xff] %v15062_v63  ;;  %v4918_v57 = vadd.f32 %v18144_v43, %v4500_v29  ;;  %v18150_v63 = vld [vmem:[#allocation178_spill] sm:$0xff] }
 0x8d9   : > { %v5446_v50 = vmax.f32 %v14940_v2, %v5346_v25  ;;  %v15067_v8 = vpop.f32.mrf.mxu1  ;;  %v1117_v2 = vld [vmem:[%s16515_s3 + $0x4b0] sm:$0xff]  ;;  %v18152_v29 = vmax.f32 %v18150_v63, %v18151_v31 }
 0x8da   : > { %18138 = vst [vmem:[#allocation67_spill] sm:$0xff] %v15067_v8  ;;  %6079 = vmatmul.f32.gmra.mxu0 %v18092_v5 }
 0x8db   : > { %v15073_v10 = vmax.f32 %v18142_v37, %v5446_v50  ;;  %5990 = vmatmul.f32.gmra.mxu3 %v18092_v5  ;;  %5889 = vmatmul.f32.gmra.mxu2 %v18143_v62  ;;  %v4081_v50 = vadd.f32 %v18147_v27, %v18146_v42  ;;  %v18149_v37 = vld [vmem:[#allocation107_spill] sm:$0xff] }
 0x8dc   : > { %6192 = vmatmul.f32.gmra.mxu1 %v18092_v5  ;;  %6635 = vmatpush.msrb.mxu0 %v1117_v2  ;;  %v18156_v42 = vld [vmem:[#allocation299_spill] sm:$0xff] }
 0x8dd   : > { %v4502_v8 = vadd.f32 %v18149_v37, %v4081_v50  ;;  %v18158_v37 = vld [vmem:[#allocation375_spill] sm:$0xff] }
 0x8de   : > { %v5247_v46 = vpop.f32.mrf.mxu3  ;;  %v15086_v25 = vpop.f32.mrf.mxu2 }
 0x8df   : > { %v5348_v30 = vadd.f32 %v5247_v46, %v4918_v57  ;;  %v15088_v4 = vpop.f32.mrf.mxu0  ;;  %v4920_v31 = vadd.f32 %v14281_v47, %v4502_v8 }
 0x8e0   : > { %18145 = vst [vmem:[#allocation122_spill] sm:$0xff] %v15088_v4  ;;  %v18160_v4 = vld [vmem:[#allocation13_spill] sm:$0xff] }
 0x8e1   : > { %v5447_v14 = vmax.f32 %v14970_v28, %v5348_v30  ;;  %v15093_v7 = vpop.f32.mrf.mxu1  ;;  %v1083_v28 = vld [vmem:[%s16515_s3 + $0x3a0] sm:$0xff]  ;;  %v18155_v30 = vld [vmem:[#allocation214_spill] sm:$0xff] }
 0x8e2   : > { %18148 = vst [vmem:[#allocation341_spill] sm:$0xff] %v15093_v7  ;;  %6082 = vmatmul.f32.gmra.mxu0 %v18106_v3  ;;  %6346 = vmatpush.msrb.mxu2 %v1083_v28  ;;  %v4084_v27 = vadd.f32 %v18156_v42, %v18155_v30  ;;  %v18159_v7 = vld [vmem:[#allocation38_spill] sm:$0xff]  ;;  %v1116_v28 = vld [vmem:[%s16515_s3 + $0x4a8] sm:$0xff]  ;;  %v18165_v30 = vld [vmem:[#allocation217_spill] sm:$0xff] }
 0x8e3   : > { %v15099_v2 = vmax.f32 %v18152_v29, %v5447_v14  ;;  %5993 = vmatmul.f32.gmra.mxu3 %v18106_v3  ;;  %5892 = vmatmul.f32.gmra.mxu2 %v14279_v21  ;;  %v18161_v47 = vmax.f32 %v18159_v7, %v18160_v4  ;;  %v18166_v42 = vld [vmem:[#allocation303_spill] sm:$0xff] }
 0x8e4   : > { %6195 = vmatmul.f32.gmra.mxu1 %v18106_v3  ;;  %v4504_v29 = vadd.f32 %v18158_v37, %v4084_v27  ;;  %v4087_v27 = vadd.f32 %v18166_v42, %v18165_v30  ;;  %v18175_v42 = vld [vmem:[#allocation164_spill] sm:$0xff] }
 0x8e5   : > { %18153 = vst [vmem:[#allocation342_spill] sm:$0xff] %v15099_v2  ;;  %6749 = vmatpush.msrb.mxu1 %v1116_v28  ;;  %v1082_v28 = vld [vmem:[%s16515_s3 + $0x398] sm:$0xff]  ;;  %v1071_v2 = vld [vmem:[%s16515_s3 + $0x340] sm:$0xff] }
 0x8e6   : > { %v5250_v63 = vpop.f32.mrf.mxu3  ;;  %v15112_v57 = vpop.f32.mrf.mxu2  ;;  %v4922_v4 = vadd.f32 %v18163_v16, %v4504_v29  ;;  %6460 = vmatpush.msra.mxu3 %v1082_v28 }
 0x8e7   : > { %v5350_v43 = vadd.f32 %v5250_v63, %v4920_v31  ;;  %v15114_v46 = vpop.f32.mrf.mxu0 }
 0x8e8   : > { %18154 = vst [vmem:[#allocation147_spill] sm:$0xff] %v15114_v46  ;;  %v18169_v46 = vld [vmem:[#allocation181_spill] sm:$0xff] }
 0x8e9   : > { %v5448_v50 = vmax.f32 %v15000_v44, %v5350_v43  ;;  %v15119_v14 = vpop.f32.mrf.mxu1  ;;  %v1115_v44 = vld [vmem:[%s16515_s3 + $0x4a0] sm:$0xff] }
 0x8ea   : > { %18157 = vst [vmem:[#allocation118_spill] sm:$0xff] %v15119_v14  ;;  %6085 = vmatmul.f32.gmra.mxu0 %v18120_v59 }
 0x8eb   : > { %v15125_v8 = vmax.f32 %v18161_v47, %v5448_v50  ;;  %5996 = vmatmul.f32.gmra.mxu3 %v18120_v59  ;;  %5895 = vmatmul.f32.gmra.mxu2 %v14309_v11  ;;  %v18168_v47 = vld [vmem:[#allocation376_spill] sm:$0xff] }
 0x8ec   : > { %6198 = vmatmul.f32.gmra.mxu1 %v18120_v59  ;;  %6636 = vmatpush.msrb.mxu0 %v1115_v44  ;;  %v4506_v14 = vadd.f32 %v18168_v47, %v4087_v27  ;;  %v18176_v27 = vld [vmem:[#allocation16_spill] sm:$0xff] }
 0x8ed   : > { %18162 = vst [vmem:[#allocation168_spill] sm:$0xff] %v15125_v8  ;;  %v18170_v8 = vld [vmem:[#allocation161_spill] sm:$0xff] }
 0x8ee   : > { %v5253_v7 = vpop.f32.mrf.mxu3  ;;  %v15138_v63 = vpop.f32.mrf.mxu2  ;;  %v18171_v29 = vmax.f32 %v18169_v46, %v18170_v8  ;;  %v4924_v46 = vadd.f32 %v14349_v17, %v4506_v14  ;;  %v1113_v17 = vld [vmem:[%s16515_s3 + $0x490] sm:$0xff] }
 0x8ef   : > { %v5352_v31 = vadd.f32 %v5253_v7, %v4922_v4  ;;  %v15140_v43 = vpop.f32.mrf.mxu0  ;;  %6637 = vmatpush.msrb.mxu0 %v1113_v17  ;;  %v1112_v17 = vld [vmem:[%s16515_s3 + $0x488] sm:$0xff] }
 0x8f0   : > { %18164 = vst [vmem:[#allocation131_spill] sm:$0xff] %v15140_v43 }
 0x8f1   : > { %v5449_v50 = vmax.f32 %v15030_v24, %v5352_v31  ;;  %v15145_v37 = vpop.f32.mrf.mxu1  ;;  %v1081_v24 = vld [vmem:[%s16515_s3 + $0x390] sm:$0xff] }
 0x8f2   : > { %18167 = vst [vmem:[#allocation249_spill] sm:$0xff] %v15145_v37  ;;  %6088 = vmatmul.f32.gmra.mxu0 %v18133_v58  ;;  %6347 = vmatpush.msrb.mxu2 %v1081_v24 }
 0x8f3   : > { %v15151_v44 = vmax.f32 %v18171_v29, %v5449_v50  ;;  %5999 = vmatmul.f32.gmra.mxu3 %v18133_v58  ;;  %5898 = vmatmul.f32.gmra.mxu2 %v14347_v41  ;;  %v18177_v50 = vmax.f32 %v18175_v42, %v18176_v27 }
 0x8f4   : > { %6201 = vmatmul.f32.gmra.mxu1 %v18133_v58 }
 0x8f5   : > { %18172 = vst [vmem:[#allocation264_spill] sm:$0xff] %v15151_v44 }
 0x8f6   : > { %v5256_v8 = vpop.f32.mrf.mxu3  ;;  %v15164_v4 = vpop.f32.mrf.mxu2 }
 0x8f7   : > { %v5354_v16 = vadd.f32 %v5256_v8, %v4924_v46  ;;  %v15166_v7 = vpop.f32.mrf.mxu0  ;;  %v1079_v46 = vld [vmem:[%s16515_s3 + $0x380] sm:$0xff]  ;;  %v1080_v8 = vld [vmem:[%s16515_s3 + $0x388] sm:$0xff] }
 0x8f8   : > { %18173 = vst [vmem:[#allocation126_spill] sm:$0xff] %v15166_v7  ;;  %6348 = vmatpush.msrb.mxu2 %v1079_v46  ;;  %6461 = vmatpush.msra.mxu3 %v1080_v8 }
 0x8f9   : > { %v5450_v31 = vmax.f32 %v15060_v45, %v5354_v16  ;;  %v15169_v30 = vpop.f32.mrf.mxu1  ;;  %v1114_v45 = vld [vmem:[%s16515_s3 + $0x498] sm:$0xff] }
 0x8fa   : > { %18174 = vst [vmem:[#allocation86_spill] sm:$0xff] %v15169_v30  ;;  %6091 = vmatmul.f32.gmra.mxu0 %v18143_v62  ;;  %6750 = vmatpush.msrb.mxu1 %v1114_v45 }
 0x8fb   : > { %v15174_v47 = vmax.f32 %v18177_v50, %v5450_v31  ;;  %6002 = vmatmul.f32.gmra.mxu3 %v18143_v62  ;;  %5901 = vmatmul.f32.gmra.mxu2 %v14391_v32  ;;  %v1111_v50 = vld [vmem:[%s16515_s3 + $0x480] sm:$0xff] }
 0x8fc   : > { %6204 = vmatmul.f32.gmra.mxu1 %v18143_v62  ;;  %6638 = vmatpush.msrb.mxu0 %v1111_v50  ;;  %v1077_v50 = vld [vmem:[%s16515_s3 + $0x370] sm:$0xff] }
 0x8fd   : > { %18178 = vst [vmem:[#allocation345_spill] sm:$0xff] %v15174_v47  ;;  %6751 = vmatpush.msrb.mxu1 %v1112_v17  ;;  %v1078_v17 = vld [vmem:[%s16515_s3 + $0x378] sm:$0xff]  ;;  %6349 = vmatpush.msrb.mxu2 %v1077_v50  ;;  %v1109_v50 = vld [vmem:[%s16515_s3 + $0x470] sm:$0xff] }
 0x8fe   : > { %v15186_v14 = vpop.f32.mrf.mxu3  ;;  %v15188_v29 = vpop.f32.mrf.mxu2  ;;  %6462 = vmatpush.msra.mxu3 %v1078_v17  ;;  %v1110_v17 = vld [vmem:[%s16515_s3 + $0x478] sm:$0xff]  ;;  %6639 = vmatpush.msrb.mxu0 %v1109_v50  ;;  %v1075_v50 = vld [vmem:[%s16515_s3 + $0x360] sm:$0xff]  ;;  %v1073_v47 = vld [vmem:[%s16515_s3 + $0x350] sm:$0xff] }
 0x8ff   : > { %v15190_v24 = vpop.f32.mrf.mxu0  ;;  %6752 = vmatpush.msrb.mxu1 %v1110_v17  ;;  %v1076_v17 = vld [vmem:[%s16515_s3 + $0x368] sm:$0xff]  ;;  %6350 = vmatpush.msrb.mxu2 %v1075_v50  ;;  %v1107_v50 = vld [vmem:[%s16515_s3 + $0x460] sm:$0xff] }
 0x900   : > { %18179 = vst [vmem:[#allocation346_spill] sm:$0xff] %v15190_v24  ;;  %6463 = vmatpush.msra.mxu3 %v1076_v17  ;;  %v1108_v17 = vld [vmem:[%s16515_s3 + $0x468] sm:$0xff]  ;;  %6640 = vmatpush.msrb.mxu0 %v1107_v50  ;;  %v1074_v50 = vld [vmem:[%s16515_s3 + $0x358] sm:$0xff] }
 0x901   : > { %v15192_v28 = vpop.f32.mrf.mxu1  ;;  %6753 = vmatpush.msrb.mxu1 %v1108_v17  ;;  %6351 = vmatpush.msrb.mxu2 %v1073_v47  ;;  %v1069_v47 = vld [vmem:[%s16515_s3 + $0x330] sm:$0xff] }
 0x902   : > { %18180 = vst [vmem:[#allocation150_spill] sm:$0xff] %v15192_v28  ;;  %6094 = vmatmul.f32.gmra.mxu0 %v14279_v21  ;;  %6464 = vmatpush.msra.mxu3 %v1074_v50  ;;  %v1106_v50 = vld [vmem:[%s16515_s3 + $0x458] sm:$0xff] }
 0x903   : > { %6005 = vmatmul.f32.gmra.mxu3 %v14279_v21  ;;  %5904 = vmatmul.f32.gmra.mxu2 %v14431_v18 }
 0x904   : > { %6207 = vmatmul.f32.gmra.mxu1 %v14279_v21  ;;  %6352 = vmatpush.msrb.mxu2 %v1071_v2  ;;  %v1063_v2 = vld [vmem:[%s16515_s3 + $0x300] sm:$0xff] }
 0x905   : > { %6754 = vmatpush.msrb.mxu1 %v1106_v50 }
 0x906   : > { %v15204_v16 = vpop.f32.mrf.mxu3  ;;  %v15206_v31 = vpop.f32.mrf.mxu2  ;;  %6353 = vmatpush.msrb.mxu2 %v1069_v47 }
 0x907   : > { %18181 = vst [vmem:[#allocation71_spill] sm:$0xff] %v15206_v31  ;;  %v15208_v42 = vpop.f32.mrf.mxu0 }
 0x908   : > { %18182 = vst [vmem:[#allocation68_spill] sm:$0xff] %v15208_v42 }
 0x909   : > { %v15210_v27 = vpop.f32.mrf.mxu1 }
 0x90a   : > { %18183 = vst [vmem:[#allocation135_spill] sm:$0xff] %v15210_v27  ;;  %6097 = vmatmul.f32.gmra.mxu0 %v14309_v11 }
 0x90b   : > { %6008 = vmatmul.f32.gmra.mxu3 %v14309_v11  ;;  %5907 = vmatmul.f32.gmra.mxu2 %v14462_v56 }
 0x90c   : > { %6210 = vmatmul.f32.gmra.mxu1 %v14309_v11 }
 0x90e   : > { %v15222_v45 = vpop.f32.mrf.mxu3  ;;  %v15224_v46 = vpop.f32.mrf.mxu2 }
 0x90f   : > { %18184 = vst [vmem:[#allocation253_spill] sm:$0xff] %v15224_v46  ;;  %v15226_v8 = vpop.f32.mrf.mxu0 }
 0x910   : > { %18185 = vst [vmem:[#allocation268_spill] sm:$0xff] %v15226_v8 }
 0x911   : > { %v15228_v27 = vpop.f32.mrf.mxu1 }
 0x912   : > { %18186 = vst [vmem:[#allocation130_spill] sm:$0xff] %v15228_v27  ;;  %6100 = vmatmul.f32.gmra.mxu0 %v14347_v41 }
 0x913   : > { %6011 = vmatmul.f32.gmra.mxu3 %v14347_v41  ;;  %5910 = vmatmul.f32.gmra.mxu2 %v14501_v51 }
 0x914   : > { %6213 = vmatmul.f32.gmra.mxu1 %v14347_v41 }
 0x916   : > { %v15240_v8 = vpop.f32.mrf.mxu3  ;;  %v15242_v27 = vpop.f32.mrf.mxu2 }
 0x917   : > { %18187 = vst [vmem:[#allocation90_spill] sm:$0xff] %v15242_v27  ;;  %v15244_v42 = vpop.f32.mrf.mxu0 }
 0x918   : > { %18188 = vst [vmem:[#allocation349_spill] sm:$0xff] %v15244_v42 }
 0x919   : > { %v15246_v28 = vpop.f32.mrf.mxu1 }
 0x91a   : > { %18189 = vst [vmem:[#allocation350_spill] sm:$0xff] %v15246_v28  ;;  %6103 = vmatmul.f32.gmra.mxu0 %v14391_v32 }
 0x91b   : > { %6014 = vmatmul.f32.gmra.mxu3 %v14391_v32  ;;  %5913 = vmatmul.f32.gmra.mxu2 %v14538_v1 }
 0x91c   : > { %6216 = vmatmul.f32.gmra.mxu1 %v14391_v32 }
 0x91e   : > { %v15258_v42 = vpop.f32.mrf.mxu3  ;;  %v15260_v28 = vpop.f32.mrf.mxu2 }
 0x91f   : > { %18190 = vst [vmem:[#allocation166_spill] sm:$0xff] %v15260_v28  ;;  %v15262_v24 = vpop.f32.mrf.mxu0  ;;  %v1065_v28 = vld [vmem:[%s16515_s3 + $0x310] sm:$0xff] }
 0x920   : > { %18191 = vst [vmem:[#allocation79_spill] sm:$0xff] %v15262_v24 }
 0x921   : > { %v15264_v30 = vpop.f32.mrf.mxu1 }
 0x922   : > { %18192 = vst [vmem:[#allocation171_spill] sm:$0xff] %v15264_v30  ;;  %6106 = vmatmul.f32.gmra.mxu0 %v14431_v18 }
 0x923   : > { %6017 = vmatmul.f32.gmra.mxu3 %v14431_v18  ;;  %5916 = vmatmul.f32.gmra.mxu2 %v14584_v35 }
 0x924   : > { %6219 = vmatmul.f32.gmra.mxu1 %v14431_v18 }
 0x926   : > { %v15276_v24 = vpop.f32.mrf.mxu3  ;;  %v15278_v30 = vpop.f32.mrf.mxu2 }
 0x927   : > { %18193 = vst [vmem:[#allocation140_spill] sm:$0xff] %v15276_v24  ;;  %v15280_v7 = vpop.f32.mrf.mxu0  ;;  %v1066_v24 = vld [vmem:[%s16515_s3 + $0x318] sm:$0xff] }
 0x928   : > { %18194 = vst [vmem:[#allocation257_spill] sm:$0xff] %v15278_v30 }
 0x929   : > { %18195 = vst [vmem:[#allocation272_spill] sm:$0xff] %v15280_v7  ;;  %v15282_v37 = vpop.f32.mrf.mxu1 }
 0x92a   : > { %18196 = vst [vmem:[#allocation132_spill] sm:$0xff] %v15282_v37  ;;  %6109 = vmatmul.f32.gmra.mxu0 %v14462_v56 }
 0x92b   : > { %6020 = vmatmul.f32.gmra.mxu3 %v14462_v56  ;;  %5919 = vmatmul.f32.gmra.mxu2 %v14616_v60 }
 0x92c   : > { %6222 = vmatmul.f32.gmra.mxu1 %v14462_v56 }
 0x92e   : > { %v15294_v7 = vpop.f32.mrf.mxu3  ;;  %v15296_v37 = vpop.f32.mrf.mxu2 }
 0x92f   : > { %18197 = vst [vmem:[#allocation94_spill] sm:$0xff] %v15294_v7  ;;  %v15298_v43 = vpop.f32.mrf.mxu0 }
 0x930   : > { %18198 = vst [vmem:[#allocation353_spill] sm:$0xff] %v15296_v37 }
 0x931   : > { %18199 = vst [vmem:[#allocation354_spill] sm:$0xff] %v15298_v43  ;;  %v15303_v44 = vpop.f32.mrf.mxu1 }
 0x932   : > { %18200 = vst [vmem:[#allocation57_spill] sm:$0xff] %v15303_v44  ;;  %6112 = vmatmul.f32.gmra.mxu0 %v14501_v51  ;;  %v1067_v44 = vld [vmem:[%s16515_s3 + $0x320] sm:$0xff] }
 0x933   : > { %6023 = vmatmul.f32.gmra.mxu3 %v14501_v51  ;;  %5922 = vmatmul.f32.gmra.mxu2 %v14654_v26 }
 0x934   : > { %6225 = vmatmul.f32.gmra.mxu1 %v14501_v51  ;;  %6354 = vmatpush.msrb.mxu2 %v1067_v44  ;;  %v1105_v44 = vld [vmem:[%s16515_s3 + $0x450] sm:$0xff] }
 0x935   : > { %6641 = vmatpush.msrb.mxu0 %v1105_v44 }
 0x936   : > { %v15318_v17 = vpop.f32.mrf.mxu3  ;;  %v15323_v43 = vpop.f32.mrf.mxu2  ;;  %6355 = vmatpush.msrb.mxu2 %v1065_v28  ;;  %v1072_v28 = vld [vmem:[%s16515_s3 + $0x348] sm:$0xff] }
 0x937   : > { %18201 = vst [vmem:[#allocation87_spill] sm:$0xff] %v15318_v17  ;;  %v15325_v37 = vpop.f32.mrf.mxu0  ;;  %6465 = vmatpush.msra.mxu3 %v1072_v28  ;;  %v1103_v28 = vld [vmem:[%s16515_s3 + $0x440] sm:$0xff] }
 0x938   : > { %18202 = vst [vmem:[#allocation29_spill] sm:$0xff] %v15323_v43  ;;  %6356 = vmatpush.msrb.mxu2 %v1063_v2  ;;  %6642 = vmatpush.msrb.mxu0 %v1103_v28 }
 0x939   : > { %v15327_v30 = vpop.f32.mrf.mxu1 }
 0x93a   : > { %6115 = vmatmul.f32.gmra.mxu0 %v14538_v1 }
 0x93b   : > { %6026 = vmatmul.f32.gmra.mxu3 %v14538_v1  ;;  %5925 = vmatmul.f32.gmra.mxu2 %v14682_v15 }
 0x93c   : > { %6228 = vmatmul.f32.gmra.mxu1 %v14538_v1 }
 0x93e   : > { %v15345_v47 = vpop.f32.mrf.mxu3  ;;  %v15347_v43 = vpop.f32.mrf.mxu2 }
 0x93f   : > { %18203 = vst [vmem:[#allocation91_spill] sm:$0xff] %v15345_v47  ;;  %v15349_v17 = vpop.f32.mrf.mxu0 }
 0x940   : > { %18204 = vst [vmem:[#allocation261_spill] sm:$0xff] %v15347_v43 }
 0x941   : > { %v15351_v27 = vpop.f32.mrf.mxu1 }
 0x942   : > { %6118 = vmatmul.f32.gmra.mxu0 %v14584_v35 }
 0x943   : > { %6029 = vmatmul.f32.gmra.mxu3 %v14584_v35  ;;  %5928 = vmatmul.f32.gmra.mxu2 %v14718_v20 }
 0x944   : > { %6231 = vmatmul.f32.gmra.mxu1 %v14584_v35 }
 0x946   : > { %v15360_v44 = vpop.f32.mrf.mxu3  ;;  %v15362_v2 = vpop.f32.mrf.mxu2 }
 0x947   : > { %18205 = vst [vmem:[#allocation276_spill] sm:$0xff] %v15360_v44  ;;  %v15364_v50 = vpop.f32.mrf.mxu0 }
 0x948   : > { %18206 = vst [vmem:[#allocation134_spill] sm:$0xff] %v15362_v2  ;;  %v1104_v2 = vld [vmem:[%s16515_s3 + $0x448] sm:$0xff] }
 0x949   : > { %v15366_v43 = vpop.f32.mrf.mxu1  ;;  %6755 = vmatpush.msrb.mxu1 %v1104_v2  ;;  %v1070_v2 = vld [vmem:[%s16515_s3 + $0x338] sm:$0xff] }
 0x94a   : > { %6121 = vmatmul.f32.gmra.mxu0 %v14616_v60  ;;  %6466 = vmatpush.msra.mxu3 %v1070_v2  ;;  %v1064_v2 = vld [vmem:[%s16515_s3 + $0x308] sm:$0xff] }
 0x94b   : > { %6032 = vmatmul.f32.gmra.mxu3 %v14616_v60  ;;  %5931 = vmatmul.f32.gmra.mxu2 %v14748_v39 }
 0x94c   : > { %6234 = vmatmul.f32.gmra.mxu1 %v14616_v60 }
 0x94e   : > { %v15378_v44 = vpop.f32.mrf.mxu3  ;;  %v15380_v47 = vpop.f32.mrf.mxu2 }
 0x94f   : > { %18207 = vst [vmem:[#allocation98_spill] sm:$0xff] %v15378_v44  ;;  %v15382_v7 = vpop.f32.mrf.mxu0 }
 0x950   : > { %18208 = vst [vmem:[#allocation357_spill] sm:$0xff] %v15380_v47  ;;  %v1068_v47 = vld [vmem:[%s16515_s3 + $0x328] sm:$0xff] }
 0x951   : > { %v15384_v46 = vpop.f32.mrf.mxu1  ;;  %6467 = vmatpush.msra.mxu3 %v1068_v47  ;;  %v1101_v47 = vld [vmem:[%s16515_s3 + $0x430] sm:$0xff] }
 0x952   : > { %6124 = vmatmul.f32.gmra.mxu0 %v14654_v26 }
 0x953   : > { %6035 = vmatmul.f32.gmra.mxu3 %v14654_v26  ;;  %5934 = vmatmul.f32.gmra.mxu2 %v14784_v6 }
 0x954   : > { %6237 = vmatmul.f32.gmra.mxu1 %v14654_v26  ;;  %6468 = vmatpush.msra.mxu3 %v1066_v24  ;;  %v1102_v24 = vld [vmem:[%s16515_s3 + $0x438] sm:$0xff] }
 0x955   : > { %6643 = vmatpush.msrb.mxu0 %v1101_v47  ;;  %6756 = vmatpush.msrb.mxu1 %v1102_v24 }
 0x956   : > { %v15393_v28 = vpop.f32.mrf.mxu3  ;;  %v15398_v44 = vpop.f32.mrf.mxu2  ;;  %6469 = vmatpush.msra.mxu3 %v1064_v2 }
 0x957   : > { %18209 = vst [vmem:[#allocation358_spill] sm:$0xff] %v15393_v28  ;;  %v15400_v49 = vpop.f32.mrf.mxu0 }
 0x958   : > { %18210 = vst [vmem:[#allocation12_spill] sm:$0xff] %v15398_v44 }
 0x959   : > { %v15405_v9 = vpop.f32.mrf.mxu1 }
 0x95a   : > { %18211 = vst [vmem:[#allocation146_spill] sm:$0xff] %v15405_v9  ;;  %6127 = vmatmul.f32.gmra.mxu0 %v14682_v15 }
 0x95b   : > { %6038 = vmatmul.f32.gmra.mxu3 %v14682_v15  ;;  %6357 = vmatmul.f32.vlgmr.msrb.gmra.mxu2 %v18092_v5 }
 0x95c   : > { %6240 = vmatmul.f32.gmra.mxu1 %v14682_v15 }
 0x95e   : > { %v15420_v44 = vpop.f32.mrf.mxu3  ;;  %v15422_v28 = vpop.f32.mrf.mxu2 }
 0x95f   : > { %18212 = vst [vmem:[#allocation174_spill] sm:$0xff] %v15420_v44  ;;  %v15424_v31 = vpop.f32.mrf.mxu0 }
 0x960   : > { %18213 = vst [vmem:[#allocation195_spill] sm:$0xff] %v15422_v28  ;;  %v1099_v28 = vld [vmem:[%s16515_s3 + $0x420] sm:$0xff] }
 0x961   : > { %v15426_v40 = vpop.f32.mrf.mxu1  ;;  %6644 = vmatpush.msrb.mxu0 %v1099_v28 }
 0x962   : > { %18214 = vst [vmem:[#allocation265_spill] sm:$0xff] %v15426_v40  ;;  %6130 = vmatmul.f32.gmra.mxu0 %v14718_v20 }
 0x963   : > { %6041 = vmatmul.f32.gmra.mxu3 %v14718_v20  ;;  %6360 = vmatmul.f32.gmra.mxu2 %v18106_v3 }
 0x964   : > { %6243 = vmatmul.f32.gmra.mxu1 %v14718_v20 }
 0x966   : > { %v15432_v9 = vpop.f32.mrf.mxu3  ;;  %v15434_v2 = vpop.f32.mrf.mxu2 }
 0x967   : > { %18215 = vst [vmem:[#allocation280_spill] sm:$0xff] %v15432_v9  ;;  %v15436_v47 = vpop.f32.mrf.mxu0 }
 0x968   : > { %18216 = vst [vmem:[#allocation136_spill] sm:$0xff] %v15434_v2  ;;  %v1100_v2 = vld [vmem:[%s16515_s3 + $0x428] sm:$0xff] }
 0x969   : > { %18217 = vst [vmem:[#allocation102_spill] sm:$0xff] %v15436_v47  ;;  %v15438_v24 = vpop.f32.mrf.mxu1  ;;  %6757 = vmatpush.msrb.mxu1 %v1100_v2 }
 0x96a   : > { %18218 = vst [vmem:[#allocation361_spill] sm:$0xff] %v15438_v24  ;;  %6133 = vmatmul.f32.gmra.mxu0 %v14748_v39 }
 0x96b   : > { %6044 = vmatmul.f32.gmra.mxu3 %v14748_v39  ;;  %6363 = vmatmul.f32.gmra.mxu2 %v18120_v59 }
 0x96c   : > { %6246 = vmatmul.f32.gmra.mxu1 %v14748_v39 }
 0x96e   : > { %v15450_v9 = vpop.f32.mrf.mxu3  ;;  %v15452_v44 = vpop.f32.mrf.mxu2 }
 0x96f   : > { %18219 = vst [vmem:[#allocation362_spill] sm:$0xff] %v15450_v9  ;;  %v15454_v24 = vpop.f32.mrf.mxu0 }
 0x970   : > { %18220 = vst [vmem:[#allocation31_spill] sm:$0xff] %v15452_v44  ;;  %v1097_v44 = vld [vmem:[%s16515_s3 + $0x410] sm:$0xff] }
 0x971   : > { %v15456_v47 = vpop.f32.mrf.mxu1  ;;  %6645 = vmatpush.msrb.mxu0 %v1097_v44 }
 0x972   : > { %18221 = vst [vmem:[#allocation198_spill] sm:$0xff] %v15456_v47  ;;  %6136 = vmatmul.f32.gmra.mxu0 %v14784_v6 }
 0x973   : > { %6047 = vmatmul.f32.gmra.mxu3 %v14784_v6  ;;  %6366 = vmatmul.f32.gmra.mxu2 %v18133_v58 }
 0x974   : > { %6249 = vmatmul.f32.gmra.mxu1 %v14784_v6 }
 0x976   : > { %v15462_v40 = vpop.f32.mrf.mxu3  ;;  %v15464_v28 = vpop.f32.mrf.mxu2 }
 0x977   : > { %18222 = vst [vmem:[#allocation109_spill] sm:$0xff] %v15462_v40  ;;  %v15466_v2 = vpop.f32.mrf.mxu0 }
 0x978   : > { %18223 = vst [vmem:[#allocation199_spill] sm:$0xff] %v15464_v28  ;;  %v1098_v28 = vld [vmem:[%s16515_s3 + $0x418] sm:$0xff] }
 0x979   : > { %18224 = vst [vmem:[#allocation269_spill] sm:$0xff] %v15466_v2  ;;  %v15468_v9 = vpop.f32.mrf.mxu1  ;;  %6758 = vmatpush.msrb.mxu1 %v1098_v28 }
 0x97a   : > { %18225 = vst [vmem:[#allocation284_spill] sm:$0xff] %v15468_v9  ;;  %6139 = vmatmul.f32.gmra.mxu0 %v14818_v34 }
 0x97b   : > { %6470 = vmatmul.f32.vlgmr.msra.gmra.mxu3 %v18092_v5  ;;  %6369 = vmatmul.f32.gmra.mxu2 %v18143_v62 }
 0x97c   : > { %6252 = vmatmul.f32.gmra.mxu1 %v14818_v34 }
 0x97e   : > { %v15480_v40 = vpop.f32.mrf.mxu3  ;;  %v15482_v9 = vpop.f32.mrf.mxu2 }
 0x97f   : > { %18226 = vst [vmem:[#allocation139_spill] sm:$0xff] %v15480_v40  ;;  %v15484_v2 = vpop.f32.mrf.mxu0 }
 0x980   : > { %18227 = vst [vmem:[#allocation106_spill] sm:$0xff] %v15482_v9 }
 0x981   : > { %v15486_v5 = vpop.f32.mrf.mxu1 }
 0x982   : > { %18228 = vst [vmem:[#allocation365_spill] sm:$0xff] %v15486_v5  ;;  %6142 = vmatmul.f32.gmra.mxu0 %v14848_v48 }
 0x983   : > { %6473 = vmatmul.f32.gmra.mxu3 %v18106_v3  ;;  %6372 = vmatmul.f32.gmra.mxu2 %v14279_v21  ;;  %v1095_v3 = vld [vmem:[%s16515_s3 + $0x400] sm:$0xff] }
 0x984   : > { %6255 = vmatmul.f32.gmra.mxu1 %v14848_v48  ;;  %6646 = vmatpush.msrb.mxu0 %v1095_v3 }
 0x986   : > { %v15492_v47 = vpop.f32.mrf.mxu3  ;;  %v15494_v44 = vpop.f32.mrf.mxu2 }
 0x987   : > { %18229 = vst [vmem:[#allocation366_spill] sm:$0xff] %v15492_v47  ;;  %v15496_v28 = vpop.f32.mrf.mxu0 }
 0x988   : > { %18230 = vst [vmem:[#allocation15_spill] sm:$0xff] %v15494_v44  ;;  %v1096_v44 = vld [vmem:[%s16515_s3 + $0x408] sm:$0xff] }
 0x989   : > { %18231 = vst [vmem:[#allocation202_spill] sm:$0xff] %v15496_v28  ;;  %v15498_v40 = vpop.f32.mrf.mxu1  ;;  %6759 = vmatpush.msrb.mxu1 %v1096_v44  ;;  %v15525_v44 = vld [vmem:[%s16514_s2] ss:$0 sm:$0xff] }
 0x98a   : > { %18232 = vst [vmem:[#allocation177_spill] sm:$0xff] %v15498_v40  ;;  %6145 = vmatmul.f32.gmra.mxu0 %v14881_v36  ;;  %v5539_v3 = vadd.f32 %v15525_v44, %v14859_v33  ;;  %v5540_v33 = vadd.f32 %v15525_v44, %v14892_v53 }
 0x98b   : > { %6476 = vmatmul.f32.gmra.mxu3 %v18120_v59  ;;  %6375 = vmatmul.f32.gmra.mxu2 %v14309_v11 }
 0x98c   : > { %6258 = vmatmul.f32.gmra.mxu1 %v14881_v36 }
 0x98e   : > { %v15510_v9 = vpop.f32.mrf.mxu3  ;;  %v15516_v59 = vpop.f32.mrf.mxu2 }
 0x98f   : > { %18233 = vst [vmem:[#allocation203_spill] sm:$0xff] %v15510_v9  ;;  %v15512_v47 = vpop.f32.mrf.mxu0 }
 0x990   : > { %18234 = vst [vmem:[#allocation273_spill] sm:$0xff] %v15512_v47 }
 0x991   : > { %v15514_v40 = vpop.f32.mrf.mxu1  ;;  %18236 = vst [vmem:[#allocation142_spill] sm:$0xff] %v15516_v59  ;;  %v15533_v59 = vmax.f32 %v5539_v3, 0.0  ;;  %v15549_v3 = vmax.f32 %v5540_v33, 0.0 }
 0x992   : > { %18235 = vst [vmem:[#allocation288_spill] sm:$0xff] %v15514_v40  ;;  %6148 = vmatmul.f32.gmra.mxu0 %v14914_v54 }
 0x993   : > { %6479 = vmatmul.f32.gmra.mxu3 %v18133_v58  ;;  %6378 = vmatmul.f32.gmra.mxu2 %v14347_v41 }
 0x994   : > { %6261 = vmatmul.f32.gmra.mxu1 %v14914_v54 }
 0x996   : > { %v15529_v9 = vpop.f32.mrf.mxu3  ;;  %v15539_v58 = vpop.f32.mrf.mxu2 }
 0x997   : > { %18237 = vst [vmem:[#allocation112_spill] sm:$0xff] %v15529_v9  ;;  %v15531_v40 = vpop.f32.mrf.mxu0 }
 0x998   : > { %18238 = vst [vmem:[#allocation369_spill] sm:$0xff] %v15531_v40 }
 0x999   : > { %v15535_v47 = vpop.f32.mrf.mxu1  ;;  %18240 = vst [vmem:[#allocation64_spill] sm:$0xff] %v15539_v58  ;;  %v5541_v58 = vadd.f32 %v15525_v44, %v14925_v38  ;;  %v5542_v38 = vadd.f32 %v15525_v44, %v14955_v52 }
 0x99a   : > { %18239 = vst [vmem:[#allocation370_spill] sm:$0xff] %v15535_v47  ;;  %6151 = vmatmul.f32.gmra.mxu0 %v15533_v59 }
 0x99b   : > { %6482 = vmatmul.f32.gmra.mxu3 %v18143_v62  ;;  %6381 = vmatmul.f32.gmra.mxu2 %v14391_v32  ;;  %v15565_v33 = vmax.f32 %v5541_v58, 0.0  ;;  %v15581_v58 = vmax.f32 %v5542_v38, 0.0 }
 0x99c   : > { %6264 = vmatmul.f32.gmra.mxu1 %v15533_v59 }
 0x99e   : > { %v15545_v9 = vpop.f32.mrf.mxu3  ;;  %v15559_v53 = vpop.f32.mrf.mxu2 }
 0x99f   : > { %18241 = vst [vmem:[#allocation206_spill] sm:$0xff] %v15545_v9  ;;  %v15547_v40 = vpop.f32.mrf.mxu0 }
 0x9a0   : > { %18242 = vst [vmem:[#allocation158_spill] sm:$0xff] %v15547_v40 }
 0x9a1   : > { %v15551_v47 = vpop.f32.mrf.mxu1  ;;  %18244 = vst [vmem:[#allocation277_spill] sm:$0xff] %v15559_v53 }
 0x9a2   : > { %18243 = vst [vmem:[#allocation207_spill] sm:$0xff] %v15551_v47  ;;  %6154 = vmatmul.f32.gmra.mxu0 %v15549_v3 }
 0x9a3   : > { %6485 = vmatmul.f32.gmra.mxu3 %v14279_v21  ;;  %6384 = vmatmul.f32.gmra.mxu2 %v14431_v18 }
 0x9a4   : > { %6267 = vmatmul.f32.gmra.mxu1 %v15549_v3 }
 0x9a6   : > { %v15561_v9 = vpop.f32.mrf.mxu3 }
 0x9a7   : > { %18245 = vst [vmem:[#allocation292_spill] sm:$0xff] %v15561_v9  ;;  %v15563_v40 = vpop.f32.mrf.mxu0  ;;  %v15577_v9 = vpop.f32.mrf.mxu2 }
 0x9a8   : > { %18246 = vst [vmem:[#allocation145_spill] sm:$0xff] %v15563_v40 }
 0x9a9   : > { %v15567_v47 = vpop.f32.mrf.mxu1  ;;  %18249 = vst [vmem:[#allocation374_spill] sm:$0xff] %v15577_v9 }
 0x9aa   : > { %18247 = vst [vmem:[#allocation116_spill] sm:$0xff] %v15567_v47  ;;  %6157 = vmatmul.f32.gmra.mxu0 %v15565_v33 }
 0x9ab   : > { %6488 = vmatmul.f32.gmra.mxu3 %v14309_v11  ;;  %6387 = vmatmul.f32.gmra.mxu2 %v14462_v56 }
 0x9ac   : > { %6270 = vmatmul.f32.gmra.mxu1 %v15565_v33 }
 0x9ae   : > { %v15575_v53 = vpop.f32.mrf.mxu3 }
 0x9af   : > { %18248 = vst [vmem:[#allocation373_spill] sm:$0xff] %v15575_v53  ;;  %v15579_v40 = vpop.f32.mrf.mxu0  ;;  %v15595_v9 = vpop.f32.mrf.mxu2 }
 0x9b0   : > { %18250 = vst [vmem:[#allocation18_spill] sm:$0xff] %v15579_v40 }
 0x9b1   : > { %v15583_v47 = vpop.f32.mrf.mxu1  ;;  %18255 = vst [vmem:[#allocation296_spill] sm:$0xff] %v15595_v9 }
 0x9b2   : > { %18251 = vst [vmem:[#allocation209_spill] sm:$0xff] %v15583_v47  ;;  %6160 = vmatmul.f32.gmra.mxu0 %v15581_v58 }
 0x9b3   : > { %6491 = vmatmul.f32.gmra.mxu3 %v14347_v41  ;;  %6390 = vmatmul.f32.gmra.mxu2 %v14501_v51 }
 0x9b4   : > { %6273 = vmatmul.f32.gmra.mxu1 %v15581_v58 }
 0x9b6   : > { %v15589_v28 = vpop.f32.mrf.mxu3 }
 0x9b7   : > { %18252 = vst [vmem:[#allocation180_spill] sm:$0xff] %v15589_v28  ;;  %v15591_v52 = vpop.f32.mrf.mxu0  ;;  %v15609_v28 = vpop.f32.mrf.mxu2 }
 0x9b8   : > { %18253 = vst [vmem:[#allocation210_spill] sm:$0xff] %v15591_v52 }
 0x9b9   : > { %v15593_v53 = vpop.f32.mrf.mxu1  ;;  %18259 = vst [vmem:[#allocation212_spill] sm:$0xff] %v15609_v28 }
 0x9ba   : > { %18254 = vst [vmem:[#allocation281_spill] sm:$0xff] %v15593_v53  ;;  %6647 = vmatmul.f32.vlgmr.msrb.gmra.mxu0 %v18143_v62 }
 0x9bb   : > { %6494 = vmatmul.f32.gmra.mxu3 %v14391_v32  ;;  %6393 = vmatmul.f32.gmra.mxu2 %v14538_v1 }
 0x9bc   : > { %6760 = vmatmul.f32.vlgmr.msrb.gmra.mxu1 %v18143_v62 }
 0x9be   : > { %v15601_v38 = vpop.f32.mrf.mxu3 }
 0x9bf   : > { %18256 = vst [vmem:[#allocation103_spill] sm:$0xff] %v15601_v38  ;;  %v15603_v47 = vpop.f32.mrf.mxu0  ;;  %v15623_v38 = vpop.f32.mrf.mxu2 }
 0x9c0   : > { %18257 = vst [vmem:[#allocation148_spill] sm:$0xff] %v15603_v47 }
 0x9c1   : > { %v15605_v40 = vpop.f32.mrf.mxu1  ;;  %18263 = vst [vmem:[#allocation300_spill] sm:$0xff] %v15623_v38 }
 0x9c2   : > { %18258 = vst [vmem:[#allocation25_spill] sm:$0xff] %v15605_v40  ;;  %6650 = vmatmul.f32.gmra.mxu0 %v14279_v21 }
 0x9c3   : > { %6497 = vmatmul.f32.gmra.mxu3 %v14431_v18  ;;  %6396 = vmatmul.f32.gmra.mxu2 %v14584_v35 }
 0x9c4   : > { %6763 = vmatmul.f32.gmra.mxu1 %v14279_v21 }
 0x9c6   : > { %v15613_v9 = vpop.f32.mrf.mxu3 }
 0x9c7   : > { %18260 = vst [vmem:[#allocation81_spill] sm:$0xff] %v15613_v9  ;;  %v15615_v53 = vpop.f32.mrf.mxu0 }
 0x9c8   : > { %18261 = vst [vmem:[#allocation213_spill] sm:$0xff] %v15615_v53 }
 0x9c9   : > { %v15617_v62 = vpop.f32.mrf.mxu1 }
 0x9ca   : > { %18262 = vst [vmem:[#allocation285_spill] sm:$0xff] %v15617_v62  ;;  %6653 = vmatmul.f32.gmra.mxu0 %v14309_v11  ;;  %v15637_v62 = vpop.f32.mrf.mxu2 }
 0x9cb   : > { %6500 = vmatmul.f32.gmra.mxu3 %v14462_v56  ;;  %6399 = vmatmul.f32.gmra.mxu2 %v14616_v60  ;;  %18268 = vst [vmem:[#allocation183_spill] sm:$0xff] %v15637_v62  ;;  %v1142_v62 = vld [vmem:[%s16517_s5 + $0x78] sm:$0xff] }
 0x9cc   : > { %6766 = vmatmul.f32.gmra.mxu1 %v14309_v11  ;;  %7009 = vmatpush.msra.mxu2 %v1142_v62 }
 0x9ce   : > { %v15625_v28 = vpop.f32.mrf.mxu3 }
 0x9cf   : > { %18264 = vst [vmem:[#allocation149_spill] sm:$0xff] %v15625_v28  ;;  %v15627_v40 = vpop.f32.mrf.mxu0 }
 0x9d0   : > { %18265 = vst [vmem:[#allocation11_spill] sm:$0xff] %v15627_v40  ;;  %v5843_v40 = vadd.f32 %v15086_v25, %v14382_v22  ;;  %v1134_v22 = vld [vmem:[%s16517_s5 + $0x38] sm:$0xff] }
 0x9d1   : > { %v15629_v21 = vpop.f32.mrf.mxu1 }
 0x9d2   : > { %18266 = vst [vmem:[#allocation22_spill] sm:$0xff] %v15629_v21  ;;  %6656 = vmatmul.f32.gmra.mxu0 %v14347_v41  ;;  %v6277_v25 = vadd.f32 %v15325_v37, %v5843_v40 }
 0x9d3   : > { %6503 = vmatmul.f32.gmra.mxu3 %v14501_v51  ;;  %6402 = vmatmul.f32.gmra.mxu2 %v14654_v26 }
 0x9d4   : > { %6769 = vmatmul.f32.gmra.mxu1 %v14347_v41 }
 0x9d6   : > { %v15635_v9 = vpop.f32.mrf.mxu3 }
 0x9d7   : > { %18267 = vst [vmem:[#allocation215_spill] sm:$0xff] %v15635_v9  ;;  %v15639_v11 = vpop.f32.mrf.mxu0  ;;  %v15653_v9 = vpop.f32.mrf.mxu2 }
 0x9d8   : > { %18269 = vst [vmem:[#allocation216_spill] sm:$0xff] %v15639_v11 }
 0x9d9   : > { %v15641_v38 = vpop.f32.mrf.mxu1  ;;  %18274 = vst [vmem:[#allocation153_spill] sm:$0xff] %v15653_v9 }
 0x9da   : > { %18270 = vst [vmem:[#allocation289_spill] sm:$0xff] %v15641_v38  ;;  %6659 = vmatmul.f32.gmra.mxu0 %v14391_v32 }
 0x9db   : > { %6506 = vmatmul.f32.gmra.mxu3 %v14538_v1  ;;  %6405 = vmatmul.f32.gmra.mxu2 %v14682_v15 }
 0x9dc   : > { %6772 = vmatmul.f32.gmra.mxu1 %v14391_v32  ;;  %v1158_v32 = vld [vmem:[%s16517_s5 + $0xf8] sm:$0xff] }
 0x9dd   : > { %7038 = vmatpush.msrb.mxu3 %v1158_v32 }
 0x9de   : > { %v15647_v28 = vpop.f32.mrf.mxu3 }
 0x9df   : > { %18271 = vst [vmem:[#allocation304_spill] sm:$0xff] %v15647_v28  ;;  %v15649_v21 = vpop.f32.mrf.mxu0 }
 0x9e0   : > { %18272 = vst [vmem:[#allocation151_spill] sm:$0xff] %v15649_v21  ;;  %v15673_v21 = vpop.f32.mrf.mxu2 }
 0x9e1   : > { %v15651_v41 = vpop.f32.mrf.mxu1  ;;  %18278 = vst [vmem:[#allocation293_spill] sm:$0xff] %v15673_v21 }
 0x9e2   : > { %18273 = vst [vmem:[#allocation124_spill] sm:$0xff] %v15651_v41  ;;  %6662 = vmatmul.f32.gmra.mxu0 %v14431_v18 }
 0x9e3   : > { %6509 = vmatmul.f32.gmra.mxu3 %v14584_v35  ;;  %6408 = vmatmul.f32.gmra.mxu2 %v14718_v20 }
 0x9e4   : > { %6775 = vmatmul.f32.gmra.mxu1 %v14431_v18 }
 0x9e6   : > { %v15665_v28 = vpop.f32.mrf.mxu3 }
 0x9e7   : > { %18275 = vst [vmem:[#allocation218_spill] sm:$0xff] %v15665_v28  ;;  %v15667_v9 = vpop.f32.mrf.mxu0  ;;  %v1141_v28 = vld [vmem:[%s16517_s5 + $0x70] sm:$0xff] }
 0x9e8   : > { %18276 = vst [vmem:[#allocation184_spill] sm:$0xff] %v15667_v9  ;;  %7010 = vmatpush.msra.mxu2 %v1141_v28  ;;  %v15693_v21 = vpop.f32.mrf.mxu2 }
 0x9e9   : > { %v15669_v41 = vpop.f32.mrf.mxu1 }
 0x9ea   : > { %18277 = vst [vmem:[#allocation219_spill] sm:$0xff] %v15669_v41  ;;  %6665 = vmatmul.f32.gmra.mxu0 %v14462_v56 }
 0x9eb   : > { %6512 = vmatmul.f32.gmra.mxu3 %v14616_v60  ;;  %6411 = vmatmul.f32.gmra.mxu2 %v14748_v39 }
 0x9ec   : > { %6778 = vmatmul.f32.gmra.mxu1 %v14462_v56  ;;  %v1157_v56 = vld [vmem:[%s16517_s5 + $0xf0] sm:$0xff] }
 0x9ed   : > { %7039 = vmatpush.msrb.mxu3 %v1157_v56 }
 0x9ee   : > { %v15677_v18 = vpop.f32.mrf.mxu3 }
 0x9ef   : > { %18279 = vst [vmem:[#allocation306_spill] sm:$0xff] %v15677_v18  ;;  %v15679_v62 = vpop.f32.mrf.mxu0 }
 0x9f0   : > { %18280 = vst [vmem:[#allocation152_spill] sm:$0xff] %v15679_v62  ;;  %v15707_v28 = vpop.f32.mrf.mxu2 }
 0x9f1   : > { %v15681_v32 = vpop.f32.mrf.mxu1 }
 0x9f2   : > { %18281 = vst [vmem:[#allocation138_spill] sm:$0xff] %v15681_v32  ;;  %6668 = vmatmul.f32.gmra.mxu0 %v14501_v51 }
 0x9f3   : > { %6515 = vmatmul.f32.gmra.mxu3 %v14654_v26  ;;  %6414 = vmatmul.f32.gmra.mxu2 %v14784_v6 }
 0x9f4   : > { %6781 = vmatmul.f32.gmra.mxu1 %v14501_v51 }
 0x9f6   : > { %v15695_v18 = vpop.f32.mrf.mxu3 }
 0x9f7   : > { %18282 = vst [vmem:[#allocation26_spill] sm:$0xff] %v15695_v18  ;;  %v15697_v32 = vpop.f32.mrf.mxu0  ;;  %v1140_v18 = vld [vmem:[%s16517_s5 + $0x68] sm:$0xff] }
 0x9f8   : > { %18283 = vst [vmem:[#allocation220_spill] sm:$0xff] %v15697_v32  ;;  %7011 = vmatpush.msra.mxu2 %v1140_v18  ;;  %v15729_v32 = vpop.f32.mrf.mxu2 }
 0x9f9   : > { %v15699_v62 = vpop.f32.mrf.mxu1 }
 0x9fa   : > { %18284 = vst [vmem:[#allocation46_spill] sm:$0xff] %v15699_v62  ;;  %6671 = vmatmul.f32.gmra.mxu0 %v14538_v1 }
 0x9fb   : > { %6518 = vmatmul.f32.gmra.mxu3 %v14682_v15  ;;  %6417 = vmatmul.f32.gmra.mxu2 %v14818_v34 }
 0x9fc   : > { %6784 = vmatmul.f32.gmra.mxu1 %v14538_v1  ;;  %v1156_v1 = vld [vmem:[%s16517_s5 + $0xe8] sm:$0xff] }
 0x9fd   : > { %7040 = vmatpush.msrb.mxu3 %v1156_v1 }
 0x9fe   : > { %v15705_v51 = vpop.f32.mrf.mxu3 }
 0x9ff   : > { %v15709_v56 = vpop.f32.mrf.mxu0 }
 0xa00   : > { %18285 = vst [vmem:[#allocation221_spill] sm:$0xff] %v15709_v56 }
 0xa01   : > { %v15711_v41 = vpop.f32.mrf.mxu1 }
 0xa02   : > { %18286 = vst [vmem:[#allocation297_spill] sm:$0xff] %v15711_v41  ;;  %6674 = vmatmul.f32.gmra.mxu0 %v14584_v35 }
 0xa03   : > { %6521 = vmatmul.f32.gmra.mxu3 %v14718_v20  ;;  %6420 = vmatmul.f32.gmra.mxu2 %v14848_v48 }
 0xa04   : > { %6787 = vmatmul.f32.gmra.mxu1 %v14584_v35 }
 0xa06   : > { %v15723_v56 = vpop.f32.mrf.mxu3 }
 0xa07   : > { %v15725_v41 = vpop.f32.mrf.mxu0 }
 0xa08   : > { %18287 = vst [vmem:[#allocation308_spill] sm:$0xff] %v15725_v41  ;;  %v15746_v41 = vpop.f32.mrf.mxu2 }
 0xa09   : > { %v15727_v62 = vpop.f32.mrf.mxu1 }
 0xa0a   : > { %18288 = vst [vmem:[#allocation48_spill] sm:$0xff] %v15727_v62  ;;  %6677 = vmatmul.f32.gmra.mxu0 %v14616_v60  ;;  %v1139_v62 = vld [vmem:[%s16517_s5 + $0x60] sm:$0xff] }
 0xa0b   : > { %6524 = vmatmul.f32.gmra.mxu3 %v14748_v39  ;;  %6423 = vmatmul.f32.gmra.mxu2 %v14881_v36 }
 0xa0c   : > { %6790 = vmatmul.f32.gmra.mxu1 %v14616_v60  ;;  %v1155_v60 = vld [vmem:[%s16517_s5 + $0xe0] sm:$0xff]  ;;  %7012 = vmatpush.msra.mxu2 %v1139_v62 }
 0xa0d   : > { %7041 = vmatpush.msrb.mxu3 %v1155_v60 }
 0xa0e   : > { %v15735_v35 = vpop.f32.mrf.mxu3 }
 0xa0f   : > { %v15737_v18 = vpop.f32.mrf.mxu0 }
 0xa10   : > { %18289 = vst [vmem:[#allocation141_spill] sm:$0xff] %v15737_v18 }
 0xa11   : > { %v15739_v1 = vpop.f32.mrf.mxu1 }
 0xa12   : > { %18290 = vst [vmem:[#allocation73_spill] sm:$0xff] %v15739_v1  ;;  %6680 = vmatmul.f32.gmra.mxu0 %v14654_v26 }
 0xa13   : > { %6527 = vmatmul.f32.gmra.mxu3 %v14784_v6  ;;  %6426 = vmatmul.f32.gmra.mxu2 %v14914_v54 }
 0xa14   : > { %6793 = vmatmul.f32.gmra.mxu1 %v14654_v26  ;;  %v15763_v26 = vpop.f32.mrf.mxu2 }
 0xa16   : > { %v15753_v1 = vpop.f32.mrf.mxu3 }
 0xa17   : > { %v15755_v18 = vpop.f32.mrf.mxu0 }
 0xa18   : > { %18291 = vst [vmem:[#allocation222_spill] sm:$0xff] %v15755_v18 }
 0xa19   : > { %v15757_v9 = vpop.f32.mrf.mxu1 }
 0xa1a   : > { %18292 = vst [vmem:[#allocation89_spill] sm:$0xff] %v15757_v9  ;;  %6683 = vmatmul.f32.gmra.mxu0 %v14682_v15  ;;  %v1154_v9 = vld [vmem:[%s16517_s5 + $0xd8] sm:$0xff] }
 0xa1b   : > { %6530 = vmatmul.f32.gmra.mxu3 %v14818_v34  ;;  %6429 = vmatmul.f32.gmra.mxu2 %v15533_v59 }
 0xa1c   : > { %6796 = vmatmul.f32.gmra.mxu1 %v14682_v15  ;;  %v1138_v15 = vld [vmem:[%s16517_s5 + $0x58] sm:$0xff]  ;;  %7042 = vmatpush.msrb.mxu3 %v1154_v9  ;;  %v1137_v9 = vld [vmem:[%s16517_s5 + $0x50] sm:$0xff] }
 0xa1d   : > { %7013 = vmatpush.msra.mxu2 %v1138_v15  ;;  %v1136_v15 = vld [vmem:[%s16517_s5 + $0x48] sm:$0xff] }
 0xa1e   : > { %v15765_v38 = vpop.f32.mrf.mxu3 }
 0xa1f   : > { %v15767_v62 = vpop.f32.mrf.mxu0  ;;  %7014 = vmatpush.msra.mxu2 %v1137_v9  ;;  %v18299_v9 = vld [vmem:[#allocation56_spill] sm:$0xff] }
 0xa20   : > { %18293 = vst [vmem:[#allocation223_spill] sm:$0xff] %v15767_v62  ;;  %v15781_v62 = vpop.f32.mrf.mxu2 }
 0xa21   : > { %v15769_v60 = vpop.f32.mrf.mxu1  ;;  %7015 = vmatpush.msra.mxu2 %v1136_v15  ;;  %v1153_v15 = vld [vmem:[%s16517_s5 + $0xd0] sm:$0xff] }
 0xa22   : > { %18294 = vst [vmem:[#allocation301_spill] sm:$0xff] %v15769_v60  ;;  %6686 = vmatmul.f32.gmra.mxu0 %v14718_v20  ;;  %7043 = vmatpush.msrb.mxu3 %v1153_v15  ;;  %v1130_v15 = vld [vmem:[%s16517_s5 + $0x18] sm:$0xff] }
 0xa23   : > { %6533 = vmatmul.f32.gmra.mxu3 %v14848_v48  ;;  %6432 = vmatmul.f32.gmra.mxu2 %v15549_v3 }
 0xa24   : > { %6799 = vmatmul.f32.gmra.mxu1 %v14718_v20 }
 0xa26   : > { %v15785_v18 = vpop.f32.mrf.mxu3 }
 0xa27   : > { %v15783_v60 = vpop.f32.mrf.mxu0 }
 0xa28   : > { %18295 = vst [vmem:[#allocation310_spill] sm:$0xff] %v15783_v60  ;;  %v15803_v60 = vpop.f32.mrf.mxu2 }
 0xa29   : > { %v15787_v11 = vpop.f32.mrf.mxu1 }
 0xa2a   : > { %18296 = vst [vmem:[#allocation113_spill] sm:$0xff] %v15787_v11  ;;  %6689 = vmatmul.f32.gmra.mxu0 %v14748_v39 }
 0xa2b   : > { %6536 = vmatmul.f32.gmra.mxu3 %v14881_v36  ;;  %6435 = vmatmul.f32.gmra.mxu2 %v15565_v33 }
 0xa2c   : > { %6802 = vmatmul.f32.gmra.mxu1 %v14748_v39  ;;  %v1135_v39 = vld [vmem:[%s16517_s5 + $0x40] sm:$0xff] }
 0xa2d   : > { %7016 = vmatpush.msra.mxu2 %v1135_v39 }
 0xa2e   : > { %v15810_v53 = vpop.f32.mrf.mxu3 }
 0xa2f   : > { %v15796_v20 = vpop.f32.mrf.mxu0  ;;  %7017 = vmatpush.msra.mxu2 %v1134_v22 }
 0xa30   : > { %18297 = vst [vmem:[#allocation154_spill] sm:$0xff] %v15796_v20  ;;  %v5956_v20 = vadd.f32 %v15186_v14, %v18299_v9  ;;  %v6567_v9 = vadd.f32 %v15693_v21, %v6277_v25  ;;  %v15848_v21 = vpop.f32.mrf.mxu2 }
 0xa31   : > { %v15801_v11 = vpop.f32.mrf.mxu1 }
 0xa32   : > { %18298 = vst [vmem:[#allocation30_spill] sm:$0xff] %v15801_v11  ;;  %6692 = vmatmul.f32.gmra.mxu0 %v14784_v6  ;;  %v5543_v11 = vadd.f32 %v15525_v44, %v14985_v19  ;;  %v6278_v14 = vadd.f32 %v15327_v30, %v5956_v20  ;;  %v1132_v19 = vld [vmem:[%s16517_s5 + $0x28] sm:$0xff]  ;;  %v18300_v30 = vld [vmem:[#allocation193_spill] sm:$0xff] }
 0xa33   : > { %6539 = vmatmul.f32.gmra.mxu3 %v14914_v54  ;;  %6438 = vmatmul.f32.gmra.mxu2 %v15581_v58  ;;  %v5846_v20 = vadd.f32 %v15112_v57, %v18300_v30  ;;  %v1131_v57 = vld [vmem:[%s16517_s5 + $0x20] sm:$0xff]  ;;  %v1128_v30 = vld [vmem:[%s16517_s5 + $0x8] sm:$0xff] }
 0xa34   : > { %6805 = vmatmul.f32.gmra.mxu1 %v14784_v6  ;;  %v1133_v6 = vld [vmem:[%s16517_s5 + $0x30] sm:$0xff]  ;;  %v6568_v47 = vadd.f32 %v15705_v51, %v6278_v14  ;;  %v15837_v39 = vmax.f32 %v5543_v11, 0.0 }
 0xa35   : > { %7018 = vmatpush.msra.mxu2 %v1133_v6  ;;  %v6279_v11 = vadd.f32 %v15349_v17, %v5846_v20  ;;  %v5545_v20 = vadd.f32 %v15525_v44, %v15045_v23 }
 0xa36   : > { %v15858_v51 = vpop.f32.mrf.mxu3 }
 0xa37   : > { %v6648_v52 = vpop.f32.mrf.mxu0  ;;  %7019 = vmatpush.msra.mxu2 %v1132_v19 }
 0xa38   : > { %v15833_v5 = vadd.f32 %v6648_v52, %v6567_v9  ;;  %v5959_v52 = vadd.f32 %v15204_v16, %v14433_v0  ;;  %v5544_v0 = vadd.f32 %v15525_v44, %v15015_v12  ;;  %v1129_v12 = vld [vmem:[%s16517_s5 + $0x10] sm:$0xff] }
 0xa39   : > { %v6761_v40 = vpop.f32.mrf.mxu1  ;;  %7020 = vmatpush.msra.mxu2 %v1131_v57  ;;  %v1127_v57 = vld [vmem:[%s16517_s5] sm:$0xff] }
 0xa3a   : > { %v15835_v37 = vadd.f32 %v6761_v40, %v6568_v47  ;;  %6695 = vmatmul.f32.gmra.mxu0 %v14818_v34  ;;  %v6280_v16 = vadd.f32 %v15351_v27, %v5959_v52  ;;  %v15872_v9 = vmax.f32 %v5544_v0, 0.0  ;;  %v18301_v27 = vld [vmem:[#allocation163_spill] sm:$0xff] }
 0xa3b   : > { %6542 = vmatmul.f32.gmra.mxu3 %v15533_v59  ;;  %6441 = vmatmul.f32.gmra.mxu2 %v15837_v39  ;;  %v5849_v40 = vadd.f32 %v15138_v63, %v18301_v27 }
 0xa3c   : > { %v6921_v47 = vmax.f32 %v15833_v5, %v15835_v37  ;;  %6808 = vmatmul.f32.gmra.mxu1 %v14818_v34  ;;  %v6569_v34 = vadd.f32 %v15707_v28, %v6279_v11  ;;  %v6570_v22 = vadd.f32 %v15723_v56, %v6280_v16  ;;  %7021 = vmatpush.msra.mxu2 %v1130_v15  ;;  %v18302_v28 = vld [vmem:[#allocation58_spill] sm:$0xff]  ;;  %v18312_v5 = vld [vmem:[#allocation329_spill] sm:$0xff] }
 0xa3d   : > { %v5962_v56 = vadd.f32 %v15222_v45, %v18302_v28  ;;  %v6281_v63 = vadd.f32 %v15364_v50, %v5849_v40  ;;  %v15894_v45 = vpop.f32.mrf.mxu2  ;;  %v18313_v37 = vld [vmem:[#allocation94_spill] sm:$0xff] }
 0xa3e   : > { %7022 = vmatpush.msra.mxu2 %v1129_v12  ;;  %v15903_v0 = vpop.f32.mrf.mxu3  ;;  %v5546_v12 = vadd.f32 %v15525_v44, %v15073_v10  ;;  %v5855_v10 = vadd.f32 %v15188_v29, %v14529_v61  ;;  %v1151_v61 = vld [vmem:[%s16517_s5 + $0xc0] sm:$0xff] }
 0xa3f   : > { %v6651_v25 = vpop.f32.mrf.mxu0  ;;  %v6282_v52 = vadd.f32 %v15366_v43, %v5962_v56  ;;  %v6571_v11 = vadd.f32 %v15729_v32, %v6281_v63  ;;  %v5965_v32 = vadd.f32 %v15240_v8, %v14503_v13  ;;  %v18304_v63 = vld [vmem:[#allocation146_spill] sm:$0xff] }
 0xa40   : > { %v15868_v14 = vadd.f32 %v6651_v25, %v6569_v34  ;;  %7023 = vmatpush.msra.mxu2 %v1128_v30  ;;  %v15910_v34 = vmax.f32 %v5545_v20, 0.0 }
 0xa41   : > { %v6764_v17 = vpop.f32.mrf.mxu1  ;;  %v6572_v23 = vadd.f32 %v15735_v35, %v6282_v52 }
 0xa42   : > { %v15870_v6 = vadd.f32 %v6764_v17, %v6570_v22  ;;  %6698 = vmatmul.f32.gmra.mxu0 %v14848_v48  ;;  %7024 = vmatpush.msra.mxu2 %v1127_v57  ;;  %v18303_v22 = vld [vmem:[#allocation233_spill] sm:$0xff] }
 0xa43   : > { %6545 = vmatmul.f32.gmra.mxu3 %v15549_v3  ;;  %6444 = vmatmul.f32.gmra.mxu2 %v15872_v9  ;;  %v5852_v25 = vadd.f32 %v15164_v4, %v18303_v22  ;;  %v6284_v4 = vadd.f32 %v15384_v46, %v5965_v32  ;;  %v5968_v46 = vadd.f32 %v15258_v42, %v14540_v55 }
 0xa44   : > { %v6922_v19 = vmax.f32 %v15868_v14, %v15870_v6  ;;  %6811 = vmatmul.f32.gmra.mxu1 %v14848_v48  ;;  %v1152_v48 = vld [vmem:[%s16517_s5 + $0xc8] sm:$0xff]  ;;  %v18318_v14 = vld [vmem:[#allocation121_spill] sm:$0xff]  ;;  %v18319_v6 = vld [vmem:[#allocation87_spill] sm:$0xff] }
 0xa45   : > { %7044 = vmatpush.msrb.mxu3 %v1152_v48  ;;  %v6283_v17 = vadd.f32 %v15382_v7, %v5852_v25  ;;  %v6574_v40 = vadd.f32 %v15753_v1, %v6284_v4  ;;  %v15928_v28 = vpop.f32.mrf.mxu2  ;;  %v15936_v7 = vmax.f32 %v5546_v12, 0.0  ;;  %v6285_v1 = vadd.f32 %v15400_v49, %v5855_v10 }
 0xa46   : > { %v15930_v8 = vpop.f32.mrf.mxu3  ;;  %v6286_v20 = vadd.f32 %v18304_v63, %v5968_v46 }
 0xa47   : > { %v6654_v50 = vpop.f32.mrf.mxu0  ;;  %v6573_v27 = vadd.f32 %v15746_v41, %v6283_v17  ;;  %v6575_v29 = vadd.f32 %v15763_v26, %v6285_v1  ;;  %7045 = vmatpush.msrb.mxu3 %v1151_v61  ;;  %v18308_v26 = vld [vmem:[#allocation140_spill] sm:$0xff]  ;;  %v18309_v17 = vld [vmem:[#allocation265_spill] sm:$0xff]  ;;  %v1150_v61 = vld [vmem:[%s16517_s5 + $0xb8] sm:$0xff] }
 0xa48   : > { %v15906_v43 = vadd.f32 %v6654_v50, %v6571_v11  ;;  %v6576_v55 = vadd.f32 %v15765_v38, %v6286_v20  ;;  %v15968_v38 = vld [vmem:[%s16516_s4] ss:$0 sm:$0xff]  ;;  %v18311_v20 = vld [vmem:[#allocation253_spill] sm:$0xff] }
 0xa49   : > { %v6767_v16 = vpop.f32.mrf.mxu1  ;;  %7046 = vmatpush.msrb.mxu3 %v1150_v61  ;;  %v18326_v61 = vld [vmem:[#allocation284_spill] sm:$0xff] }
 0xa4a   : > { %v15908_v15 = vadd.f32 %v6767_v16, %v6572_v23  ;;  %6701 = vmatmul.f32.gmra.mxu0 %v14881_v36  ;;  %v18306_v23 = vld [vmem:[#allocation71_spill] sm:$0xff]  ;;  %v18307_v16 = vld [vmem:[#allocation114_spill] sm:$0xff] }
 0xa4b   : > { %6548 = vmatmul.f32.gmra.mxu3 %v15565_v33  ;;  %6447 = vmatmul.f32.gmra.mxu2 %v15910_v34  ;;  %v5971_v22 = vadd.f32 %v18308_v26, %v18307_v16 }
 0xa4c   : > { %v6923_v35 = vmax.f32 %v15906_v43, %v15908_v15  ;;  %6814 = vmatmul.f32.gmra.mxu1 %v14881_v36  ;;  %v18323_v43 = vld [vmem:[#allocation14_spill] sm:$0xff] }
 0xa4d   : > { %v15955_v48 = vpop.f32.mrf.mxu2  ;;  %v6288_v12 = vadd.f32 %v18309_v17, %v5971_v22  ;;  %v18317_v17 = vld [vmem:[#allocation90_spill] sm:$0xff] }
 0xa4e   : > { %v15959_v50 = vpop.f32.mrf.mxu3 }
 0xa4f   : > { %v6657_v13 = vpop.f32.mrf.mxu0 }
 0xa50   : > { %v15932_v56 = vadd.f32 %v6657_v13, %v6573_v27 }
 0xa51   : > { %v6770_v30 = vpop.f32.mrf.mxu1 }
 0xa52   : > { %v15934_v36 = vadd.f32 %v6770_v30, %v6574_v40  ;;  %6704 = vmatmul.f32.gmra.mxu0 %v14914_v54  ;;  %v6578_v40 = vadd.f32 %v15785_v18, %v6288_v12 }
 0xa53   : > { %6551 = vmatmul.f32.gmra.mxu3 %v15581_v58  ;;  %6450 = vmatmul.f32.gmra.mxu2 %v15936_v7 }
 0xa54   : > { %v6924_v41 = vmax.f32 %v15932_v56, %v15934_v36  ;;  %6817 = vmatmul.f32.gmra.mxu1 %v14914_v54  ;;  %v18305_v54 = vld [vmem:[#allocation248_spill] sm:$0xff]  ;;  %v18327_v36 = vld [vmem:[#allocation194_spill] sm:$0xff] }
 0xa55   : > { %v5858_v49 = vadd.f32 %v18306_v23, %v18305_v54 }
 0xa57   : > { %v6660_v42 = vpop.f32.mrf.mxu0  ;;  %v6287_v32 = vadd.f32 %v15424_v31, %v5858_v49 }
 0xa58   : > { %v6865_v52 = vadd.f32 %v6660_v42, %v6575_v29  ;;  %v18314_v29 = vld [vmem:[#allocation102_spill] sm:$0xff]  ;;  %v15992_v42 = vpop.f32.mrf.mxu3 }
 0xa59   : > { %v6773_v57 = vpop.f32.mrf.mxu1  ;;  %v6577_v27 = vadd.f32 %v15781_v62, %v6287_v32  ;;  %v15985_v62 = vpop.f32.mrf.mxu2  ;;  %v18316_v32 = vld [vmem:[#allocation330_spill] sm:$0xff] }
 0xa5a   : > { %v6866_v11 = vadd.f32 %v6773_v57, %v6576_v55  ;;  %6707 = vmatmul.f32.gmra.mxu0 %v15533_v59  ;;  %v5864_v12 = vadd.f32 %v18317_v17, %v18316_v32 }
 0xa5b   : > { %6554 = vmatmul.f32.gmra.mxu3 %v15837_v39 }
 0xa5c   : > { %v6925_v25 = vmax.f32 %v6865_v52, %v6866_v11  ;;  %6820 = vmatmul.f32.gmra.mxu1 %v15533_v59  ;;  %v18310_v59 = vld [vmem:[#allocation74_spill] sm:$0xff]  ;;  %v18315_v52 = vld [vmem:[#allocation361_spill] sm:$0xff] }
 0xa5d   : > { %v5861_v31 = vadd.f32 %v18311_v20, %v18310_v59 }
 0xa5e   : > { %v6953_v4 = vmax.f32 %v6921_v47, %v6925_v25  ;;  %v5974_v47 = vadd.f32 %v18313_v37, %v18312_v5  ;;  %v18322_v5 = vld [vmem:[#allocation166_spill] sm:$0xff] }
 0xa5f   : > { %v6663_v30 = vpop.f32.mrf.mxu0  ;;  %v6289_v55 = vadd.f32 %v18314_v29, %v5861_v31  ;;  %v18321_v31 = vld [vmem:[#allocation39_spill] sm:$0xff] }
 0xa60   : > { %v6961_v13 = vadd.f32 %v15968_v38, %v6953_v4  ;;  %v6867_v10 = vadd.f32 %v6663_v30, %v6577_v27  ;;  %v6290_v57 = vadd.f32 %v18315_v52, %v5974_v47  ;;  %v18320_v4 = vld [vmem:[#allocation198_spill] sm:$0xff]  ;;  %v5867_v37 = vadd.f32 %v18322_v5, %v18321_v31  ;;  %v18325_v47 = vld [vmem:[#allocation269_spill] sm:$0xff] }
 0xa61   : > { %v6776_v46 = vpop.f32.mrf.mxu1  ;;  %v6579_v54 = vadd.f32 %v15803_v60, %v6289_v55  ;;  %v18336_v5 = vld [vmem:[#allocation202_spill] sm:$0xff] }
 0xa62   : > { %v6965_v1 = vmax.f32 %v6961_v13, 0.0  ;;  %v6868_v63 = vadd.f32 %v6776_v46, %v6578_v40  ;;  %6710 = vmatmul.f32.gmra.mxu0 %v15549_v3  ;;  %v16010_v40 = vpop.f32.mrf.mxu2 }
 0xa63   : > { %6557 = vmatmul.f32.gmra.mxu3 %v15872_v9 }
 0xa64   : > { %v6926_v18 = vmax.f32 %v6867_v10, %v6868_v63  ;;  %6823 = vmatmul.f32.gmra.mxu1 %v15549_v3  ;;  %7025 = vmatmul.f32.vlgmr.msra.gmra.mxu2 %v6965_v1  ;;  %v6580_v3 = vadd.f32 %v15810_v53, %v6290_v57  ;;  %v6291_v53 = vadd.f32 %v15454_v24, %v5864_v12  ;;  %v16016_v10 = vpop.f32.mrf.mxu3  ;;  %v1146_v12 = vld [vmem:[%s16517_s5 + $0x98] sm:$0xff] }
 0xa66   : > { %v6954_v11 = vmax.f32 %v6922_v19, %v6926_v18  ;;  %v5977_v19 = vadd.f32 %v18319_v6, %v18318_v14  ;;  %v6581_v30 = vadd.f32 %v15848_v21, %v6291_v53  ;;  %v18324_v21 = vld [vmem:[#allocation91_spill] sm:$0xff]  ;;  %v6293_v18 = vadd.f32 %v18325_v47, %v5867_v37  ;;  %v18331_v6 = vld [vmem:[#allocation365_spill] sm:$0xff] }
 0xa67   : > { %v6666_v23 = vpop.f32.mrf.mxu0  ;;  %v5980_v15 = vadd.f32 %v18324_v21, %v18323_v43  ;;  %v18337_v43 = vld [vmem:[#allocation177_spill] sm:$0xff] }
 0xa68   : > { %v6962_v49 = vadd.f32 %v15968_v38, %v6954_v11  ;;  %v6869_v16 = vadd.f32 %v6666_v23, %v6579_v54  ;;  %v6292_v27 = vadd.f32 %v18320_v4, %v5977_v19  ;;  %v6583_v52 = vadd.f32 %v15894_v45, %v6293_v18 }
 0xa69   : > { %v6779_v26 = vpop.f32.mrf.mxu1  ;;  %v6294_v29 = vadd.f32 %v18326_v61, %v5980_v15 }
 0xa6a   : > { %v6870_v22 = vadd.f32 %v6779_v26, %v6580_v3  ;;  %v6966_v25 = vmax.f32 %v6962_v49, 0.0  ;;  %6713 = vmatmul.f32.gmra.mxu0 %v15565_v33  ;;  %v6582_v46 = vadd.f32 %v15858_v51, %v6292_v27  ;;  %v1149_v51 = vld [vmem:[%s16517_s5 + $0xb0] sm:$0xff]  ;;  %v16037_v11 = vpop.f32.mrf.mxu2  ;;  %v1148_v3 = vld [vmem:[%s16517_s5 + $0xa8] sm:$0xff] }
 0xa6b   : > { %6560 = vmatmul.f32.gmra.mxu3 %v15910_v34  ;;  %v6584_v57 = vadd.f32 %v15903_v0, %v6294_v29  ;;  %v1147_v0 = vld [vmem:[%s16517_s5 + $0xa0] sm:$0xff]  ;;  %v1144_v27 = vld [vmem:[%s16517_s5 + $0x88] sm:$0xff] }
 0xa6c   : > { %v6927_v60 = vmax.f32 %v6869_v16, %v6870_v22  ;;  %6826 = vmatmul.f32.gmra.mxu1 %v15565_v33  ;;  %7028 = vmatmul.f32.gmra.mxu2 %v6966_v25  ;;  %v16043_v23 = vpop.f32.mrf.mxu3  ;;  %v18329_v22 = vld [vmem:[#allocation237_spill] sm:$0xff]  ;;  %v18330_v25 = vld [vmem:[#allocation276_spill] sm:$0xff]  ;;  %v18338_v29 = vld [vmem:[#allocation63_spill] sm:$0xff] }
 0xa6d   : > { %7047 = vmatpush.msrb.mxu3 %v1149_v51  ;;  %v5983_v32 = vadd.f32 %v18330_v25, %v18329_v22 }
 0xa6e   : > { %v6955_v13 = vmax.f32 %v6923_v35, %v6927_v60  ;;  %v1145_v60 = vld [vmem:[%s16517_s5 + $0x90] sm:$0xff] }
 0xa6f   : > { %v6669_v1 = vpop.f32.mrf.mxu0  ;;  %7048 = vmatpush.msrb.mxu3 %v1148_v3  ;;  %v6296_v19 = vadd.f32 %v18331_v6, %v5983_v32 }
 0xa70   : > { %v6963_v33 = vadd.f32 %v15968_v38, %v6955_v13  ;;  %v6871_v63 = vadd.f32 %v6669_v1, %v6581_v30  ;;  %v18332_v1 = vld [vmem:[#allocation252_spill] sm:$0xff] }
 0xa71   : > { %v6782_v59 = vpop.f32.mrf.mxu1  ;;  %7049 = vmatpush.msrb.mxu3 %v1147_v0  ;;  %v6586_v4 = vadd.f32 %v15930_v8, %v6296_v19  ;;  %v18347_v19 = vld [vmem:[#allocation174_spill] sm:$0xff] }
 0xa72   : > { %v6872_v24 = vadd.f32 %v6782_v59, %v6582_v46  ;;  %v6967_v20 = vmax.f32 %v6963_v33, 0.0  ;;  %6716 = vmatmul.f32.gmra.mxu0 %v15581_v58  ;;  %v16075_v30 = vpop.f32.mrf.mxu2  ;;  %v18333_v33 = vld [vmem:[#allocation353_spill] sm:$0xff]  ;;  %v18334_v59 = vld [vmem:[#allocation186_spill] sm:$0xff] }
 0xa73   : > { %6563 = vmatmul.f32.gmra.mxu3 %v15936_v7  ;;  %v5873_v8 = vadd.f32 %v18333_v33, %v18332_v1 }
 0xa74   : > { %v6928_v35 = vmax.f32 %v6871_v63, %v6872_v24  ;;  %6829 = vmatmul.f32.gmra.mxu1 %v15581_v58  ;;  %7031 = vmatmul.f32.gmra.mxu2 %v6967_v20  ;;  %v16084_v63 = vpop.f32.mrf.mxu3  ;;  %v18335_v24 = vld [vmem:[#allocation98_spill] sm:$0xff] }
 0xa75   : > { %7050 = vmatpush.msrb.mxu3 %v1146_v12  ;;  %v5986_v20 = vadd.f32 %v18335_v24, %v18334_v59  ;;  %v6297_v37 = vadd.f32 %v18336_v5, %v5873_v8  ;;  %v18344_v12 = vld [vmem:[#allocation334_spill] sm:$0xff] }
 0xa76   : > { %v6956_v55 = vmax.f32 %v6924_v41, %v6928_v35  ;;  %v18328_v41 = vld [vmem:[#allocation257_spill] sm:$0xff] }
 0xa77   : > { %v6672_v58 = vpop.f32.mrf.mxu0  ;;  %v5870_v26 = vadd.f32 %v18328_v41, %v18327_v36  ;;  %7051 = vmatpush.msrb.mxu3 %v1145_v60  ;;  %v6298_v21 = vadd.f32 %v18337_v43, %v5986_v20  ;;  %v6587_v15 = vadd.f32 %v15955_v48, %v6297_v37  ;;  %v18351_v37 = vld [vmem:[#allocation54_spill] sm:$0xff] }
 0xa78   : > { %v6964_v54 = vadd.f32 %v15968_v38, %v6956_v55  ;;  %v16045_v49 = vadd.f32 %v6672_v58, %v6583_v52  ;;  %v18339_v55 = vld [vmem:[#allocation29_spill] sm:$0xff]  ;;  %v18352_v43 = vld [vmem:[#allocation134_spill] sm:$0xff] }
 0xa79   : > { %v6785_v16 = vpop.f32.mrf.mxu1  ;;  %v6295_v14 = vadd.f32 %v15484_v2, %v5870_v26  ;;  %7052 = vmatpush.msrb.mxu3 %v1144_v27  ;;  %v6588_v35 = vadd.f32 %v15959_v50, %v6298_v21  ;;  %v5876_v52 = vadd.f32 %v18339_v55, %v18338_v29  ;;  %v18342_v50 = vld [vmem:[#allocation273_spill] sm:$0xff]  ;;  %v18350_v27 = vld [vmem:[#allocation370_spill] sm:$0xff]  ;;  %v5882_v21 = vadd.f32 %v18352_v43, %v18351_v37  ;;  %v18356_v55 = vld [vmem:[#allocation168_spill] sm:$0xff] }
 0xa7a   : > { %v16047_v56 = vadd.f32 %v6785_v16, %v6584_v57  ;;  %v6968_v45 = vmax.f32 %v6964_v54, 0.0  ;;  %6719 = vmatmul.f32.gmra.mxu0 %v15837_v39  ;;  %v18341_v57 = vld [vmem:[#allocation358_spill] sm:$0xff]  ;;  %v16105_v54 = vpop.f32.mrf.mxu2 }
 0xa7b   : > { %v6585_v53 = vadd.f32 %v15928_v28, %v6295_v14  ;;  %v1143_v28 = vld [vmem:[%s16517_s5 + $0x80] sm:$0xff]  ;;  %v6299_v3 = vadd.f32 %v18342_v50, %v5876_v52  ;;  %v18345_v14 = vld [vmem:[#allocation261_spill] sm:$0xff]  ;;  %v18355_v29 = vld [vmem:[#allocation158_spill] sm:$0xff]  ;;  %v5548_v52 = vadd.f32 %v15525_v44, %v18356_v55 }
 0xa7c   : > { %v6929_v17 = vmax.f32 %v16045_v49, %v16047_v56  ;;  %6832 = vmatmul.f32.gmra.mxu1 %v15837_v39  ;;  %7034 = vmatmul.f32.gmra.mxu2 %v6968_v45  ;;  %v16111_v16 = vpop.f32.mrf.mxu3  ;;  %v18343_v45 = vld [vmem:[#allocation288_spill] sm:$0xff]  ;;  %v5879_v6 = vadd.f32 %v18345_v14, %v18344_v12  ;;  %v18360_v56 = vld [vmem:[#allocation241_spill] sm:$0xff]  ;;  %v1170_v55 = vld [vmem:[%s16517_s5 + $0x158] sm:$0xff] }
 0xa7d   : > { %7053 = vmatpush.msrb.mxu3 %v1143_v28  ;;  %v6589_v36 = vadd.f32 %v15985_v62, %v6299_v3  ;;  %v18348_v62 = vld [vmem:[#allocation369_spill] sm:$0xff] }
 0xa7f   : > { %v6675_v39 = vpop.f32.mrf.mxu0 }
 0xa80   : > { %v16073_v13 = vadd.f32 %v6675_v39, %v6585_v53 }
 0xa81   : > { %v6788_v2 = vpop.f32.mrf.mxu1 }
 0xa82   : > { %v16077_v46 = vadd.f32 %v6788_v2, %v6586_v4  ;;  %6722 = vmatmul.f32.gmra.mxu0 %v15872_v9  ;;  %v18349_v4 = vld [vmem:[#allocation342_spill] sm:$0xff]  ;;  %v16132_v28 = vpop.f32.mrf.mxu2 }
 0xa83   : > { %v5547_v39 = vadd.f32 %v15525_v44, %v18349_v4 }
 0xa84   : > { %v6930_v31 = vmax.f32 %v16073_v13, %v16077_v46  ;;  %6835 = vmatmul.f32.gmra.mxu1 %v15872_v9  ;;  %v18340_v9 = vld [vmem:[#allocation333_spill] sm:$0xff]  ;;  %v16135_v33 = vpop.f32.mrf.mxu3 }
 0xa85   : > { %v5989_v58 = vadd.f32 %v18341_v57, %v18340_v9  ;;  %v5595_v5 = vmax.f32 %v5547_v39, 0.0  ;;  %v18364_v39 = vld [vmem:[#allocation116_spill] sm:$0xff] }
 0xa87   : > { %v6678_v51 = vpop.f32.mrf.mxu0  ;;  %v6300_v0 = vadd.f32 %v18343_v45, %v5989_v58 }
 0xa88   : > { %v16096_v47 = vadd.f32 %v6678_v51, %v6587_v15  ;;  %v18353_v15 = vld [vmem:[#allocation9_spill] sm:$0xff] }
 0xa89   : > { %v6791_v18 = vpop.f32.mrf.mxu1  ;;  %v6590_v41 = vadd.f32 %v15992_v42, %v6300_v0  ;;  %v6301_v42 = vadd.f32 %v18348_v62, %v5879_v6  ;;  %v18358_v6 = vld [vmem:[#allocation45_spill] sm:$0xff] }
 0xa8a   : > { %v16098_v61 = vadd.f32 %v6791_v18, %v6588_v35  ;;  %6725 = vmatmul.f32.gmra.mxu0 %v15910_v34  ;;  %v18354_v35 = vld [vmem:[#allocation280_spill] sm:$0xff]  ;;  %v16150_v50 = vpop.f32.mrf.mxu2 }
 0xa8b   : > { %v6591_v1 = vadd.f32 %v16010_v40, %v6301_v42  ;;  %v5995_v51 = vadd.f32 %v18354_v35, %v18353_v15  ;;  %v6303_v40 = vadd.f32 %v18355_v29, %v5882_v21  ;;  %v18363_v42 = vld [vmem:[#allocation264_spill] sm:$0xff] }
 0xa8c   : > { %v6931_v48 = vmax.f32 %v16096_v47, %v16098_v61  ;;  %6838 = vmatmul.f32.gmra.mxu1 %v15910_v34  ;;  %v18346_v34 = vld [vmem:[#allocation17_spill] sm:$0xff]  ;;  %v5549_v4 = vadd.f32 %v15525_v44, %v18363_v42  ;;  %v18366_v21 = vld [vmem:[#allocation12_spill] sm:$0xff] }
 0xa8d   : > { %v5992_v60 = vadd.f32 %v18347_v19, %v18346_v34  ;;  %v6593_v58 = vadd.f32 %v16037_v11, %v6303_v40  ;;  %v18359_v34 = vld [vmem:[#allocation357_spill] sm:$0xff]  ;;  %v18361_v11 = vld [vmem:[#allocation362_spill] sm:$0xff] }
 0xa8e   : > { %v5885_v49 = vadd.f32 %v18359_v34, %v18358_v6  ;;  %v5597_v13 = vmax.f32 %v5549_v4, 0.0  ;;  %v18372_v34 = vld [vmem:[#allocation119_spill] sm:$0xff] }
 0xa8f   : > { %v6681_v26 = vpop.f32.mrf.mxu0  ;;  %v6302_v2 = vadd.f32 %v18350_v27, %v5992_v60  ;;  %v18362_v60 = vld [vmem:[#allocation145_spill] sm:$0xff] }
 0xa90   : > { %v16116_v22 = vadd.f32 %v6681_v26, %v6589_v36  ;;  %v16154_v36 = vpop.f32.mrf.mxu3  ;;  %v6305_v62 = vadd.f32 %v18362_v60, %v5885_v49  ;;  %v18373_v49 = vld [vmem:[#allocation195_spill] sm:$0xff]  ;;  %v1166_v60 = vld [vmem:[%s16517_s5 + $0x138] sm:$0xff] }
 0xa91   : > { %v6794_v25 = vpop.f32.mrf.mxu1  ;;  %v6592_v8 = vadd.f32 %v16016_v10, %v6302_v2  ;;  %v18357_v10 = vld [vmem:[#allocation207_spill] sm:$0xff] }
 0xa92   : > { %v16118_v32 = vadd.f32 %v6794_v25, %v6590_v41  ;;  %6728 = vmatmul.f32.gmra.mxu0 %v15936_v7  ;;  %v6304_v9 = vadd.f32 %v18357_v10, %v5995_v51  ;;  %v5596_v25 = vmax.f32 %v5548_v52, 0.0  ;;  %v16179_v46 = vpop.f32.mrf.mxu2  ;;  %v18367_v51 = vld [vmem:[#allocation78_spill] sm:$0xff] }
 0xa93   : > { %v18369_v52 = vld [vmem:[#allocation18_spill] sm:$0xff] }
 0xa94   : > { %v6932_v53 = vmax.f32 %v16116_v22, %v16118_v32  ;;  %6841 = vmatmul.f32.gmra.mxu1 %v15936_v7  ;;  %v6594_v3 = vadd.f32 %v16043_v23, %v6304_v9  ;;  %v1174_v23 = vld [vmem:[%s16517_s5 + $0x178] sm:$0xff]  ;;  %v18370_v9 = vld [vmem:[#allocation345_spill] sm:$0xff] }
 0xa95   : > { %7067 = vmatpush.msrb.mxu2 %v1174_v23 }
 0xa97   : > { %v6684_v59 = vpop.f32.mrf.mxu0 }
 0xa98   : > { %v6881_v24 = vadd.f32 %v6684_v59, %v6591_v1  ;;  %v1173_v1 = vld [vmem:[%s16517_s5 + $0x170] sm:$0xff]  ;;  %v16186_v35 = vpop.f32.mrf.mxu3 }
 0xa99   : > { %v6797_v20 = vpop.f32.mrf.mxu1  ;;  %7068 = vmatpush.msrb.mxu2 %v1173_v1  ;;  %v1165_v1 = vld [vmem:[%s16517_s5 + $0x130] sm:$0xff] }
 0xa9a   : > { %v6882_v7 = vadd.f32 %v6797_v20, %v6592_v8  ;;  %6731 = vmatmul.f32.gmra.mxu0 %v5595_v5  ;;  %v6595_v8 = vadd.f32 %v16075_v30, %v6305_v62  ;;  %v1171_v30 = vld [vmem:[%s16517_s5 + $0x160] sm:$0xff]  ;;  %v18376_v62 = vld [vmem:[#allocation210_spill] sm:$0xff] }
 0xa9c   : > { %v6933_v18 = vmax.f32 %v6881_v24, %v6882_v7  ;;  %6844 = vmatmul.f32.gmra.mxu1 %v5595_v5  ;;  %v1172_v5 = vld [vmem:[%s16517_s5 + $0x168] sm:$0xff] }
 0xa9d   : > { %7069 = vmatpush.msrb.mxu2 %v1172_v5  ;;  %v1164_v5 = vld [vmem:[%s16517_s5 + $0x128] sm:$0xff] }
 0xa9e   : > { %v6969_v57 = vmax.f32 %v6929_v17, %v6933_v18  ;;  %v5998_v17 = vadd.f32 %v18361_v11, %v18360_v56  ;;  %v18368_v18 = vld [vmem:[#allocation109_spill] sm:$0xff]  ;;  %v18375_v11 = vld [vmem:[#allocation139_spill] sm:$0xff] }
 0xa9f   : > { %v6687_v0 = vpop.f32.mrf.mxu0  ;;  %7070 = vmatpush.msrb.mxu2 %v1171_v30  ;;  %v6001_v29 = vadd.f32 %v18368_v18, %v18367_v51  ;;  %v18374_v56 = vld [vmem:[#allocation337_spill] sm:$0xff] }
 0xaa0   : > { %v6973_v45 = vadd.f32 %v15968_v38, %v6969_v57  ;;  %v6883_v41 = vadd.f32 %v6687_v0, %v6593_v58  ;;  %v6306_v27 = vadd.f32 %v18364_v39, %v5998_v17  ;;  %v5550_v57 = vadd.f32 %v15525_v44, %v18370_v9  ;;  %v18371_v58 = vld [vmem:[#allocation209_spill] sm:$0xff]  ;;  %v1168_v44 = vld [vmem:[%s16517_s5 + $0x148] sm:$0xff]  ;;  %v6528_v4 = vpop.f32.mrf.mxu3 }
 0xaa1   : > { %v6800_v26 = vpop.f32.mrf.mxu1  ;;  %7071 = vmatpush.msrb.mxu2 %v1170_v55  ;;  %v1169_v0 = vld [vmem:[%s16517_s5 + $0x150] sm:$0xff]  ;;  %v6004_v17 = vadd.f32 %v18375_v11, %v18374_v56 }
 0xaa2   : > { %v6977_v12 = vmax.f32 %v6973_v45, 0.0  ;;  %v6884_v14 = vadd.f32 %v6800_v26, %v6594_v3  ;;  %6734 = vmatmul.f32.gmra.mxu0 %v5596_v25  ;;  %v6596_v59 = vadd.f32 %v16084_v63, %v6306_v27  ;;  %v18365_v63 = vld [vmem:[#allocation256_spill] sm:$0xff]  ;;  %v6308_v3 = vadd.f32 %v18371_v58, %v6001_v29  ;;  %v18377_v39 = vld [vmem:[#allocation281_spill] sm:$0xff] }
 0xaa3   : > { %v5888_v15 = vadd.f32 %v18366_v21, %v18365_v63  ;;  %7072 = vmatpush.msrb.mxu2 %v1169_v0  ;;  %v5598_v47 = vmax.f32 %v5550_v57, 0.0  ;;  %v6310_v27 = vadd.f32 %v18377_v39, %v6004_v17  ;;  %v1162_v21 = vld [vmem:[%s16517_s5 + $0x118] sm:$0xff]  ;;  %v18383_v18 = vld [vmem:[#allocation25_spill] sm:$0xff]  ;;  %v1160_v58 = vld [vmem:[%s16517_s5 + $0x108] sm:$0xff] }
 0xaa4   : > { %v6934_v19 = vmax.f32 %v6883_v41, %v6884_v14  ;;  %6847 = vmatmul.f32.gmra.mxu1 %v5596_v25  ;;  %7054 = vmatmul.f32.vlgmr.msrb.gmra.mxu3 %v6977_v12  ;;  %v6598_v26 = vadd.f32 %v16111_v16, %v6308_v3  ;;  %v5891_v16 = vadd.f32 %v18373_v49, %v18372_v34  ;;  %v1161_v55 = vld [vmem:[%s16517_s5 + $0x110] sm:$0xff] }
 0xaa5   : > { %v6307_v10 = vadd.f32 %v18369_v52, %v5888_v15  ;;  %7073 = vmatpush.msrb.mxu2 %v1168_v44  ;;  %v18382_v15 = vld [vmem:[#allocation148_spill] sm:$0xff]  ;;  %v18392_v39 = vld [vmem:[#allocation245_spill] sm:$0xff] }
 0xaa6   : > { %v6970_v2 = vmax.f32 %v6930_v31, %v6934_v19  ;;  %v16216_v19 = vpop.f32.mrf.mxu2  ;;  %v6309_v42 = vadd.f32 %v18376_v62, %v5891_v16  ;;  %v18391_v62 = vld [vmem:[#allocation199_spill] sm:$0xff] }
 0xaa7   : > { %v6690_v24 = vpop.f32.mrf.mxu0  ;;  %v6597_v41 = vadd.f32 %v16105_v54, %v6307_v10  ;;  %v1167_v54 = vld [vmem:[%s16517_s5 + $0x140] sm:$0xff] }
 0xaa8   : > { %v6974_v20 = vadd.f32 %v15968_v38, %v6970_v2  ;;  %v6885_v7 = vadd.f32 %v6690_v24, %v6595_v8  ;;  %7074 = vmatpush.msrb.mxu2 %v1167_v54  ;;  %v6599_v8 = vadd.f32 %v16132_v28, %v6309_v42  ;;  %v1163_v28 = vld [vmem:[%s16517_s5 + $0x120] sm:$0xff]  ;;  %v6531_v10 = vpop.f32.mrf.mxu3 }
 0xaa9   : > { %v6803_v37 = vpop.f32.mrf.mxu1 }
 0xaaa   : > { %v6886_v31 = vadd.f32 %v6803_v37, %v6596_v59  ;;  %v6978_v43 = vmax.f32 %v6974_v20, 0.0  ;;  %6737 = vmatmul.f32.gmra.mxu0 %v5597_v13  ;;  %7075 = vmatpush.msrb.mxu2 %v1166_v60  ;;  %v6600_v59 = vadd.f32 %v16135_v33, %v6310_v27  ;;  %v18378_v37 = vld [vmem:[#allocation338_spill] sm:$0xff]  ;;  %v18379_v33 = vld [vmem:[#allocation136_spill] sm:$0xff] }
 0xaab   : > { %v18390_v60 = vld [vmem:[#allocation82_spill] sm:$0xff]  ;;  %v18393_v27 = vld [vmem:[#allocation112_spill] sm:$0xff] }
 0xaac   : > { %v6935_v40 = vmax.f32 %v6885_v7, %v6886_v31  ;;  %6850 = vmatmul.f32.gmra.mxu1 %v5597_v13  ;;  %7057 = vmatmul.f32.gmra.mxu3 %v6978_v43  ;;  %v5894_v13 = vadd.f32 %v18379_v33, %v18378_v37  ;;  %v18380_v31 = vld [vmem:[#allocation125_spill] sm:$0xff]  ;;  %v18381_v43 = vld [vmem:[#allocation366_spill] sm:$0xff]  ;;  %v5900_v42 = vadd.f32 %v18391_v62, %v18390_v60  ;;  %v18396_v33 = vld [vmem:[#allocation260_spill] sm:$0xff] }
 0xaad   : > { %7076 = vmatpush.msrb.mxu2 %v1165_v1  ;;  %v6007_v30 = vadd.f32 %v18381_v43, %v18380_v31 }
 0xaae   : > { %v6971_v45 = vmax.f32 %v6931_v48, %v6935_v40  ;;  %v6311_v51 = vadd.f32 %v18382_v15, %v5894_v13  ;;  %v6418_v40 = vpop.f32.mrf.mxu2  ;;  %v18397_v13 = vld [vmem:[#allocation106_spill] sm:$0xff] }
 0xaaf   : > { %v6693_v25 = vpop.f32.mrf.mxu0  ;;  %7077 = vmatpush.msrb.mxu2 %v1164_v5  ;;  %v6312_v29 = vadd.f32 %v18383_v18, %v6007_v30  ;;  %v5903_v31 = vadd.f32 %v18397_v13, %v18396_v33  ;;  %v18398_v30 = vld [vmem:[#allocation67_spill] sm:$0xff]  ;;  %v18400_v18 = vld [vmem:[#allocation216_spill] sm:$0xff] }
 0xab0   : > { %v6975_v12 = vadd.f32 %v15968_v38, %v6971_v45  ;;  %v6887_v14 = vadd.f32 %v6693_v25, %v6597_v41  ;;  %v6601_v52 = vadd.f32 %v16150_v50, %v6311_v51  ;;  %v1159_v41 = vld [vmem:[%s16517_s5 + $0x100] sm:$0xff]  ;;  %v6534_v56 = vpop.f32.mrf.mxu3 }
 0xab1   : > { %v6806_v6 = vpop.f32.mrf.mxu1  ;;  %7078 = vmatpush.msrb.mxu2 %v1163_v28  ;;  %v6602_v9 = vadd.f32 %v16154_v36, %v6312_v29  ;;  %v18384_v50 = vld [vmem:[#allocation123_spill] sm:$0xff]  ;;  %v18386_v36 = vld [vmem:[#allocation77_spill] sm:$0xff] }
 0xab2   : > { %v6888_v61 = vadd.f32 %v6806_v6, %v6598_v26  ;;  %v6979_v48 = vmax.f32 %v6975_v12, 0.0  ;;  %6740 = vmatmul.f32.gmra.mxu0 %v5598_v47  ;;  %v18385_v26 = vld [vmem:[#allocation31_spill] sm:$0xff]  ;;  %v18388_v6 = vld [vmem:[#allocation213_spill] sm:$0xff] }
 0xab3   : > { %7079 = vmatpush.msrb.mxu2 %v1162_v21  ;;  %v5897_v25 = vadd.f32 %v18385_v26, %v18384_v50  ;;  %v18387_v12 = vld [vmem:[#allocation203_spill] sm:$0xff]  ;;  %v18399_v21 = vld [vmem:[#allocation206_spill] sm:$0xff]  ;;  %v18404_v50 = vld [vmem:[#allocation341_spill] sm:$0xff] }
 0xab4   : > { %v6936_v23 = vmax.f32 %v6887_v14, %v6888_v61  ;;  %6853 = vmatmul.f32.gmra.mxu1 %v5598_v47  ;;  %7060 = vmatmul.f32.gmra.mxu3 %v6979_v48  ;;  %v6010_v44 = vadd.f32 %v18387_v12, %v18386_v36  ;;  %v18389_v61 = vld [vmem:[#allocation285_spill] sm:$0xff]  ;;  %v6016_v15 = vadd.f32 %v18399_v21, %v18398_v30  ;;  %v18405_v26 = vld [vmem:[#allocation292_spill] sm:$0xff] }
 0xab5   : > { %7080 = vmatpush.msrb.mxu2 %v1161_v55  ;;  %v6313_v47 = vadd.f32 %v18388_v6, %v5897_v25  ;;  %v6019_v25 = vadd.f32 %v18405_v26, %v18404_v50 }
 0xab6   : > { %v6972_v2 = vmax.f32 %v6932_v53, %v6936_v23  ;;  %v6314_v48 = vadd.f32 %v18389_v61, %v6010_v44  ;;  %v6421_v34 = vpop.f32.mrf.mxu2  ;;  %v18406_v44 = vld [vmem:[#allocation151_spill] sm:$0xff]  ;;  %v18407_v61 = vld [vmem:[#allocation124_spill] sm:$0xff] }
 0xab7   : > { %v6696_v24 = vpop.f32.mrf.mxu0  ;;  %7081 = vmatpush.msrb.mxu2 %v1160_v58  ;;  %v6603_v54 = vadd.f32 %v16179_v46, %v6313_v47  ;;  %v18394_v46 = vld [vmem:[#allocation11_spill] sm:$0xff] }
 0xab8   : > { %v6976_v20 = vadd.f32 %v15968_v38, %v6972_v2  ;;  %v16235_v7 = vadd.f32 %v6696_v24, %v6599_v8  ;;  %v6604_v49 = vadd.f32 %v16186_v35, %v6314_v48  ;;  %v6013_v2 = vadd.f32 %v18393_v27, %v18392_v39  ;;  %v6537_v43 = vpop.f32.mrf.mxu3  ;;  %v18408_v39 = vld [vmem:[#allocation147_spill] sm:$0xff]  ;;  %v18409_v27 = vld [vmem:[#allocation142_spill] sm:$0xff] }
 0xab9   : > { %v6809_v22 = vpop.f32.mrf.mxu1  ;;  %7082 = vmatpush.msrb.mxu2 %v1159_v41  ;;  %v6315_v8 = vadd.f32 %v18394_v46, %v5900_v42  ;;  %v6320_v48 = vadd.f32 %v18407_v61, %v6019_v25  ;;  %v18410_v46 = vld [vmem:[#allocation118_spill] sm:$0xff]  ;;  %v1184_v25 = vld [vmem:[%s16517_s5 + $0x1c8] sm:$0xff] }
 0xaba   : > { %v16237_v32 = vadd.f32 %v6809_v22, %v6600_v59  ;;  %v6980_v53 = vmax.f32 %v6976_v20, 0.0  ;;  %v18395_v59 = vld [vmem:[#allocation22_spill] sm:$0xff] }
 0xabb   : > { %v6316_v35 = vadd.f32 %v18395_v59, %v6013_v2  ;;  %v6605_v24 = vadd.f32 %v16216_v19, %v6315_v8  ;;  %v6317_v19 = vadd.f32 %v18400_v18, %v5903_v31  ;;  %v5909_v2 = vadd.f32 %v18409_v27, %v18408_v39  ;;  %v18411_v8 = vld [vmem:[#allocation373_spill] sm:$0xff]  ;;  %v18424_v27 = vld [vmem:[#allocation220_spill] sm:$0xff] }
 0xabc   : > { %v6937_v63 = vmax.f32 %v16235_v7, %v16237_v32  ;;  %7063 = vmatmul.f32.gmra.mxu3 %v6980_v53  ;;  %v6022_v59 = vadd.f32 %v18411_v8, %v18410_v46  ;;  %v1190_v7 = vld [vmem:[%s16517_s5 + $0x1f8] sm:$0xff]  ;;  %v1189_v32 = vld [vmem:[%s16517_s5 + $0x1f0] sm:$0xff] }
 0xabd   : > { %v6606_v20 = vadd.f32 %v6528_v4, %v6316_v35  ;;  %v18401_v4 = vld [vmem:[#allocation289_spill] sm:$0xff]  ;;  %v6607_v55 = vadd.f32 %v6418_v40, %v6317_v19  ;;  %7096 = vmatpush.msra.mxu3 %v1190_v7  ;;  %v18425_v46 = vld [vmem:[#allocation46_spill] sm:$0xff] }
 0xabe   : > { %v6424_v28 = vpop.f32.mrf.mxu2  ;;  %v6318_v29 = vadd.f32 %v18401_v4, %v6016_v15  ;;  %v1181_v39 = vld [vmem:[%s16517_s5 + $0x1b0] sm:$0xff] }
 0xabf   : > { %v6699_v57 = vpop.f32.mrf.mxu0  ;;  %7097 = vmatpush.msra.mxu3 %v1189_v32 }
 0xac0   : > { %v16261_v3 = vadd.f32 %v6699_v57, %v6601_v52  ;;  %v6608_v52 = vadd.f32 %v6531_v10, %v6318_v29  ;;  %v6540_v47 = vpop.f32.mrf.mxu3  ;;  %v18414_v29 = vld [vmem:[#allocation131_spill] sm:$0xff] }
 0xac1   : > { %v6812_v45 = vpop.f32.mrf.mxu1 }
 0xac2   : > { %v16263_v0 = vadd.f32 %v6812_v45, %v6602_v9  ;;  %v18402_v45 = vld [vmem:[#allocation122_spill] sm:$0xff] }
 0xac4   : > { %v6938_v14 = vmax.f32 %v16261_v3, %v16263_v0  ;;  %v18403_v0 = vld [vmem:[#allocation15_spill] sm:$0xff] }
 0xac5   : > { %v5906_v41 = vadd.f32 %v18403_v0, %v18402_v45  ;;  %v18418_v45 = vld [vmem:[#allocation152_spill] sm:$0xff] }
 0xac6   : > { %v6427_v36 = vpop.f32.mrf.mxu2 }
 0xac7   : > { %v6702_v16 = vpop.f32.mrf.mxu0  ;;  %v6319_v6 = vadd.f32 %v18406_v44, %v5906_v41  ;;  %v18419_v41 = vld [vmem:[#allocation138_spill] sm:$0xff] }
 0xac8   : > { %v16278_v11 = vadd.f32 %v6702_v16, %v6603_v54  ;;  %v6610_v54 = vadd.f32 %v6534_v56, %v6320_v48  ;;  %v18413_v56 = vld [vmem:[#allocation219_spill] sm:$0xff]  ;;  %v6543_v13 = vpop.f32.mrf.mxu3 }
 0xac9   : > { %v6815_v17 = vpop.f32.mrf.mxu1  ;;  %v6609_v10 = vadd.f32 %v6421_v34, %v6319_v6 }
 0xaca   : > { %v16280_v23 = vadd.f32 %v6815_v17, %v6604_v49 }
 0xacc   : > { %v6939_v1 = vmax.f32 %v16278_v11, %v16280_v23  ;;  %v1183_v11 = vld [vmem:[%s16517_s5 + $0x1c0] sm:$0xff]  ;;  %v18420_v23 = vld [vmem:[#allocation126_spill] sm:$0xff] }
 0xacf   : > { %v6705_v5 = vpop.f32.mrf.mxu0 }
 0xad0   : > { %v16291_v22 = vadd.f32 %v6705_v5, %v6605_v24  ;;  %v6322_v24 = vadd.f32 %v18413_v56, %v6022_v59 }
 0xad1   : > { %v6818_v53 = vpop.f32.mrf.mxu1 }
 0xad2   : > { %v16293_v37 = vadd.f32 %v6818_v53, %v6606_v20  ;;  %v6430_v20 = vpop.f32.mrf.mxu2  ;;  %v1188_v53 = vld [vmem:[%s16517_s5 + $0x1e8] sm:$0xff]  ;;  %v6612_v31 = vadd.f32 %v6537_v43, %v6322_v24 }
 0xad3   : > { %7098 = vmatpush.msra.mxu3 %v1188_v53 }
 0xad4   : > { %v6940_v51 = vmax.f32 %v16291_v22, %v16293_v37  ;;  %v1179_v22 = vld [vmem:[%s16517_s5 + $0x1a0] sm:$0xff]  ;;  %v18426_v37 = vld [vmem:[#allocation346_spill] sm:$0xff] }
 0xad7   : > { %v6708_v9 = vpop.f32.mrf.mxu0 }
 0xad8   : > { %v6897_v57 = vadd.f32 %v6708_v9, %v6607_v55  ;;  %v18415_v55 = vld [vmem:[#allocation64_spill] sm:$0xff] }
 0xad9   : > { %v6821_v58 = vpop.f32.mrf.mxu1  ;;  %v18417_v9 = vld [vmem:[#allocation180_spill] sm:$0xff] }
 0xada   : > { %v6898_v3 = vadd.f32 %v6821_v58, %v6608_v52  ;;  %v5912_v52 = vadd.f32 %v18415_v55, %v18414_v29  ;;  %v1186_v58 = vld [vmem:[%s16517_s5 + $0x1d8] sm:$0xff]  ;;  %v6433_v44 = vpop.f32.mrf.mxu2  ;;  %v1177_v55 = vld [vmem:[%s16517_s5 + $0x190] sm:$0xff] }
 0xadc   : > { %v6941_v12 = vmax.f32 %v6897_v57, %v6898_v3  ;;  %v1185_v3 = vld [vmem:[%s16517_s5 + $0x1d0] sm:$0xff]  ;;  %v6323_v0 = vadd.f32 %v18418_v45, %v5912_v52  ;;  %v1175_v45 = vld [vmem:[%s16517_s5 + $0x180] sm:$0xff] }
 0xade   : > { %v6981_v40 = vmax.f32 %v6937_v63, %v6941_v12  ;;  %v18412_v63 = vld [vmem:[#allocation184_spill] sm:$0xff]  ;;  %v6613_v12 = vadd.f32 %v6427_v36, %v6323_v0  ;;  %v18422_v36 = vld [vmem:[#allocation86_spill] sm:$0xff] }
 0xadf   : > { %v6711_v16 = vpop.f32.mrf.mxu0  ;;  %v6321_v34 = vadd.f32 %v18412_v63, %v5909_v2  ;;  %v18432_v0 = vld [vmem:[#allocation68_spill] sm:$0xff] }
 0xae0   : > { %v6985_v49 = vadd.f32 %v15968_v38, %v6981_v40  ;;  %v6899_v17 = vadd.f32 %v6711_v16, %v6609_v10  ;;  %v6546_v40 = vpop.f32.mrf.mxu3 }
 0xae1   : > { %v6824_v60 = vpop.f32.mrf.mxu1  ;;  %v6611_v33 = vadd.f32 %v6424_v28, %v6321_v34  ;;  %v18416_v28 = vld [vmem:[#allocation249_spill] sm:$0xff] }
 0xae2   : > { %v6989_v62 = vmax.f32 %v6985_v49, 0.0  ;;  %v6900_v42 = vadd.f32 %v6824_v60, %v6610_v54  ;;  %v6025_v57 = vadd.f32 %v18417_v9, %v18416_v28  ;;  %v18423_v60 = vld [vmem:[#allocation103_spill] sm:$0xff] }
 0xae4   : > { %v6942_v35 = vmax.f32 %v6899_v17, %v6900_v42  ;;  %7083 = vmatmul.f32.vlgmr.msrb.gmra.mxu2 %v6989_v62  ;;  %v6324_v50 = vadd.f32 %v18419_v41, %v6025_v57  ;;  %v1182_v42 = vld [vmem:[%s16517_s5 + $0x1b8] sm:$0xff]  ;;  %v1176_v57 = vld [vmem:[%s16517_s5 + $0x188] sm:$0xff] }
 0xae5   : > { %v18433_v41 = vld [vmem:[#allocation296_spill] sm:$0xff] }
 0xae6   : > { %v6982_v5 = vmax.f32 %v6938_v14, %v6942_v35  ;;  %v1187_v14 = vld [vmem:[%s16517_s5 + $0x1e0] sm:$0xff]  ;;  %v6614_v6 = vadd.f32 %v6540_v47, %v6324_v50  ;;  %v6028_v47 = vadd.f32 %v18423_v60, %v18422_v36  ;;  %v1180_v35 = vld [vmem:[%s16517_s5 + $0x1a8] sm:$0xff]  ;;  %v5921_v50 = vadd.f32 %v18433_v41, %v18432_v0 }
 0xae7   : > { %v6714_v30 = vpop.f32.mrf.mxu0  ;;  %7099 = vmatpush.msra.mxu3 %v1187_v14  ;;  %v18431_v14 = vld [vmem:[#allocation297_spill] sm:$0xff]  ;;  %v18438_v36 = vld [vmem:[#allocation268_spill] sm:$0xff] }
 0xae8   : > { %v6986_v21 = vadd.f32 %v15968_v38, %v6982_v5  ;;  %v6901_v15 = vadd.f32 %v6714_v30, %v6611_v33  ;;  %v6326_v8 = vadd.f32 %v18425_v46, %v6028_v47  ;;  %v6436_v5 = vpop.f32.mrf.mxu2  ;;  %v18429_v30 = vld [vmem:[#allocation81_spill] sm:$0xff]  ;;  %v18439_v60 = vld [vmem:[#allocation212_spill] sm:$0xff] }
 0xae9   : > { %v6827_v18 = vpop.f32.mrf.mxu1  ;;  %7100 = vmatpush.msra.mxu3 %v1186_v58  ;;  %v5924_v47 = vadd.f32 %v18439_v60, %v18438_v36  ;;  %v18456_v36 = vld [vmem:[#allocation272_spill] sm:$0xff]  ;;  %v18457_v60 = vld [vmem:[#allocation153_spill] sm:$0xff] }
 0xaea   : > { %v6902_v19 = vadd.f32 %v6827_v18, %v6612_v31  ;;  %v6990_v4 = vmax.f32 %v6986_v21, 0.0  ;;  %v6616_v32 = vadd.f32 %v6543_v13, %v6326_v8  ;;  %v6549_v31 = vpop.f32.mrf.mxu3  ;;  %v18428_v13 = vld [vmem:[#allocation150_spill] sm:$0xff]  ;;  %v18443_v8 = vld [vmem:[#allocation73_spill] sm:$0xff] }
 0xaeb   : > { %7101 = vmatpush.msra.mxu3 %v1185_v3  ;;  %v6031_v21 = vadd.f32 %v18429_v30, %v18428_v13  ;;  %v1178_v18 = vld [vmem:[%s16517_s5 + $0x198] sm:$0xff] }
 0xaec   : > { %v6943_v43 = vmax.f32 %v6901_v15, %v6902_v19  ;;  %7086 = vmatmul.f32.gmra.mxu2 %v6990_v4  ;;  %v18430_v19 = vld [vmem:[#allocation221_spill] sm:$0xff]  ;;  %v18448_v13 = vld [vmem:[#allocation222_spill] sm:$0xff] }
 0xaed   : > { %7102 = vmatpush.msra.mxu3 %v1184_v25  ;;  %v6328_v29 = vadd.f32 %v18431_v14, %v6031_v21  ;;  %v18435_v25 = vld [vmem:[#allocation149_spill] sm:$0xff] }
 0xaee   : > { %v6983_v26 = vmax.f32 %v6939_v1, %v6943_v43  ;;  %v18421_v1 = vld [vmem:[#allocation277_spill] sm:$0xff] }
 0xaef   : > { %v6717_v61 = vpop.f32.mrf.mxu0  ;;  %v5915_v17 = vadd.f32 %v18421_v1, %v18420_v23  ;;  %7103 = vmatpush.msra.mxu3 %v1183_v11  ;;  %v6618_v28 = vadd.f32 %v6546_v40, %v6328_v29  ;;  %v18449_v21 = vld [vmem:[#allocation89_spill] sm:$0xff] }
 0xaf0   : > { %v6987_v48 = vadd.f32 %v15968_v38, %v6983_v26  ;;  %v6903_v10 = vadd.f32 %v6717_v61, %v6613_v12  ;;  %v18434_v26 = vld [vmem:[#allocation135_spill] sm:$0xff]  ;;  %v18436_v61 = vld [vmem:[#allocation308_spill] sm:$0xff] }
 0xaf1   : > { %v6830_v54 = vpop.f32.mrf.mxu1  ;;  %v6325_v2 = vadd.f32 %v18424_v27, %v5915_v17  ;;  %7104 = vmatpush.msra.mxu3 %v1182_v42  ;;  %v6034_v12 = vadd.f32 %v18435_v25, %v18434_v26  ;;  %v18441_v42 = vld [vmem:[#allocation215_spill] sm:$0xff]  ;;  %v18455_v25 = vld [vmem:[#allocation301_spill] sm:$0xff] }
 0xaf2   : > { %v6904_v49 = vadd.f32 %v6830_v54, %v6614_v6  ;;  %v6991_v16 = vmax.f32 %v6987_v48, 0.0  ;;  %v6329_v48 = vadd.f32 %v18436_v61, %v5921_v50  ;;  %v6552_v40 = vpop.f32.mrf.mxu3  ;;  %v18454_v50 = vld [vmem:[#allocation223_spill] sm:$0xff] }
 0xaf3   : > { %v6615_v7 = vadd.f32 %v6430_v20, %v6325_v2  ;;  %7105 = vmatpush.msra.mxu3 %v1181_v39  ;;  %v18442_v2 = vld [vmem:[#allocation141_spill] sm:$0xff] }
 0xaf4   : > { %v6944_v62 = vmax.f32 %v6903_v10, %v6904_v49  ;;  %7089 = vmatmul.f32.gmra.mxu2 %v6991_v16  ;;  %v18437_v10 = vld [vmem:[#allocation48_spill] sm:$0xff]  ;;  %v6619_v49 = vadd.f32 %v6436_v5, %v6329_v48  ;;  %v6331_v46 = vadd.f32 %v18442_v2, %v5924_v47  ;;  %v5933_v47 = vadd.f32 %v18457_v60, %v18456_v36  ;;  %v8325_v36 = vld [vmem:[%s16518_s6] ss:$0 sm:$0xff] }
 0xaf5   : > { %7106 = vmatpush.msra.mxu3 %v1180_v35  ;;  %v6330_v54 = vadd.f32 %v18437_v10, %v6034_v12 }
 0xaf6   : > { %v6984_v59 = vmax.f32 %v6940_v51, %v6944_v62  ;;  %v18427_v51 = vld [vmem:[#allocation374_spill] sm:$0xff] }
 0xaf7   : > { %v6720_v63 = vpop.f32.mrf.mxu0  ;;  %v5918_v20 = vadd.f32 %v18427_v51, %v18426_v37  ;;  %7107 = vmatpush.msra.mxu3 %v1179_v22  ;;  %v6620_v16 = vadd.f32 %v6549_v31, %v6330_v54  ;;  %v18440_v62 = vld [vmem:[#allocation130_spill] sm:$0xff]  ;;  %v18447_v51 = vld [vmem:[#allocation304_spill] sm:$0xff] }
 0xaf8   : > { %v6988_v34 = vadd.f32 %v15968_v38, %v6984_v59  ;;  %v16373_v56 = vadd.f32 %v6720_v63, %v6615_v7  ;;  %v6037_v39 = vadd.f32 %v18441_v42, %v18440_v62  ;;  %v18446_v37 = vld [vmem:[#allocation350_spill] sm:$0xff]  ;;  %v18458_v42 = vld [vmem:[#allocation132_spill] sm:$0xff] }
 0xaf9   : > { %v6833_v24 = vpop.f32.mrf.mxu1  ;;  %v6327_v4 = vadd.f32 %v18430_v19, %v5918_v20  ;;  %7108 = vmatpush.msra.mxu3 %v1178_v18  ;;  %v6040_v20 = vadd.f32 %v18447_v51, %v18446_v37  ;;  %v18463_v37 = vld [vmem:[#allocation293_spill] sm:$0xff] }
 0xafa   : > { %v16375_v53 = vadd.f32 %v6833_v24, %v6616_v32  ;;  %v6992_v33 = vmax.f32 %v6988_v34, 0.0  ;;  %v6332_v59 = vadd.f32 %v18443_v8, %v6037_v39  ;;  %v6555_v32 = vpop.f32.mrf.mxu3  ;;  %v18459_v39 = vld [vmem:[#allocation306_spill] sm:$0xff] }
 0xafb   : > { %v6617_v52 = vadd.f32 %v6433_v44, %v6327_v4  ;;  %7109 = vmatpush.msra.mxu3 %v1177_v55  ;;  %v6439_v44 = vpop.f32.mrf.mxu2  ;;  %v6334_v18 = vadd.f32 %v18449_v21, %v6040_v20  ;;  %v6046_v2 = vadd.f32 %v18459_v39, %v18458_v42  ;;  %v18464_v20 = vld [vmem:[#allocation57_spill] sm:$0xff] }
 0xafc   : > { %v6945_v15 = vmax.f32 %v16373_v56, %v16375_v53  ;;  %7092 = vmatmul.f32.gmra.mxu2 %v6992_v33  ;;  %v6621_v7 = vadd.f32 %v6439_v44, %v6331_v46  ;;  %v6622_v63 = vadd.f32 %v6552_v40, %v6332_v59  ;;  %v18444_v53 = vld [vmem:[#allocation349_spill] sm:$0xff]  ;;  %v18445_v33 = vld [vmem:[#allocation300_spill] sm:$0xff] }
 0xafd   : > { %7110 = vmatpush.msra.mxu3 %v1176_v57  ;;  %v5927_v22 = vadd.f32 %v18445_v33, %v18444_v53  ;;  %v6624_v14 = vadd.f32 %v6555_v32, %v6334_v18  ;;  %v18450_v57 = vld [vmem:[#allocation79_spill] sm:$0xff]  ;;  %v18461_v59 = vld [vmem:[#allocation113_spill] sm:$0xff] }
 0xaff   : > { %v6723_v9 = vpop.f32.mrf.mxu0  ;;  %7111 = vmatpush.msra.mxu3 %v1175_v45  ;;  %v6333_v30 = vadd.f32 %v18448_v13, %v5927_v22  ;;  %v18453_v45 = vld [vmem:[#allocation218_spill] sm:$0xff] }
 0xb00   : > { %v16397_v43 = vadd.f32 %v6723_v9, %v6617_v52  ;;  %v18462_v22 = vld [vmem:[#allocation354_spill] sm:$0xff] }
 0xb01   : > { %v6836_v58 = vpop.f32.mrf.mxu1  ;;  %v5936_v51 = vadd.f32 %v18463_v37, %v18462_v22  ;;  %v18465_v13 = vld [vmem:[#allocation26_spill] sm:$0xff] }
 0xb02   : > { %v16399_v3 = vadd.f32 %v6836_v58, %v6618_v28  ;;  %v6558_v55 = vpop.f32.mrf.mxu3 }
 0xb03   : > { %v6442_v35 = vpop.f32.mrf.mxu2 }
 0xb04   : > { %v6946_v6 = vmax.f32 %v16397_v43, %v16399_v3  ;;  %v6623_v19 = vadd.f32 %v6442_v35, %v6333_v30  ;;  %v18451_v43 = vld [vmem:[#allocation183_spill] sm:$0xff]  ;;  %v6338_v35 = vadd.f32 %v18461_v59, %v6046_v2  ;;  %v6049_v30 = vadd.f32 %v18465_v13, %v18464_v20 }
 0xb05   : > { %v5930_v58 = vadd.f32 %v18451_v43, %v18450_v57  ;;  %v18452_v3 = vld [vmem:[#allocation171_spill] sm:$0xff] }
 0xb06   : > { %v6043_v0 = vadd.f32 %v18453_v45, %v18452_v3 }
 0xb07   : > { %v6726_v11 = vpop.f32.mrf.mxu0  ;;  %v6335_v26 = vadd.f32 %v18454_v50, %v5930_v58  ;;  %v8607_v50 = vld [vmem:[%s16516_s4] ss:$0 sm:$0xff] }
 0xb08   : > { %v16412_v23 = vadd.f32 %v6726_v11, %v6619_v49  ;;  %v6336_v12 = vadd.f32 %v18455_v25, %v6043_v0 }
 0xb09   : > { %v6839_v1 = vpop.f32.mrf.mxu1 }
 0xb0a   : > { %v16414_v17 = vadd.f32 %v6839_v1, %v6620_v16  ;;  %v6626_v48 = vadd.f32 %v6558_v55, %v6336_v12  ;;  %v6561_v62 = vpop.f32.mrf.mxu3  ;;  %v7131_v12 = vld [vmem:[%s16519_s7 + $0x10] sm:$0xff] }
 0xb0b   : > { %v6445_v4 = vpop.f32.mrf.mxu2 }
 0xb0c   : > { %v6947_v27 = vmax.f32 %v16412_v23, %v16414_v17  ;;  %v6625_v61 = vadd.f32 %v6445_v4, %v6335_v26  ;;  %v7136_v23 = vld [vmem:[%s16519_s7 + $0x38] sm:$0xff]  ;;  %v7134_v17 = vld [vmem:[%s16519_s7 + $0x28] sm:$0xff] }
 0xb0d   : > { %7162 = vmatpush.msra.mxu2 %v7136_v23 }
 0xb0f   : > { %v6729_v34 = vpop.f32.mrf.mxu0 }
 0xb10   : > { %v16424_v56 = vadd.f32 %v6729_v34, %v6621_v7 }
 0xb11   : > { %v6842_v24 = vpop.f32.mrf.mxu1 }
 0xb12   : > { %v16426_v5 = vadd.f32 %v6842_v24, %v6622_v63  ;;  %v6628_v63 = vadd.f32 %v6561_v62, %v6338_v35  ;;  %v6564_v4 = vpop.f32.mrf.mxu3 }
 0xb13   : > { %v6448_v16 = vpop.f32.mrf.mxu2 }
 0xb14   : > { %v6948_v31 = vmax.f32 %v16424_v56, %v16426_v5 }
 0xb17   : > { %v6732_v29 = vpop.f32.mrf.mxu0 }
 0xb18   : > { %v6913_v52 = vadd.f32 %v6732_v29, %v6623_v19  ;;  %v18466_v19 = vld [vmem:[#allocation154_spill] sm:$0xff] }
 0xb19   : > { %v6845_v28 = vpop.f32.mrf.mxu1 }
 0xb1a   : > { %v6914_v9 = vadd.f32 %v6845_v28, %v6624_v14  ;;  %v18467_v14 = vld [vmem:[#allocation30_spill] sm:$0xff] }
 0xb1b   : > { %v6451_v21 = vpop.f32.mrf.mxu2  ;;  %v6340_v29 = vadd.f32 %v18467_v14, %v6049_v30 }
 0xb1c   : > { %v6949_v41 = vmax.f32 %v6913_v52, %v6914_v9 }
 0xb1d   : > { %v6630_v28 = vadd.f32 %v6564_v4, %v6340_v29 }
 0xb1e   : > { %v6993_v44 = vmax.f32 %v6945_v15, %v6949_v41  ;;  %v18460_v15 = vld [vmem:[#allocation310_spill] sm:$0xff] }
 0xb1f   : > { %v6735_v10 = vpop.f32.mrf.mxu0  ;;  %v6337_v8 = vadd.f32 %v18460_v15, %v5933_v47 }
 0xb20   : > { %v6997_v40 = vadd.f32 %v15968_v38, %v6993_v44  ;;  %v6915_v54 = vadd.f32 %v6735_v10, %v6625_v61  ;;  %v7130_v44 = vld [vmem:[%s16519_s7 + $0x8] sm:$0xff]  ;;  %v7129_v10 = vld [vmem:[%s16519_s7] sm:$0xff] }
 0xb21   : > { %v6848_v49 = vpop.f32.mrf.mxu1  ;;  %v6627_v32 = vadd.f32 %v6448_v16, %v6337_v8 }
 0xb22   : > { %v7001_v11 = vmax.f32 %v6997_v40, 0.0  ;;  %v6916_v1 = vadd.f32 %v6848_v49, %v6626_v48 }
 0xb23   : > { %v7026_v61 = vpop.f32.mrf.mxu2 }
 0xb24   : > { %v6950_v46 = vmax.f32 %v6915_v54, %v6916_v1  ;;  %7112 = vmatmul.f32.vlgmr.msra.gmra.mxu3 %v7001_v11  ;;  %v7027_v47 = vadd.f32 %v8325_v36, %v7026_v61 }
 0xb26   : > { %v6994_v7 = vmax.f32 %v6946_v6, %v6950_v46  ;;  %v6339_v6 = vadd.f32 %v18466_v19, %v5936_v51  ;;  %v8326_v19 = vld [vmem:[%s16520_s8] ss:$0 sm:$0xff] }
 0xb27   : > { %v6738_v34 = vpop.f32.mrf.mxu0  ;;  %v7055_v40 = vpop.f32.mrf.mxu3 }
 0xb28   : > { %v6998_v56 = vadd.f32 %v15968_v38, %v6994_v7  ;;  %v6917_v24 = vadd.f32 %v6738_v34, %v6627_v32  ;;  %v6629_v52 = vadd.f32 %v6451_v21, %v6339_v6  ;;  %v7056_v62 = vadd.f32 %v7055_v40, %v7027_v47 }
 0xb29   : > { %v6851_v5 = vpop.f32.mrf.mxu1 }
 0xb2a   : > { %v6918_v53 = vadd.f32 %v6851_v5, %v6628_v63  ;;  %v7002_v33 = vmax.f32 %v6998_v56, 0.0 }
 0xb2b   : > { %v7029_v48 = vpop.f32.mrf.mxu2 }
 0xb2c   : > { %v6951_v18 = vmax.f32 %v6917_v24, %v6918_v53  ;;  %7115 = vmatmul.f32.gmra.mxu3 %v7002_v33  ;;  %v7030_v15 = vadd.f32 %v8325_v36, %v7029_v48 }
 0xb2e   : > { %v6995_v55 = vmax.f32 %v6947_v27, %v6951_v18  ;;  %v7133_v27 = vld [vmem:[%s16519_s7 + $0x20] sm:$0xff] }
 0xb2f   : > { %v6741_v9 = vpop.f32.mrf.mxu0  ;;  %v7058_v49 = vpop.f32.mrf.mxu3 }
 0xb30   : > { %v6999_v57 = vadd.f32 %v15968_v38, %v6995_v55  ;;  %v6919_v43 = vadd.f32 %v6741_v9, %v6629_v52  ;;  %v7135_v38 = vld [vmem:[%s16519_s7 + $0x30] sm:$0xff]  ;;  %v7059_v59 = vadd.f32 %v7058_v49, %v7030_v15 }
 0xb31   : > { %v6854_v58 = vpop.f32.mrf.mxu1  ;;  %7163 = vmatpush.msra.mxu2 %v7135_v38 }
 0xb32   : > { %v6920_v3 = vadd.f32 %v6854_v58, %v6630_v28  ;;  %v7003_v45 = vmax.f32 %v6999_v57, 0.0 }
 0xb33   : > { %7164 = vmatpush.msra.mxu2 %v7134_v17  ;;  %v7032_v54 = vpop.f32.mrf.mxu2 }
 0xb34   : > { %v6952_v0 = vmax.f32 %v6919_v43, %v6920_v3  ;;  %7118 = vmatmul.f32.gmra.mxu3 %v7003_v45  ;;  %v7033_v34 = vadd.f32 %v8325_v36, %v7032_v54 }
 0xb35   : > { %7165 = vmatpush.msra.mxu2 %v7133_v27 }
 0xb36   : > { %v6996_v41 = vmax.f32 %v6948_v31, %v6952_v0  ;;  %v7132_v31 = vld [vmem:[%s16519_s7 + $0x18] sm:$0xff] }
 0xb37   : > { %7166 = vmatpush.msra.mxu2 %v7132_v31  ;;  %v7061_v11 = vpop.f32.mrf.mxu3 }
 0xb38   : > { %v7000_v26 = vadd.f32 %v8607_v50, %v6996_v41  ;;  %v7062_v24 = vadd.f32 %v7061_v11, %v7033_v34 }
 0xb39   : > { %7167 = vmatpush.msra.mxu2 %v7131_v12 }
 0xb3a   : > { %v7004_v25 = vmax.f32 %v7000_v26, 0.0 }
 0xb3b   : > { %7168 = vmatpush.msra.mxu2 %v7130_v44  ;;  %v7035_v16 = vpop.f32.mrf.mxu2 }
 0xb3c   : > { %7121 = vmatmul.f32.gmra.mxu3 %v7004_v25  ;;  %v7036_v22 = vadd.f32 %v8325_v36, %v7035_v16 }
 0xb3d   : > { %7169 = vmatpush.msra.mxu2 %v7129_v10 }
 0xb3f   : > { %v7064_v60 = vpop.f32.mrf.mxu3 }
 0xb40   : > { %v7065_v20 = vadd.f32 %v7064_v60, %v7036_v22 }
 0xb67   : > { %v7084_v1 = vpop.f32.mrf.mxu2 }
 0xb68   : > { %v7085_v42 = vadd.f32 %v7084_v1, %v7056_v62 }
 0xb6f   : > { %v7087_v39 = vpop.f32.mrf.mxu2 }
 0xb70   : > { %v7088_v35 = vadd.f32 %v7087_v39, %v7059_v59 }
 0xb77   : > { %v7090_v63 = vpop.f32.mrf.mxu2 }
 0xb78   : > { %v7091_v5 = vadd.f32 %v7090_v63, %v7062_v24 }
 0xb7f   : > { %v7093_v51 = vpop.f32.mrf.mxu2 }
 0xb80   : > { %v7094_v13 = vadd.f32 %v7093_v51, %v7065_v20 }
 0xba7   : > { %v7113_v2 = vpop.f32.mrf.mxu3 }
 0xba8   : > { %v7114_v46 = vadd.f32 %v7113_v2, %v7085_v42 }
 0xbaa   : > { %v7125_v8 = vmax.f32 %v7114_v46, 0.0 }
 0xbac   : > { %8278 = vmatmul.msk.f32.vlgmr.msra.gmra.mxu2 %vm7141_vm2, %v7125_v8 }
 0xbaf   : > { %v7116_v7 = vpop.f32.mrf.mxu3 }
 0xbb0   : > { %v7117_v32 = vadd.f32 %v7116_v7, %v7088_v35 }
 0xbb2   : > { %v7126_v56 = vmax.f32 %v7117_v32, 0.0 }
 0xbb4   : > { %8279 = vmatmul.msk.f32.gmra.mxu2 %vm7141_vm2, %v7126_v56 }
 0xbb7   : > { %v7119_v53 = vpop.f32.mrf.mxu3 }
 0xbb8   : > { %v7120_v33 = vadd.f32 %v7119_v53, %v7091_v5 }
 0xbba   : > { %v7127_v37 = vmax.f32 %v7120_v33, 0.0 }
 0xbbc   : > { %8280 = vmatmul.msk.f32.gmra.mxu2 %vm7141_vm2, %v7127_v37 }
 0xbbf   : > { %v7122_v30 = vpop.f32.mrf.mxu3 }
 0xbc0   : > { %v7123_v21 = vadd.f32 %v7122_v30, %v7094_v13 }
 0xbc2   : > { %v7128_v18 = vmax.f32 %v7123_v21, 0.0 }
 0xbc4   : > { %8281 = vmatmul.msk.f32.gmra.mxu2 %vm7141_vm2, %v7128_v18 }
 0xc2f   : > { %v7171_v6 = vpop.f32.mrf.mxu2 }
 0xc30   : > { %v7172_v4 = vadd.f32 %v8326_v19, %v7171_v6 }
 0xc32   : > { %7183 = vmax.xlane.f32.xlu0 %v7172_v4 }
 0xc37   : > { %v7174_v14 = vpop.f32.mrf.mxu2 }
 0xc38   : > { %v7175_v29 = vadd.f32 %v8326_v19, %v7174_v14 }
 0xc3a   : > { %7185 = vmax.xlane.f32.xlu0 %v7175_v29 }
 0xc3f   : > { %v7177_v55 = vpop.f32.mrf.mxu2 }
 0xc40   : > { %v7178_v52 = vadd.f32 %v8326_v19, %v7177_v55 }
 0xc42   : > { %7187 = vmax.xlane.f32.xlu1 %v7178_v52 }
 0xc47   : > { %v7180_v28 = vpop.f32.mrf.mxu2 }
 0xc48   : > { %v7181_v9 = vadd.f32 %v8326_v19, %v7180_v28 }
 0xc4a   : > { %7189 = vmax.xlane.f32.xlu1 %v7181_v9 }
 0xca5   : > { %v7184_v57 = vpop.xlane.xlu0 %7183 }
 0xca6   : > { %v7191_v43 = vsub.f32 %v7172_v4, %v7184_v57 }
 0xca8   : > { %v7195_v58 = vmul.f32 1.442695, %v7191_v43 }
 0xcaa   : > { %8327 = vpow2.f32 %v7195_v58 }
 0xcad   : > { %v7186_v3 = vpop.xlane.xlu0 %7185 }
 0xcae   : > { %v7192_v45 = vsub.f32 %v7175_v29, %v7186_v3 }
 0xcb0   : > { %v8328_v0 = vpop.eup %8327  ;;  %v7197_v41 = vmul.f32 1.442695, %v7192_v45 }
 0xcb1   : > { %7203 = vadd.xlane.f32.xlu2 %v8328_v0 }
 0xcb2   : > { %8329 = vpow2.f32 %v7197_v41 }
 0xcb5   : > { %v7188_v50 = vpop.xlane.xlu1 %7187 }
 0xcb6   : > { %v7193_v26 = vsub.f32 %v7178_v52, %v7188_v50 }
 0xcb8   : > { %v8330_v25 = vpop.eup %8329  ;;  %v7199_v23 = vmul.f32 1.442695, %v7193_v26 }
 0xcb9   : > { %7205 = vadd.xlane.f32.xlu2 %v8330_v25 }
 0xcba   : > { %8331 = vpow2.f32 %v7199_v23 }
 0xcbd   : > { %v7190_v38 = vpop.xlane.xlu1 %7189 }
 0xcbe   : > { %v7194_v17 = vsub.f32 %v7181_v9, %v7190_v38 }
 0xcc0   : > { %v8332_v27 = vpop.eup %8331  ;;  %v7201_v31 = vmul.f32 1.442695, %v7194_v17 }
 0xcc1   : > { %7207 = vadd.xlane.f32.xlu0 %v8332_v27 }
 0xcc2   : > { %8333 = vpow2.f32 %v7201_v31 }
 0xcc8   : > { %v8334_v12 = vpop.eup %8333 }
 0xcc9   : > { %7209 = vadd.xlane.f32.xlu1 %v8334_v12 }
 0xd24   : > { %v7204_v44 = vpop.xlane.xlu2 %7203 }
 0xd25   : > { %8335 = vlog2.f32 %v7204_v44 }
 0xd2b   : > { %v8336_v61 = vpop.eup %8335 }
 0xd2c   : > { %v7212_v48 = vmul.f32 0.6931472, %v8336_v61  ;;  %v7206_v40 = vpop.xlane.xlu2 %7205 }
 0xd2d   : > { %8337 = vlog2.f32 %v7206_v40 }
 0xd2e   : > { %v7219_v10 = vsub.f32 %v7191_v43, %v7212_v48 }
 0xd30   : > { %7223 = vst [vmem:[%s813_s20] sm:$0xff] %v7219_v10 }
 0xd33   : > { %v8338_v54 = vpop.eup %8337 }
 0xd34   : > { %v7214_v49 = vmul.f32 0.6931472, %v8338_v54  ;;  %v7208_v16 = vpop.xlane.xlu0 %7207 }
 0xd35   : > { %8339 = vlog2.f32 %v7208_v16 }
 0xd36   : > { %v7220_v11 = vsub.f32 %v7192_v45, %v7214_v49 }
 0xd38   : > { %7224 = vst [vmem:[%s813_s20 + $0x8] sm:$0xff] %v7220_v11 }
 0xd3b   : > { %v8340_v1 = vpop.eup %8339 }
 0xd3c   : > { %v7216_v36 = vmul.f32 0.6931472, %v8340_v1  ;;  %v7210_v60 = vpop.xlane.xlu1 %7209 }
 0xd3d   : > { %8341 = vlog2.f32 %v7210_v60 }
 0xd3e   : > { %v7221_v47 = vsub.f32 %v7193_v26, %v7216_v36 }
 0xd40   : > { %7225 = vst [vmem:[%s813_s20 + $0x10] sm:$0xff] %v7221_v47 }
 0xd43   : > { %v8342_v62 = vpop.eup %8341 }
 0xd44   : > { %v7218_v42 = vmul.f32 0.6931472, %v8342_v62 }
 0xd46   : > { %v7222_v39 = vsub.f32 %v7194_v17, %v7218_v42 }
 0xd48   : > { %7226 = vst [vmem:[%s813_s20 + $0x18] sm:$0xff] %v7222_v39 }
 0xd49 PF: > { %p16_p9 = scmp.ge.s32.totalorder %s8699_s13, 4   ;;  %s18468_s30 = smov %s8626_s10 }
 0xd4a   : > { %s18469_s10 = smov %s8708_s16  ;;  %s18470_s11 = smov %s8699_s13 }
 0xd4b   :  { %18 = sbr.rel (!%p16_p9) target bundleno = 2 (0x2), region = 129 }

</bundles_post_ra>
